<compile_context>
chip_gen: v7x
topology: tpu7x:2x2x1
jax: 0.10.0
libtpu: 0.0.40
codegen_flags: <defaults>
</compile_context>

<pallas_src>
import functools

import jax
import jax.numpy as jnp
from jax import lax
from jax.experimental import pallas as pl
from jax.experimental.pallas import tpu as pltpu

LN_EPS = 1e-5


# ----------------------------- in-kernel helpers ----------------------------

def _layernorm(z, g, b):
    mu = jnp.mean(z, axis=-1, keepdims=True)
    var = jnp.mean(jnp.square(z - mu), axis=-1, keepdims=True)
    return (z - mu) * lax.rsqrt(var + LN_EPS) * g + b


def _embed_lookup(ids_ref, emb_ref):
    ids = ids_ref[...]                              # (L, 1) int32
    emb = emb_ref[...]                              # (V, E) f32
    L = ids.shape[0]
    V = emb.shape[0]
    onehot = (ids == lax.broadcasted_iota(jnp.int32, (L, V), 1)).astype(jnp.float32)
    return jnp.dot(onehot, emb, preferred_element_type=jnp.float32)


def _mha_block(q, k, v, num_heads):
    # q: (Lq, E), k/v: (Lk, E) for ONE batch element; heads are slices along E.
    # Static head loop -> pure 2-D matmuls, no in-kernel 4-D transposes.
    _, E = q.shape
    dh = E // num_heads
    scale = 1.0 / (dh ** 0.5)
    outs = []
    for h in range(num_heads):
        lo = h * dh
        qh = q[:, lo:lo + dh] * scale
        kh = k[:, lo:lo + dh]
        vh = v[:, lo:lo + dh]
        s = lax.dot_general(qh, kh, (((1,), (1,)), ((), ())),
                            preferred_element_type=jnp.float32)      # (Lq, Lk)
        s = s - jnp.max(s, axis=-1, keepdims=True)
        p = jnp.exp(s)
        p = p * pl.reciprocal(jnp.sum(p, axis=-1, keepdims=True), approx=True)
        outs.append(jnp.dot(p, vh, preferred_element_type=jnp.float32))
    return jnp.concatenate(outs, axis=-1)                             # (Lq, E)


# ----------------------------- Pallas kernels ------------------------------

def _encoder_layer_kernel(*refs, num_heads, embed_input, final_norm):
    it = iter(refs)
    if embed_input:
        ids_ref, emb_ref = next(it), next(it)
        x = _embed_lookup(ids_ref, emb_ref)                           # (L, E)
    else:
        x = next(it)[...]                                             # (L, E)
    (sa_w, sa_b, so_w, so_b, ln1_g, ln1_b,
     ff1_w, ff1_b, ff2_w, ff2_b, ln2_g, ln2_b) = [next(it) for _ in range(12)]
    if final_norm:
        fin_g, fin_b = next(it), next(it)
    o_ref = next(it)

    E = x.shape[-1]
    # fused QKV projection (single (E, 3E) matmul)
    qkv = jnp.dot(x, sa_w[...], preferred_element_type=jnp.float32) + sa_b[...]
    a = _mha_block(qkv[:, :E], qkv[:, E:2 * E], qkv[:, 2 * E:], num_heads)
    a = jnp.dot(a, so_w[...], preferred_element_type=jnp.float32) + so_b[...]
    x = _layernorm(x + a, ln1_g[...], ln1_b[...])
    # feed-forward
    h = jnp.dot(x, ff1_w[...], preferred_element_type=jnp.float32) + ff1_b[...]
    h = jnp.maximum(h, 0.0)
    h = jnp.dot(h, ff2_w[...], preferred_element_type=jnp.float32) + ff2_b[...]
    x = _layernorm(x + h, ln2_g[...], ln2_b[...])
    if final_norm:          # fused encoder-stack final LayerNorm (last layer only)
        x = _layernorm(x, fin_g[...], fin_b[...])
    o_ref[...] = x


def _decoder_layer_kernel(*refs, num_heads, embed_input, head):
    it = iter(refs)
    if embed_input:
        ids_ref, emb_ref = next(it), next(it)
        x = _embed_lookup(ids_ref, emb_ref)                           # (T, E)
    else:
        x = next(it)[...]                                             # (T, E)
    mem = next(it)[...]                                               # (S, E)
    (sa_w, sa_b, so_w, so_b, ln1_g, ln1_b,
     caq_w, caq_b, cakv_w, cakv_b, co_w, co_b, ln2_g, ln2_b,
     ff1_w, ff1_b, ff2_w, ff2_b, ln3_g, ln3_b) = [next(it) for _ in range(20)]
    if head:
        fin_g, fin_b, fc_w, fc_b = [next(it) for _ in range(4)]
    o_ref = next(it)

    E = x.shape[-1]
    # self-attention (fused QKV matmul)
    qkv = jnp.dot(x, sa_w[...], preferred_element_type=jnp.float32) + sa_b[...]
    a = _mha_block(qkv[:, :E], qkv[:, E:2 * E], qkv[:, 2 * E:], num_heads)
    a = jnp.dot(a, so_w[...], preferred_element_type=jnp.float32) + so_b[...]
    x = _layernorm(x + a, ln1_g[...], ln1_b[...])
    # cross-attention (q from decoder, fused KV projection from memory)
    q = jnp.dot(x, caq_w[...], preferred_element_type=jnp.float32) + caq_b[...]
    kv = jnp.dot(mem, cakv_w[...], preferred_element_type=jnp.float32) + cakv_b[...]
    c = _mha_block(q, kv[:, :E], kv[:, E:], num_heads)
    c = jnp.dot(c, co_w[...], preferred_element_type=jnp.float32) + co_b[...]
    x = _layernorm(x + c, ln2_g[...], ln2_b[...])
    # feed-forward
    h = jnp.dot(x, ff1_w[...], preferred_element_type=jnp.float32) + ff1_b[...]
    h = jnp.maximum(h, 0.0)
    h = jnp.dot(h, ff2_w[...], preferred_element_type=jnp.float32) + ff2_b[...]
    x = _layernorm(x + h, ln3_g[...], ln3_b[...])
    if head:                # fused decoder-stack final LayerNorm + vocab projection
        x = _layernorm(x, fin_g[...], fin_b[...])
        x = jnp.dot(x, fc_w[...], preferred_element_type=jnp.float32) + fc_b[...]
    o_ref[...] = x


# ------------------------------ op wrappers --------------------------------

def _full_spec(w):
    return pl.BlockSpec(w.shape, lambda n: (0, 0))


def encoder_layer(x_or_ids, p, num_heads, batch, emb_table=None, final_norm=None):
    embed_input = emb_table is not None
    weights = [p["sa_w"], p["sa_b"], p["so_w"], p["so_b"],
               p["ln1_g"], p["ln1_b"],
               p["ff1_w"], p["ff1_b"], p["ff2_w"], p["ff2_b"],
               p["ln2_g"], p["ln2_b"]]
    if final_norm is not None:
        weights += list(final_norm)
    E = p["so_w"].shape[0]
    M = x_or_ids.shape[0]
    L = M // batch
    if embed_input:
        in_specs = [pl.BlockSpec((L, 1), lambda n: (n, 0)), _full_spec(emb_table)]
        args = [x_or_ids, emb_table]
    else:
        in_specs = [pl.BlockSpec((L, E), lambda n: (n, 0))]
        args = [x_or_ids]
    in_specs += [_full_spec(w) for w in weights]
    args += weights
    kern = functools.partial(_encoder_layer_kernel, num_heads=num_heads,
                             embed_input=embed_input,
                             final_norm=final_norm is not None)
    return pl.pallas_call(
        kern,
        out_shape=jax.ShapeDtypeStruct((M, E), jnp.float32),
        grid=(batch,),
        in_specs=in_specs,
        out_specs=pl.BlockSpec((L, E), lambda n: (n, 0)),
        compiler_params=pltpu.CompilerParams(dimension_semantics=("parallel",)),
    )(*args)


def decoder_layer(x_or_ids, mem, p, num_heads, batch, emb_table=None, head=None):
    embed_input = emb_table is not None
    weights = [p["sa_w"], p["sa_b"], p["so_w"], p["so_b"], p["ln1_g"], p["ln1_b"],
               p["ca_q_w"], p["ca_q_b"], p["ca_kv_w"], p["ca_kv_b"],
               p["co_w"], p["co_b"], p["ln2_g"], p["ln2_b"],
               p["ff1_w"], p["ff1_b"], p["ff2_w"], p["ff2_b"],
               p["ln3_g"], p["ln3_b"]]
    if head is not None:
        weights += list(head)            # (dec_norm_g, dec_norm_b, fc_w_pad, fc_b_pad)
    E = p["so_w"].shape[0]
    M = x_or_ids.shape[0]
    T = M // batch
    S = mem.shape[0] // batch
    mem_spec = pl.BlockSpec((S, E), lambda n: (n, 0))
    if embed_input:
        in_specs = [pl.BlockSpec((T, 1), lambda n: (n, 0)), _full_spec(emb_table)]
        args = [x_or_ids, emb_table]
    else:
        in_specs = [pl.BlockSpec((T, E), lambda n: (n, 0))]
        args = [x_or_ids]
    in_specs += [mem_spec] + [_full_spec(w) for w in weights]
    args += [mem] + weights
    out_dim = head[2].shape[1] if head is not None else E
    kern = functools.partial(_decoder_layer_kernel, num_heads=num_heads,
                             embed_input=embed_input, head=head is not None)
    return pl.pallas_call(
        kern,
        out_shape=jax.ShapeDtypeStruct((M, out_dim), jnp.float32),
        grid=(batch,),
        in_specs=in_specs,
        out_specs=pl.BlockSpec((T, out_dim), lambda n: (n, 0)),
        compiler_params=pltpu.CompilerParams(dimension_semantics=("parallel",)),
    )(*args)


# --------------------------------- forward ----------------------------------

def text_generation_transformer(params, src_ids, tgt_ids, num_heads):
    S, N = src_ids.shape
    T, _ = tgt_ids.shape
    V, E = params["embedding"].shape

    # token ids in batch-major (n, l) row order; embedding is fused into layer 0
    src_flat = jnp.transpose(src_ids).reshape(N * S, 1).astype(jnp.int32)
    tgt_flat = jnp.transpose(tgt_ids).reshape(N * T, 1).astype(jnp.int32)

    # pad vocab to a 128-lane multiple so the fused logits store is lane-dense
    v_pad = ((V + 127) // 128) * 128
    fc_w, fc_b = params["fc_w"], params["fc_b"]
    if v_pad != V:
        fc_w = jnp.pad(fc_w, ((0, 0), (0, v_pad - V)))
        fc_b = jnp.pad(fc_b, ((0, 0), (0, v_pad - V)))

    n_enc = len(params["encoder_layers"])
    mem = src_flat
    for i, lp in enumerate(params["encoder_layers"]):
        fin = ((params["enc_norm_g"], params["enc_norm_b"])
               if i == n_enc - 1 else None)
        mem = encoder_layer(mem, lp, num_heads, N,
                            emb_table=params["embedding"] if i == 0 else None,
                            final_norm=fin)

    n_dec = len(params["decoder_layers"])
    out = tgt_flat
    for i, lp in enumerate(params["decoder_layers"]):
        hd = ((params["dec_norm_g"], params["dec_norm_b"], fc_w, fc_b)
              if i == n_dec - 1 else None)
        out = decoder_layer(out, mem, lp, num_heads, N,
                            emb_table=params["embedding"] if i == 0 else None,
                            head=hd)

    logits = out[:, :V].reshape(N, T, V)
    return jnp.transpose(logits, (1, 0, 2))                      # (T, N, V) seq-first


# ------------------------------ parameter init ------------------------------
# All weights stored pre-transposed (in, out) so kernels compute x @ W directly.

def _init_enc_layer(key, e, dff):
    k1, k2, k3, k4 = jax.random.split(key, 4)
    return {
        "sa_w": 0.02 * jax.random.normal(k1, (e, 3 * e), jnp.float32),
        "sa_b": jnp.zeros((1, 3 * e), jnp.float32),
        "so_w": 0.02 * jax.random.normal(k2, (e, e), jnp.float32),
        "so_b": jnp.zeros((1, e), jnp.float32),
        "ln1_g": jnp.ones((1, e), jnp.float32), "ln1_b": jnp.zeros((1, e), jnp.float32),
        "ff1_w": 0.02 * jax.random.normal(k3, (e, dff), jnp.float32),
        "ff1_b": jnp.zeros((1, dff), jnp.float32),
        "ff2_w": 0.02 * jax.random.normal(k4, (dff, e), jnp.float32),
        "ff2_b": jnp.zeros((1, e), jnp.float32),
        "ln2_g": jnp.ones((1, e), jnp.float32), "ln2_b": jnp.zeros((1, e), jnp.float32),
    }


def _init_dec_layer(key, e, dff):
    k1, k2, k3, k4, k5, k6, k7 = jax.random.split(key, 7)
    return {
        "sa_w": 0.02 * jax.random.normal(k1, (e, 3 * e), jnp.float32),
        "sa_b": jnp.zeros((1, 3 * e), jnp.float32),
        "so_w": 0.02 * jax.random.normal(k2, (e, e), jnp.float32),
        "so_b": jnp.zeros((1, e), jnp.float32),
        "ln1_g": jnp.ones((1, e), jnp.float32), "ln1_b": jnp.zeros((1, e), jnp.float32),
        "ca_q_w": 0.02 * jax.random.normal(k3, (e, e), jnp.float32),
        "ca_q_b": jnp.zeros((1, e), jnp.float32),
        "ca_kv_w": 0.02 * jax.random.normal(k4, (e, 2 * e), jnp.float32),
        "ca_kv_b": jnp.zeros((1, 2 * e), jnp.float32),
        "co_w": 0.02 * jax.random.normal(k5, (e, e), jnp.float32),
        "co_b": jnp.zeros((1, e), jnp.float32),
        "ln2_g": jnp.ones((1, e), jnp.float32), "ln2_b": jnp.zeros((1, e), jnp.float32),
        "ff1_w": 0.02 * jax.random.normal(k6, (e, dff), jnp.float32),
        "ff1_b": jnp.zeros((1, dff), jnp.float32),
        "ff2_w": 0.02 * jax.random.normal(k7, (dff, e), jnp.float32),
        "ff2_b": jnp.zeros((1, e), jnp.float32),
        "ln3_g": jnp.ones((1, e), jnp.float32), "ln3_b": jnp.zeros((1, e), jnp.float32),
    }


def init_params(key, vocab_size, embed_size, num_layers, dim_feedforward=2048):
    keys = jax.random.split(key, 2 * num_layers + 2)
    return {
        "embedding": 0.02 * jax.random.normal(keys[0], (vocab_size, embed_size), jnp.float32),
        "encoder_layers": [_init_enc_layer(keys[1 + i], embed_size, dim_feedforward)
                           for i in range(num_layers)],
        "decoder_layers": [_init_dec_layer(keys[1 + num_layers + i], embed_size, dim_feedforward)
                           for i in range(num_layers)],
        "enc_norm_g": jnp.ones((1, embed_size), jnp.float32),
        "enc_norm_b": jnp.zeros((1, embed_size), jnp.float32),
        "dec_norm_g": jnp.ones((1, embed_size), jnp.float32),
        "dec_norm_b": jnp.zeros((1, embed_size), jnp.float32),
        "fc_w": 0.02 * jax.random.normal(keys[-1], (embed_size, vocab_size), jnp.float32),
        "fc_b": jnp.zeros((1, vocab_size), jnp.float32),
    }


# ----------------------------------- main -----------------------------------

if __name__ == "__main__":
    VOCAB, EMBED, HEADS, LAYERS = 64, 32, 4, 2
    S, T, N = 8, 8, 2          # src seq len, tgt seq len, batch

    root = jax.random.PRNGKey(0)
    k_params, k_src, k_tgt = jax.random.split(root, 3)

    params = init_params(k_params, VOCAB, EMBED, LAYERS)
    src_ids = jax.random.randint(k_src, (S, N), 0, VOCAB, dtype=jnp.int32)
    tgt_ids = jax.random.randint(k_tgt, (T, N), 0, VOCAB, dtype=jnp.int32)

    fwd = jax.jit(functools.partial(text_generation_transformer, num_heads=HEADS))
    logits = jax.block_until_ready(fwd(params, src_ids, tgt_ids))

    assert logits.shape == (T, N, VOCAB), logits.shape
    assert bool(jnp.all(jnp.isfinite(logits)))
    print("KERNEL_OK")
</pallas_src>

<mosaic_0001>
module attributes {stable_mosaic.version = 11 : i64} {
  func.func @_encoder_layer_kernel(%arg0: i32, %arg1: memref<8x1xi32, #tpu.memory_space<vmem>>, %arg2: memref<64x32xf32, #tpu.memory_space<vmem>>, %arg3: memref<32x96xf32, #tpu.memory_space<vmem>>, %arg4: memref<1x96xf32, #tpu.memory_space<vmem>>, %arg5: memref<32x32xf32, #tpu.memory_space<vmem>>, %arg6: memref<1x32xf32, #tpu.memory_space<vmem>>, %arg7: memref<1x32xf32, #tpu.memory_space<vmem>>, %arg8: memref<1x32xf32, #tpu.memory_space<vmem>>, %arg9: memref<32x2048xf32, #tpu.memory_space<vmem>>, %arg10: memref<1x2048xf32, #tpu.memory_space<vmem>>, %arg11: memref<2048x32xf32, #tpu.memory_space<vmem>>, %arg12: memref<1x32xf32, #tpu.memory_space<vmem>>, %arg13: memref<1x32xf32, #tpu.memory_space<vmem>>, %arg14: memref<1x32xf32, #tpu.memory_space<vmem>>, %arg15: memref<8x32xf32, #tpu.memory_space<vmem>>) attributes {dimension_semantics = [#tpu.dimension_semantics<parallel>], iteration_bounds = array<i64: 2>, scalar_prefetch = 0 : i64, scratch_operands = 0 : i64, tpu.core_type = #tpu.core_type<tc>, window_params = [{transform_indices = @transform_0, window_bounds = array<i64: 8, 1>}, {pipeline_mode = #tpu.pipeline_mode<synchronous>, transform_indices = @transform_1, window_bounds = array<i64: 64, 32>}, {pipeline_mode = #tpu.pipeline_mode<synchronous>, transform_indices = @transform_2, window_bounds = array<i64: 32, 96>}, {pipeline_mode = #tpu.pipeline_mode<synchronous>, transform_indices = @transform_3, window_bounds = array<i64: 1, 96>}, {pipeline_mode = #tpu.pipeline_mode<synchronous>, transform_indices = @transform_4, window_bounds = array<i64: 32, 32>}, {pipeline_mode = #tpu.pipeline_mode<synchronous>, transform_indices = @transform_5, window_bounds = array<i64: 1, 32>}, {pipeline_mode = #tpu.pipeline_mode<synchronous>, transform_indices = @transform_6, window_bounds = array<i64: 1, 32>}, {pipeline_mode = #tpu.pipeline_mode<synchronous>, transform_indices = @transform_7, window_bounds = array<i64: 1, 32>}, {pipeline_mode = #tpu.pipeline_mode<synchronous>, transform_indices = @transform_8, window_bounds = array<i64: 32, 2048>}, {pipeline_mode = #tpu.pipeline_mode<synchronous>, transform_indices = @transform_9, window_bounds = array<i64: 1, 2048>}, {pipeline_mode = #tpu.pipeline_mode<synchronous>, transform_indices = @transform_10, window_bounds = array<i64: 2048, 32>}, {pipeline_mode = #tpu.pipeline_mode<synchronous>, transform_indices = @transform_11, window_bounds = array<i64: 1, 32>}, {pipeline_mode = #tpu.pipeline_mode<synchronous>, transform_indices = @transform_12, window_bounds = array<i64: 1, 32>}, {pipeline_mode = #tpu.pipeline_mode<synchronous>, transform_indices = @transform_13, window_bounds = array<i64: 1, 32>}, {transform_indices = @transform_14, window_bounds = array<i64: 8, 32>}]} {
    %c0 = arith.constant 0 : index
    %c0_0 = arith.constant 0 : index
    %0 = vector.load %arg1[%c0, %c0_0] : memref<8x1xi32, #tpu.memory_space<vmem>>, vector<8x1xi32>
    %c0_1 = arith.constant 0 : index
    %c0_2 = arith.constant 0 : index
    %1 = vector.load %arg2[%c0_1, %c0_2] : memref<64x32xf32, #tpu.memory_space<vmem>>, vector<64x32xf32>
    %2 = tpu.iota {dimensions = array<i32: 1>} : vector<8x64xi32>
    %3 = vector.broadcast %0 : vector<8x1xi32> to vector<8x64xi32>
    %4 = arith.cmpi eq, %3, %2 : vector<8x64xi32>
    %5 = arith.extui %4 : vector<8x64xi1> to vector<8x64xi32>
    %6 = arith.sitofp %5 : vector<8x64xi32> to vector<8x64xf32>
    %cst = arith.constant dense<0.000000e+00> : vector<8x32xf32>
    %7 = tpu.matmul %6, %1, %cst {dimension_numbers = #tpu.dot_dimension_numbers<[1], [0], [0], [1], [0, 0, 1, 1], [], []>} : vector<8x64xf32>, vector<64x32xf32>, vector<8x32xf32> -> vector<8x32xf32>
    %c0_3 = arith.constant 0 : index
    %c0_4 = arith.constant 0 : index
    %8 = vector.load %arg3[%c0_3, %c0_4] : memref<32x96xf32, #tpu.memory_space<vmem>>, vector<32x96xf32>
    %cst_5 = arith.constant dense<0.000000e+00> : vector<8x96xf32>
    %9 = tpu.matmul %7, %8, %cst_5 {dimension_numbers = #tpu.dot_dimension_numbers<[1], [0], [0], [1], [0, 0, 1, 1], [], []>} : vector<8x32xf32>, vector<32x96xf32>, vector<8x96xf32> -> vector<8x96xf32>
    %c0_6 = arith.constant 0 : index
    %c0_7 = arith.constant 0 : index
    %10 = vector.load %arg4[%c0_6, %c0_7] : memref<1x96xf32, #tpu.memory_space<vmem>>, vector<1x96xf32>
    %11 = vector.broadcast %10 : vector<1x96xf32> to vector<8x96xf32>
    %12 = arith.addf %9, %11 : vector<8x96xf32>
    %13 = vector.extract_strided_slice %12 {offsets = [0, 0], sizes = [8, 32], strides = [1, 1]} : vector<8x96xf32> to vector<8x32xf32>
    %14 = vector.extract_strided_slice %12 {offsets = [0, 32], sizes = [8, 32], strides = [1, 1]} : vector<8x96xf32> to vector<8x32xf32>
    %15 = vector.extract_strided_slice %12 {offsets = [0, 64], sizes = [8, 32], strides = [1, 1]} : vector<8x96xf32> to vector<8x32xf32>
    %16 = vector.extract_strided_slice %13 {offsets = [0, 0], sizes = [8, 8], strides = [1, 1]} : vector<8x32xf32> to vector<8x8xf32>
    %cst_8 = arith.constant 0.353553385 : f32
    %17 = vector.broadcast %cst_8 : f32 to vector<8x8xf32>
    %18 = arith.mulf %16, %17 : vector<8x8xf32>
    %19 = vector.extract_strided_slice %14 {offsets = [0, 0], sizes = [8, 8], strides = [1, 1]} : vector<8x32xf32> to vector<8x8xf32>
    %20 = vector.extract_strided_slice %15 {offsets = [0, 0], sizes = [8, 8], strides = [1, 1]} : vector<8x32xf32> to vector<8x8xf32>
    %cst_9 = arith.constant dense<0.000000e+00> : vector<8x8xf32>
    %21 = tpu.matmul %18, %19, %cst_9 {dimension_numbers = #tpu.dot_dimension_numbers<[1], [1], [0], [0], [0, 0, 1, 0], [], []>} : vector<8x8xf32>, vector<8x8xf32>, vector<8x8xf32> -> vector<8x8xf32>
    %cst_10 = arith.constant dense<0xFF800000> : vector<8xf32>
    %22 = vector.multi_reduction <maximumf>, %21, %cst_10 [1] : vector<8x8xf32> to vector<8xf32>
    %23 = vector.shape_cast %22 : vector<8xf32> to vector<8x1xf32>
    %24 = vector.broadcast %23 : vector<8x1xf32> to vector<8x8xf32>
    %25 = arith.subf %21, %24 : vector<8x8xf32>
    %26 = math.exp %25 : vector<8x8xf32>
    %cst_11 = arith.constant dense<0.000000e+00> : vector<8xf32>
    %27 = vector.multi_reduction <add>, %26, %cst_11 [1] : vector<8x8xf32> to vector<8xf32>
    %28 = vector.shape_cast %27 : vector<8xf32> to vector<8x1xf32>
    %29 = tpu.reciprocal %28 {approx = true} : vector<8x1xf32> -> vector<8x1xf32>
    %30 = vector.broadcast %29 : vector<8x1xf32> to vector<8x8xf32>
    %31 = arith.mulf %26, %30 : vector<8x8xf32>
    %cst_12 = arith.constant dense<0.000000e+00> : vector<8x8xf32>
    %32 = tpu.matmul %31, %20, %cst_12 {dimension_numbers = #tpu.dot_dimension_numbers<[1], [0], [0], [1], [0, 0, 1, 1], [], []>} : vector<8x8xf32>, vector<8x8xf32>, vector<8x8xf32> -> vector<8x8xf32>
    %33 = vector.extract_strided_slice %13 {offsets = [0, 8], sizes = [8, 8], strides = [1, 1]} : vector<8x32xf32> to vector<8x8xf32>
    %cst_13 = arith.constant 0.353553385 : f32
    %34 = vector.broadcast %cst_13 : f32 to vector<8x8xf32>
    %35 = arith.mulf %33, %34 : vector<8x8xf32>
    %36 = vector.extract_strided_slice %14 {offsets = [0, 8], sizes = [8, 8], strides = [1, 1]} : vector<8x32xf32> to vector<8x8xf32>
    %37 = vector.extract_strided_slice %15 {offsets = [0, 8], sizes = [8, 8], strides = [1, 1]} : vector<8x32xf32> to vector<8x8xf32>
    %cst_14 = arith.constant dense<0.000000e+00> : vector<8x8xf32>
    %38 = tpu.matmul %35, %36, %cst_14 {dimension_numbers = #tpu.dot_dimension_numbers<[1], [1], [0], [0], [0, 0, 1, 0], [], []>} : vector<8x8xf32>, vector<8x8xf32>, vector<8x8xf32> -> vector<8x8xf32>
    %cst_15 = arith.constant dense<0xFF800000> : vector<8xf32>
    %39 = vector.multi_reduction <maximumf>, %38, %cst_15 [1] : vector<8x8xf32> to vector<8xf32>
    %40 = vector.shape_cast %39 : vector<8xf32> to vector<8x1xf32>
    %41 = vector.broadcast %40 : vector<8x1xf32> to vector<8x8xf32>
    %42 = arith.subf %38, %41 : vector<8x8xf32>
    %43 = math.exp %42 : vector<8x8xf32>
    %cst_16 = arith.constant dense<0.000000e+00> : vector<8xf32>
    %44 = vector.multi_reduction <add>, %43, %cst_16 [1] : vector<8x8xf32> to vector<8xf32>
    %45 = vector.shape_cast %44 : vector<8xf32> to vector<8x1xf32>
    %46 = tpu.reciprocal %45 {approx = true} : vector<8x1xf32> -> vector<8x1xf32>
    %47 = vector.broadcast %46 : vector<8x1xf32> to vector<8x8xf32>
    %48 = arith.mulf %43, %47 : vector<8x8xf32>
    %cst_17 = arith.constant dense<0.000000e+00> : vector<8x8xf32>
    %49 = tpu.matmul %48, %37, %cst_17 {dimension_numbers = #tpu.dot_dimension_numbers<[1], [0], [0], [1], [0, 0, 1, 1], [], []>} : vector<8x8xf32>, vector<8x8xf32>, vector<8x8xf32> -> vector<8x8xf32>
    %50 = vector.extract_strided_slice %13 {offsets = [0, 16], sizes = [8, 8], strides = [1, 1]} : vector<8x32xf32> to vector<8x8xf32>
    %cst_18 = arith.constant 0.353553385 : f32
    %51 = vector.broadcast %cst_18 : f32 to vector<8x8xf32>
    %52 = arith.mulf %50, %51 : vector<8x8xf32>
    %53 = vector.extract_strided_slice %14 {offsets = [0, 16], sizes = [8, 8], strides = [1, 1]} : vector<8x32xf32> to vector<8x8xf32>
    %54 = vector.extract_strided_slice %15 {offsets = [0, 16], sizes = [8, 8], strides = [1, 1]} : vector<8x32xf32> to vector<8x8xf32>
    %cst_19 = arith.constant dense<0.000000e+00> : vector<8x8xf32>
    %55 = tpu.matmul %52, %53, %cst_19 {dimension_numbers = #tpu.dot_dimension_numbers<[1], [1], [0], [0], [0, 0, 1, 0], [], []>} : vector<8x8xf32>, vector<8x8xf32>, vector<8x8xf32> -> vector<8x8xf32>
    %cst_20 = arith.constant dense<0xFF800000> : vector<8xf32>
    %56 = vector.multi_reduction <maximumf>, %55, %cst_20 [1] : vector<8x8xf32> to vector<8xf32>
    %57 = vector.shape_cast %56 : vector<8xf32> to vector<8x1xf32>
    %58 = vector.broadcast %57 : vector<8x1xf32> to vector<8x8xf32>
    %59 = arith.subf %55, %58 : vector<8x8xf32>
    %60 = math.exp %59 : vector<8x8xf32>
    %cst_21 = arith.constant dense<0.000000e+00> : vector<8xf32>
    %61 = vector.multi_reduction <add>, %60, %cst_21 [1] : vector<8x8xf32> to vector<8xf32>
    %62 = vector.shape_cast %61 : vector<8xf32> to vector<8x1xf32>
    %63 = tpu.reciprocal %62 {approx = true} : vector<8x1xf32> -> vector<8x1xf32>
    %64 = vector.broadcast %63 : vector<8x1xf32> to vector<8x8xf32>
    %65 = arith.mulf %60, %64 : vector<8x8xf32>
    %cst_22 = arith.constant dense<0.000000e+00> : vector<8x8xf32>
    %66 = tpu.matmul %65, %54, %cst_22 {dimension_numbers = #tpu.dot_dimension_numbers<[1], [0], [0], [1], [0, 0, 1, 1], [], []>} : vector<8x8xf32>, vector<8x8xf32>, vector<8x8xf32> -> vector<8x8xf32>
    %67 = vector.extract_strided_slice %13 {offsets = [0, 24], sizes = [8, 8], strides = [1, 1]} : vector<8x32xf32> to vector<8x8xf32>
    %cst_23 = arith.constant 0.353553385 : f32
    %68 = vector.broadcast %cst_23 : f32 to vector<8x8xf32>
    %69 = arith.mulf %67, %68 : vector<8x8xf32>
    %70 = vector.extract_strided_slice %14 {offsets = [0, 24], sizes = [8, 8], strides = [1, 1]} : vector<8x32xf32> to vector<8x8xf32>
    %71 = vector.extract_strided_slice %15 {offsets = [0, 24], sizes = [8, 8], strides = [1, 1]} : vector<8x32xf32> to vector<8x8xf32>
    %cst_24 = arith.constant dense<0.000000e+00> : vector<8x8xf32>
    %72 = tpu.matmul %69, %70, %cst_24 {dimension_numbers = #tpu.dot_dimension_numbers<[1], [1], [0], [0], [0, 0, 1, 0], [], []>} : vector<8x8xf32>, vector<8x8xf32>, vector<8x8xf32> -> vector<8x8xf32>
    %cst_25 = arith.constant dense<0xFF800000> : vector<8xf32>
    %73 = vector.multi_reduction <maximumf>, %72, %cst_25 [1] : vector<8x8xf32> to vector<8xf32>
    %74 = vector.shape_cast %73 : vector<8xf32> to vector<8x1xf32>
    %75 = vector.broadcast %74 : vector<8x1xf32> to vector<8x8xf32>
    %76 = arith.subf %72, %75 : vector<8x8xf32>
    %77 = math.exp %76 : vector<8x8xf32>
    %cst_26 = arith.constant dense<0.000000e+00> : vector<8xf32>
    %78 = vector.multi_reduction <add>, %77, %cst_26 [1] : vector<8x8xf32> to vector<8xf32>
    %79 = vector.shape_cast %78 : vector<8xf32> to vector<8x1xf32>
    %80 = tpu.reciprocal %79 {approx = true} : vector<8x1xf32> -> vector<8x1xf32>
    %81 = vector.broadcast %80 : vector<8x1xf32> to vector<8x8xf32>
    %82 = arith.mulf %77, %81 : vector<8x8xf32>
    %cst_27 = arith.constant dense<0.000000e+00> : vector<8x8xf32>
    %83 = tpu.matmul %82, %71, %cst_27 {dimension_numbers = #tpu.dot_dimension_numbers<[1], [0], [0], [1], [0, 0, 1, 1], [], []>} : vector<8x8xf32>, vector<8x8xf32>, vector<8x8xf32> -> vector<8x8xf32>
    %84 = tpu.concatenate %32, %49, %66, %83 in 1 : vector<8x8xf32>, vector<8x8xf32>, vector<8x8xf32>, vector<8x8xf32> -> vector<8x32xf32>
    %c0_28 = arith.constant 0 : index
    %c0_29 = arith.constant 0 : index
    %85 = vector.load %arg5[%c0_28, %c0_29] : memref<32x32xf32, #tpu.memory_space<vmem>>, vector<32x32xf32>
    %cst_30 = arith.constant dense<0.000000e+00> : vector<8x32xf32>
    %86 = tpu.matmul %84, %85, %cst_30 {dimension_numbers = #tpu.dot_dimension_numbers<[1], [0], [0], [1], [0, 0, 1, 1], [], []>} : vector<8x32xf32>, vector<32x32xf32>, vector<8x32xf32> -> vector<8x32xf32>
    %c0_31 = arith.constant 0 : index
    %c0_32 = arith.constant 0 : index
    %87 = vector.load %arg6[%c0_31, %c0_32] : memref<1x32xf32, #tpu.memory_space<vmem>>, vector<1x32xf32>
    %88 = vector.broadcast %87 : vector<1x32xf32> to vector<8x32xf32>
    %89 = arith.addf %86, %88 : vector<8x32xf32>
    %90 = arith.addf %7, %89 : vector<8x32xf32>
    %c0_33 = arith.constant 0 : index
    %c0_34 = arith.constant 0 : index
    %91 = vector.load %arg7[%c0_33, %c0_34] : memref<1x32xf32, #tpu.memory_space<vmem>>, vector<1x32xf32>
    %c0_35 = arith.constant 0 : index
    %c0_36 = arith.constant 0 : index
    %92 = vector.load %arg8[%c0_35, %c0_36] : memref<1x32xf32, #tpu.memory_space<vmem>>, vector<1x32xf32>
    %cst_37 = arith.constant dense<0.000000e+00> : vector<8xf32>
    %93 = vector.multi_reduction <add>, %90, %cst_37 [1] : vector<8x32xf32> to vector<8xf32>
    %94 = vector.shape_cast %93 : vector<8xf32> to vector<8x1xf32>
    %cst_38 = arith.constant 3.200000e+01 : f32
    %95 = vector.broadcast %cst_38 : f32 to vector<8x1xf32>
    %96 = arith.divf %94, %95 : vector<8x1xf32>
    %97 = vector.broadcast %96 : vector<8x1xf32> to vector<8x32xf32>
    %98 = arith.subf %90, %97 : vector<8x32xf32>
    %99 = arith.mulf %98, %98 : vector<8x32xf32>
    %cst_39 = arith.constant dense<0.000000e+00> : vector<8xf32>
    %100 = vector.multi_reduction <add>, %99, %cst_39 [1] : vector<8x32xf32> to vector<8xf32>
    %101 = vector.shape_cast %100 : vector<8xf32> to vector<8x1xf32>
    %cst_40 = arith.constant 3.200000e+01 : f32
    %102 = vector.broadcast %cst_40 : f32 to vector<8x1xf32>
    %103 = arith.divf %101, %102 : vector<8x1xf32>
    %104 = vector.broadcast %96 : vector<8x1xf32> to vector<8x32xf32>
    %105 = arith.subf %90, %104 : vector<8x32xf32>
    %cst_41 = arith.constant 9.99999974E-6 : f32
    %106 = vector.broadcast %cst_41 : f32 to vector<8x1xf32>
    %107 = arith.addf %103, %106 : vector<8x1xf32>
    %108 = math.rsqrt %107 : vector<8x1xf32>
    %109 = vector.broadcast %108 : vector<8x1xf32> to vector<8x32xf32>
    %110 = arith.mulf %105, %109 : vector<8x32xf32>
    %111 = vector.broadcast %91 : vector<1x32xf32> to vector<8x32xf32>
    %112 = arith.mulf %110, %111 : vector<8x32xf32>
    %113 = vector.broadcast %92 : vector<1x32xf32> to vector<8x32xf32>
    %114 = arith.addf %112, %113 : vector<8x32xf32>
    %c0_42 = arith.constant 0 : index
    %c0_43 = arith.constant 0 : index
    %115 = vector.load %arg9[%c0_42, %c0_43] : memref<32x2048xf32, #tpu.memory_space<vmem>>, vector<32x2048xf32>
    %cst_44 = arith.constant dense<0.000000e+00> : vector<8x2048xf32>
    %116 = tpu.matmul %114, %115, %cst_44 {dimension_numbers = #tpu.dot_dimension_numbers<[1], [0], [0], [1], [0, 0, 1, 1], [], []>} : vector<8x32xf32>, vector<32x2048xf32>, vector<8x2048xf32> -> vector<8x2048xf32>
    %c0_45 = arith.constant 0 : index
    %c0_46 = arith.constant 0 : index
    %117 = vector.load %arg10[%c0_45, %c0_46] : memref<1x2048xf32, #tpu.memory_space<vmem>>, vector<1x2048xf32>
    %118 = vector.broadcast %117 : vector<1x2048xf32> to vector<8x2048xf32>
    %119 = arith.addf %116, %118 : vector<8x2048xf32>
    %cst_47 = arith.constant 0.000000e+00 : f32
    %120 = vector.broadcast %cst_47 : f32 to vector<8x2048xf32>
    %121 = arith.maximumf %119, %120 : vector<8x2048xf32>
    %c0_48 = arith.constant 0 : index
    %c0_49 = arith.constant 0 : index
    %122 = vector.load %arg11[%c0_48, %c0_49] : memref<2048x32xf32, #tpu.memory_space<vmem>>, vector<2048x32xf32>
    %cst_50 = arith.constant dense<0.000000e+00> : vector<8x32xf32>
    %123 = tpu.matmul %121, %122, %cst_50 {dimension_numbers = #tpu.dot_dimension_numbers<[1], [0], [0], [1], [0, 0, 1, 1], [], []>} : vector<8x2048xf32>, vector<2048x32xf32>, vector<8x32xf32> -> vector<8x32xf32>
    %c0_51 = arith.constant 0 : index
    %c0_52 = arith.constant 0 : index
    %124 = vector.load %arg12[%c0_51, %c0_52] : memref<1x32xf32, #tpu.memory_space<vmem>>, vector<1x32xf32>
    %125 = vector.broadcast %124 : vector<1x32xf32> to vector<8x32xf32>
    %126 = arith.addf %123, %125 : vector<8x32xf32>
    %127 = arith.addf %114, %126 : vector<8x32xf32>
    %c0_53 = arith.constant 0 : index
    %c0_54 = arith.constant 0 : index
    %128 = vector.load %arg13[%c0_53, %c0_54] : memref<1x32xf32, #tpu.memory_space<vmem>>, vector<1x32xf32>
    %c0_55 = arith.constant 0 : index
    %c0_56 = arith.constant 0 : index
    %129 = vector.load %arg14[%c0_55, %c0_56] : memref<1x32xf32, #tpu.memory_space<vmem>>, vector<1x32xf32>
    %cst_57 = arith.constant dense<0.000000e+00> : vector<8xf32>
    %130 = vector.multi_reduction <add>, %127, %cst_57 [1] : vector<8x32xf32> to vector<8xf32>
    %131 = vector.shape_cast %130 : vector<8xf32> to vector<8x1xf32>
    %cst_58 = arith.constant 3.200000e+01 : f32
    %132 = vector.broadcast %cst_58 : f32 to vector<8x1xf32>
    %133 = arith.divf %131, %132 : vector<8x1xf32>
    %134 = vector.broadcast %133 : vector<8x1xf32> to vector<8x32xf32>
    %135 = arith.subf %127, %134 : vector<8x32xf32>
    %136 = arith.mulf %135, %135 : vector<8x32xf32>
    %cst_59 = arith.constant dense<0.000000e+00> : vector<8xf32>
    %137 = vector.multi_reduction <add>, %136, %cst_59 [1] : vector<8x32xf32> to vector<8xf32>
    %138 = vector.shape_cast %137 : vector<8xf32> to vector<8x1xf32>
    %cst_60 = arith.constant 3.200000e+01 : f32
    %139 = vector.broadcast %cst_60 : f32 to vector<8x1xf32>
    %140 = arith.divf %138, %139 : vector<8x1xf32>
    %141 = vector.broadcast %133 : vector<8x1xf32> to vector<8x32xf32>
    %142 = arith.subf %127, %141 : vector<8x32xf32>
    %cst_61 = arith.constant 9.99999974E-6 : f32
    %143 = vector.broadcast %cst_61 : f32 to vector<8x1xf32>
    %144 = arith.addf %140, %143 : vector<8x1xf32>
    %145 = math.rsqrt %144 : vector<8x1xf32>
    %146 = vector.broadcast %145 : vector<8x1xf32> to vector<8x32xf32>
    %147 = arith.mulf %142, %146 : vector<8x32xf32>
    %148 = vector.broadcast %128 : vector<1x32xf32> to vector<8x32xf32>
    %149 = arith.mulf %147, %148 : vector<8x32xf32>
    %150 = vector.broadcast %129 : vector<1x32xf32> to vector<8x32xf32>
    %151 = arith.addf %149, %150 : vector<8x32xf32>
    %c0_62 = arith.constant 0 : index
    %c0_63 = arith.constant 0 : index
    %152 = vector.load %arg15[%c0_62, %c0_63] : memref<8x32xf32, #tpu.memory_space<vmem>>, vector<8x32xf32>
    tpu.vector_store %arg15[%c0_62, %c0_63], %151 {strides = array<i32>} : memref<8x32xf32, #tpu.memory_space<vmem>>, vector<8x32xf32>,
    return
  }
  func.func @transform_0(%arg0: i32) -> (i32, i32) {
    %c0_i32 = arith.constant 0 : i32
    %c0_i32_0 = arith.constant 0 : i32
    return %arg0, %c0_i32 : i32, i32
  }
  func.func @transform_1(%arg0: i32) -> (i32, i32) {
    %c0_i32 = arith.constant 0 : i32
    %c0_i32_0 = arith.constant 0 : i32
    %c0_i32_1 = arith.constant 0 : i32
    return %c0_i32, %c0_i32_0 : i32, i32
  }
  func.func @transform_2(%arg0: i32) -> (i32, i32) {
    %c0_i32 = arith.constant 0 : i32
    %c0_i32_0 = arith.constant 0 : i32
    %c0_i32_1 = arith.constant 0 : i32
    return %c0_i32, %c0_i32_0 : i32, i32
  }
  func.func @transform_3(%arg0: i32) -> (i32, i32) {
    %c0_i32 = arith.constant 0 : i32
    %c0_i32_0 = arith.constant 0 : i32
    %c0_i32_1 = arith.constant 0 : i32
    return %c0_i32, %c0_i32_0 : i32, i32
  }
  func.func @transform_4(%arg0: i32) -> (i32, i32) {
    %c0_i32 = arith.constant 0 : i32
    %c0_i32_0 = arith.constant 0 : i32
    %c0_i32_1 = arith.constant 0 : i32
    return %c0_i32, %c0_i32_0 : i32, i32
  }
  func.func @transform_5(%arg0: i32) -> (i32, i32) {
    %c0_i32 = arith.constant 0 : i32
    %c0_i32_0 = arith.constant 0 : i32
    %c0_i32_1 = arith.constant 0 : i32
    return %c0_i32, %c0_i32_0 : i32, i32
  }
  func.func @transform_6(%arg0: i32) -> (i32, i32) {
    %c0_i32 = arith.constant 0 : i32
    %c0_i32_0 = arith.constant 0 : i32
    %c0_i32_1 = arith.constant 0 : i32
    return %c0_i32, %c0_i32_0 : i32, i32
  }
  func.func @transform_7(%arg0: i32) -> (i32, i32) {
    %c0_i32 = arith.constant 0 : i32
    %c0_i32_0 = arith.constant 0 : i32
    %c0_i32_1 = arith.constant 0 : i32
    return %c0_i32, %c0_i32_0 : i32, i32
  }
  func.func @transform_8(%arg0: i32) -> (i32, i32) {
    %c0_i32 = arith.constant 0 : i32
    %c0_i32_0 = arith.constant 0 : i32
    %c0_i32_1 = arith.constant 0 : i32
    return %c0_i32, %c0_i32_0 : i32, i32
  }
  func.func @transform_9(%arg0: i32) -> (i32, i32) {
    %c0_i32 = arith.constant 0 : i32
    %c0_i32_0 = arith.constant 0 : i32
    %c0_i32_1 = arith.constant 0 : i32
    return %c0_i32, %c0_i32_0 : i32, i32
  }
  func.func @transform_10(%arg0: i32) -> (i32, i32) {
    %c0_i32 = arith.constant 0 : i32
    %c0_i32_0 = arith.constant 0 : i32
    %c0_i32_1 = arith.constant 0 : i32
    return %c0_i32, %c0_i32_0 : i32, i32
  }
  func.func @transform_11(%arg0: i32) -> (i32, i32) {
    %c0_i32 = arith.constant 0 : i32
    %c0_i32_0 = arith.constant 0 : i32
    %c0_i32_1 = arith.constant 0 : i32
    return %c0_i32, %c0_i32_0 : i32, i32
  }
  func.func @transform_12(%arg0: i32) -> (i32, i32) {
    %c0_i32 = arith.constant 0 : i32
    %c0_i32_0 = arith.constant 0 : i32
    %c0_i32_1 = arith.constant 0 : i32
    return %c0_i32, %c0_i32_0 : i32, i32
  }
  func.func @transform_13(%arg0: i32) -> (i32, i32) {
    %c0_i32 = arith.constant 0 : i32
    %c0_i32_0 = arith.constant 0 : i32
    %c0_i32_1 = arith.constant 0 : i32
    return %c0_i32, %c0_i32_0 : i32, i32
  }
  func.func @transform_14(%arg0: i32) -> (i32, i32) {
    %c0_i32 = arith.constant 0 : i32
    %c0_i32_0 = arith.constant 0 : i32
    return %arg0, %c0_i32 : i32, i32
  }
}

module attributes {stable_mosaic.version = 11 : i64} {
  func.func @_encoder_layer_kernel(%arg0: i32, %arg1: memref<8x32xf32, #tpu.memory_space<vmem>>, %arg2: memref<32x96xf32, #tpu.memory_space<vmem>>, %arg3: memref<1x96xf32, #tpu.memory_space<vmem>>, %arg4: memref<32x32xf32, #tpu.memory_space<vmem>>, %arg5: memref<1x32xf32, #tpu.memory_space<vmem>>, %arg6: memref<1x32xf32, #tpu.memory_space<vmem>>, %arg7: memref<1x32xf32, #tpu.memory_space<vmem>>, %arg8: memref<32x2048xf32, #tpu.memory_space<vmem>>, %arg9: memref<1x2048xf32, #tpu.memory_space<vmem>>, %arg10: memref<2048x32xf32, #tpu.memory_space<vmem>>, %arg11: memref<1x32xf32, #tpu.memory_space<vmem>>, %arg12: memref<1x32xf32, #tpu.memory_space<vmem>>, %arg13: memref<1x32xf32, #tpu.memory_space<vmem>>, %arg14: memref<1x32xf32, #tpu.memory_space<vmem>>, %arg15: memref<1x32xf32, #tpu.memory_space<vmem>>, %arg16: memref<8x32xf32, #tpu.memory_space<vmem>>) attributes {dimension_semantics = [#tpu.dimension_semantics<parallel>], iteration_bounds = array<i64: 2>, scalar_prefetch = 0 : i64, scratch_operands = 0 : i64, tpu.core_type = #tpu.core_type<tc>, window_params = [{transform_indices = @transform_0, window_bounds = array<i64: 8, 32>}, {pipeline_mode = #tpu.pipeline_mode<synchronous>, transform_indices = @transform_1, window_bounds = array<i64: 32, 96>}, {pipeline_mode = #tpu.pipeline_mode<synchronous>, transform_indices = @transform_2, window_bounds = array<i64: 1, 96>}, {pipeline_mode = #tpu.pipeline_mode<synchronous>, transform_indices = @transform_3, window_bounds = array<i64: 32, 32>}, {pipeline_mode = #tpu.pipeline_mode<synchronous>, transform_indices = @transform_4, window_bounds = array<i64: 1, 32>}, {pipeline_mode = #tpu.pipeline_mode<synchronous>, transform_indices = @transform_5, window_bounds = array<i64: 1, 32>}, {pipeline_mode = #tpu.pipeline_mode<synchronous>, transform_indices = @transform_6, window_bounds = array<i64: 1, 32>}, {pipeline_mode = #tpu.pipeline_mode<synchronous>, transform_indices = @transform_7, window_bounds = array<i64: 32, 2048>}, {pipeline_mode = #tpu.pipeline_mode<synchronous>, transform_indices = @transform_8, window_bounds = array<i64: 1, 2048>}, {pipeline_mode = #tpu.pipeline_mode<synchronous>, transform_indices = @transform_9, window_bounds = array<i64: 2048, 32>}, {pipeline_mode = #tpu.pipeline_mode<synchronous>, transform_indices = @transform_10, window_bounds = array<i64: 1, 32>}, {pipeline_mode = #tpu.pipeline_mode<synchronous>, transform_indices = @transform_11, window_bounds = array<i64: 1, 32>}, {pipeline_mode = #tpu.pipeline_mode<synchronous>, transform_indices = @transform_12, window_bounds = array<i64: 1, 32>}, {pipeline_mode = #tpu.pipeline_mode<synchronous>, transform_indices = @transform_13, window_bounds = array<i64: 1, 32>}, {pipeline_mode = #tpu.pipeline_mode<synchronous>, transform_indices = @transform_14, window_bounds = array<i64: 1, 32>}, {transform_indices = @transform_15, window_bounds = array<i64: 8, 32>}]} {
    %c0 = arith.constant 0 : index
    %c0_0 = arith.constant 0 : index
    %0 = vector.load %arg1[%c0, %c0_0] : memref<8x32xf32, #tpu.memory_space<vmem>>, vector<8x32xf32>
    %c0_1 = arith.constant 0 : index
    %c0_2 = arith.constant 0 : index
    %1 = vector.load %arg2[%c0_1, %c0_2] : memref<32x96xf32, #tpu.memory_space<vmem>>, vector<32x96xf32>
    %cst = arith.constant dense<0.000000e+00> : vector<8x96xf32>
    %2 = tpu.matmul %0, %1, %cst {dimension_numbers = #tpu.dot_dimension_numbers<[1], [0], [0], [1], [0, 0, 1, 1], [], []>} : vector<8x32xf32>, vector<32x96xf32>, vector<8x96xf32> -> vector<8x96xf32>
    %c0_3 = arith.constant 0 : index
    %c0_4 = arith.constant 0 : index
    %3 = vector.load %arg3[%c0_3, %c0_4] : memref<1x96xf32, #tpu.memory_space<vmem>>, vector<1x96xf32>
    %4 = vector.broadcast %3 : vector<1x96xf32> to vector<8x96xf32>
    %5 = arith.addf %2, %4 : vector<8x96xf32>
    %6 = vector.extract_strided_slice %5 {offsets = [0, 0], sizes = [8, 32], strides = [1, 1]} : vector<8x96xf32> to vector<8x32xf32>
    %7 = vector.extract_strided_slice %5 {offsets = [0, 32], sizes = [8, 32], strides = [1, 1]} : vector<8x96xf32> to vector<8x32xf32>
    %8 = vector.extract_strided_slice %5 {offsets = [0, 64], sizes = [8, 32], strides = [1, 1]} : vector<8x96xf32> to vector<8x32xf32>
    %9 = vector.extract_strided_slice %6 {offsets = [0, 0], sizes = [8, 8], strides = [1, 1]} : vector<8x32xf32> to vector<8x8xf32>
    %cst_5 = arith.constant 0.353553385 : f32
    %10 = vector.broadcast %cst_5 : f32 to vector<8x8xf32>
    %11 = arith.mulf %9, %10 : vector<8x8xf32>
    %12 = vector.extract_strided_slice %7 {offsets = [0, 0], sizes = [8, 8], strides = [1, 1]} : vector<8x32xf32> to vector<8x8xf32>
    %13 = vector.extract_strided_slice %8 {offsets = [0, 0], sizes = [8, 8], strides = [1, 1]} : vector<8x32xf32> to vector<8x8xf32>
    %cst_6 = arith.constant dense<0.000000e+00> : vector<8x8xf32>
    %14 = tpu.matmul %11, %12, %cst_6 {dimension_numbers = #tpu.dot_dimension_numbers<[1], [1], [0], [0], [0, 0, 1, 0], [], []>} : vector<8x8xf32>, vector<8x8xf32>, vector<8x8xf32> -> vector<8x8xf32>
    %cst_7 = arith.constant dense<0xFF800000> : vector<8xf32>
    %15 = vector.multi_reduction <maximumf>, %14, %cst_7 [1] : vector<8x8xf32> to vector<8xf32>
    %16 = vector.shape_cast %15 : vector<8xf32> to vector<8x1xf32>
    %17 = vector.broadcast %16 : vector<8x1xf32> to vector<8x8xf32>
    %18 = arith.subf %14, %17 : vector<8x8xf32>
    %19 = math.exp %18 : vector<8x8xf32>
    %cst_8 = arith.constant dense<0.000000e+00> : vector<8xf32>
    %20 = vector.multi_reduction <add>, %19, %cst_8 [1] : vector<8x8xf32> to vector<8xf32>
    %21 = vector.shape_cast %20 : vector<8xf32> to vector<8x1xf32>
    %22 = tpu.reciprocal %21 {approx = true} : vector<8x1xf32> -> vector<8x1xf32>
    %23 = vector.broadcast %22 : vector<8x1xf32> to vector<8x8xf32>
    %24 = arith.mulf %19, %23 : vector<8x8xf32>
    %cst_9 = arith.constant dense<0.000000e+00> : vector<8x8xf32>
    %25 = tpu.matmul %24, %13, %cst_9 {dimension_numbers = #tpu.dot_dimension_numbers<[1], [0], [0], [1], [0, 0, 1, 1], [], []>} : vector<8x8xf32>, vector<8x8xf32>, vector<8x8xf32> -> vector<8x8xf32>
    %26 = vector.extract_strided_slice %6 {offsets = [0, 8], sizes = [8, 8], strides = [1, 1]} : vector<8x32xf32> to vector<8x8xf32>
    %cst_10 = arith.constant 0.353553385 : f32
    %27 = vector.broadcast %cst_10 : f32 to vector<8x8xf32>
    %28 = arith.mulf %26, %27 : vector<8x8xf32>
    %29 = vector.extract_strided_slice %7 {offsets = [0, 8], sizes = [8, 8], strides = [1, 1]} : vector<8x32xf32> to vector<8x8xf32>
    %30 = vector.extract_strided_slice %8 {offsets = [0, 8], sizes = [8, 8], strides = [1, 1]} : vector<8x32xf32> to vector<8x8xf32>
    %cst_11 = arith.constant dense<0.000000e+00> : vector<8x8xf32>
    %31 = tpu.matmul %28, %29, %cst_11 {dimension_numbers = #tpu.dot_dimension_numbers<[1], [1], [0], [0], [0, 0, 1, 0], [], []>} : vector<8x8xf32>, vector<8x8xf32>, vector<8x8xf32> -> vector<8x8xf32>
    %cst_12 = arith.constant dense<0xFF800000> : vector<8xf32>
    %32 = vector.multi_reduction <maximumf>, %31, %cst_12 [1] : vector<8x8xf32> to vector<8xf32>
    %33 = vector.shape_cast %32 : vector<8xf32> to vector<8x1xf32>
    %34 = vector.broadcast %33 : vector<8x1xf32> to vector<8x8xf32>
    %35 = arith.subf %31, %34 : vector<8x8xf32>
    %36 = math.exp %35 : vector<8x8xf32>
    %cst_13 = arith.constant dense<0.000000e+00> : vector<8xf32>
    %37 = vector.multi_reduction <add>, %36, %cst_13 [1] : vector<8x8xf32> to vector<8xf32>
    %38 = vector.shape_cast %37 : vector<8xf32> to vector<8x1xf32>
    %39 = tpu.reciprocal %38 {approx = true} : vector<8x1xf32> -> vector<8x1xf32>
    %40 = vector.broadcast %39 : vector<8x1xf32> to vector<8x8xf32>
    %41 = arith.mulf %36, %40 : vector<8x8xf32>
    %cst_14 = arith.constant dense<0.000000e+00> : vector<8x8xf32>
    %42 = tpu.matmul %41, %30, %cst_14 {dimension_numbers = #tpu.dot_dimension_numbers<[1], [0], [0], [1], [0, 0, 1, 1], [], []>} : vector<8x8xf32>, vector<8x8xf32>, vector<8x8xf32> -> vector<8x8xf32>
    %43 = vector.extract_strided_slice %6 {offsets = [0, 16], sizes = [8, 8], strides = [1, 1]} : vector<8x32xf32> to vector<8x8xf32>
    %cst_15 = arith.constant 0.353553385 : f32
    %44 = vector.broadcast %cst_15 : f32 to vector<8x8xf32>
    %45 = arith.mulf %43, %44 : vector<8x8xf32>
    %46 = vector.extract_strided_slice %7 {offsets = [0, 16], sizes = [8, 8], strides = [1, 1]} : vector<8x32xf32> to vector<8x8xf32>
    %47 = vector.extract_strided_slice %8 {offsets = [0, 16], sizes = [8, 8], strides = [1, 1]} : vector<8x32xf32> to vector<8x8xf32>
    %cst_16 = arith.constant dense<0.000000e+00> : vector<8x8xf32>
    %48 = tpu.matmul %45, %46, %cst_16 {dimension_numbers = #tpu.dot_dimension_numbers<[1], [1], [0], [0], [0, 0, 1, 0], [], []>} : vector<8x8xf32>, vector<8x8xf32>, vector<8x8xf32> -> vector<8x8xf32>
    %cst_17 = arith.constant dense<0xFF800000> : vector<8xf32>
    %49 = vector.multi_reduction <maximumf>, %48, %cst_17 [1] : vector<8x8xf32> to vector<8xf32>
    %50 = vector.shape_cast %49 : vector<8xf32> to vector<8x1xf32>
    %51 = vector.broadcast %50 : vector<8x1xf32> to vector<8x8xf32>
    %52 = arith.subf %48, %51 : vector<8x8xf32>
    %53 = math.exp %52 : vector<8x8xf32>
    %cst_18 = arith.constant dense<0.000000e+00> : vector<8xf32>
    %54 = vector.multi_reduction <add>, %53, %cst_18 [1] : vector<8x8xf32> to vector<8xf32>
    %55 = vector.shape_cast %54 : vector<8xf32> to vector<8x1xf32>
    %56 = tpu.reciprocal %55 {approx = true} : vector<8x1xf32> -> vector<8x1xf32>
    %57 = vector.broadcast %56 : vector<8x1xf32> to vector<8x8xf32>
    %58 = arith.mulf %53, %57 : vector<8x8xf32>
    %cst_19 = arith.constant dense<0.000000e+00> : vector<8x8xf32>
    %59 = tpu.matmul %58, %47, %cst_19 {dimension_numbers = #tpu.dot_dimension_numbers<[1], [0], [0], [1], [0, 0, 1, 1], [], []>} : vector<8x8xf32>, vector<8x8xf32>, vector<8x8xf32> -> vector<8x8xf32>
    %60 = vector.extract_strided_slice %6 {offsets = [0, 24], sizes = [8, 8], strides = [1, 1]} : vector<8x32xf32> to vector<8x8xf32>
    %cst_20 = arith.constant 0.353553385 : f32
    %61 = vector.broadcast %cst_20 : f32 to vector<8x8xf32>
    %62 = arith.mulf %60, %61 : vector<8x8xf32>
    %63 = vector.extract_strided_slice %7 {offsets = [0, 24], sizes = [8, 8], strides = [1, 1]} : vector<8x32xf32> to vector<8x8xf32>
    %64 = vector.extract_strided_slice %8 {offsets = [0, 24], sizes = [8, 8], strides = [1, 1]} : vector<8x32xf32> to vector<8x8xf32>
    %cst_21 = arith.constant dense<0.000000e+00> : vector<8x8xf32>
    %65 = tpu.matmul %62, %63, %cst_21 {dimension_numbers = #tpu.dot_dimension_numbers<[1], [1], [0], [0], [0, 0, 1, 0], [], []>} : vector<8x8xf32>, vector<8x8xf32>, vector<8x8xf32> -> vector<8x8xf32>
    %cst_22 = arith.constant dense<0xFF800000> : vector<8xf32>
    %66 = vector.multi_reduction <maximumf>, %65, %cst_22 [1] : vector<8x8xf32> to vector<8xf32>
    %67 = vector.shape_cast %66 : vector<8xf32> to vector<8x1xf32>
    %68 = vector.broadcast %67 : vector<8x1xf32> to vector<8x8xf32>
    %69 = arith.subf %65, %68 : vector<8x8xf32>
    %70 = math.exp %69 : vector<8x8xf32>
    %cst_23 = arith.constant dense<0.000000e+00> : vector<8xf32>
    %71 = vector.multi_reduction <add>, %70, %cst_23 [1] : vector<8x8xf32> to vector<8xf32>
    %72 = vector.shape_cast %71 : vector<8xf32> to vector<8x1xf32>
    %73 = tpu.reciprocal %72 {approx = true} : vector<8x1xf32> -> vector<8x1xf32>
    %74 = vector.broadcast %73 : vector<8x1xf32> to vector<8x8xf32>
    %75 = arith.mulf %70, %74 : vector<8x8xf32>
    %cst_24 = arith.constant dense<0.000000e+00> : vector<8x8xf32>
    %76 = tpu.matmul %75, %64, %cst_24 {dimension_numbers = #tpu.dot_dimension_numbers<[1], [0], [0], [1], [0, 0, 1, 1], [], []>} : vector<8x8xf32>, vector<8x8xf32>, vector<8x8xf32> -> vector<8x8xf32>
    %77 = tpu.concatenate %25, %42, %59, %76 in 1 : vector<8x8xf32>, vector<8x8xf32>, vector<8x8xf32>, vector<8x8xf32> -> vector<8x32xf32>
    %c0_25 = arith.constant 0 : index
    %c0_26 = arith.constant 0 : index
    %78 = vector.load %arg4[%c0_25, %c0_26] : memref<32x32xf32, #tpu.memory_space<vmem>>, vector<32x32xf32>
    %cst_27 = arith.constant dense<0.000000e+00> : vector<8x32xf32>
    %79 = tpu.matmul %77, %78, %cst_27 {dimension_numbers = #tpu.dot_dimension_numbers<[1], [0], [0], [1], [0, 0, 1, 1], [], []>} : vector<8x32xf32>, vector<32x32xf32>, vector<8x32xf32> -> vector<8x32xf32>
    %c0_28 = arith.constant 0 : index
    %c0_29 = arith.constant 0 : index
    %80 = vector.load %arg5[%c0_28, %c0_29] : memref<1x32xf32, #tpu.memory_space<vmem>>, vector<1x32xf32>
    %81 = vector.broadcast %80 : vector<1x32xf32> to vector<8x32xf32>
    %82 = arith.addf %79, %81 : vector<8x32xf32>
    %83 = arith.addf %0, %82 : vector<8x32xf32>
    %c0_30 = arith.constant 0 : index
    %c0_31 = arith.constant 0 : index
    %84 = vector.load %arg6[%c0_30, %c0_31] : memref<1x32xf32, #tpu.memory_space<vmem>>, vector<1x32xf32>
    %c0_32 = arith.constant 0 : index
    %c0_33 = arith.constant 0 : index
    %85 = vector.load %arg7[%c0_32, %c0_33] : memref<1x32xf32, #tpu.memory_space<vmem>>, vector<1x32xf32>
    %cst_34 = arith.constant dense<0.000000e+00> : vector<8xf32>
    %86 = vector.multi_reduction <add>, %83, %cst_34 [1] : vector<8x32xf32> to vector<8xf32>
    %87 = vector.shape_cast %86 : vector<8xf32> to vector<8x1xf32>
    %cst_35 = arith.constant 3.200000e+01 : f32
    %88 = vector.broadcast %cst_35 : f32 to vector<8x1xf32>
    %89 = arith.divf %87, %88 : vector<8x1xf32>
    %90 = vector.broadcast %89 : vector<8x1xf32> to vector<8x32xf32>
    %91 = arith.subf %83, %90 : vector<8x32xf32>
    %92 = arith.mulf %91, %91 : vector<8x32xf32>
    %cst_36 = arith.constant dense<0.000000e+00> : vector<8xf32>
    %93 = vector.multi_reduction <add>, %92, %cst_36 [1] : vector<8x32xf32> to vector<8xf32>
    %94 = vector.shape_cast %93 : vector<8xf32> to vector<8x1xf32>
    %cst_37 = arith.constant 3.200000e+01 : f32
    %95 = vector.broadcast %cst_37 : f32 to vector<8x1xf32>
    %96 = arith.divf %94, %95 : vector<8x1xf32>
    %97 = vector.broadcast %89 : vector<8x1xf32> to vector<8x32xf32>
    %98 = arith.subf %83, %97 : vector<8x32xf32>
    %cst_38 = arith.constant 9.99999974E-6 : f32
    %99 = vector.broadcast %cst_38 : f32 to vector<8x1xf32>
    %100 = arith.addf %96, %99 : vector<8x1xf32>
    %101 = math.rsqrt %100 : vector<8x1xf32>
    %102 = vector.broadcast %101 : vector<8x1xf32> to vector<8x32xf32>
    %103 = arith.mulf %98, %102 : vector<8x32xf32>
    %104 = vector.broadcast %84 : vector<1x32xf32> to vector<8x32xf32>
    %105 = arith.mulf %103, %104 : vector<8x32xf32>
    %106 = vector.broadcast %85 : vector<1x32xf32> to vector<8x32xf32>
    %107 = arith.addf %105, %106 : vector<8x32xf32>
    %c0_39 = arith.constant 0 : index
    %c0_40 = arith.constant 0 : index
    %108 = vector.load %arg8[%c0_39, %c0_40] : memref<32x2048xf32, #tpu.memory_space<vmem>>, vector<32x2048xf32>
    %cst_41 = arith.constant dense<0.000000e+00> : vector<8x2048xf32>
    %109 = tpu.matmul %107, %108, %cst_41 {dimension_numbers = #tpu.dot_dimension_numbers<[1], [0], [0], [1], [0, 0, 1, 1], [], []>} : vector<8x32xf32>, vector<32x2048xf32>, vector<8x2048xf32> -> vector<8x2048xf32>
    %c0_42 = arith.constant 0 : index
    %c0_43 = arith.constant 0 : index
    %110 = vector.load %arg9[%c0_42, %c0_43] : memref<1x2048xf32, #tpu.memory_space<vmem>>, vector<1x2048xf32>
    %111 = vector.broadcast %110 : vector<1x2048xf32> to vector<8x2048xf32>
    %112 = arith.addf %109, %111 : vector<8x2048xf32>
    %cst_44 = arith.constant 0.000000e+00 : f32
    %113 = vector.broadcast %cst_44 : f32 to vector<8x2048xf32>
    %114 = arith.maximumf %112, %113 : vector<8x2048xf32>
    %c0_45 = arith.constant 0 : index
    %c0_46 = arith.constant 0 : index
    %115 = vector.load %arg10[%c0_45, %c0_46] : memref<2048x32xf32, #tpu.memory_space<vmem>>, vector<2048x32xf32>
    %cst_47 = arith.constant dense<0.000000e+00> : vector<8x32xf32>
    %116 = tpu.matmul %114, %115, %cst_47 {dimension_numbers = #tpu.dot_dimension_numbers<[1], [0], [0], [1], [0, 0, 1, 1], [], []>} : vector<8x2048xf32>, vector<2048x32xf32>, vector<8x32xf32> -> vector<8x32xf32>
    %c0_48 = arith.constant 0 : index
    %c0_49 = arith.constant 0 : index
    %117 = vector.load %arg11[%c0_48, %c0_49] : memref<1x32xf32, #tpu.memory_space<vmem>>, vector<1x32xf32>
    %118 = vector.broadcast %117 : vector<1x32xf32> to vector<8x32xf32>
    %119 = arith.addf %116, %118 : vector<8x32xf32>
    %120 = arith.addf %107, %119 : vector<8x32xf32>
    %c0_50 = arith.constant 0 : index
    %c0_51 = arith.constant 0 : index
    %121 = vector.load %arg12[%c0_50, %c0_51] : memref<1x32xf32, #tpu.memory_space<vmem>>, vector<1x32xf32>
    %c0_52 = arith.constant 0 : index
    %c0_53 = arith.constant 0 : index
    %122 = vector.load %arg13[%c0_52, %c0_53] : memref<1x32xf32, #tpu.memory_space<vmem>>, vector<1x32xf32>
    %cst_54 = arith.constant dense<0.000000e+00> : vector<8xf32>
    %123 = vector.multi_reduction <add>, %120, %cst_54 [1] : vector<8x32xf32> to vector<8xf32>
    %124 = vector.shape_cast %123 : vector<8xf32> to vector<8x1xf32>
    %cst_55 = arith.constant 3.200000e+01 : f32
    %125 = vector.broadcast %cst_55 : f32 to vector<8x1xf32>
    %126 = arith.divf %124, %125 : vector<8x1xf32>
    %127 = vector.broadcast %126 : vector<8x1xf32> to vector<8x32xf32>
    %128 = arith.subf %120, %127 : vector<8x32xf32>
    %129 = arith.mulf %128, %128 : vector<8x32xf32>
    %cst_56 = arith.constant dense<0.000000e+00> : vector<8xf32>
    %130 = vector.multi_reduction <add>, %129, %cst_56 [1] : vector<8x32xf32> to vector<8xf32>
    %131 = vector.shape_cast %130 : vector<8xf32> to vector<8x1xf32>
    %cst_57 = arith.constant 3.200000e+01 : f32
    %132 = vector.broadcast %cst_57 : f32 to vector<8x1xf32>
    %133 = arith.divf %131, %132 : vector<8x1xf32>
    %134 = vector.broadcast %126 : vector<8x1xf32> to vector<8x32xf32>
    %135 = arith.subf %120, %134 : vector<8x32xf32>
    %cst_58 = arith.constant 9.99999974E-6 : f32
    %136 = vector.broadcast %cst_58 : f32 to vector<8x1xf32>
    %137 = arith.addf %133, %136 : vector<8x1xf32>
    %138 = math.rsqrt %137 : vector<8x1xf32>
    %139 = vector.broadcast %138 : vector<8x1xf32> to vector<8x32xf32>
    %140 = arith.mulf %135, %139 : vector<8x32xf32>
    %141 = vector.broadcast %121 : vector<1x32xf32> to vector<8x32xf32>
    %142 = arith.mulf %140, %141 : vector<8x32xf32>
    %143 = vector.broadcast %122 : vector<1x32xf32> to vector<8x32xf32>
    %144 = arith.addf %142, %143 : vector<8x32xf32>
    %c0_59 = arith.constant 0 : index
    %c0_60 = arith.constant 0 : index
    %145 = vector.load %arg14[%c0_59, %c0_60] : memref<1x32xf32, #tpu.memory_space<vmem>>, vector<1x32xf32>
    %c0_61 = arith.constant 0 : index
    %c0_62 = arith.constant 0 : index
    %146 = vector.load %arg15[%c0_61, %c0_62] : memref<1x32xf32, #tpu.memory_space<vmem>>, vector<1x32xf32>
    %cst_63 = arith.constant dense<0.000000e+00> : vector<8xf32>
    %147 = vector.multi_reduction <add>, %144, %cst_63 [1] : vector<8x32xf32> to vector<8xf32>
    %148 = vector.shape_cast %147 : vector<8xf32> to vector<8x1xf32>
    %cst_64 = arith.constant 3.200000e+01 : f32
    %149 = vector.broadcast %cst_64 : f32 to vector<8x1xf32>
    %150 = arith.divf %148, %149 : vector<8x1xf32>
    %151 = vector.broadcast %150 : vector<8x1xf32> to vector<8x32xf32>
    %152 = arith.subf %144, %151 : vector<8x32xf32>
    %153 = arith.mulf %152, %152 : vector<8x32xf32>
    %cst_65 = arith.constant dense<0.000000e+00> : vector<8xf32>
    %154 = vector.multi_reduction <add>, %153, %cst_65 [1] : vector<8x32xf32> to vector<8xf32>
    %155 = vector.shape_cast %154 : vector<8xf32> to vector<8x1xf32>
    %cst_66 = arith.constant 3.200000e+01 : f32
    %156 = vector.broadcast %cst_66 : f32 to vector<8x1xf32>
    %157 = arith.divf %155, %156 : vector<8x1xf32>
    %158 = vector.broadcast %150 : vector<8x1xf32> to vector<8x32xf32>
    %159 = arith.subf %144, %158 : vector<8x32xf32>
    %cst_67 = arith.constant 9.99999974E-6 : f32
    %160 = vector.broadcast %cst_67 : f32 to vector<8x1xf32>
    %161 = arith.addf %157, %160 : vector<8x1xf32>
    %162 = math.rsqrt %161 : vector<8x1xf32>
    %163 = vector.broadcast %162 : vector<8x1xf32> to vector<8x32xf32>
    %164 = arith.mulf %159, %163 : vector<8x32xf32>
    %165 = vector.broadcast %145 : vector<1x32xf32> to vector<8x32xf32>
    %166 = arith.mulf %164, %165 : vector<8x32xf32>
    %167 = vector.broadcast %146 : vector<1x32xf32> to vector<8x32xf32>
    %168 = arith.addf %166, %167 : vector<8x32xf32>
    %c0_68 = arith.constant 0 : index
    %c0_69 = arith.constant 0 : index
    %169 = vector.load %arg16[%c0_68, %c0_69] : memref<8x32xf32, #tpu.memory_space<vmem>>, vector<8x32xf32>
    tpu.vector_store %arg16[%c0_68, %c0_69], %168 {strides = array<i32>} : memref<8x32xf32, #tpu.memory_space<vmem>>, vector<8x32xf32>,
    return
  }
  func.func @transform_0(%arg0: i32) -> (i32, i32) {
    %c0_i32 = arith.constant 0 : i32
    %c0_i32_0 = arith.constant 0 : i32
    return %arg0, %c0_i32 : i32, i32
  }
  func.func @transform_1(%arg0: i32) -> (i32, i32) {
    %c0_i32 = arith.constant 0 : i32
    %c0_i32_0 = arith.constant 0 : i32
    %c0_i32_1 = arith.constant 0 : i32
    return %c0_i32, %c0_i32_0 : i32, i32
  }
  func.func @transform_2(%arg0: i32) -> (i32, i32) {
    %c0_i32 = arith.constant 0 : i32
    %c0_i32_0 = arith.constant 0 : i32
    %c0_i32_1 = arith.constant 0 : i32
    return %c0_i32, %c0_i32_0 : i32, i32
  }
  func.func @transform_3(%arg0: i32) -> (i32, i32) {
    %c0_i32 = arith.constant 0 : i32
    %c0_i32_0 = arith.constant 0 : i32
    %c0_i32_1 = arith.constant 0 : i32
    return %c0_i32, %c0_i32_0 : i32, i32
  }
  func.func @transform_4(%arg0: i32) -> (i32, i32) {
    %c0_i32 = arith.constant 0 : i32
    %c0_i32_0 = arith.constant 0 : i32
    %c0_i32_1 = arith.constant 0 : i32
    return %c0_i32, %c0_i32_0 : i32, i32
  }
  func.func @transform_5(%arg0: i32) -> (i32, i32) {
    %c0_i32 = arith.constant 0 : i32
    %c0_i32_0 = arith.constant 0 : i32
    %c0_i32_1 = arith.constant 0 : i32
    return %c0_i32, %c0_i32_0 : i32, i32
  }
  func.func @transform_6(%arg0: i32) -> (i32, i32) {
    %c0_i32 = arith.constant 0 : i32
    %c0_i32_0 = arith.constant 0 : i32
    %c0_i32_1 = arith.constant 0 : i32
    return %c0_i32, %c0_i32_0 : i32, i32
  }
  func.func @transform_7(%arg0: i32) -> (i32, i32) {
    %c0_i32 = arith.constant 0 : i32
    %c0_i32_0 = arith.constant 0 : i32
    %c0_i32_1 = arith.constant 0 : i32
    return %c0_i32, %c0_i32_0 : i32, i32
  }
  func.func @transform_8(%arg0: i32) -> (i32, i32) {
    %c0_i32 = arith.constant 0 : i32
    %c0_i32_0 = arith.constant 0 : i32
    %c0_i32_1 = arith.constant 0 : i32
    return %c0_i32, %c0_i32_0 : i32, i32
  }
  func.func @transform_9(%arg0: i32) -> (i32, i32) {
    %c0_i32 = arith.constant 0 : i32
    %c0_i32_0 = arith.constant 0 : i32
    %c0_i32_1 = arith.constant 0 : i32
    return %c0_i32, %c0_i32_0 : i32, i32
  }
  func.func @transform_10(%arg0: i32) -> (i32, i32) {
    %c0_i32 = arith.constant 0 : i32
    %c0_i32_0 = arith.constant 0 : i32
    %c0_i32_1 = arith.constant 0 : i32
    return %c0_i32, %c0_i32_0 : i32, i32
  }
  func.func @transform_11(%arg0: i32) -> (i32, i32) {
    %c0_i32 = arith.constant 0 : i32
    %c0_i32_0 = arith.constant 0 : i32
    %c0_i32_1 = arith.constant 0 : i32
    return %c0_i32, %c0_i32_0 : i32, i32
  }
  func.func @transform_12(%arg0: i32) -> (i32, i32) {
    %c0_i32 = arith.constant 0 : i32
    %c0_i32_0 = arith.constant 0 : i32
    %c0_i32_1 = arith.constant 0 : i32
    return %c0_i32, %c0_i32_0 : i32, i32
  }
  func.func @transform_13(%arg0: i32) -> (i32, i32) {
    %c0_i32 = arith.constant 0 : i32
    %c0_i32_0 = arith.constant 0 : i32
    %c0_i32_1 = arith.constant 0 : i32
    return %c0_i32, %c0_i32_0 : i32, i32
  }
  func.func @transform_14(%arg0: i32) -> (i32, i32) {
    %c0_i32 = arith.constant 0 : i32
    %c0_i32_0 = arith.constant 0 : i32
    %c0_i32_1 = arith.constant 0 : i32
    return %c0_i32, %c0_i32_0 : i32, i32
  }
  func.func @transform_15(%arg0: i32) -> (i32, i32) {
    %c0_i32 = arith.constant 0 : i32
    %c0_i32_0 = arith.constant 0 : i32
    return %arg0, %c0_i32 : i32, i32
  }
}

module attributes {stable_mosaic.version = 11 : i64} {
  func.func @_decoder_layer_kernel(%arg0: i32, %arg1: memref<8x1xi32, #tpu.memory_space<vmem>>, %arg2: memref<64x32xf32, #tpu.memory_space<vmem>>, %arg3: memref<8x32xf32, #tpu.memory_space<vmem>>, %arg4: memref<32x96xf32, #tpu.memory_space<vmem>>, %arg5: memref<1x96xf32, #tpu.memory_space<vmem>>, %arg6: memref<32x32xf32, #tpu.memory_space<vmem>>, %arg7: memref<1x32xf32, #tpu.memory_space<vmem>>, %arg8: memref<1x32xf32, #tpu.memory_space<vmem>>, %arg9: memref<1x32xf32, #tpu.memory_space<vmem>>, %arg10: memref<32x32xf32, #tpu.memory_space<vmem>>, %arg11: memref<1x32xf32, #tpu.memory_space<vmem>>, %arg12: memref<32x64xf32, #tpu.memory_space<vmem>>, %arg13: memref<1x64xf32, #tpu.memory_space<vmem>>, %arg14: memref<32x32xf32, #tpu.memory_space<vmem>>, %arg15: memref<1x32xf32, #tpu.memory_space<vmem>>, %arg16: memref<1x32xf32, #tpu.memory_space<vmem>>, %arg17: memref<1x32xf32, #tpu.memory_space<vmem>>, %arg18: memref<32x2048xf32, #tpu.memory_space<vmem>>, %arg19: memref<1x2048xf32, #tpu.memory_space<vmem>>, %arg20: memref<2048x32xf32, #tpu.memory_space<vmem>>, %arg21: memref<1x32xf32, #tpu.memory_space<vmem>>, %arg22: memref<1x32xf32, #tpu.memory_space<vmem>>, %arg23: memref<1x32xf32, #tpu.memory_space<vmem>>, %arg24: memref<8x32xf32, #tpu.memory_space<vmem>>) attributes {dimension_semantics = [#tpu.dimension_semantics<parallel>], iteration_bounds = array<i64: 2>, scalar_prefetch = 0 : i64, scratch_operands = 0 : i64, tpu.core_type = #tpu.core_type<tc>, window_params = [{transform_indices = @transform_0, window_bounds = array<i64: 8, 1>}, {pipeline_mode = #tpu.pipeline_mode<synchronous>, transform_indices = @transform_1, window_bounds = array<i64: 64, 32>}, {transform_indices = @transform_2, window_bounds = array<i64: 8, 32>}, {pipeline_mode = #tpu.pipeline_mode<synchronous>, transform_indices = @transform_3, window_bounds = array<i64: 32, 96>}, {pipeline_mode = #tpu.pipeline_mode<synchronous>, transform_indices = @transform_4, window_bounds = array<i64: 1, 96>}, {pipeline_mode = #tpu.pipeline_mode<synchronous>, transform_indices = @transform_5, window_bounds = array<i64: 32, 32>}, {pipeline_mode = #tpu.pipeline_mode<synchronous>, transform_indices = @transform_6, window_bounds = array<i64: 1, 32>}, {pipeline_mode = #tpu.pipeline_mode<synchronous>, transform_indices = @transform_7, window_bounds = array<i64: 1, 32>}, {pipeline_mode = #tpu.pipeline_mode<synchronous>, transform_indices = @transform_8, window_bounds = array<i64: 1, 32>}, {pipeline_mode = #tpu.pipeline_mode<synchronous>, transform_indices = @transform_9, window_bounds = array<i64: 32, 32>}, {pipeline_mode = #tpu.pipeline_mode<synchronous>, transform_indices = @transform_10, window_bounds = array<i64: 1, 32>}, {pipeline_mode = #tpu.pipeline_mode<synchronous>, transform_indices = @transform_11, window_bounds = array<i64: 32, 64>}, {pipeline_mode = #tpu.pipeline_mode<synchronous>, transform_indices = @transform_12, window_bounds = array<i64: 1, 64>}, {pipeline_mode = #tpu.pipeline_mode<synchronous>, transform_indices = @transform_13, window_bounds = array<i64: 32, 32>}, {pipeline_mode = #tpu.pipeline_mode<synchronous>, transform_indices = @transform_14, window_bounds = array<i64: 1, 32>}, {pipeline_mode = #tpu.pipeline_mode<synchronous>, transform_indices = @transform_15, window_bounds = array<i64: 1, 32>}, {pipeline_mode = #tpu.pipeline_mode<synchronous>, transform_indices = @transform_16, window_bounds = array<i64: 1, 32>}, {pipeline_mode = #tpu.pipeline_mode<synchronous>, transform_indices = @transform_17, window_bounds = array<i64: 32, 2048>}, {pipeline_mode = #tpu.pipeline_mode<synchronous>, transform_indices = @transform_18, window_bounds = array<i64: 1, 2048>}, {pipeline_mode = #tpu.pipeline_mode<synchronous>, transform_indices = @transform_19, window_bounds = array<i64: 2048, 32>}, {pipeline_mode = #tpu.pipeline_mode<synchronous>, transform_indices = @transform_20, window_bounds = array<i64: 1, 32>}, {pipeline_mode = #tpu.pipeline_mode<synchronous>, transform_indices = @transform_21, window_bounds = array<i64: 1, 32>}, {pipeline_mode = #tpu.pipeline_mode<synchronous>, transform_indices = @transform_22, window_bounds = array<i64: 1, 32>}, {transform_indices = @transform_23, window_bounds = array<i64: 8, 32>}]} {
    %c0 = arith.constant 0 : index
    %c0_0 = arith.constant 0 : index
    %0 = vector.load %arg1[%c0, %c0_0] : memref<8x1xi32, #tpu.memory_space<vmem>>, vector<8x1xi32>
    %c0_1 = arith.constant 0 : index
    %c0_2 = arith.constant 0 : index
    %1 = vector.load %arg2[%c0_1, %c0_2] : memref<64x32xf32, #tpu.memory_space<vmem>>, vector<64x32xf32>
    %2 = tpu.iota {dimensions = array<i32: 1>} : vector<8x64xi32>
    %3 = vector.broadcast %0 : vector<8x1xi32> to vector<8x64xi32>
    %4 = arith.cmpi eq, %3, %2 : vector<8x64xi32>
    %5 = arith.extui %4 : vector<8x64xi1> to vector<8x64xi32>
    %6 = arith.sitofp %5 : vector<8x64xi32> to vector<8x64xf32>
    %cst = arith.constant dense<0.000000e+00> : vector<8x32xf32>
    %7 = tpu.matmul %6, %1, %cst {dimension_numbers = #tpu.dot_dimension_numbers<[1], [0], [0], [1], [0, 0, 1, 1], [], []>} : vector<8x64xf32>, vector<64x32xf32>, vector<8x32xf32> -> vector<8x32xf32>
    %c0_3 = arith.constant 0 : index
    %c0_4 = arith.constant 0 : index
    %8 = vector.load %arg3[%c0_3, %c0_4] : memref<8x32xf32, #tpu.memory_space<vmem>>, vector<8x32xf32>
    %c0_5 = arith.constant 0 : index
    %c0_6 = arith.constant 0 : index
    %9 = vector.load %arg4[%c0_5, %c0_6] : memref<32x96xf32, #tpu.memory_space<vmem>>, vector<32x96xf32>
    %cst_7 = arith.constant dense<0.000000e+00> : vector<8x96xf32>
    %10 = tpu.matmul %7, %9, %cst_7 {dimension_numbers = #tpu.dot_dimension_numbers<[1], [0], [0], [1], [0, 0, 1, 1], [], []>} : vector<8x32xf32>, vector<32x96xf32>, vector<8x96xf32> -> vector<8x96xf32>
    %c0_8 = arith.constant 0 : index
    %c0_9 = arith.constant 0 : index
    %11 = vector.load %arg5[%c0_8, %c0_9] : memref<1x96xf32, #tpu.memory_space<vmem>>, vector<1x96xf32>
    %12 = vector.broadcast %11 : vector<1x96xf32> to vector<8x96xf32>
    %13 = arith.addf %10, %12 : vector<8x96xf32>
    %14 = vector.extract_strided_slice %13 {offsets = [0, 0], sizes = [8, 32], strides = [1, 1]} : vector<8x96xf32> to vector<8x32xf32>
    %15 = vector.extract_strided_slice %13 {offsets = [0, 32], sizes = [8, 32], strides = [1, 1]} : vector<8x96xf32> to vector<8x32xf32>
    %16 = vector.extract_strided_slice %13 {offsets = [0, 64], sizes = [8, 32], strides = [1, 1]} : vector<8x96xf32> to vector<8x32xf32>
    %17 = vector.extract_strided_slice %14 {offsets = [0, 0], sizes = [8, 8], strides = [1, 1]} : vector<8x32xf32> to vector<8x8xf32>
    %cst_10 = arith.constant 0.353553385 : f32
    %18 = vector.broadcast %cst_10 : f32 to vector<8x8xf32>
    %19 = arith.mulf %17, %18 : vector<8x8xf32>
    %20 = vector.extract_strided_slice %15 {offsets = [0, 0], sizes = [8, 8], strides = [1, 1]} : vector<8x32xf32> to vector<8x8xf32>
    %21 = vector.extract_strided_slice %16 {offsets = [0, 0], sizes = [8, 8], strides = [1, 1]} : vector<8x32xf32> to vector<8x8xf32>
    %cst_11 = arith.constant dense<0.000000e+00> : vector<8x8xf32>
    %22 = tpu.matmul %19, %20, %cst_11 {dimension_numbers = #tpu.dot_dimension_numbers<[1], [1], [0], [0], [0, 0, 1, 0], [], []>} : vector<8x8xf32>, vector<8x8xf32>, vector<8x8xf32> -> vector<8x8xf32>
    %cst_12 = arith.constant dense<0xFF800000> : vector<8xf32>
    %23 = vector.multi_reduction <maximumf>, %22, %cst_12 [1] : vector<8x8xf32> to vector<8xf32>
    %24 = vector.shape_cast %23 : vector<8xf32> to vector<8x1xf32>
    %25 = vector.broadcast %24 : vector<8x1xf32> to vector<8x8xf32>
    %26 = arith.subf %22, %25 : vector<8x8xf32>
    %27 = math.exp %26 : vector<8x8xf32>
    %cst_13 = arith.constant dense<0.000000e+00> : vector<8xf32>
    %28 = vector.multi_reduction <add>, %27, %cst_13 [1] : vector<8x8xf32> to vector<8xf32>
    %29 = vector.shape_cast %28 : vector<8xf32> to vector<8x1xf32>
    %30 = tpu.reciprocal %29 {approx = true} : vector<8x1xf32> -> vector<8x1xf32>
    %31 = vector.broadcast %30 : vector<8x1xf32> to vector<8x8xf32>
    %32 = arith.mulf %27, %31 : vector<8x8xf32>
    %cst_14 = arith.constant dense<0.000000e+00> : vector<8x8xf32>
    %33 = tpu.matmul %32, %21, %cst_14 {dimension_numbers = #tpu.dot_dimension_numbers<[1], [0], [0], [1], [0, 0, 1, 1], [], []>} : vector<8x8xf32>, vector<8x8xf32>, vector<8x8xf32> -> vector<8x8xf32>
    %34 = vector.extract_strided_slice %14 {offsets = [0, 8], sizes = [8, 8], strides = [1, 1]} : vector<8x32xf32> to vector<8x8xf32>
    %cst_15 = arith.constant 0.353553385 : f32
    %35 = vector.broadcast %cst_15 : f32 to vector<8x8xf32>
    %36 = arith.mulf %34, %35 : vector<8x8xf32>
    %37 = vector.extract_strided_slice %15 {offsets = [0, 8], sizes = [8, 8], strides = [1, 1]} : vector<8x32xf32> to vector<8x8xf32>
    %38 = vector.extract_strided_slice %16 {offsets = [0, 8], sizes = [8, 8], strides = [1, 1]} : vector<8x32xf32> to vector<8x8xf32>
    %cst_16 = arith.constant dense<0.000000e+00> : vector<8x8xf32>
    %39 = tpu.matmul %36, %37, %cst_16 {dimension_numbers = #tpu.dot_dimension_numbers<[1], [1], [0], [0], [0, 0, 1, 0], [], []>} : vector<8x8xf32>, vector<8x8xf32>, vector<8x8xf32> -> vector<8x8xf32>
    %cst_17 = arith.constant dense<0xFF800000> : vector<8xf32>
    %40 = vector.multi_reduction <maximumf>, %39, %cst_17 [1] : vector<8x8xf32> to vector<8xf32>
    %41 = vector.shape_cast %40 : vector<8xf32> to vector<8x1xf32>
    %42 = vector.broadcast %41 : vector<8x1xf32> to vector<8x8xf32>
    %43 = arith.subf %39, %42 : vector<8x8xf32>
    %44 = math.exp %43 : vector<8x8xf32>
    %cst_18 = arith.constant dense<0.000000e+00> : vector<8xf32>
    %45 = vector.multi_reduction <add>, %44, %cst_18 [1] : vector<8x8xf32> to vector<8xf32>
    %46 = vector.shape_cast %45 : vector<8xf32> to vector<8x1xf32>
    %47 = tpu.reciprocal %46 {approx = true} : vector<8x1xf32> -> vector<8x1xf32>
    %48 = vector.broadcast %47 : vector<8x1xf32> to vector<8x8xf32>
    %49 = arith.mulf %44, %48 : vector<8x8xf32>
    %cst_19 = arith.constant dense<0.000000e+00> : vector<8x8xf32>
    %50 = tpu.matmul %49, %38, %cst_19 {dimension_numbers = #tpu.dot_dimension_numbers<[1], [0], [0], [1], [0, 0, 1, 1], [], []>} : vector<8x8xf32>, vector<8x8xf32>, vector<8x8xf32> -> vector<8x8xf32>
    %51 = vector.extract_strided_slice %14 {offsets = [0, 16], sizes = [8, 8], strides = [1, 1]} : vector<8x32xf32> to vector<8x8xf32>
    %cst_20 = arith.constant 0.353553385 : f32
    %52 = vector.broadcast %cst_20 : f32 to vector<8x8xf32>
    %53 = arith.mulf %51, %52 : vector<8x8xf32>
    %54 = vector.extract_strided_slice %15 {offsets = [0, 16], sizes = [8, 8], strides = [1, 1]} : vector<8x32xf32> to vector<8x8xf32>
    %55 = vector.extract_strided_slice %16 {offsets = [0, 16], sizes = [8, 8], strides = [1, 1]} : vector<8x32xf32> to vector<8x8xf32>
    %cst_21 = arith.constant dense<0.000000e+00> : vector<8x8xf32>
    %56 = tpu.matmul %53, %54, %cst_21 {dimension_numbers = #tpu.dot_dimension_numbers<[1], [1], [0], [0], [0, 0, 1, 0], [], []>} : vector<8x8xf32>, vector<8x8xf32>, vector<8x8xf32> -> vector<8x8xf32>
    %cst_22 = arith.constant dense<0xFF800000> : vector<8xf32>
    %57 = vector.multi_reduction <maximumf>, %56, %cst_22 [1] : vector<8x8xf32> to vector<8xf32>
    %58 = vector.shape_cast %57 : vector<8xf32> to vector<8x1xf32>
    %59 = vector.broadcast %58 : vector<8x1xf32> to vector<8x8xf32>
    %60 = arith.subf %56, %59 : vector<8x8xf32>
    %61 = math.exp %60 : vector<8x8xf32>
    %cst_23 = arith.constant dense<0.000000e+00> : vector<8xf32>
    %62 = vector.multi_reduction <add>, %61, %cst_23 [1] : vector<8x8xf32> to vector<8xf32>
    %63 = vector.shape_cast %62 : vector<8xf32> to vector<8x1xf32>
    %64 = tpu.reciprocal %63 {approx = true} : vector<8x1xf32> -> vector<8x1xf32>
    %65 = vector.broadcast %64 : vector<8x1xf32> to vector<8x8xf32>
    %66 = arith.mulf %61, %65 : vector<8x8xf32>
    %cst_24 = arith.constant dense<0.000000e+00> : vector<8x8xf32>
    %67 = tpu.matmul %66, %55, %cst_24 {dimension_numbers = #tpu.dot_dimension_numbers<[1], [0], [0], [1], [0, 0, 1, 1], [], []>} : vector<8x8xf32>, vector<8x8xf32>, vector<8x8xf32> -> vector<8x8xf32>
    %68 = vector.extract_strided_slice %14 {offsets = [0, 24], sizes = [8, 8], strides = [1, 1]} : vector<8x32xf32> to vector<8x8xf32>
    %cst_25 = arith.constant 0.353553385 : f32
    %69 = vector.broadcast %cst_25 : f32 to vector<8x8xf32>
    %70 = arith.mulf %68, %69 : vector<8x8xf32>
    %71 = vector.extract_strided_slice %15 {offsets = [0, 24], sizes = [8, 8], strides = [1, 1]} : vector<8x32xf32> to vector<8x8xf32>
    %72 = vector.extract_strided_slice %16 {offsets = [0, 24], sizes = [8, 8], strides = [1, 1]} : vector<8x32xf32> to vector<8x8xf32>
    %cst_26 = arith.constant dense<0.000000e+00> : vector<8x8xf32>
    %73 = tpu.matmul %70, %71, %cst_26 {dimension_numbers = #tpu.dot_dimension_numbers<[1], [1], [0], [0], [0, 0, 1, 0], [], []>} : vector<8x8xf32>, vector<8x8xf32>, vector<8x8xf32> -> vector<8x8xf32>
    %cst_27 = arith.constant dense<0xFF800000> : vector<8xf32>
    %74 = vector.multi_reduction <maximumf>, %73, %cst_27 [1] : vector<8x8xf32> to vector<8xf32>
    %75 = vector.shape_cast %74 : vector<8xf32> to vector<8x1xf32>
    %76 = vector.broadcast %75 : vector<8x1xf32> to vector<8x8xf32>
    %77 = arith.subf %73, %76 : vector<8x8xf32>
    %78 = math.exp %77 : vector<8x8xf32>
    %cst_28 = arith.constant dense<0.000000e+00> : vector<8xf32>
    %79 = vector.multi_reduction <add>, %78, %cst_28 [1] : vector<8x8xf32> to vector<8xf32>
    %80 = vector.shape_cast %79 : vector<8xf32> to vector<8x1xf32>
    %81 = tpu.reciprocal %80 {approx = true} : vector<8x1xf32> -> vector<8x1xf32>
    %82 = vector.broadcast %81 : vector<8x1xf32> to vector<8x8xf32>
    %83 = arith.mulf %78, %82 : vector<8x8xf32>
    %cst_29 = arith.constant dense<0.000000e+00> : vector<8x8xf32>
    %84 = tpu.matmul %83, %72, %cst_29 {dimension_numbers = #tpu.dot_dimension_numbers<[1], [0], [0], [1], [0, 0, 1, 1], [], []>} : vector<8x8xf32>, vector<8x8xf32>, vector<8x8xf32> -> vector<8x8xf32>
    %85 = tpu.concatenate %33, %50, %67, %84 in 1 : vector<8x8xf32>, vector<8x8xf32>, vector<8x8xf32>, vector<8x8xf32> -> vector<8x32xf32>
    %c0_30 = arith.constant 0 : index
    %c0_31 = arith.constant 0 : index
    %86 = vector.load %arg6[%c0_30, %c0_31] : memref<32x32xf32, #tpu.memory_space<vmem>>, vector<32x32xf32>
    %cst_32 = arith.constant dense<0.000000e+00> : vector<8x32xf32>
    %87 = tpu.matmul %85, %86, %cst_32 {dimension_numbers = #tpu.dot_dimension_numbers<[1], [0], [0], [1], [0, 0, 1, 1], [], []>} : vector<8x32xf32>, vector<32x32xf32>, vector<8x32xf32> -> vector<8x32xf32>
    %c0_33 = arith.constant 0 : index
    %c0_34 = arith.constant 0 : index
    %88 = vector.load %arg7[%c0_33, %c0_34] : memref<1x32xf32, #tpu.memory_space<vmem>>, vector<1x32xf32>
    %89 = vector.broadcast %88 : vector<1x32xf32> to vector<8x32xf32>
    %90 = arith.addf %87, %89 : vector<8x32xf32>
    %91 = arith.addf %7, %90 : vector<8x32xf32>
    %c0_35 = arith.constant 0 : index
    %c0_36 = arith.constant 0 : index
    %92 = vector.load %arg8[%c0_35, %c0_36] : memref<1x32xf32, #tpu.memory_space<vmem>>, vector<1x32xf32>
    %c0_37 = arith.constant 0 : index
    %c0_38 = arith.constant 0 : index
    %93 = vector.load %arg9[%c0_37, %c0_38] : memref<1x32xf32, #tpu.memory_space<vmem>>, vector<1x32xf32>
    %cst_39 = arith.constant dense<0.000000e+00> : vector<8xf32>
    %94 = vector.multi_reduction <add>, %91, %cst_39 [1] : vector<8x32xf32> to vector<8xf32>
    %95 = vector.shape_cast %94 : vector<8xf32> to vector<8x1xf32>
    %cst_40 = arith.constant 3.200000e+01 : f32
    %96 = vector.broadcast %cst_40 : f32 to vector<8x1xf32>
    %97 = arith.divf %95, %96 : vector<8x1xf32>
    %98 = vector.broadcast %97 : vector<8x1xf32> to vector<8x32xf32>
    %99 = arith.subf %91, %98 : vector<8x32xf32>
    %100 = arith.mulf %99, %99 : vector<8x32xf32>
    %cst_41 = arith.constant dense<0.000000e+00> : vector<8xf32>
    %101 = vector.multi_reduction <add>, %100, %cst_41 [1] : vector<8x32xf32> to vector<8xf32>
    %102 = vector.shape_cast %101 : vector<8xf32> to vector<8x1xf32>
    %cst_42 = arith.constant 3.200000e+01 : f32
    %103 = vector.broadcast %cst_42 : f32 to vector<8x1xf32>
    %104 = arith.divf %102, %103 : vector<8x1xf32>
    %105 = vector.broadcast %97 : vector<8x1xf32> to vector<8x32xf32>
    %106 = arith.subf %91, %105 : vector<8x32xf32>
    %cst_43 = arith.constant 9.99999974E-6 : f32
    %107 = vector.broadcast %cst_43 : f32 to vector<8x1xf32>
    %108 = arith.addf %104, %107 : vector<8x1xf32>
    %109 = math.rsqrt %108 : vector<8x1xf32>
    %110 = vector.broadcast %109 : vector<8x1xf32> to vector<8x32xf32>
    %111 = arith.mulf %106, %110 : vector<8x32xf32>
    %112 = vector.broadcast %92 : vector<1x32xf32> to vector<8x32xf32>
    %113 = arith.mulf %111, %112 : vector<8x32xf32>
    %114 = vector.broadcast %93 : vector<1x32xf32> to vector<8x32xf32>
    %115 = arith.addf %113, %114 : vector<8x32xf32>
    %c0_44 = arith.constant 0 : index
    %c0_45 = arith.constant 0 : index
    %116 = vector.load %arg10[%c0_44, %c0_45] : memref<32x32xf32, #tpu.memory_space<vmem>>, vector<32x32xf32>
    %cst_46 = arith.constant dense<0.000000e+00> : vector<8x32xf32>
    %117 = tpu.matmul %115, %116, %cst_46 {dimension_numbers = #tpu.dot_dimension_numbers<[1], [0], [0], [1], [0, 0, 1, 1], [], []>} : vector<8x32xf32>, vector<32x32xf32>, vector<8x32xf32> -> vector<8x32xf32>
    %c0_47 = arith.constant 0 : index
    %c0_48 = arith.constant 0 : index
    %118 = vector.load %arg11[%c0_47, %c0_48] : memref<1x32xf32, #tpu.memory_space<vmem>>, vector<1x32xf32>
    %119 = vector.broadcast %118 : vector<1x32xf32> to vector<8x32xf32>
    %120 = arith.addf %117, %119 : vector<8x32xf32>
    %c0_49 = arith.constant 0 : index
    %c0_50 = arith.constant 0 : index
    %121 = vector.load %arg12[%c0_49, %c0_50] : memref<32x64xf32, #tpu.memory_space<vmem>>, vector<32x64xf32>
    %cst_51 = arith.constant dense<0.000000e+00> : vector<8x64xf32>
    %122 = tpu.matmul %8, %121, %cst_51 {dimension_numbers = #tpu.dot_dimension_numbers<[1], [0], [0], [1], [0, 0, 1, 1], [], []>} : vector<8x32xf32>, vector<32x64xf32>, vector<8x64xf32> -> vector<8x64xf32>
    %c0_52 = arith.constant 0 : index
    %c0_53 = arith.constant 0 : index
    %123 = vector.load %arg13[%c0_52, %c0_53] : memref<1x64xf32, #tpu.memory_space<vmem>>, vector<1x64xf32>
    %124 = vector.broadcast %123 : vector<1x64xf32> to vector<8x64xf32>
    %125 = arith.addf %122, %124 : vector<8x64xf32>
    %126 = vector.extract_strided_slice %125 {offsets = [0, 0], sizes = [8, 32], strides = [1, 1]} : vector<8x64xf32> to vector<8x32xf32>
    %127 = vector.extract_strided_slice %125 {offsets = [0, 32], sizes = [8, 32], strides = [1, 1]} : vector<8x64xf32> to vector<8x32xf32>
    %128 = vector.extract_strided_slice %120 {offsets = [0, 0], sizes = [8, 8], strides = [1, 1]} : vector<8x32xf32> to vector<8x8xf32>
    %cst_54 = arith.constant 0.353553385 : f32
    %129 = vector.broadcast %cst_54 : f32 to vector<8x8xf32>
    %130 = arith.mulf %128, %129 : vector<8x8xf32>
    %131 = vector.extract_strided_slice %126 {offsets = [0, 0], sizes = [8, 8], strides = [1, 1]} : vector<8x32xf32> to vector<8x8xf32>
    %132 = vector.extract_strided_slice %127 {offsets = [0, 0], sizes = [8, 8], strides = [1, 1]} : vector<8x32xf32> to vector<8x8xf32>
    %cst_55 = arith.constant dense<0.000000e+00> : vector<8x8xf32>
    %133 = tpu.matmul %130, %131, %cst_55 {dimension_numbers = #tpu.dot_dimension_numbers<[1], [1], [0], [0], [0, 0, 1, 0], [], []>} : vector<8x8xf32>, vector<8x8xf32>, vector<8x8xf32> -> vector<8x8xf32>
    %cst_56 = arith.constant dense<0xFF800000> : vector<8xf32>
    %134 = vector.multi_reduction <maximumf>, %133, %cst_56 [1] : vector<8x8xf32> to vector<8xf32>
    %135 = vector.shape_cast %134 : vector<8xf32> to vector<8x1xf32>
    %136 = vector.broadcast %135 : vector<8x1xf32> to vector<8x8xf32>
    %137 = arith.subf %133, %136 : vector<8x8xf32>
    %138 = math.exp %137 : vector<8x8xf32>
    %cst_57 = arith.constant dense<0.000000e+00> : vector<8xf32>
    %139 = vector.multi_reduction <add>, %138, %cst_57 [1] : vector<8x8xf32> to vector<8xf32>
    %140 = vector.shape_cast %139 : vector<8xf32> to vector<8x1xf32>
    %141 = tpu.reciprocal %140 {approx = true} : vector<8x1xf32> -> vector<8x1xf32>
    %142 = vector.broadcast %141 : vector<8x1xf32> to vector<8x8xf32>
    %143 = arith.mulf %138, %142 : vector<8x8xf32>
    %cst_58 = arith.constant dense<0.000000e+00> : vector<8x8xf32>
    %144 = tpu.matmul %143, %132, %cst_58 {dimension_numbers = #tpu.dot_dimension_numbers<[1], [0], [0], [1], [0, 0, 1, 1], [], []>} : vector<8x8xf32>, vector<8x8xf32>, vector<8x8xf32> -> vector<8x8xf32>
    %145 = vector.extract_strided_slice %120 {offsets = [0, 8], sizes = [8, 8], strides = [1, 1]} : vector<8x32xf32> to vector<8x8xf32>
    %cst_59 = arith.constant 0.353553385 : f32
    %146 = vector.broadcast %cst_59 : f32 to vector<8x8xf32>
    %147 = arith.mulf %145, %146 : vector<8x8xf32>
    %148 = vector.extract_strided_slice %126 {offsets = [0, 8], sizes = [8, 8], strides = [1, 1]} : vector<8x32xf32> to vector<8x8xf32>
    %149 = vector.extract_strided_slice %127 {offsets = [0, 8], sizes = [8, 8], strides = [1, 1]} : vector<8x32xf32> to vector<8x8xf32>
    %cst_60 = arith.constant dense<0.000000e+00> : vector<8x8xf32>
    %150 = tpu.matmul %147, %148, %cst_60 {dimension_numbers = #tpu.dot_dimension_numbers<[1], [1], [0], [0], [0, 0, 1, 0], [], []>} : vector<8x8xf32>, vector<8x8xf32>, vector<8x8xf32> -> vector<8x8xf32>
    %cst_61 = arith.constant dense<0xFF800000> : vector<8xf32>
    %151 = vector.multi_reduction <maximumf>, %150, %cst_61 [1] : vector<8x8xf32> to vector<8xf32>
    %152 = vector.shape_cast %151 : vector<8xf32> to vector<8x1xf32>
    %153 = vector.broadcast %152 : vector<8x1xf32> to vector<8x8xf32>
    %154 = arith.subf %150, %153 : vector<8x8xf32>
    %155 = math.exp %154 : vector<8x8xf32>
    %cst_62 = arith.constant dense<0.000000e+00> : vector<8xf32>
    %156 = vector.multi_reduction <add>, %155, %cst_62 [1] : vector<8x8xf32> to vector<8xf32>
    %157 = vector.shape_cast %156 : vector<8xf32> to vector<8x1xf32>
    %158 = tpu.reciprocal %157 {approx = true} : vector<8x1xf32> -> vector<8x1xf32>
    %159 = vector.broadcast %158 : vector<8x1xf32> to vector<8x8xf32>
    %160 = arith.mulf %155, %159 : vector<8x8xf32>
    %cst_63 = arith.constant dense<0.000000e+00> : vector<8x8xf32>
    %161 = tpu.matmul %160, %149, %cst_63 {dimension_numbers = #tpu.dot_dimension_numbers<[1], [0], [0], [1], [0, 0, 1, 1], [], []>} : vector<8x8xf32>, vector<8x8xf32>, vector<8x8xf32> -> vector<8x8xf32>
    %162 = vector.extract_strided_slice %120 {offsets = [0, 16], sizes = [8, 8], strides = [1, 1]} : vector<8x32xf32> to vector<8x8xf32>
    %cst_64 = arith.constant 0.353553385 : f32
    %163 = vector.broadcast %cst_64 : f32 to vector<8x8xf32>
    %164 = arith.mulf %162, %163 : vector<8x8xf32>
    %165 = vector.extract_strided_slice %126 {offsets = [0, 16], sizes = [8, 8], strides = [1, 1]} : vector<8x32xf32> to vector<8x8xf32>
    %166 = vector.extract_strided_slice %127 {offsets = [0, 16], sizes = [8, 8], strides = [1, 1]} : vector<8x32xf32> to vector<8x8xf32>
    %cst_65 = arith.constant dense<0.000000e+00> : vector<8x8xf32>
    %167 = tpu.matmul %164, %165, %cst_65 {dimension_numbers = #tpu.dot_dimension_numbers<[1], [1], [0], [0], [0, 0, 1, 0], [], []>} : vector<8x8xf32>, vector<8x8xf32>, vector<8x8xf32> -> vector<8x8xf32>
    %cst_66 = arith.constant dense<0xFF800000> : vector<8xf32>
    %168 = vector.multi_reduction <maximumf>, %167, %cst_66 [1] : vector<8x8xf32> to vector<8xf32>
    %169 = vector.shape_cast %168 : vector<8xf32> to vector<8x1xf32>
    %170 = vector.broadcast %169 : vector<8x1xf32> to vector<8x8xf32>
    %171 = arith.subf %167, %170 : vector<8x8xf32>
    %172 = math.exp %171 : vector<8x8xf32>
    %cst_67 = arith.constant dense<0.000000e+00> : vector<8xf32>
    %173 = vector.multi_reduction <add>, %172, %cst_67 [1] : vector<8x8xf32> to vector<8xf32>
    %174 = vector.shape_cast %173 : vector<8xf32> to vector<8x1xf32>
    %175 = tpu.reciprocal %174 {approx = true} : vector<8x1xf32> -> vector<8x1xf32>
    %176 = vector.broadcast %175 : vector<8x1xf32> to vector<8x8xf32>
    %177 = arith.mulf %172, %176 : vector<8x8xf32>
    %cst_68 = arith.constant dense<0.000000e+00> : vector<8x8xf32>
    %178 = tpu.matmul %177, %166, %cst_68 {dimension_numbers = #tpu.dot_dimension_numbers<[1], [0], [0], [1], [0, 0, 1, 1], [], []>} : vector<8x8xf32>, vector<8x8xf32>, vector<8x8xf32> -> vector<8x8xf32>
    %179 = vector.extract_strided_slice %120 {offsets = [0, 24], sizes = [8, 8], strides = [1, 1]} : vector<8x32xf32> to vector<8x8xf32>
    %cst_69 = arith.constant 0.353553385 : f32
    %180 = vector.broadcast %cst_69 : f32 to vector<8x8xf32>
    %181 = arith.mulf %179, %180 : vector<8x8xf32>
    %182 = vector.extract_strided_slice %126 {offsets = [0, 24], sizes = [8, 8], strides = [1, 1]} : vector<8x32xf32> to vector<8x8xf32>
    %183 = vector.extract_strided_slice %127 {offsets = [0, 24], sizes = [8, 8], strides = [1, 1]} : vector<8x32xf32> to vector<8x8xf32>
    %cst_70 = arith.constant dense<0.000000e+00> : vector<8x8xf32>
    %184 = tpu.matmul %181, %182, %cst_70 {dimension_numbers = #tpu.dot_dimension_numbers<[1], [1], [0], [0], [0, 0, 1, 0], [], []>} : vector<8x8xf32>, vector<8x8xf32>, vector<8x8xf32> -> vector<8x8xf32>
    %cst_71 = arith.constant dense<0xFF800000> : vector<8xf32>
    %185 = vector.multi_reduction <maximumf>, %184, %cst_71 [1] : vector<8x8xf32> to vector<8xf32>
    %186 = vector.shape_cast %185 : vector<8xf32> to vector<8x1xf32>
    %187 = vector.broadcast %186 : vector<8x1xf32> to vector<8x8xf32>
    %188 = arith.subf %184, %187 : vector<8x8xf32>
    %189 = math.exp %188 : vector<8x8xf32>
    %cst_72 = arith.constant dense<0.000000e+00> : vector<8xf32>
    %190 = vector.multi_reduction <add>, %189, %cst_72 [1] : vector<8x8xf32> to vector<8xf32>
    %191 = vector.shape_cast %190 : vector<8xf32> to vector<8x1xf32>
    %192 = tpu.reciprocal %191 {approx = true} : vector<8x1xf32> -> vector<8x1xf32>
    %193 = vector.broadcast %192 : vector<8x1xf32> to vector<8x8xf32>
    %194 = arith.mulf %189, %193 : vector<8x8xf32>
    %cst_73 = arith.constant dense<0.000000e+00> : vector<8x8xf32>
    %195 = tpu.matmul %194, %183, %cst_73 {dimension_numbers = #tpu.dot_dimension_numbers<[1], [0], [0], [1], [0, 0, 1, 1], [], []>} : vector<8x8xf32>, vector<8x8xf32>, vector<8x8xf32> -> vector<8x8xf32>
    %196 = tpu.concatenate %144, %161, %178, %195 in 1 : vector<8x8xf32>, vector<8x8xf32>, vector<8x8xf32>, vector<8x8xf32> -> vector<8x32xf32>
    %c0_74 = arith.constant 0 : index
    %c0_75 = arith.constant 0 : index
    %197 = vector.load %arg14[%c0_74, %c0_75] : memref<32x32xf32, #tpu.memory_space<vmem>>, vector<32x32xf32>
    %cst_76 = arith.constant dense<0.000000e+00> : vector<8x32xf32>
    %198 = tpu.matmul %196, %197, %cst_76 {dimension_numbers = #tpu.dot_dimension_numbers<[1], [0], [0], [1], [0, 0, 1, 1], [], []>} : vector<8x32xf32>, vector<32x32xf32>, vector<8x32xf32> -> vector<8x32xf32>
    %c0_77 = arith.constant 0 : index
    %c0_78 = arith.constant 0 : index
    %199 = vector.load %arg15[%c0_77, %c0_78] : memref<1x32xf32, #tpu.memory_space<vmem>>, vector<1x32xf32>
    %200 = vector.broadcast %199 : vector<1x32xf32> to vector<8x32xf32>
    %201 = arith.addf %198, %200 : vector<8x32xf32>
    %202 = arith.addf %115, %201 : vector<8x32xf32>
    %c0_79 = arith.constant 0 : index
    %c0_80 = arith.constant 0 : index
    %203 = vector.load %arg16[%c0_79, %c0_80] : memref<1x32xf32, #tpu.memory_space<vmem>>, vector<1x32xf32>
    %c0_81 = arith.constant 0 : index
    %c0_82 = arith.constant 0 : index
    %204 = vector.load %arg17[%c0_81, %c0_82] : memref<1x32xf32, #tpu.memory_space<vmem>>, vector<1x32xf32>
    %cst_83 = arith.constant dense<0.000000e+00> : vector<8xf32>
    %205 = vector.multi_reduction <add>, %202, %cst_83 [1] : vector<8x32xf32> to vector<8xf32>
    %206 = vector.shape_cast %205 : vector<8xf32> to vector<8x1xf32>
    %cst_84 = arith.constant 3.200000e+01 : f32
    %207 = vector.broadcast %cst_84 : f32 to vector<8x1xf32>
    %208 = arith.divf %206, %207 : vector<8x1xf32>
    %209 = vector.broadcast %208 : vector<8x1xf32> to vector<8x32xf32>
    %210 = arith.subf %202, %209 : vector<8x32xf32>
    %211 = arith.mulf %210, %210 : vector<8x32xf32>
    %cst_85 = arith.constant dense<0.000000e+00> : vector<8xf32>
    %212 = vector.multi_reduction <add>, %211, %cst_85 [1] : vector<8x32xf32> to vector<8xf32>
    %213 = vector.shape_cast %212 : vector<8xf32> to vector<8x1xf32>
    %cst_86 = arith.constant 3.200000e+01 : f32
    %214 = vector.broadcast %cst_86 : f32 to vector<8x1xf32>
    %215 = arith.divf %213, %214 : vector<8x1xf32>
    %216 = vector.broadcast %208 : vector<8x1xf32> to vector<8x32xf32>
    %217 = arith.subf %202, %216 : vector<8x32xf32>
    %cst_87 = arith.constant 9.99999974E-6 : f32
    %218 = vector.broadcast %cst_87 : f32 to vector<8x1xf32>
    %219 = arith.addf %215, %218 : vector<8x1xf32>
    %220 = math.rsqrt %219 : vector<8x1xf32>
    %221 = vector.broadcast %220 : vector<8x1xf32> to vector<8x32xf32>
    %222 = arith.mulf %217, %221 : vector<8x32xf32>
    %223 = vector.broadcast %203 : vector<1x32xf32> to vector<8x32xf32>
    %224 = arith.mulf %222, %223 : vector<8x32xf32>
    %225 = vector.broadcast %204 : vector<1x32xf32> to vector<8x32xf32>
    %226 = arith.addf %224, %225 : vector<8x32xf32>
    %c0_88 = arith.constant 0 : index
    %c0_89 = arith.constant 0 : index
    %227 = vector.load %arg18[%c0_88, %c0_89] : memref<32x2048xf32, #tpu.memory_space<vmem>>, vector<32x2048xf32>
    %cst_90 = arith.constant dense<0.000000e+00> : vector<8x2048xf32>
    %228 = tpu.matmul %226, %227, %cst_90 {dimension_numbers = #tpu.dot_dimension_numbers<[1], [0], [0], [1], [0, 0, 1, 1], [], []>} : vector<8x32xf32>, vector<32x2048xf32>, vector<8x2048xf32> -> vector<8x2048xf32>
    %c0_91 = arith.constant 0 : index
    %c0_92 = arith.constant 0 : index
    %229 = vector.load %arg19[%c0_91, %c0_92] : memref<1x2048xf32, #tpu.memory_space<vmem>>, vector<1x2048xf32>
    %230 = vector.broadcast %229 : vector<1x2048xf32> to vector<8x2048xf32>
    %231 = arith.addf %228, %230 : vector<8x2048xf32>
    %cst_93 = arith.constant 0.000000e+00 : f32
    %232 = vector.broadcast %cst_93 : f32 to vector<8x2048xf32>
    %233 = arith.maximumf %231, %232 : vector<8x2048xf32>
    %c0_94 = arith.constant 0 : index
    %c0_95 = arith.constant 0 : index
    %234 = vector.load %arg20[%c0_94, %c0_95] : memref<2048x32xf32, #tpu.memory_space<vmem>>, vector<2048x32xf32>
    %cst_96 = arith.constant dense<0.000000e+00> : vector<8x32xf32>
    %235 = tpu.matmul %233, %234, %cst_96 {dimension_numbers = #tpu.dot_dimension_numbers<[1], [0], [0], [1], [0, 0, 1, 1], [], []>} : vector<8x2048xf32>, vector<2048x32xf32>, vector<8x32xf32> -> vector<8x32xf32>
    %c0_97 = arith.constant 0 : index
    %c0_98 = arith.constant 0 : index
    %236 = vector.load %arg21[%c0_97, %c0_98] : memref<1x32xf32, #tpu.memory_space<vmem>>, vector<1x32xf32>
    %237 = vector.broadcast %236 : vector<1x32xf32> to vector<8x32xf32>
    %238 = arith.addf %235, %237 : vector<8x32xf32>
    %239 = arith.addf %226, %238 : vector<8x32xf32>
    %c0_99 = arith.constant 0 : index
    %c0_100 = arith.constant 0 : index
    %240 = vector.load %arg22[%c0_99, %c0_100] : memref<1x32xf32, #tpu.memory_space<vmem>>, vector<1x32xf32>
    %c0_101 = arith.constant 0 : index
    %c0_102 = arith.constant 0 : index
    %241 = vector.load %arg23[%c0_101, %c0_102] : memref<1x32xf32, #tpu.memory_space<vmem>>, vector<1x32xf32>
    %cst_103 = arith.constant dense<0.000000e+00> : vector<8xf32>
    %242 = vector.multi_reduction <add>, %239, %cst_103 [1] : vector<8x32xf32> to vector<8xf32>
    %243 = vector.shape_cast %242 : vector<8xf32> to vector<8x1xf32>
    %cst_104 = arith.constant 3.200000e+01 : f32
    %244 = vector.broadcast %cst_104 : f32 to vector<8x1xf32>
    %245 = arith.divf %243, %244 : vector<8x1xf32>
    %246 = vector.broadcast %245 : vector<8x1xf32> to vector<8x32xf32>
    %247 = arith.subf %239, %246 : vector<8x32xf32>
    %248 = arith.mulf %247, %247 : vector<8x32xf32>
    %cst_105 = arith.constant dense<0.000000e+00> : vector<8xf32>
    %249 = vector.multi_reduction <add>, %248, %cst_105 [1] : vector<8x32xf32> to vector<8xf32>
    %250 = vector.shape_cast %249 : vector<8xf32> to vector<8x1xf32>
    %cst_106 = arith.constant 3.200000e+01 : f32
    %251 = vector.broadcast %cst_106 : f32 to vector<8x1xf32>
    %252 = arith.divf %250, %251 : vector<8x1xf32>
    %253 = vector.broadcast %245 : vector<8x1xf32> to vector<8x32xf32>
    %254 = arith.subf %239, %253 : vector<8x32xf32>
    %cst_107 = arith.constant 9.99999974E-6 : f32
    %255 = vector.broadcast %cst_107 : f32 to vector<8x1xf32>
    %256 = arith.addf %252, %255 : vector<8x1xf32>
    %257 = math.rsqrt %256 : vector<8x1xf32>
    %258 = vector.broadcast %257 : vector<8x1xf32> to vector<8x32xf32>
    %259 = arith.mulf %254, %258 : vector<8x32xf32>
    %260 = vector.broadcast %240 : vector<1x32xf32> to vector<8x32xf32>
    %261 = arith.mulf %259, %260 : vector<8x32xf32>
    %262 = vector.broadcast %241 : vector<1x32xf32> to vector<8x32xf32>
    %263 = arith.addf %261, %262 : vector<8x32xf32>
    %c0_108 = arith.constant 0 : index
    %c0_109 = arith.constant 0 : index
    %264 = vector.load %arg24[%c0_108, %c0_109] : memref<8x32xf32, #tpu.memory_space<vmem>>, vector<8x32xf32>
    tpu.vector_store %arg24[%c0_108, %c0_109], %263 {strides = array<i32>} : memref<8x32xf32, #tpu.memory_space<vmem>>, vector<8x32xf32>,
    return
  }
  func.func @transform_0(%arg0: i32) -> (i32, i32) {
    %c0_i32 = arith.constant 0 : i32
    %c0_i32_0 = arith.constant 0 : i32
    return %arg0, %c0_i32 : i32, i32
  }
  func.func @transform_1(%arg0: i32) -> (i32, i32) {
    %c0_i32 = arith.constant 0 : i32
    %c0_i32_0 = arith.constant 0 : i32
    %c0_i32_1 = arith.constant 0 : i32
    return %c0_i32, %c0_i32_0 : i32, i32
  }
  func.func @transform_2(%arg0: i32) -> (i32, i32) {
    %c0_i32 = arith.constant 0 : i32
    %c0_i32_0 = arith.constant 0 : i32
    return %arg0, %c0_i32 : i32, i32
  }
  func.func @transform_3(%arg0: i32) -> (i32, i32) {
    %c0_i32 = arith.constant 0 : i32
    %c0_i32_0 = arith.constant 0 : i32
    %c0_i32_1 = arith.constant 0 : i32
    return %c0_i32, %c0_i32_0 : i32, i32
  }
  func.func @transform_4(%arg0: i32) -> (i32, i32) {
    %c0_i32 = arith.constant 0 : i32
    %c0_i32_0 = arith.constant 0 : i32
    %c0_i32_1 = arith.constant 0 : i32
    return %c0_i32, %c0_i32_0 : i32, i32
  }
  func.func @transform_5(%arg0: i32) -> (i32, i32) {
    %c0_i32 = arith.constant 0 : i32
    %c0_i32_0 = arith.constant 0 : i32
    %c0_i32_1 = arith.constant 0 : i32
    return %c0_i32, %c0_i32_0 : i32, i32
  }
  func.func @transform_6(%arg0: i32) -> (i32, i32) {
    %c0_i32 = arith.constant 0 : i32
    %c0_i32_0 = arith.constant 0 : i32
    %c0_i32_1 = arith.constant 0 : i32
    return %c0_i32, %c0_i32_0 : i32, i32
  }
  func.func @transform_7(%arg0: i32) -> (i32, i32) {
    %c0_i32 = arith.constant 0 : i32
    %c0_i32_0 = arith.constant 0 : i32
    %c0_i32_1 = arith.constant 0 : i32
    return %c0_i32, %c0_i32_0 : i32, i32
  }
  func.func @transform_8(%arg0: i32) -> (i32, i32) {
    %c0_i32 = arith.constant 0 : i32
    %c0_i32_0 = arith.constant 0 : i32
    %c0_i32_1 = arith.constant 0 : i32
    return %c0_i32, %c0_i32_0 : i32, i32
  }
  func.func @transform_9(%arg0: i32) -> (i32, i32) {
    %c0_i32 = arith.constant 0 : i32
    %c0_i32_0 = arith.constant 0 : i32
    %c0_i32_1 = arith.constant 0 : i32
    return %c0_i32, %c0_i32_0 : i32, i32
  }
  func.func @transform_10(%arg0: i32) -> (i32, i32) {
    %c0_i32 = arith.constant 0 : i32
    %c0_i32_0 = arith.constant 0 : i32
    %c0_i32_1 = arith.constant 0 : i32
    return %c0_i32, %c0_i32_0 : i32, i32
  }
  func.func @transform_11(%arg0: i32) -> (i32, i32) {
    %c0_i32 = arith.constant 0 : i32
    %c0_i32_0 = arith.constant 0 : i32
    %c0_i32_1 = arith.constant 0 : i32
    return %c0_i32, %c0_i32_0 : i32, i32
  }
  func.func @transform_12(%arg0: i32) -> (i32, i32) {
    %c0_i32 = arith.constant 0 : i32
    %c0_i32_0 = arith.constant 0 : i32
    %c0_i32_1 = arith.constant 0 : i32
    return %c0_i32, %c0_i32_0 : i32, i32
  }
  func.func @transform_13(%arg0: i32) -> (i32, i32) {
    %c0_i32 = arith.constant 0 : i32
    %c0_i32_0 = arith.constant 0 : i32
    %c0_i32_1 = arith.constant 0 : i32
    return %c0_i32, %c0_i32_0 : i32, i32
  }
  func.func @transform_14(%arg0: i32) -> (i32, i32) {
    %c0_i32 = arith.constant 0 : i32
    %c0_i32_0 = arith.constant 0 : i32
    %c0_i32_1 = arith.constant 0 : i32
    return %c0_i32, %c0_i32_0 : i32, i32
  }
  func.func @transform_15(%arg0: i32) -> (i32, i32) {
    %c0_i32 = arith.constant 0 : i32
    %c0_i32_0 = arith.constant 0 : i32
    %c0_i32_1 = arith.constant 0 : i32
    return %c0_i32, %c0_i32_0 : i32, i32
  }
  func.func @transform_16(%arg0: i32) -> (i32, i32) {
    %c0_i32 = arith.constant 0 : i32
    %c0_i32_0 = arith.constant 0 : i32
    %c0_i32_1 = arith.constant 0 : i32
    return %c0_i32, %c0_i32_0 : i32, i32
  }
  func.func @transform_17(%arg0: i32) -> (i32, i32) {
    %c0_i32 = arith.constant 0 : i32
    %c0_i32_0 = arith.constant 0 : i32
    %c0_i32_1 = arith.constant 0 : i32
    return %c0_i32, %c0_i32_0 : i32, i32
  }
  func.func @transform_18(%arg0: i32) -> (i32, i32) {
    %c0_i32 = arith.constant 0 : i32
    %c0_i32_0 = arith.constant 0 : i32
    %c0_i32_1 = arith.constant 0 : i32
    return %c0_i32, %c0_i32_0 : i32, i32
  }
  func.func @transform_19(%arg0: i32) -> (i32, i32) {
    %c0_i32 = arith.constant 0 : i32
    %c0_i32_0 = arith.constant 0 : i32
    %c0_i32_1 = arith.constant 0 : i32
    return %c0_i32, %c0_i32_0 : i32, i32
  }
  func.func @transform_20(%arg0: i32) -> (i32, i32) {
    %c0_i32 = arith.constant 0 : i32
    %c0_i32_0 = arith.constant 0 : i32
    %c0_i32_1 = arith.constant 0 : i32
    return %c0_i32, %c0_i32_0 : i32, i32
  }
  func.func @transform_21(%arg0: i32) -> (i32, i32) {
    %c0_i32 = arith.constant 0 : i32
    %c0_i32_0 = arith.constant 0 : i32
    %c0_i32_1 = arith.constant 0 : i32
    return %c0_i32, %c0_i32_0 : i32, i32
  }
  func.func @transform_22(%arg0: i32) -> (i32, i32) {
    %c0_i32 = arith.constant 0 : i32
    %c0_i32_0 = arith.constant 0 : i32
    %c0_i32_1 = arith.constant 0 : i32
    return %c0_i32, %c0_i32_0 : i32, i32
  }
  func.func @transform_23(%arg0: i32) -> (i32, i32) {
    %c0_i32 = arith.constant 0 : i32
    %c0_i32_0 = arith.constant 0 : i32
    return %arg0, %c0_i32 : i32, i32
  }
}

module attributes {stable_mosaic.version = 11 : i64} {
  func.func @_decoder_layer_kernel(%arg0: i32, %arg1: memref<8x32xf32, #tpu.memory_space<vmem>>, %arg2: memref<8x32xf32, #tpu.memory_space<vmem>>, %arg3: memref<32x96xf32, #tpu.memory_space<vmem>>, %arg4: memref<1x96xf32, #tpu.memory_space<vmem>>, %arg5: memref<32x32xf32, #tpu.memory_space<vmem>>, %arg6: memref<1x32xf32, #tpu.memory_space<vmem>>, %arg7: memref<1x32xf32, #tpu.memory_space<vmem>>, %arg8: memref<1x32xf32, #tpu.memory_space<vmem>>, %arg9: memref<32x32xf32, #tpu.memory_space<vmem>>, %arg10: memref<1x32xf32, #tpu.memory_space<vmem>>, %arg11: memref<32x64xf32, #tpu.memory_space<vmem>>, %arg12: memref<1x64xf32, #tpu.memory_space<vmem>>, %arg13: memref<32x32xf32, #tpu.memory_space<vmem>>, %arg14: memref<1x32xf32, #tpu.memory_space<vmem>>, %arg15: memref<1x32xf32, #tpu.memory_space<vmem>>, %arg16: memref<1x32xf32, #tpu.memory_space<vmem>>, %arg17: memref<32x2048xf32, #tpu.memory_space<vmem>>, %arg18: memref<1x2048xf32, #tpu.memory_space<vmem>>, %arg19: memref<2048x32xf32, #tpu.memory_space<vmem>>, %arg20: memref<1x32xf32, #tpu.memory_space<vmem>>, %arg21: memref<1x32xf32, #tpu.memory_space<vmem>>, %arg22: memref<1x32xf32, #tpu.memory_space<vmem>>, %arg23: memref<1x32xf32, #tpu.memory_space<vmem>>, %arg24: memref<1x32xf32, #tpu.memory_space<vmem>>, %arg25: memref<32x128xf32, #tpu.memory_space<vmem>>, %arg26: memref<1x128xf32, #tpu.memory_space<vmem>>, %arg27: memref<8x128xf32, #tpu.memory_space<vmem>>) attributes {dimension_semantics = [#tpu.dimension_semantics<parallel>], iteration_bounds = array<i64: 2>, scalar_prefetch = 0 : i64, scratch_operands = 0 : i64, tpu.core_type = #tpu.core_type<tc>, window_params = [{transform_indices = @transform_0, window_bounds = array<i64: 8, 32>}, {transform_indices = @transform_1, window_bounds = array<i64: 8, 32>}, {pipeline_mode = #tpu.pipeline_mode<synchronous>, transform_indices = @transform_2, window_bounds = array<i64: 32, 96>}, {pipeline_mode = #tpu.pipeline_mode<synchronous>, transform_indices = @transform_3, window_bounds = array<i64: 1, 96>}, {pipeline_mode = #tpu.pipeline_mode<synchronous>, transform_indices = @transform_4, window_bounds = array<i64: 32, 32>}, {pipeline_mode = #tpu.pipeline_mode<synchronous>, transform_indices = @transform_5, window_bounds = array<i64: 1, 32>}, {pipeline_mode = #tpu.pipeline_mode<synchronous>, transform_indices = @transform_6, window_bounds = array<i64: 1, 32>}, {pipeline_mode = #tpu.pipeline_mode<synchronous>, transform_indices = @transform_7, window_bounds = array<i64: 1, 32>}, {pipeline_mode = #tpu.pipeline_mode<synchronous>, transform_indices = @transform_8, window_bounds = array<i64: 32, 32>}, {pipeline_mode = #tpu.pipeline_mode<synchronous>, transform_indices = @transform_9, window_bounds = array<i64: 1, 32>}, {pipeline_mode = #tpu.pipeline_mode<synchronous>, transform_indices = @transform_10, window_bounds = array<i64: 32, 64>}, {pipeline_mode = #tpu.pipeline_mode<synchronous>, transform_indices = @transform_11, window_bounds = array<i64: 1, 64>}, {pipeline_mode = #tpu.pipeline_mode<synchronous>, transform_indices = @transform_12, window_bounds = array<i64: 32, 32>}, {pipeline_mode = #tpu.pipeline_mode<synchronous>, transform_indices = @transform_13, window_bounds = array<i64: 1, 32>}, {pipeline_mode = #tpu.pipeline_mode<synchronous>, transform_indices = @transform_14, window_bounds = array<i64: 1, 32>}, {pipeline_mode = #tpu.pipeline_mode<synchronous>, transform_indices = @transform_15, window_bounds = array<i64: 1, 32>}, {pipeline_mode = #tpu.pipeline_mode<synchronous>, transform_indices = @transform_16, window_bounds = array<i64: 32, 2048>}, {pipeline_mode = #tpu.pipeline_mode<synchronous>, transform_indices = @transform_17, window_bounds = array<i64: 1, 2048>}, {pipeline_mode = #tpu.pipeline_mode<synchronous>, transform_indices = @transform_18, window_bounds = array<i64: 2048, 32>}, {pipeline_mode = #tpu.pipeline_mode<synchronous>, transform_indices = @transform_19, window_bounds = array<i64: 1, 32>}, {pipeline_mode = #tpu.pipeline_mode<synchronous>, transform_indices = @transform_20, window_bounds = array<i64: 1, 32>}, {pipeline_mode = #tpu.pipeline_mode<synchronous>, transform_indices = @transform_21, window_bounds = array<i64: 1, 32>}, {pipeline_mode = #tpu.pipeline_mode<synchronous>, transform_indices = @transform_22, window_bounds = array<i64: 1, 32>}, {pipeline_mode = #tpu.pipeline_mode<synchronous>, transform_indices = @transform_23, window_bounds = array<i64: 1, 32>}, {pipeline_mode = #tpu.pipeline_mode<synchronous>, transform_indices = @transform_24, window_bounds = array<i64: 32, 128>}, {pipeline_mode = #tpu.pipeline_mode<synchronous>, transform_indices = @transform_25, window_bounds = array<i64: 1, 128>}, {transform_indices = @transform_26, window_bounds = array<i64: 8, 128>}]} {
    %c0 = arith.constant 0 : index
    %c0_0 = arith.constant 0 : index
    %0 = vector.load %arg1[%c0, %c0_0] : memref<8x32xf32, #tpu.memory_space<vmem>>, vector<8x32xf32>
    %c0_1 = arith.constant 0 : index
    %c0_2 = arith.constant 0 : index
    %1 = vector.load %arg2[%c0_1, %c0_2] : memref<8x32xf32, #tpu.memory_space<vmem>>, vector<8x32xf32>
    %c0_3 = arith.constant 0 : index
    %c0_4 = arith.constant 0 : index
    %2 = vector.load %arg3[%c0_3, %c0_4] : memref<32x96xf32, #tpu.memory_space<vmem>>, vector<32x96xf32>
    %cst = arith.constant dense<0.000000e+00> : vector<8x96xf32>
    %3 = tpu.matmul %0, %2, %cst {dimension_numbers = #tpu.dot_dimension_numbers<[1], [0], [0], [1], [0, 0, 1, 1], [], []>} : vector<8x32xf32>, vector<32x96xf32>, vector<8x96xf32> -> vector<8x96xf32>
    %c0_5 = arith.constant 0 : index
    %c0_6 = arith.constant 0 : index
    %4 = vector.load %arg4[%c0_5, %c0_6] : memref<1x96xf32, #tpu.memory_space<vmem>>, vector<1x96xf32>
    %5 = vector.broadcast %4 : vector<1x96xf32> to vector<8x96xf32>
    %6 = arith.addf %3, %5 : vector<8x96xf32>
    %7 = vector.extract_strided_slice %6 {offsets = [0, 0], sizes = [8, 32], strides = [1, 1]} : vector<8x96xf32> to vector<8x32xf32>
    %8 = vector.extract_strided_slice %6 {offsets = [0, 32], sizes = [8, 32], strides = [1, 1]} : vector<8x96xf32> to vector<8x32xf32>
    %9 = vector.extract_strided_slice %6 {offsets = [0, 64], sizes = [8, 32], strides = [1, 1]} : vector<8x96xf32> to vector<8x32xf32>
    %10 = vector.extract_strided_slice %7 {offsets = [0, 0], sizes = [8, 8], strides = [1, 1]} : vector<8x32xf32> to vector<8x8xf32>
    %cst_7 = arith.constant 0.353553385 : f32
    %11 = vector.broadcast %cst_7 : f32 to vector<8x8xf32>
    %12 = arith.mulf %10, %11 : vector<8x8xf32>
    %13 = vector.extract_strided_slice %8 {offsets = [0, 0], sizes = [8, 8], strides = [1, 1]} : vector<8x32xf32> to vector<8x8xf32>
    %14 = vector.extract_strided_slice %9 {offsets = [0, 0], sizes = [8, 8], strides = [1, 1]} : vector<8x32xf32> to vector<8x8xf32>
    %cst_8 = arith.constant dense<0.000000e+00> : vector<8x8xf32>
    %15 = tpu.matmul %12, %13, %cst_8 {dimension_numbers = #tpu.dot_dimension_numbers<[1], [1], [0], [0], [0, 0, 1, 0], [], []>} : vector<8x8xf32>, vector<8x8xf32>, vector<8x8xf32> -> vector<8x8xf32>
    %cst_9 = arith.constant dense<0xFF800000> : vector<8xf32>
    %16 = vector.multi_reduction <maximumf>, %15, %cst_9 [1] : vector<8x8xf32> to vector<8xf32>
    %17 = vector.shape_cast %16 : vector<8xf32> to vector<8x1xf32>
    %18 = vector.broadcast %17 : vector<8x1xf32> to vector<8x8xf32>
    %19 = arith.subf %15, %18 : vector<8x8xf32>
    %20 = math.exp %19 : vector<8x8xf32>
    %cst_10 = arith.constant dense<0.000000e+00> : vector<8xf32>
    %21 = vector.multi_reduction <add>, %20, %cst_10 [1] : vector<8x8xf32> to vector<8xf32>
    %22 = vector.shape_cast %21 : vector<8xf32> to vector<8x1xf32>
    %23 = tpu.reciprocal %22 {approx = true} : vector<8x1xf32> -> vector<8x1xf32>
    %24 = vector.broadcast %23 : vector<8x1xf32> to vector<8x8xf32>
    %25 = arith.mulf %20, %24 : vector<8x8xf32>
    %cst_11 = arith.constant dense<0.000000e+00> : vector<8x8xf32>
    %26 = tpu.matmul %25, %14, %cst_11 {dimension_numbers = #tpu.dot_dimension_numbers<[1], [0], [0], [1], [0, 0, 1, 1], [], []>} : vector<8x8xf32>, vector<8x8xf32>, vector<8x8xf32> -> vector<8x8xf32>
    %27 = vector.extract_strided_slice %7 {offsets = [0, 8], sizes = [8, 8], strides = [1, 1]} : vector<8x32xf32> to vector<8x8xf32>
    %cst_12 = arith.constant 0.353553385 : f32
    %28 = vector.broadcast %cst_12 : f32 to vector<8x8xf32>
    %29 = arith.mulf %27, %28 : vector<8x8xf32>
    %30 = vector.extract_strided_slice %8 {offsets = [0, 8], sizes = [8, 8], strides = [1, 1]} : vector<8x32xf32> to vector<8x8xf32>
    %31 = vector.extract_strided_slice %9 {offsets = [0, 8], sizes = [8, 8], strides = [1, 1]} : vector<8x32xf32> to vector<8x8xf32>
    %cst_13 = arith.constant dense<0.000000e+00> : vector<8x8xf32>
    %32 = tpu.matmul %29, %30, %cst_13 {dimension_numbers = #tpu.dot_dimension_numbers<[1], [1], [0], [0], [0, 0, 1, 0], [], []>} : vector<8x8xf32>, vector<8x8xf32>, vector<8x8xf32> -> vector<8x8xf32>
    %cst_14 = arith.constant dense<0xFF800000> : vector<8xf32>
    %33 = vector.multi_reduction <maximumf>, %32, %cst_14 [1] : vector<8x8xf32> to vector<8xf32>
    %34 = vector.shape_cast %33 : vector<8xf32> to vector<8x1xf32>
    %35 = vector.broadcast %34 : vector<8x1xf32> to vector<8x8xf32>
    %36 = arith.subf %32, %35 : vector<8x8xf32>
    %37 = math.exp %36 : vector<8x8xf32>
    %cst_15 = arith.constant dense<0.000000e+00> : vector<8xf32>
    %38 = vector.multi_reduction <add>, %37, %cst_15 [1] : vector<8x8xf32> to vector<8xf32>
    %39 = vector.shape_cast %38 : vector<8xf32> to vector<8x1xf32>
    %40 = tpu.reciprocal %39 {approx = true} : vector<8x1xf32> -> vector<8x1xf32>
    %41 = vector.broadcast %40 : vector<8x1xf32> to vector<8x8xf32>
    %42 = arith.mulf %37, %41 : vector<8x8xf32>
    %cst_16 = arith.constant dense<0.000000e+00> : vector<8x8xf32>
    %43 = tpu.matmul %42, %31, %cst_16 {dimension_numbers = #tpu.dot_dimension_numbers<[1], [0], [0], [1], [0, 0, 1, 1], [], []>} : vector<8x8xf32>, vector<8x8xf32>, vector<8x8xf32> -> vector<8x8xf32>
    %44 = vector.extract_strided_slice %7 {offsets = [0, 16], sizes = [8, 8], strides = [1, 1]} : vector<8x32xf32> to vector<8x8xf32>
    %cst_17 = arith.constant 0.353553385 : f32
    %45 = vector.broadcast %cst_17 : f32 to vector<8x8xf32>
    %46 = arith.mulf %44, %45 : vector<8x8xf32>
    %47 = vector.extract_strided_slice %8 {offsets = [0, 16], sizes = [8, 8], strides = [1, 1]} : vector<8x32xf32> to vector<8x8xf32>
    %48 = vector.extract_strided_slice %9 {offsets = [0, 16], sizes = [8, 8], strides = [1, 1]} : vector<8x32xf32> to vector<8x8xf32>
    %cst_18 = arith.constant dense<0.000000e+00> : vector<8x8xf32>
    %49 = tpu.matmul %46, %47, %cst_18 {dimension_numbers = #tpu.dot_dimension_numbers<[1], [1], [0], [0], [0, 0, 1, 0], [], []>} : vector<8x8xf32>, vector<8x8xf32>, vector<8x8xf32> -> vector<8x8xf32>
    %cst_19 = arith.constant dense<0xFF800000> : vector<8xf32>
    %50 = vector.multi_reduction <maximumf>, %49, %cst_19 [1] : vector<8x8xf32> to vector<8xf32>
    %51 = vector.shape_cast %50 : vector<8xf32> to vector<8x1xf32>
    %52 = vector.broadcast %51 : vector<8x1xf32> to vector<8x8xf32>
    %53 = arith.subf %49, %52 : vector<8x8xf32>
    %54 = math.exp %53 : vector<8x8xf32>
    %cst_20 = arith.constant dense<0.000000e+00> : vector<8xf32>
    %55 = vector.multi_reduction <add>, %54, %cst_20 [1] : vector<8x8xf32> to vector<8xf32>
    %56 = vector.shape_cast %55 : vector<8xf32> to vector<8x1xf32>
    %57 = tpu.reciprocal %56 {approx = true} : vector<8x1xf32> -> vector<8x1xf32>
    %58 = vector.broadcast %57 : vector<8x1xf32> to vector<8x8xf32>
    %59 = arith.mulf %54, %58 : vector<8x8xf32>
    %cst_21 = arith.constant dense<0.000000e+00> : vector<8x8xf32>
    %60 = tpu.matmul %59, %48, %cst_21 {dimension_numbers = #tpu.dot_dimension_numbers<[1], [0], [0], [1], [0, 0, 1, 1], [], []>} : vector<8x8xf32>, vector<8x8xf32>, vector<8x8xf32> -> vector<8x8xf32>
    %61 = vector.extract_strided_slice %7 {offsets = [0, 24], sizes = [8, 8], strides = [1, 1]} : vector<8x32xf32> to vector<8x8xf32>
    %cst_22 = arith.constant 0.353553385 : f32
    %62 = vector.broadcast %cst_22 : f32 to vector<8x8xf32>
    %63 = arith.mulf %61, %62 : vector<8x8xf32>
    %64 = vector.extract_strided_slice %8 {offsets = [0, 24], sizes = [8, 8], strides = [1, 1]} : vector<8x32xf32> to vector<8x8xf32>
    %65 = vector.extract_strided_slice %9 {offsets = [0, 24], sizes = [8, 8], strides = [1, 1]} : vector<8x32xf32> to vector<8x8xf32>
    %cst_23 = arith.constant dense<0.000000e+00> : vector<8x8xf32>
    %66 = tpu.matmul %63, %64, %cst_23 {dimension_numbers = #tpu.dot_dimension_numbers<[1], [1], [0], [0], [0, 0, 1, 0], [], []>} : vector<8x8xf32>, vector<8x8xf32>, vector<8x8xf32> -> vector<8x8xf32>
    %cst_24 = arith.constant dense<0xFF800000> : vector<8xf32>
    %67 = vector.multi_reduction <maximumf>, %66, %cst_24 [1] : vector<8x8xf32> to vector<8xf32>
    %68 = vector.shape_cast %67 : vector<8xf32> to vector<8x1xf32>
    %69 = vector.broadcast %68 : vector<8x1xf32> to vector<8x8xf32>
    %70 = arith.subf %66, %69 : vector<8x8xf32>
    %71 = math.exp %70 : vector<8x8xf32>
    %cst_25 = arith.constant dense<0.000000e+00> : vector<8xf32>
    %72 = vector.multi_reduction <add>, %71, %cst_25 [1] : vector<8x8xf32> to vector<8xf32>
    %73 = vector.shape_cast %72 : vector<8xf32> to vector<8x1xf32>
    %74 = tpu.reciprocal %73 {approx = true} : vector<8x1xf32> -> vector<8x1xf32>
    %75 = vector.broadcast %74 : vector<8x1xf32> to vector<8x8xf32>
    %76 = arith.mulf %71, %75 : vector<8x8xf32>
    %cst_26 = arith.constant dense<0.000000e+00> : vector<8x8xf32>
    %77 = tpu.matmul %76, %65, %cst_26 {dimension_numbers = #tpu.dot_dimension_numbers<[1], [0], [0], [1], [0, 0, 1, 1], [], []>} : vector<8x8xf32>, vector<8x8xf32>, vector<8x8xf32> -> vector<8x8xf32>
    %78 = tpu.concatenate %26, %43, %60, %77 in 1 : vector<8x8xf32>, vector<8x8xf32>, vector<8x8xf32>, vector<8x8xf32> -> vector<8x32xf32>
    %c0_27 = arith.constant 0 : index
    %c0_28 = arith.constant 0 : index
    %79 = vector.load %arg5[%c0_27, %c0_28] : memref<32x32xf32, #tpu.memory_space<vmem>>, vector<32x32xf32>
    %cst_29 = arith.constant dense<0.000000e+00> : vector<8x32xf32>
    %80 = tpu.matmul %78, %79, %cst_29 {dimension_numbers = #tpu.dot_dimension_numbers<[1], [0], [0], [1], [0, 0, 1, 1], [], []>} : vector<8x32xf32>, vector<32x32xf32>, vector<8x32xf32> -> vector<8x32xf32>
    %c0_30 = arith.constant 0 : index
    %c0_31 = arith.constant 0 : index
    %81 = vector.load %arg6[%c0_30, %c0_31] : memref<1x32xf32, #tpu.memory_space<vmem>>, vector<1x32xf32>
    %82 = vector.broadcast %81 : vector<1x32xf32> to vector<8x32xf32>
    %83 = arith.addf %80, %82 : vector<8x32xf32>
    %84 = arith.addf %0, %83 : vector<8x32xf32>
    %c0_32 = arith.constant 0 : index
    %c0_33 = arith.constant 0 : index
    %85 = vector.load %arg7[%c0_32, %c0_33] : memref<1x32xf32, #tpu.memory_space<vmem>>, vector<1x32xf32>
    %c0_34 = arith.constant 0 : index
    %c0_35 = arith.constant 0 : index
    %86 = vector.load %arg8[%c0_34, %c0_35] : memref<1x32xf32, #tpu.memory_space<vmem>>, vector<1x32xf32>
    %cst_36 = arith.constant dense<0.000000e+00> : vector<8xf32>
    %87 = vector.multi_reduction <add>, %84, %cst_36 [1] : vector<8x32xf32> to vector<8xf32>
    %88 = vector.shape_cast %87 : vector<8xf32> to vector<8x1xf32>
    %cst_37 = arith.constant 3.200000e+01 : f32
    %89 = vector.broadcast %cst_37 : f32 to vector<8x1xf32>
    %90 = arith.divf %88, %89 : vector<8x1xf32>
    %91 = vector.broadcast %90 : vector<8x1xf32> to vector<8x32xf32>
    %92 = arith.subf %84, %91 : vector<8x32xf32>
    %93 = arith.mulf %92, %92 : vector<8x32xf32>
    %cst_38 = arith.constant dense<0.000000e+00> : vector<8xf32>
    %94 = vector.multi_reduction <add>, %93, %cst_38 [1] : vector<8x32xf32> to vector<8xf32>
    %95 = vector.shape_cast %94 : vector<8xf32> to vector<8x1xf32>
    %cst_39 = arith.constant 3.200000e+01 : f32
    %96 = vector.broadcast %cst_39 : f32 to vector<8x1xf32>
    %97 = arith.divf %95, %96 : vector<8x1xf32>
    %98 = vector.broadcast %90 : vector<8x1xf32> to vector<8x32xf32>
    %99 = arith.subf %84, %98 : vector<8x32xf32>
    %cst_40 = arith.constant 9.99999974E-6 : f32
    %100 = vector.broadcast %cst_40 : f32 to vector<8x1xf32>
    %101 = arith.addf %97, %100 : vector<8x1xf32>
    %102 = math.rsqrt %101 : vector<8x1xf32>
    %103 = vector.broadcast %102 : vector<8x1xf32> to vector<8x32xf32>
    %104 = arith.mulf %99, %103 : vector<8x32xf32>
    %105 = vector.broadcast %85 : vector<1x32xf32> to vector<8x32xf32>
    %106 = arith.mulf %104, %105 : vector<8x32xf32>
    %107 = vector.broadcast %86 : vector<1x32xf32> to vector<8x32xf32>
    %108 = arith.addf %106, %107 : vector<8x32xf32>
    %c0_41 = arith.constant 0 : index
    %c0_42 = arith.constant 0 : index
    %109 = vector.load %arg9[%c0_41, %c0_42] : memref<32x32xf32, #tpu.memory_space<vmem>>, vector<32x32xf32>
    %cst_43 = arith.constant dense<0.000000e+00> : vector<8x32xf32>
    %110 = tpu.matmul %108, %109, %cst_43 {dimension_numbers = #tpu.dot_dimension_numbers<[1], [0], [0], [1], [0, 0, 1, 1], [], []>} : vector<8x32xf32>, vector<32x32xf32>, vector<8x32xf32> -> vector<8x32xf32>
    %c0_44 = arith.constant 0 : index
    %c0_45 = arith.constant 0 : index
    %111 = vector.load %arg10[%c0_44, %c0_45] : memref<1x32xf32, #tpu.memory_space<vmem>>, vector<1x32xf32>
    %112 = vector.broadcast %111 : vector<1x32xf32> to vector<8x32xf32>
    %113 = arith.addf %110, %112 : vector<8x32xf32>
    %c0_46 = arith.constant 0 : index
    %c0_47 = arith.constant 0 : index
    %114 = vector.load %arg11[%c0_46, %c0_47] : memref<32x64xf32, #tpu.memory_space<vmem>>, vector<32x64xf32>
    %cst_48 = arith.constant dense<0.000000e+00> : vector<8x64xf32>
    %115 = tpu.matmul %1, %114, %cst_48 {dimension_numbers = #tpu.dot_dimension_numbers<[1], [0], [0], [1], [0, 0, 1, 1], [], []>} : vector<8x32xf32>, vector<32x64xf32>, vector<8x64xf32> -> vector<8x64xf32>
    %c0_49 = arith.constant 0 : index
    %c0_50 = arith.constant 0 : index
    %116 = vector.load %arg12[%c0_49, %c0_50] : memref<1x64xf32, #tpu.memory_space<vmem>>, vector<1x64xf32>
    %117 = vector.broadcast %116 : vector<1x64xf32> to vector<8x64xf32>
    %118 = arith.addf %115, %117 : vector<8x64xf32>
    %119 = vector.extract_strided_slice %118 {offsets = [0, 0], sizes = [8, 32], strides = [1, 1]} : vector<8x64xf32> to vector<8x32xf32>
    %120 = vector.extract_strided_slice %118 {offsets = [0, 32], sizes = [8, 32], strides = [1, 1]} : vector<8x64xf32> to vector<8x32xf32>
    %121 = vector.extract_strided_slice %113 {offsets = [0, 0], sizes = [8, 8], strides = [1, 1]} : vector<8x32xf32> to vector<8x8xf32>
    %cst_51 = arith.constant 0.353553385 : f32
    %122 = vector.broadcast %cst_51 : f32 to vector<8x8xf32>
    %123 = arith.mulf %121, %122 : vector<8x8xf32>
    %124 = vector.extract_strided_slice %119 {offsets = [0, 0], sizes = [8, 8], strides = [1, 1]} : vector<8x32xf32> to vector<8x8xf32>
    %125 = vector.extract_strided_slice %120 {offsets = [0, 0], sizes = [8, 8], strides = [1, 1]} : vector<8x32xf32> to vector<8x8xf32>
    %cst_52 = arith.constant dense<0.000000e+00> : vector<8x8xf32>
    %126 = tpu.matmul %123, %124, %cst_52 {dimension_numbers = #tpu.dot_dimension_numbers<[1], [1], [0], [0], [0, 0, 1, 0], [], []>} : vector<8x8xf32>, vector<8x8xf32>, vector<8x8xf32> -> vector<8x8xf32>
    %cst_53 = arith.constant dense<0xFF800000> : vector<8xf32>
    %127 = vector.multi_reduction <maximumf>, %126, %cst_53 [1] : vector<8x8xf32> to vector<8xf32>
    %128 = vector.shape_cast %127 : vector<8xf32> to vector<8x1xf32>
    %129 = vector.broadcast %128 : vector<8x1xf32> to vector<8x8xf32>
    %130 = arith.subf %126, %129 : vector<8x8xf32>
    %131 = math.exp %130 : vector<8x8xf32>
    %cst_54 = arith.constant dense<0.000000e+00> : vector<8xf32>
    %132 = vector.multi_reduction <add>, %131, %cst_54 [1] : vector<8x8xf32> to vector<8xf32>
    %133 = vector.shape_cast %132 : vector<8xf32> to vector<8x1xf32>
    %134 = tpu.reciprocal %133 {approx = true} : vector<8x1xf32> -> vector<8x1xf32>
    %135 = vector.broadcast %134 : vector<8x1xf32> to vector<8x8xf32>
    %136 = arith.mulf %131, %135 : vector<8x8xf32>
    %cst_55 = arith.constant dense<0.000000e+00> : vector<8x8xf32>
    %137 = tpu.matmul %136, %125, %cst_55 {dimension_numbers = #tpu.dot_dimension_numbers<[1], [0], [0], [1], [0, 0, 1, 1], [], []>} : vector<8x8xf32>, vector<8x8xf32>, vector<8x8xf32> -> vector<8x8xf32>
    %138 = vector.extract_strided_slice %113 {offsets = [0, 8], sizes = [8, 8], strides = [1, 1]} : vector<8x32xf32> to vector<8x8xf32>
    %cst_56 = arith.constant 0.353553385 : f32
    %139 = vector.broadcast %cst_56 : f32 to vector<8x8xf32>
    %140 = arith.mulf %138, %139 : vector<8x8xf32>
    %141 = vector.extract_strided_slice %119 {offsets = [0, 8], sizes = [8, 8], strides = [1, 1]} : vector<8x32xf32> to vector<8x8xf32>
    %142 = vector.extract_strided_slice %120 {offsets = [0, 8], sizes = [8, 8], strides = [1, 1]} : vector<8x32xf32> to vector<8x8xf32>
    %cst_57 = arith.constant dense<0.000000e+00> : vector<8x8xf32>
    %143 = tpu.matmul %140, %141, %cst_57 {dimension_numbers = #tpu.dot_dimension_numbers<[1], [1], [0], [0], [0, 0, 1, 0], [], []>} : vector<8x8xf32>, vector<8x8xf32>, vector<8x8xf32> -> vector<8x8xf32>
    %cst_58 = arith.constant dense<0xFF800000> : vector<8xf32>
    %144 = vector.multi_reduction <maximumf>, %143, %cst_58 [1] : vector<8x8xf32> to vector<8xf32>
    %145 = vector.shape_cast %144 : vector<8xf32> to vector<8x1xf32>
    %146 = vector.broadcast %145 : vector<8x1xf32> to vector<8x8xf32>
    %147 = arith.subf %143, %146 : vector<8x8xf32>
    %148 = math.exp %147 : vector<8x8xf32>
    %cst_59 = arith.constant dense<0.000000e+00> : vector<8xf32>
    %149 = vector.multi_reduction <add>, %148, %cst_59 [1] : vector<8x8xf32> to vector<8xf32>
    %150 = vector.shape_cast %149 : vector<8xf32> to vector<8x1xf32>
    %151 = tpu.reciprocal %150 {approx = true} : vector<8x1xf32> -> vector<8x1xf32>
    %152 = vector.broadcast %151 : vector<8x1xf32> to vector<8x8xf32>
    %153 = arith.mulf %148, %152 : vector<8x8xf32>
    %cst_60 = arith.constant dense<0.000000e+00> : vector<8x8xf32>
    %154 = tpu.matmul %153, %142, %cst_60 {dimension_numbers = #tpu.dot_dimension_numbers<[1], [0], [0], [1], [0, 0, 1, 1], [], []>} : vector<8x8xf32>, vector<8x8xf32>, vector<8x8xf32> -> vector<8x8xf32>
    %155 = vector.extract_strided_slice %113 {offsets = [0, 16], sizes = [8, 8], strides = [1, 1]} : vector<8x32xf32> to vector<8x8xf32>
    %cst_61 = arith.constant 0.353553385 : f32
    %156 = vector.broadcast %cst_61 : f32 to vector<8x8xf32>
    %157 = arith.mulf %155, %156 : vector<8x8xf32>
    %158 = vector.extract_strided_slice %119 {offsets = [0, 16], sizes = [8, 8], strides = [1, 1]} : vector<8x32xf32> to vector<8x8xf32>
    %159 = vector.extract_strided_slice %120 {offsets = [0, 16], sizes = [8, 8], strides = [1, 1]} : vector<8x32xf32> to vector<8x8xf32>
    %cst_62 = arith.constant dense<0.000000e+00> : vector<8x8xf32>
    %160 = tpu.matmul %157, %158, %cst_62 {dimension_numbers = #tpu.dot_dimension_numbers<[1], [1], [0], [0], [0, 0, 1, 0], [], []>} : vector<8x8xf32>, vector<8x8xf32>, vector<8x8xf32> -> vector<8x8xf32>
    %cst_63 = arith.constant dense<0xFF800000> : vector<8xf32>
    %161 = vector.multi_reduction <maximumf>, %160, %cst_63 [1] : vector<8x8xf32> to vector<8xf32>
    %162 = vector.shape_cast %161 : vector<8xf32> to vector<8x1xf32>
    %163 = vector.broadcast %162 : vector<8x1xf32> to vector<8x8xf32>
    %164 = arith.subf %160, %163 : vector<8x8xf32>
    %165 = math.exp %164 : vector<8x8xf32>
    %cst_64 = arith.constant dense<0.000000e+00> : vector<8xf32>
    %166 = vector.multi_reduction <add>, %165, %cst_64 [1] : vector<8x8xf32> to vector<8xf32>
    %167 = vector.shape_cast %166 : vector<8xf32> to vector<8x1xf32>
    %168 = tpu.reciprocal %167 {approx = true} : vector<8x1xf32> -> vector<8x1xf32>
    %169 = vector.broadcast %168 : vector<8x1xf32> to vector<8x8xf32>
    %170 = arith.mulf %165, %169 : vector<8x8xf32>
    %cst_65 = arith.constant dense<0.000000e+00> : vector<8x8xf32>
    %171 = tpu.matmul %170, %159, %cst_65 {dimension_numbers = #tpu.dot_dimension_numbers<[1], [0], [0], [1], [0, 0, 1, 1], [], []>} : vector<8x8xf32>, vector<8x8xf32>, vector<8x8xf32> -> vector<8x8xf32>
    %172 = vector.extract_strided_slice %113 {offsets = [0, 24], sizes = [8, 8], strides = [1, 1]} : vector<8x32xf32> to vector<8x8xf32>
    %cst_66 = arith.constant 0.353553385 : f32
    %173 = vector.broadcast %cst_66 : f32 to vector<8x8xf32>
    %174 = arith.mulf %172, %173 : vector<8x8xf32>
    %175 = vector.extract_strided_slice %119 {offsets = [0, 24], sizes = [8, 8], strides = [1, 1]} : vector<8x32xf32> to vector<8x8xf32>
    %176 = vector.extract_strided_slice %120 {offsets = [0, 24], sizes = [8, 8], strides = [1, 1]} : vector<8x32xf32> to vector<8x8xf32>
    %cst_67 = arith.constant dense<0.000000e+00> : vector<8x8xf32>
    %177 = tpu.matmul %174, %175, %cst_67 {dimension_numbers = #tpu.dot_dimension_numbers<[1], [1], [0], [0], [0, 0, 1, 0], [], []>} : vector<8x8xf32>, vector<8x8xf32>, vector<8x8xf32> -> vector<8x8xf32>
    %cst_68 = arith.constant dense<0xFF800000> : vector<8xf32>
    %178 = vector.multi_reduction <maximumf>, %177, %cst_68 [1] : vector<8x8xf32> to vector<8xf32>
    %179 = vector.shape_cast %178 : vector<8xf32> to vector<8x1xf32>
    %180 = vector.broadcast %179 : vector<8x1xf32> to vector<8x8xf32>
    %181 = arith.subf %177, %180 : vector<8x8xf32>
    %182 = math.exp %181 : vector<8x8xf32>
    %cst_69 = arith.constant dense<0.000000e+00> : vector<8xf32>
    %183 = vector.multi_reduction <add>, %182, %cst_69 [1] : vector<8x8xf32> to vector<8xf32>
    %184 = vector.shape_cast %183 : vector<8xf32> to vector<8x1xf32>
    %185 = tpu.reciprocal %184 {approx = true} : vector<8x1xf32> -> vector<8x1xf32>
    %186 = vector.broadcast %185 : vector<8x1xf32> to vector<8x8xf32>
    %187 = arith.mulf %182, %186 : vector<8x8xf32>
    %cst_70 = arith.constant dense<0.000000e+00> : vector<8x8xf32>
    %188 = tpu.matmul %187, %176, %cst_70 {dimension_numbers = #tpu.dot_dimension_numbers<[1], [0], [0], [1], [0, 0, 1, 1], [], []>} : vector<8x8xf32>, vector<8x8xf32>, vector<8x8xf32> -> vector<8x8xf32>
    %189 = tpu.concatenate %137, %154, %171, %188 in 1 : vector<8x8xf32>, vector<8x8xf32>, vector<8x8xf32>, vector<8x8xf32> -> vector<8x32xf32>
    %c0_71 = arith.constant 0 : index
    %c0_72 = arith.constant 0 : index
    %190 = vector.load %arg13[%c0_71, %c0_72] : memref<32x32xf32, #tpu.memory_space<vmem>>, vector<32x32xf32>
    %cst_73 = arith.constant dense<0.000000e+00> : vector<8x32xf32>
    %191 = tpu.matmul %189, %190, %cst_73 {dimension_numbers = #tpu.dot_dimension_numbers<[1], [0], [0], [1], [0, 0, 1, 1], [], []>} : vector<8x32xf32>, vector<32x32xf32>, vector<8x32xf32> -> vector<8x32xf32>
    %c0_74 = arith.constant 0 : index
    %c0_75 = arith.constant 0 : index
    %192 = vector.load %arg14[%c0_74, %c0_75] : memref<1x32xf32, #tpu.memory_space<vmem>>, vector<1x32xf32>
    %193 = vector.broadcast %192 : vector<1x32xf32> to vector<8x32xf32>
    %194 = arith.addf %191, %193 : vector<8x32xf32>
    %195 = arith.addf %108, %194 : vector<8x32xf32>
    %c0_76 = arith.constant 0 : index
    %c0_77 = arith.constant 0 : index
    %196 = vector.load %arg15[%c0_76, %c0_77] : memref<1x32xf32, #tpu.memory_space<vmem>>, vector<1x32xf32>
    %c0_78 = arith.constant 0 : index
    %c0_79 = arith.constant 0 : index
    %197 = vector.load %arg16[%c0_78, %c0_79] : memref<1x32xf32, #tpu.memory_space<vmem>>, vector<1x32xf32>
    %cst_80 = arith.constant dense<0.000000e+00> : vector<8xf32>
    %198 = vector.multi_reduction <add>, %195, %cst_80 [1] : vector<8x32xf32> to vector<8xf32>
    %199 = vector.shape_cast %198 : vector<8xf32> to vector<8x1xf32>
    %cst_81 = arith.constant 3.200000e+01 : f32
    %200 = vector.broadcast %cst_81 : f32 to vector<8x1xf32>
    %201 = arith.divf %199, %200 : vector<8x1xf32>
    %202 = vector.broadcast %201 : vector<8x1xf32> to vector<8x32xf32>
    %203 = arith.subf %195, %202 : vector<8x32xf32>
    %204 = arith.mulf %203, %203 : vector<8x32xf32>
    %cst_82 = arith.constant dense<0.000000e+00> : vector<8xf32>
    %205 = vector.multi_reduction <add>, %204, %cst_82 [1] : vector<8x32xf32> to vector<8xf32>
    %206 = vector.shape_cast %205 : vector<8xf32> to vector<8x1xf32>
    %cst_83 = arith.constant 3.200000e+01 : f32
    %207 = vector.broadcast %cst_83 : f32 to vector<8x1xf32>
    %208 = arith.divf %206, %207 : vector<8x1xf32>
    %209 = vector.broadcast %201 : vector<8x1xf32> to vector<8x32xf32>
    %210 = arith.subf %195, %209 : vector<8x32xf32>
    %cst_84 = arith.constant 9.99999974E-6 : f32
    %211 = vector.broadcast %cst_84 : f32 to vector<8x1xf32>
    %212 = arith.addf %208, %211 : vector<8x1xf32>
    %213 = math.rsqrt %212 : vector<8x1xf32>
    %214 = vector.broadcast %213 : vector<8x1xf32> to vector<8x32xf32>
    %215 = arith.mulf %210, %214 : vector<8x32xf32>
    %216 = vector.broadcast %196 : vector<1x32xf32> to vector<8x32xf32>
    %217 = arith.mulf %215, %216 : vector<8x32xf32>
    %218 = vector.broadcast %197 : vector<1x32xf32> to vector<8x32xf32>
    %219 = arith.addf %217, %218 : vector<8x32xf32>
    %c0_85 = arith.constant 0 : index
    %c0_86 = arith.constant 0 : index
    %220 = vector.load %arg17[%c0_85, %c0_86] : memref<32x2048xf32, #tpu.memory_space<vmem>>, vector<32x2048xf32>
    %cst_87 = arith.constant dense<0.000000e+00> : vector<8x2048xf32>
    %221 = tpu.matmul %219, %220, %cst_87 {dimension_numbers = #tpu.dot_dimension_numbers<[1], [0], [0], [1], [0, 0, 1, 1], [], []>} : vector<8x32xf32>, vector<32x2048xf32>, vector<8x2048xf32> -> vector<8x2048xf32>
    %c0_88 = arith.constant 0 : index
    %c0_89 = arith.constant 0 : index
    %222 = vector.load %arg18[%c0_88, %c0_89] : memref<1x2048xf32, #tpu.memory_space<vmem>>, vector<1x2048xf32>
    %223 = vector.broadcast %222 : vector<1x2048xf32> to vector<8x2048xf32>
    %224 = arith.addf %221, %223 : vector<8x2048xf32>
    %cst_90 = arith.constant 0.000000e+00 : f32
    %225 = vector.broadcast %cst_90 : f32 to vector<8x2048xf32>
    %226 = arith.maximumf %224, %225 : vector<8x2048xf32>
    %c0_91 = arith.constant 0 : index
    %c0_92 = arith.constant 0 : index
    %227 = vector.load %arg19[%c0_91, %c0_92] : memref<2048x32xf32, #tpu.memory_space<vmem>>, vector<2048x32xf32>
    %cst_93 = arith.constant dense<0.000000e+00> : vector<8x32xf32>
    %228 = tpu.matmul %226, %227, %cst_93 {dimension_numbers = #tpu.dot_dimension_numbers<[1], [0], [0], [1], [0, 0, 1, 1], [], []>} : vector<8x2048xf32>, vector<2048x32xf32>, vector<8x32xf32> -> vector<8x32xf32>
    %c0_94 = arith.constant 0 : index
    %c0_95 = arith.constant 0 : index
    %229 = vector.load %arg20[%c0_94, %c0_95] : memref<1x32xf32, #tpu.memory_space<vmem>>, vector<1x32xf32>
    %230 = vector.broadcast %229 : vector<1x32xf32> to vector<8x32xf32>
    %231 = arith.addf %228, %230 : vector<8x32xf32>
    %232 = arith.addf %219, %231 : vector<8x32xf32>
    %c0_96 = arith.constant 0 : index
    %c0_97 = arith.constant 0 : index
    %233 = vector.load %arg21[%c0_96, %c0_97] : memref<1x32xf32, #tpu.memory_space<vmem>>, vector<1x32xf32>
    %c0_98 = arith.constant 0 : index
    %c0_99 = arith.constant 0 : index
    %234 = vector.load %arg22[%c0_98, %c0_99] : memref<1x32xf32, #tpu.memory_space<vmem>>, vector<1x32xf32>
    %cst_100 = arith.constant dense<0.000000e+00> : vector<8xf32>
    %235 = vector.multi_reduction <add>, %232, %cst_100 [1] : vector<8x32xf32> to vector<8xf32>
    %236 = vector.shape_cast %235 : vector<8xf32> to vector<8x1xf32>
    %cst_101 = arith.constant 3.200000e+01 : f32
    %237 = vector.broadcast %cst_101 : f32 to vector<8x1xf32>
    %238 = arith.divf %236, %237 : vector<8x1xf32>
    %239 = vector.broadcast %238 : vector<8x1xf32> to vector<8x32xf32>
    %240 = arith.subf %232, %239 : vector<8x32xf32>
    %241 = arith.mulf %240, %240 : vector<8x32xf32>
    %cst_102 = arith.constant dense<0.000000e+00> : vector<8xf32>
    %242 = vector.multi_reduction <add>, %241, %cst_102 [1] : vector<8x32xf32> to vector<8xf32>
    %243 = vector.shape_cast %242 : vector<8xf32> to vector<8x1xf32>
    %cst_103 = arith.constant 3.200000e+01 : f32
    %244 = vector.broadcast %cst_103 : f32 to vector<8x1xf32>
    %245 = arith.divf %243, %244 : vector<8x1xf32>
    %246 = vector.broadcast %238 : vector<8x1xf32> to vector<8x32xf32>
    %247 = arith.subf %232, %246 : vector<8x32xf32>
    %cst_104 = arith.constant 9.99999974E-6 : f32
    %248 = vector.broadcast %cst_104 : f32 to vector<8x1xf32>
    %249 = arith.addf %245, %248 : vector<8x1xf32>
    %250 = math.rsqrt %249 : vector<8x1xf32>
    %251 = vector.broadcast %250 : vector<8x1xf32> to vector<8x32xf32>
    %252 = arith.mulf %247, %251 : vector<8x32xf32>
    %253 = vector.broadcast %233 : vector<1x32xf32> to vector<8x32xf32>
    %254 = arith.mulf %252, %253 : vector<8x32xf32>
    %255 = vector.broadcast %234 : vector<1x32xf32> to vector<8x32xf32>
    %256 = arith.addf %254, %255 : vector<8x32xf32>
    %c0_105 = arith.constant 0 : index
    %c0_106 = arith.constant 0 : index
    %257 = vector.load %arg23[%c0_105, %c0_106] : memref<1x32xf32, #tpu.memory_space<vmem>>, vector<1x32xf32>
    %c0_107 = arith.constant 0 : index
    %c0_108 = arith.constant 0 : index
    %258 = vector.load %arg24[%c0_107, %c0_108] : memref<1x32xf32, #tpu.memory_space<vmem>>, vector<1x32xf32>
    %cst_109 = arith.constant dense<0.000000e+00> : vector<8xf32>
    %259 = vector.multi_reduction <add>, %256, %cst_109 [1] : vector<8x32xf32> to vector<8xf32>
    %260 = vector.shape_cast %259 : vector<8xf32> to vector<8x1xf32>
    %cst_110 = arith.constant 3.200000e+01 : f32
    %261 = vector.broadcast %cst_110 : f32 to vector<8x1xf32>
    %262 = arith.divf %260, %261 : vector<8x1xf32>
    %263 = vector.broadcast %262 : vector<8x1xf32> to vector<8x32xf32>
    %264 = arith.subf %256, %263 : vector<8x32xf32>
    %265 = arith.mulf %264, %264 : vector<8x32xf32>
    %cst_111 = arith.constant dense<0.000000e+00> : vector<8xf32>
    %266 = vector.multi_reduction <add>, %265, %cst_111 [1] : vector<8x32xf32> to vector<8xf32>
    %267 = vector.shape_cast %266 : vector<8xf32> to vector<8x1xf32>
    %cst_112 = arith.constant 3.200000e+01 : f32
    %268 = vector.broadcast %cst_112 : f32 to vector<8x1xf32>
    %269 = arith.divf %267, %268 : vector<8x1xf32>
    %270 = vector.broadcast %262 : vector<8x1xf32> to vector<8x32xf32>
    %271 = arith.subf %256, %270 : vector<8x32xf32>
    %cst_113 = arith.constant 9.99999974E-6 : f32
    %272 = vector.broadcast %cst_113 : f32 to vector<8x1xf32>
    %273 = arith.addf %269, %272 : vector<8x1xf32>
    %274 = math.rsqrt %273 : vector<8x1xf32>
    %275 = vector.broadcast %274 : vector<8x1xf32> to vector<8x32xf32>
    %276 = arith.mulf %271, %275 : vector<8x32xf32>
    %277 = vector.broadcast %257 : vector<1x32xf32> to vector<8x32xf32>
    %278 = arith.mulf %276, %277 : vector<8x32xf32>
    %279 = vector.broadcast %258 : vector<1x32xf32> to vector<8x32xf32>
    %280 = arith.addf %278, %279 : vector<8x32xf32>
    %c0_114 = arith.constant 0 : index
    %c0_115 = arith.constant 0 : index
    %281 = vector.load %arg25[%c0_114, %c0_115] : memref<32x128xf32, #tpu.memory_space<vmem>>, vector<32x128xf32>
    %cst_116 = arith.constant dense<0.000000e+00> : vector<8x128xf32>
    %282 = tpu.matmul %280, %281, %cst_116 {dimension_numbers = #tpu.dot_dimension_numbers<[1], [0], [0], [1], [0, 0, 1, 1], [], []>} : vector<8x32xf32>, vector<32x128xf32>, vector<8x128xf32> -> vector<8x128xf32>
    %c0_117 = arith.constant 0 : index
    %c0_118 = arith.constant 0 : index
    %283 = vector.load %arg26[%c0_117, %c0_118] : memref<1x128xf32, #tpu.memory_space<vmem>>, vector<1x128xf32>
    %284 = vector.broadcast %283 : vector<1x128xf32> to vector<8x128xf32>
    %285 = arith.addf %282, %284 : vector<8x128xf32>
    %c0_119 = arith.constant 0 : index
    %c0_120 = arith.constant 0 : index
    %286 = vector.load %arg27[%c0_119, %c0_120] : memref<8x128xf32, #tpu.memory_space<vmem>>, vector<8x128xf32>
    tpu.vector_store %arg27[%c0_119, %c0_120], %285 {strides = array<i32>} : memref<8x128xf32, #tpu.memory_space<vmem>>, vector<8x128xf32>,
    return
  }
  func.func @transform_0(%arg0: i32) -> (i32, i32) {
    %c0_i32 = arith.constant 0 : i32
    %c0_i32_0 = arith.constant 0 : i32
    return %arg0, %c0_i32 : i32, i32
  }
  func.func @transform_1(%arg0: i32) -> (i32, i32) {
    %c0_i32 = arith.constant 0 : i32
    %c0_i32_0 = arith.constant 0 : i32
    return %arg0, %c0_i32 : i32, i32
  }
  func.func @transform_2(%arg0: i32) -> (i32, i32) {
    %c0_i32 = arith.constant 0 : i32
    %c0_i32_0 = arith.constant 0 : i32
    %c0_i32_1 = arith.constant 0 : i32
    return %c0_i32, %c0_i32_0 : i32, i32
  }
  func.func @transform_3(%arg0: i32) -> (i32, i32) {
    %c0_i32 = arith.constant 0 : i32
    %c0_i32_0 = arith.constant 0 : i32
    %c0_i32_1 = arith.constant 0 : i32
    return %c0_i32, %c0_i32_0 : i32, i32
  }
  func.func @transform_4(%arg0: i32) -> (i32, i32) {
    %c0_i32 = arith.constant 0 : i32
    %c0_i32_0 = arith.constant 0 : i32
    %c0_i32_1 = arith.constant 0 : i32
    return %c0_i32, %c0_i32_0 : i32, i32
  }
  func.func @transform_5(%arg0: i32) -> (i32, i32) {
    %c0_i32 = arith.constant 0 : i32
    %c0_i32_0 = arith.constant 0 : i32
    %c0_i32_1 = arith.constant 0 : i32
    return %c0_i32, %c0_i32_0 : i32, i32
  }
  func.func @transform_6(%arg0: i32) -> (i32, i32) {
    %c0_i32 = arith.constant 0 : i32
    %c0_i32_0 = arith.constant 0 : i32
    %c0_i32_1 = arith.constant 0 : i32
    return %c0_i32, %c0_i32_0 : i32, i32
  }
  func.func @transform_7(%arg0: i32) -> (i32, i32) {
    %c0_i32 = arith.constant 0 : i32
    %c0_i32_0 = arith.constant 0 : i32
    %c0_i32_1 = arith.constant 0 : i32
    return %c0_i32, %c0_i32_0 : i32, i32
  }
  func.func @transform_8(%arg0: i32) -> (i32, i32) {
    %c0_i32 = arith.constant 0 : i32
    %c0_i32_0 = arith.constant 0 : i32
    %c0_i32_1 = arith.constant 0 : i32
    return %c0_i32, %c0_i32_0 : i32, i32
  }
  func.func @transform_9(%arg0: i32) -> (i32, i32) {
    %c0_i32 = arith.constant 0 : i32
    %c0_i32_0 = arith.constant 0 : i32
    %c0_i32_1 = arith.constant 0 : i32
    return %c0_i32, %c0_i32_0 : i32, i32
  }
  func.func @transform_10(%arg0: i32) -> (i32, i32) {
    %c0_i32 = arith.constant 0 : i32
    %c0_i32_0 = arith.constant 0 : i32
    %c0_i32_1 = arith.constant 0 : i32
    return %c0_i32, %c0_i32_0 : i32, i32
  }
  func.func @transform_11(%arg0: i32) -> (i32, i32) {
    %c0_i32 = arith.constant 0 : i32
    %c0_i32_0 = arith.constant 0 : i32
    %c0_i32_1 = arith.constant 0 : i32
    return %c0_i32, %c0_i32_0 : i32, i32
  }
  func.func @transform_12(%arg0: i32) -> (i32, i32) {
    %c0_i32 = arith.constant 0 : i32
    %c0_i32_0 = arith.constant 0 : i32
    %c0_i32_1 = arith.constant 0 : i32
    return %c0_i32, %c0_i32_0 : i32, i32
  }
  func.func @transform_13(%arg0: i32) -> (i32, i32) {
    %c0_i32 = arith.constant 0 : i32
    %c0_i32_0 = arith.constant 0 : i32
    %c0_i32_1 = arith.constant 0 : i32
    return %c0_i32, %c0_i32_0 : i32, i32
  }
  func.func @transform_14(%arg0: i32) -> (i32, i32) {
    %c0_i32 = arith.constant 0 : i32
    %c0_i32_0 = arith.constant 0 : i32
    %c0_i32_1 = arith.constant 0 : i32
    return %c0_i32, %c0_i32_0 : i32, i32
  }
  func.func @transform_15(%arg0: i32) -> (i32, i32) {
    %c0_i32 = arith.constant 0 : i32
    %c0_i32_0 = arith.constant 0 : i32
    %c0_i32_1 = arith.constant 0 : i32
    return %c0_i32, %c0_i32_0 : i32, i32
  }
  func.func @transform_16(%arg0: i32) -> (i32, i32) {
    %c0_i32 = arith.constant 0 : i32
    %c0_i32_0 = arith.constant 0 : i32
    %c0_i32_1 = arith.constant 0 : i32
    return %c0_i32, %c0_i32_0 : i32, i32
  }
  func.func @transform_17(%arg0: i32) -> (i32, i32) {
    %c0_i32 = arith.constant 0 : i32
    %c0_i32_0 = arith.constant 0 : i32
    %c0_i32_1 = arith.constant 0 : i32
    return %c0_i32, %c0_i32_0 : i32, i32
  }
  func.func @transform_18(%arg0: i32) -> (i32, i32) {
    %c0_i32 = arith.constant 0 : i32
    %c0_i32_0 = arith.constant 0 : i32
    %c0_i32_1 = arith.constant 0 : i32
    return %c0_i32, %c0_i32_0 : i32, i32
  }
  func.func @transform_19(%arg0: i32) -> (i32, i32) {
    %c0_i32 = arith.constant 0 : i32
    %c0_i32_0 = arith.constant 0 : i32
    %c0_i32_1 = arith.constant 0 : i32
    return %c0_i32, %c0_i32_0 : i32, i32
  }
  func.func @transform_20(%arg0: i32) -> (i32, i32) {
    %c0_i32 = arith.constant 0 : i32
    %c0_i32_0 = arith.constant 0 : i32
    %c0_i32_1 = arith.constant 0 : i32
    return %c0_i32, %c0_i32_0 : i32, i32
  }
  func.func @transform_21(%arg0: i32) -> (i32, i32) {
    %c0_i32 = arith.constant 0 : i32
    %c0_i32_0 = arith.constant 0 : i32
    %c0_i32_1 = arith.constant 0 : i32
    return %c0_i32, %c0_i32_0 : i32, i32
  }
  func.func @transform_22(%arg0: i32) -> (i32, i32) {
    %c0_i32 = arith.constant 0 : i32
    %c0_i32_0 = arith.constant 0 : i32
    %c0_i32_1 = arith.constant 0 : i32
    return %c0_i32, %c0_i32_0 : i32, i32
  }
  func.func @transform_23(%arg0: i32) -> (i32, i32) {
    %c0_i32 = arith.constant 0 : i32
    %c0_i32_0 = arith.constant 0 : i32
    %c0_i32_1 = arith.constant 0 : i32
    return %c0_i32, %c0_i32_0 : i32, i32
  }
  func.func @transform_24(%arg0: i32) -> (i32, i32) {
    %c0_i32 = arith.constant 0 : i32
    %c0_i32_0 = arith.constant 0 : i32
    %c0_i32_1 = arith.constant 0 : i32
    return %c0_i32, %c0_i32_0 : i32, i32
  }
  func.func @transform_25(%arg0: i32) -> (i32, i32) {
    %c0_i32 = arith.constant 0 : i32
    %c0_i32_0 = arith.constant 0 : i32
    %c0_i32_1 = arith.constant 0 : i32
    return %c0_i32, %c0_i32_0 : i32, i32
  }
  func.func @transform_26(%arg0: i32) -> (i32, i32) {
    %c0_i32 = arith.constant 0 : i32
    %c0_i32_0 = arith.constant 0 : i32
    return %arg0, %c0_i32 : i32, i32
  }
}

</mosaic_0001>

<bundles_post_ra>
// kernel: text_generation_transformer.4
= control target key start
LH: loop header
LB: loop body
LE: loop exit
PB: predicated region body
PF: predicated region fallthrough
CT: control target
= control target key end

     0   :  { %s4003_s29 = smov 0   ;;  %s5257_s0 = inlined_call_operand.vmem [shape: s32[16,1], index: 0, kind: input, shape index: {}]   ;;  %s5258_s1 = inlined_call_operand.vmem [shape: f32[64,32], index: 1, kind: input, shape index: {}]   ;;  %s5259_s2 = inlined_call_operand.vmem [shape: f32[32,96], index: 2, kind: input, shape index: {}]   ;;  %s5260_s3 = inlined_call_operand.vmem [shape: f32[1,96], index: 3, kind: input, shape index: {}]   ;;  %s5261_s4 = inlined_call_operand.vmem [shape: f32[32,32], index: 4, kind: input, shape index: {}]   ;;  %s5262_s5 = inlined_call_operand.vmem [shape: f32[1,32], index: 5, kind: input, shape index: {}]   ;;  %s5263_s6 = inlined_call_operand.vmem [shape: f32[1,32], index: 6, kind: input, shape index: {}]   ;;  %s5264_s7 = inlined_call_operand.vmem [shape: f32[1,32], index: 7, kind: input, shape index: {}]   ;;  %s5265_s8 = inlined_call_operand.vmem [shape: f32[32,2048], index: 8, kind: input, shape index: {}]   ;;  %s5266_s9 = inlined_call_operand.vmem [shape: f32[1,2048], index: 9, kind: input, shape index: {}]   ;;  %s5267_s10 = inlined_call_operand.vmem [shape: f32[2048,32], index: 10, kind: input, shape index: {}]   ;;  %s5268_s11 = inlined_call_operand.vmem [shape: f32[1,32], index: 11, kind: input, shape index: {}]   ;;  %s5269_s12 = inlined_call_operand.vmem [shape: f32[1,32], index: 12, kind: input, shape index: {}]   ;;  %s5270_s13 = inlined_call_operand.vmem [shape: f32[1,32], index: 13, kind: input, shape index: {}]   ;;  %s5271_s14 = inlined_call_operand.vmem [shape: f32[16,32], index: 14, kind: output, shape index: {}]  }
   0x1 LB: > { %s3075_s30 = sadd.s32 4294967295, %s3908_s29   ;;  %p3079_p0 = scmp.ge.s32.totalorder %s3908_s29, 1  ;;  %s3908_s29 = sphi %s4003_s29, %s24_s29  }
   0x2   : > { %p411_p1 = scmp.lt.s32.totalorder %s3908_s29, 3 }
   0x4   : > { %p412_p2 = pnand %p3079_p0, %p411_p1 }
   0x5   : > { %p455_p3 = scmp.lt.s32.totalorder (!%p412_p2), %s3075_s30, 1  ;;  %v464_v0 = vld [vmem:[%s5258_s1] sm:$0xff] (!%p412_p2)  ;;  %v465_v1 = vld [vmem:[%s5258_s1 + $0x8] sm:$0xff] (!%p412_p2)  ;;  %v466_v2 = vld [vmem:[%s5258_s1 + $0x10] sm:$0xff] (!%p412_p2)  ;;  %v3910_v3 = vmov (!%p412_p2), 0   ;;  %v3911_v4 = vmov (!%p412_p2), 0.0|0.0   ;;  %v472_v22 = vlaneseq (!%p412_p2) }
   0x6   : > { %415 = sbr.rel (%p412_p2) target bundleno = 3469 (0xd8d), region = 76  ;;  %3881 = vset.pattern.permute.xlu0 (!%p412_p2), %v3910_v3  ;;  %3511 = vmatprep.subr.bf16.mxu0 (!%p412_p2), %v3911_v4  ;;  %v3512_v5 = vpack.c.bf16 (!%p412_p2), %v465_v1, %v464_v0  ;;  %v467_v6 = vld [vmem:[%s5258_s1 + $0x18] sm:$0xff] (!%p412_p2)  ;;  %v468_v8 = vld [vmem:[%s5258_s1 + $0x20] sm:$0xff] (!%p412_p2)  ;;  %v469_v9 = vld [vmem:[%s5258_s1 + $0x28] sm:$0xff] (!%p412_p2)  ;;  %vm3912_vm0 = vmmov (!%p412_p2), 0   ;;  %v3913_v14 = vmov (!%p412_p2), 0.0  }
   0x7   : > { %3523 = vmatprep.subr.bf16.mxu1 (!%p412_p2), %v3911_v4  ;;  %v3515_v7 = vpack.c.bf16 (!%p412_p2), %v467_v6, %v466_v2  ;;  %v3518_v11 = vpack.c.bf16 (!%p412_p2), %v469_v9, %v468_v8  ;;  %v470_v12 = vld [vmem:[%s5258_s1 + $0x30] sm:$0xff] (!%p412_p2)  ;;  %v471_v13 = vld [vmem:[%s5258_s1 + $0x38] sm:$0xff] (!%p412_p2)  ;;  %3446 = vmatprep.mubr.msk.f32.mxu0 (!%p412_p2), %vm3912_vm0, %v3913_v14  ;;  %v554_v15 = vld [vmem:[%s5259_s2] sm:$0xff] (!%p412_p2)  ;;  %v473_v23 = vand.u32 (!%p412_p2), 127, %v472_v22  ;;  %vm480_vm1 = vcmask (!%p412_p2), 523264   ;;  %s3914_s18 = smov (!%p412_p2), 96  }
   0x8   : > { %3513 = vmatpush3.bf16.msra.mxu0 (!%p412_p2), %v3512_v5  ;;  %v555_v16 = vld [vmem:[%s5259_s2 + $0x8] sm:$0xff] (!%p412_p2)  ;;  %v556_v17 = vld [vmem:[%s5259_s2 + $0x10] sm:$0xff] (!%p412_p2)  ;;  %3457 = vmatprep.mubr.msk.f32.mxu1 (!%p412_p2), %vm3912_vm0, %v3913_v14  ;;  %v557_v19 = vld [vmem:[%s5259_s2 + $0x18] sm:$0xff] (!%p412_p2)  ;;  %v3521_v20 = vpack.c.bf16 (!%p412_p2), %v471_v13, %v470_v12  ;;  %vm565_vm3 = vcmask (!%p412_p2), 261120   ;;  %s3915_s19 = smov (!%p412_p2), 64   ;;  %s3916_s20 = smov (!%p412_p2), 120  }
   0x9   : > { %3514 = vmatprep.subr.bf16.mxu0 (!%p412_p2), %v3911_v4  ;;  %v3524_v18 = vpack.c.bf16 (!%p412_p2), %v555_v16, %v554_v15  ;;  %v3527_v21 = vpack.c.bf16 (!%p412_p2), %v557_v19, %v556_v17  ;;  %v3084_v28 = vld [vmem:[%s5260_s3] ss:$0 sm:$0xff] (!%p412_p2)  ;;  %s3917_s21 = smov (!%p412_p2), 80   ;;  %s3918_s22 = smov (!%p412_p2), 112   ;;  %vm643_vm4 = vcmask (!%p412_p2), 64512   ;;  %vm1314_vm5 = vcmask (!%p412_p2), 130048  }
   0xa   : > { %s3919_s24 = smov (!%p412_p2), 72   ;;  %s3920_s25 = smov (!%p412_p2), 88   ;;  %vm1316_vm6 = vcmask (!%p412_p2), 195584  }
   0xb   : > { %3525 = vmatpush3.bf16.msra.mxu1 (!%p412_p2), %v3524_v18  ;;  %s3921_s26 = smov (!%p412_p2), 104   ;;  %s3922_s27 = smov (!%p412_p2), 56  }
   0xc   : > { %3516 = vmatpush3.bf16.msra.mxu0 (!%p412_p2), %v3515_v7  ;;  %3526 = vmatprep.subr.bf16.mxu1 (!%p412_p2), %v3911_v4  ;;  %s3923_s28 = smov (!%p412_p2), 40   ;;  %s3924_s15 = smov (!%p412_p2), 48  }
   0xd   : > { %s5273_s30 = smov (!%p455_p3, %s3075_s30), 1  ;;  %3517 = vmatprep.subr.bf16.mxu0 %v3911_v4 }
   0xe   : > { %s3080_s23 = sshll.u32 %s5273_s30, 3 }
   0xf   : > { %s458_s16 = scalar_lea.vmem %s5257_s0, %s3080_s23  ;;  %3528 = vmatpush3.bf16.msra.mxu1 %v3527_v21 }
  0x10   : > { %v463_v10 = vld [vmem:[%s458_s16] sm:$0xff]  ;;  %3519 = vmatpush3.bf16.msra.mxu0 %v3518_v11  ;;  %3460 = vmatprep.subr.mxu1 %v3913_v14 }
  0x11   : > { %475 = vperm.xlu0 %3881, %v463_v10   ;;  %3520 = vmatprep.subr.bf16.mxu0 %v3911_v4 }
  0x14   : > { %3522 = vmatpush3.bf16.msra.mxu0 %v3521_v20 }
  0x15   : > { %3480 = vmatprep.subr.mxu0 %v3913_v14 }
  0x90   : > { %v476_v24 = vpop.permute.xlu0 %475 }
  0x91   : > { %vm477_vm2 = vcmp.eq.s32.totalorder %v476_v24, %v473_v23 }
  0x92   : > { %v3082_v25 = vsel %vm477_vm2, 1.0, %v3913_v14 }
  0x93   : > { %3447 = vmatmul.mubr.msk.f32.vlgmr.msra.gmra.mrb[0].mxu0 %vm480_vm1, %v3082_v25 }
  0x94   : > { %3482 = vmatprep.mubr.msk.f32.mxu0 %vm3912_vm0, %v3913_v14 }
 0x166   : > { %v4071_v26 = vpop.f32.mrb[0].mxu0 }
 0x167   : > { %v3448_v27 = vpop.f32.mrb[1].mxu0  ;;  %3458 = vmatmul.mubr.msk.f32.vlgmr.msra.gmra.mrb[0].mxu1 %vm565_vm3, %v4071_v26 }
 0x168   : > { %3462 = vmatprep.mubr.msk.f32.mxu1 %vm3912_vm0, %v3913_v14 }
 0x23a   : > { %v635_v29 = vpop.f32.mrb[0].mxu1 }
 0x23b   : > { %v4080_v30 = vadd.f32 %v3084_v28, %v635_v29  ;;  %v3459_v31 = vpop.f32.mrb[1].mxu1 }
 0x23c   : > { %v1319_v31 = vld [vmem:[%s5261_s4 + $0x8] sm:$0xff] }
 0x23d   : > { %641 = vrot.lane.b32.xlu0 %v4080_v30, %s3914_s18  ;;  %v639_v32 = vmul.f32 0.35355338, %v4080_v30 }
 0x241   : > { %730 = vrot.lane.b32.xlu0 %v4080_v30, %s3915_s19 }
 0x245   : > { %806 = vrot.lane.b32.xlu0 %v639_v32, %s3916_s20 }
 0x249   : > { %973 = vrot.lane.b32.xlu0 %v4080_v30, %s3917_s21 }
 0x24d   : > { %971 = vrot.lane.b32.xlu0 %v639_v32, %s3918_s22  ;;  %s462_s22 = scalar_lea.vmem %s5271_s14, %s3080_s23 }
 0x251   : > { %1138 = vrot.lane.b32.xlu0 %v4080_v30, %s3919_s24 }
 0x2af   : > { %v642_v33 = vpop.permute.xlu0 %641 }
 0x2b0   : > { %3461 = vmatpush3.xpose.msk.msra.mxu1 %vm643_vm4, %v642_v33  ;;  %v1320_v33 = vld [vmem:[%s5261_s4 + $0x10] sm:$0xff] }
 0x2b1   : > { %3465 = vmatprep.subr.mxu1 %v3913_v14 }
 0x2b3   : > { %v731_v34 = vpop.permute.xlu0 %730  ;;  %3463 = vmatmul.mubr.msk.f32.vlgmr.msra.gmra.mrb[2].mxu1 %vm643_vm4, %v639_v32 }
 0x2b4   : > { %3466 = vmatpush3.msra.mxu1 %v731_v34  ;;  %3467 = vmatprep.mubr.msk.f32.mxu1 %vm3912_vm0, %v3913_v14  ;;  %v1321_v34 = vld [vmem:[%s5261_s4 + $0x18] sm:$0xff] }
 0x2b5   : > { %3470 = vmatprep.subr.mxu1 %v3913_v14 }
 0x2b7   : > { %v807_v35 = vpop.permute.xlu0 %806 }
 0x2bb   : > { %v974_v36 = vpop.permute.xlu0 %973 }
 0x2bc   : > { %3481 = vmatpush3.xpose.msk.msra.mxu0 %vm643_vm4, %v974_v36 }
 0x2bd   : > { %3490 = vmatprep.subr.mxu0 %v3913_v14 }
 0x2bf   : > { %v972_v37 = vpop.permute.xlu0 %971 }
 0x2c0   : > { %3483 = vmatmul.mubr.msk.f32.vlgmr.msra.gmra.mrb[2].mxu0 %vm643_vm4, %v972_v37 }
 0x2c1   : > { %3492 = vmatprep.mubr.msk.f32.mxu0 %vm3912_vm0, %v3913_v14 }
 0x2c3   : > { %v1139_v38 = vpop.permute.xlu0 %1138 }
 0x2c4   : > { %3491 = vmatpush3.xpose.msk.msra.mxu0 %vm643_vm4, %v1139_v38 }
 0x2c5   : > { %3529 = vmatprep.subr.bf16.mxu0 %v3911_v4 }
 0x386   : > { %v715_v39 = vpop.f32.mrb[2].mxu1 }
 0x387   : > { %v3464_v40 = vpop.f32.mrb[3].mxu1  ;;  %v719_v41 = vsel %vm643_vm4, %v715_v39, -inf }
 0x388   : > { %720 = vmax.xlane.f32.xlu1 %v719_v41 }
 0x393   : > { %v1045_v42 = vpop.f32.mrb[2].mxu0 }
 0x394   : > { %v3484_v43 = vpop.f32.mrb[3].mxu0  ;;  %v1049_v49 = vsel %vm643_vm4, %v1045_v42, -inf }
 0x415   : > { %v721_v44 = vpop.xlane.xlu1 %720 }
 0x416   : > { %v722_v45 = vsub.f32 %v715_v39, %v721_v44 }
 0x418   : > { %v723_v46 = vmul.f32 1.442695, %v722_v45 }
 0x41a   : > { %3882 = vpow2.f32 %v723_v46 }
 0x424   : > { %v3883_v47 = vpop.eup %3882 }
 0x425   : > { %v725_v48 = vsel %vm643_vm4, %v3883_v47, 0.0 }
 0x426   : > { %726 = vadd.xlane.f32.xlu1 %v725_v48 }
 0x437   : > { %808 = vrot.lane.b32.xlu1 %v4080_v30, %s3920_s25  ;;  %s3925_s25 = smov 8  }
 0x43b   : > { %1136 = vrot.lane.b32.xlu1 %v639_v32, %s3921_s26  ;;  %s3926_s26 = smov 16  }
 0x45f   : > { %1050 = vmax.xlane.f32.xlu1 %v1049_v49 }
 0x4b3   : > { %v727_v50 = vpop.xlane.xlu1 %726 }
 0x4b4   : > { %3884 = vrcp.f32 %v727_v50 }
 0x4b7   : > { %v809_v51 = vpop.permute.xlu1 %808 }
 0x4bb   : > { %v1137_v52 = vpop.permute.xlu1 %1136 }
 0x4bc   : > { %3493 = vmatmul.mubr.msk.f32.vlgmr.msra.gmra.mrb[4].mxu0 %vm643_vm4, %v1137_v52 }
 0x4bd   : > { %3508 = vmatprep.mubr.msk.f32.mxu0 %vm3912_vm0, %v3913_v14 }
 0x4be   : > { %v3885_v53 = vpop.eup %3884 }
 0x4bf   : > { %v729_v54 = vmul.f32 %v3885_v53, %v3883_v47  ;;  %v3098_v47 = vld [vmem:[%s5262_s5] ss:$0 sm:$0xff] }
 0x4c1   : > { %3468 = vmatmul.mubr.msk.f32.vlgmr.msra.gmra.mrb[4].mxu1 %vm643_vm4, %v729_v54 }
 0x4c2   : > { %3471 = vmatpush3.xpose.msk.msra.mxu1 %vm643_vm4, %v809_v51  ;;  %3472 = vmatprep.mubr.msk.f32.mxu1 %vm3912_vm0, %v3913_v14 }
 0x4c3   : > { %3475 = vmatprep.subr.mxu1 %v3913_v14 }
 0x4c5   : > { %3473 = vmatmul.mubr.msk.f32.vlgmr.msra.gmra.mrb[6].mxu1 %vm643_vm4, %v807_v35  ;;  %v3533_v35 = vpack.c.bf16 %v1321_v34, %v1320_v33  ;;  %v1437_v33 = vld [vmem:[%s5265_s8 + $0x20] sm:$0xff] }
 0x4c6   : > { %3477 = vmatprep.mubr.msk.f32.mxu1 %vm3912_vm0, %v3913_v14  ;;  %v1453_v34 = vld [vmem:[%s5265_s8 + $0xa0] sm:$0xff] }
 0x4ec   : > { %v1051_v55 = vpop.xlane.xlu1 %1050 }
 0x4ed   : > { %v1052_v56 = vsub.f32 %v1045_v42, %v1051_v55 }
 0x4ef   : > { %v1053_v57 = vmul.f32 1.442695, %v1052_v56 }
 0x4f1   : > { %3886 = vpow2.f32 %v1053_v57 }
 0x4fb   : > { %v3887_v58 = vpop.eup %3886 }
 0x4fc   : > { %v1055_v59 = vsel %vm643_vm4, %v3887_v58, 0.0 }
 0x4fd   : > { %1056 = vadd.xlane.f32.xlu1 %v1055_v59  ;;  %v1450_v59 = vld [vmem:[%s5265_s8 + $0x88] sm:$0xff] }
 0x50e   : > { %895 = vrot.lane.b32.xlu1 %v4080_v30, %s3922_s27  ;;  %s3927_s27 = smov 24  }
 0x512   : > { %1225 = vrot.lane.b32.xlu1 %v4080_v30, %s3923_s28 }
 0x58a   : > { %v1057_v60 = vpop.xlane.xlu1 %1056 }
 0x58e   : > { %v896_v61 = vpop.permute.xlu1 %895 }
 0x58f   : > { %3476 = vmatpush3.msra.mxu1 %v896_v61  ;;  %v1210_v62 = vpop.f32.mrb[4].mxu0  ;;  %v1452_v61 = vld [vmem:[%s5265_s8 + $0x98] sm:$0xff] }
 0x590   : > { %v3494_v63 = vpop.f32.mrb[5].mxu0  ;;  %3485 = vmatprep.subr.mxu1 %v3913_v14  ;;  %v1214_v6 = vsel %vm643_vm4, %v1210_v62, -inf }
 0x591   : > { %v1449_v63 = vld [vmem:[%s5265_s8 + $0x80] sm:$0xff] }
 0x592   : > { %v1226_v28 = vpop.permute.xlu1 %1225 }
 0x594   : > { %v4119_v0 = vpop.f32.mrb[4].mxu1 }
 0x595   : > { %v3469_v1 = vpop.f32.mrb[5].mxu1 }
 0x598   : > { %v880_v2 = vpop.f32.mrb[6].mxu1 }
 0x599   : > { %v3474_v3 = vpop.f32.mrb[7].mxu1  ;;  %v884_v5 = vsel %vm643_vm4, %v880_v2, -inf }
 0x59a   : > { %885 = vmax.xlane.f32.xlu0 %v884_v5  ;;  %v1451_v3 = vld [vmem:[%s5265_s8 + $0x90] sm:$0xff] }
 0x59e   : > { %1215 = vmax.xlane.f32.xlu0 %v1214_v6  ;;  %v1466_v6 = vld [vmem:[%s5265_s8 + $0x108] sm:$0xff] }
 0x627   : > { %v886_v7 = vpop.xlane.xlu0 %885 }
 0x628   : > { %v887_v8 = vsub.f32 %v880_v2, %v886_v7  ;;  %v1435_v2 = vld [vmem:[%s5265_s8 + $0x10] sm:$0xff]  ;;  %v1482_v7 = vld [vmem:[%s5265_s8 + $0x188] sm:$0xff] }
 0x629   : > { %v3545_v5 = vpack.c.bf16 %v1451_v3, %v1435_v2 }
 0x62a   : > { %v888_v11 = vmul.f32 1.442695, %v887_v8  ;;  %v1468_v8 = vld [vmem:[%s5265_s8 + $0x118] sm:$0xff] }
 0x62b   : > { %v1216_v9 = vpop.xlane.xlu0 %1215 }
 0x62c   : > { %v1217_v10 = vsub.f32 %v1210_v62, %v1216_v9  ;;  %v1433_v62 = vld [vmem:[%s5265_s8] sm:$0xff]  ;;  %v3539_v9 = vpack.c.bf16 %v1482_v7, %v1466_v6 }
 0x62d   : > { %v3537_v1 = vpack.c.bf16 %v1449_v63, %v1433_v62  ;;  %v1474_v62 = vld [vmem:[%s5265_s8 + $0x148] sm:$0xff]  ;;  %v1489_v6 = vld [vmem:[%s5265_s8 + $0x1c0] sm:$0xff] }
 0x62e   : > { %v1218_v12 = vmul.f32 1.442695, %v1217_v10  ;;  %v1484_v10 = vld [vmem:[%s5265_s8 + $0x198] sm:$0xff]  ;;  %v1490_v63 = vld [vmem:[%s5265_s8 + $0x1c8] sm:$0xff] }
 0x62f   : > { %v3571_v7 = vpack.c.bf16 %v1490_v63, %v1474_v62  ;;  %v2220_v62 = vld [vmem:[%s5267_s10 + $0x1a0] sm:$0xff]  ;;  %v2221_v63 = vld [vmem:[%s5267_s10 + $0x1a8] sm:$0xff] }
 0x630   : > { %3888 = vpow2.f32 %v1218_v12  ;;  %v1481_v12 = vld [vmem:[%s5265_s8 + $0x180] sm:$0xff] }
 0x631   : > { %3890 = vpow2.f32 %v888_v11  ;;  %v1465_v11 = vld [vmem:[%s5265_s8 + $0x100] sm:$0xff] }
 0x63a   : > { %v3889_v13 = vpop.eup %3888 }
 0x63b   : > { %v1220_v15 = vsel %vm643_vm4, %v3889_v13, 0.0  ;;  %v3891_v16 = vpop.eup %3890 }
 0x63c   : > { %1221 = vadd.xlane.f32.xlu0 %v1220_v15  ;;  %v890_v17 = vsel %vm643_vm4, %v3891_v16, 0.0  ;;  %v3541_v15 = vpack.c.bf16 %v1481_v12, %v1465_v11  ;;  %v1446_v11 = vld [vmem:[%s5265_s8 + $0x68] sm:$0xff] }
 0x63d   : > { %v1462_v12 = vld [vmem:[%s5265_s8 + $0xe8] sm:$0xff] }
 0x640   : > { %891 = vadd.xlane.f32.xlu0 %v890_v17  ;;  %v1483_v17 = vld [vmem:[%s5265_s8 + $0x190] sm:$0xff] }
 0x656   : > { %1060 = vrot.lane.b32.xlu0 %v4080_v30, %s3924_s15  ;;  %v1318_v30 = vld [vmem:[%s5261_s4] sm:$0xff] }
 0x657   : > { %v3530_v32 = vpack.c.bf16 %v1319_v31, %v1318_v30  ;;  %v3100_v30 = vld [vmem:[%s5263_s6] ss:$0 sm:$0xff] }
 0x659   : > { %3531 = vmatpush3.bf16.msra.mxu0 %v3530_v32  ;;  %v3101_v32 = vld [vmem:[%s5264_s7] ss:$0 sm:$0xff] }
 0x65a   : > { %3532 = vmatprep.subr.bf16.mxu0 %v3911_v4 }
 0x65d   : > { %3534 = vmatpush3.bf16.msra.mxu0 %v3533_v35 }
 0x6c9   : > { %v1222_v18 = vpop.xlane.xlu0 %1221 }
 0x6cd   : > { %v892_v19 = vpop.xlane.xlu0 %891 }
 0x6ce   : > { %3892 = vrcp.f32 %v892_v19  ;;  %v1438_v19 = vld [vmem:[%s5265_s8 + $0x28] sm:$0xff] }
 0x6cf   : > { %3894 = vrcp.f32 %v1057_v60 }
 0x6d0   : > { %3896 = vrcp.f32 %v1222_v18 }
 0x6d1   : > { %v1061_v24 = vpop.permute.xlu0 %1060 }
 0x6d8   : > { %v3893_v20 = vpop.eup %3892 }
 0x6d9   : > { %v894_v21 = vmul.f32 %v3893_v20, %v3891_v16  ;;  %v3895_v23 = vpop.eup %3894  ;;  %v1467_v16 = vld [vmem:[%s5265_s8 + $0x110] sm:$0xff]  ;;  %v1454_v20 = vld [vmem:[%s5265_s8 + $0xa8] sm:$0xff] }
 0x6da   : > { %v1059_v25 = vmul.f32 %v3895_v23, %v3887_v58  ;;  %v3897_v27 = vpop.eup %3896  ;;  %v1434_v58 = vld [vmem:[%s5265_s8 + $0x8] sm:$0xff]  ;;  %v3549_v18 = vpack.c.bf16 %v1483_v17, %v1467_v16  ;;  %v3551_v23 = vpack.c.bf16 %v1454_v20, %v1438_v19  ;;  %v1461_v19 = vld [vmem:[%s5265_s8 + $0xe0] sm:$0xff]  ;;  %v3583_v20 = vpack.c.bf16 %v1462_v12, %v1446_v11  ;;  %v2222_v11 = vld [vmem:[%s5267_s10 + $0x1b0] sm:$0xff] }
 0x6db   : > { %3478 = vmatmul.mubr.msk.f32.vlgmr.msra.gmra.mrb[8].mxu1 %vm643_vm4, %v894_v21  ;;  %v1224_v29 = vmul.f32 %v3897_v27, %v3889_v13  ;;  %v3535_v60 = vpack.c.bf16 %v1450_v59, %v1434_v58  ;;  %v3547_v13 = vpack.c.bf16 %v1484_v10, %v1468_v8  ;;  %v1440_v21 = vld [vmem:[%s5265_s8 + $0x38] sm:$0xff]  ;;  %v1457_v58 = vld [vmem:[%s5265_s8 + $0xc0] sm:$0xff]  ;;  %v1491_v10 = vld [vmem:[%s5265_s8 + $0x1d0] sm:$0xff] }
 0x6dc   : > { %3486 = vmatpush3.msra.mxu1 %v1061_v24  ;;  %3487 = vmatprep.mubr.msk.f32.mxu1 %vm3912_vm0, %v3913_v14  ;;  %v1456_v24 = vld [vmem:[%s5265_s8 + $0xb8] sm:$0xff] }
 0x6dd   : > { %3495 = vmatprep.subr.mxu1 %v3913_v14  ;;  %v2223_v12 = vld [vmem:[%s5267_s10 + $0x1b8] sm:$0xff] }
 0x6df   : > { %3488 = vmatmul.mubr.msk.f32.vlgmr.msra.gmra.mrb[10].mxu1 %vm643_vm4, %v1059_v25  ;;  %v3559_v25 = vpack.c.bf16 %v1456_v24, %v1440_v21  ;;  %v1463_v24 = vld [vmem:[%s5265_s8 + $0xf0] sm:$0xff] }
 0x6e0   : > { %3496 = vmatpush3.msra.mxu1 %v1226_v28  ;;  %3497 = vmatprep.mubr.msk.f32.mxu1 %vm3912_vm0, %v3913_v14 }
 0x6e1   : > { %3536 = vmatprep.subr.bf16.mxu1 %v3535_v60  ;;  %v1443_v60 = vld [vmem:[%s5265_s8 + $0x50] sm:$0xff] }
 0x6e3   : > { %3498 = vmatmul.mubr.msk.f32.vlgmr.msra.gmra.mrb[12].mxu1 %vm643_vm4, %v1224_v29 }
 0x6e4   : > { %1648 = vmatprep.mubr.f32.mxu1 %v3913_v14  ;;  %3538 = vmatpush1.bf16.msra.mxu1 %v3537_v1  ;;  %v1492_v1 = vld [vmem:[%s5265_s8 + $0x1d8] sm:$0xff] }
 0x6e5   : > { %3540 = vmatprep.subr.bf16.mxu1 %v3539_v9  ;;  %v1475_v9 = vld [vmem:[%s5265_s8 + $0x150] sm:$0xff] }
 0x6e6   : > { %v3581_v17 = vpack.c.bf16 %v1491_v10, %v1475_v9  ;;  %v2190_v9 = vld [vmem:[%s5267_s10 + $0xb0] sm:$0xff]  ;;  %v2191_v10 = vld [vmem:[%s5267_s10 + $0xb8] sm:$0xff] }
 0x6e8   : > { %3542 = vmatpush1.bf16.msra.mxu1 %v3541_v15  ;;  %v1464_v15 = vld [vmem:[%s5265_s8 + $0xf8] sm:$0xff] }
 0x6e9   : > { %3552 = vmatprep.subr.bf16.mxu1 %v3551_v23  ;;  %v1447_v23 = vld [vmem:[%s5265_s8 + $0x70] sm:$0xff] }
 0x7ae   : > { %v967_v36 = vpop.f32.mrb[8].mxu1 }
 0x7af   : > { %1302 = vrot.lane.b32.xlu1 %v967_v36, %s3925_s25  ;;  %v3479_v37 = vpop.f32.mrb[9].mxu1  ;;  %v1439_v36 = vld [vmem:[%s5265_s8 + $0x30] sm:$0xff] }
 0x7b0   : > { %v1455_v37 = vld [vmem:[%s5265_s8 + $0xb0] sm:$0xff] }
 0x7b2   : > { %v1132_v38 = vpop.f32.mrb[10].mxu1 }
 0x7b3   : > { %1306 = vrot.lane.b32.xlu0 %v1132_v38, %s3926_s26  ;;  %v3489_v39 = vpop.f32.mrb[11].mxu1  ;;  %v1470_v38 = vld [vmem:[%s5265_s8 + $0x128] sm:$0xff] }
 0x7b4   : > { %v1486_v39 = vld [vmem:[%s5265_s8 + $0x1a8] sm:$0xff] }
 0x7b6   : > { %v1297_v40 = vpop.f32.mrb[12].mxu1 }
 0x7b7   : > { %1310 = vrot.lane.b32.xlu1 %v1297_v40, %s3927_s27  ;;  %v3499_v4 = vpop.f32.mrb[13].mxu1  ;;  %v1472_v40 = vld [vmem:[%s5265_s8 + $0x138] sm:$0xff] }
 0x7b8   : > { %v1488_v4 = vld [vmem:[%s5265_s8 + $0x1b8] sm:$0xff] }
 0x821   : > { %v1303_v41 = vpop.permute.xlu1 %1302 }
 0x822   : > { %v1313_v43 = vsel %vm643_vm4, %v4119_v0, %v1303_v41 }
 0x825   : > { %v1307_v42 = vpop.permute.xlu0 %1306 }
 0x826   : > { %v1315_v44 = vsel %vm1314_vm5, %v1313_v43, %v1307_v42  ;;  %v3553_v42 = vpack.c.bf16 %v1453_v34, %v1437_v33  ;;  %v3561_v43 = vpack.c.bf16 %v1455_v37, %v1439_v36  ;;  %v1493_v33 = vld [vmem:[%s5265_s8 + $0x1e0] sm:$0xff]  ;;  %v1479_v36 = vld [vmem:[%s5265_s8 + $0x170] sm:$0xff] }
 0x827   : > { %v1495_v37 = vld [vmem:[%s5265_s8 + $0x1f0] sm:$0xff] }
 0x829   : > { %v1311_v45 = vpop.permute.xlu1 %1310 }
 0x82a   : > { %v1317_v46 = vsel %vm1316_vm6, %v1315_v44, %v1311_v45  ;;  %v1469_v44 = vld [vmem:[%s5265_s8 + $0x120] sm:$0xff] }
 0x82b   : > { %3509 = vmatmul.mubr.msk.f32.vlgmr.msra.gmra.mrb[6].mxu0 %vm565_vm3, %v1317_v46  ;;  %v1485_v45 = vld [vmem:[%s5265_s8 + $0x1a0] sm:$0xff] }
 0x82c   : > { %1719 = vmatprep.mubr.f32.mxu0 %v3913_v14 }
 0x8fe   : > { %v1398_v48 = vpop.f32.mrb[6].mxu0 }
 0x8ff   : > { %v1399_v49 = vadd.f32 %v3098_v47, %v1398_v48  ;;  %v3510_v50 = vpop.f32.mrb[7].mxu0  ;;  %v3555_v47 = vpack.c.bf16 %v1486_v39, %v1470_v38  ;;  %v3563_v48 = vpack.c.bf16 %v1488_v4, %v1472_v40  ;;  %v2184_v38 = vld [vmem:[%s5267_s10 + $0x80] sm:$0xff]  ;;  %v2185_v39 = vld [vmem:[%s5267_s10 + $0x88] sm:$0xff] }
 0x900   : > { %v1487_v50 = vld [vmem:[%s5265_s8 + $0x1b0] sm:$0xff]  ;;  %v2216_v40 = vld [vmem:[%s5267_s10 + $0x180] sm:$0xff]  ;;  %v2217_v4 = vld [vmem:[%s5267_s10 + $0x188] sm:$0xff] }
 0x901   : > { %v1402_v51 = vadd.f32 %v1399_v49, %v4071_v26  ;;  %v1436_v26 = vld [vmem:[%s5265_s8 + $0x18] sm:$0xff]  ;;  %v1471_v49 = vld [vmem:[%s5265_s8 + $0x130] sm:$0xff] }
 0x902   : > { %v3543_v0 = vpack.c.bf16 %v1452_v61, %v1436_v26  ;;  %v1459_v61 = vld [vmem:[%s5265_s8 + $0xd0] sm:$0xff] }
 0x903   : > { %v1405_v52 = vsel %vm565_vm3, %v1402_v51, 0.0  ;;  %v3577_v3 = vpack.c.bf16 %v1459_v61, %v1443_v60  ;;  %v2188_v60 = vld [vmem:[%s5267_s10 + $0xa0] sm:$0xff]  ;;  %v2189_v61 = vld [vmem:[%s5267_s10 + $0xa8] sm:$0xff] }
 0x904   : > { %1406 = vadd.xlane.f32.xlu0 %v1405_v52  ;;  %3544 = vmatprep.subr.bf16.mxu0 %v3543_v0  ;;  %v1458_v52 = vld [vmem:[%s5265_s8 + $0xc8] sm:$0xff]  ;;  %v1476_v0 = vld [vmem:[%s5265_s8 + $0x158] sm:$0xff] }
 0x905   : > { %3546 = vmatpush1.bf16.msra.mxu0 %v3545_v5  ;;  %v1473_v5 = vld [vmem:[%s5265_s8 + $0x140] sm:$0xff]  ;;  %v3579_v8 = vpack.c.bf16 %v1492_v1, %v1476_v0 }
 0x906   : > { %3548 = vmatprep.subr.bf16.mxu0 %v3547_v13  ;;  %v1448_v13 = vld [vmem:[%s5265_s8 + $0x78] sm:$0xff]  ;;  %v3573_v16 = vpack.c.bf16 %v1489_v6, %v1473_v5  ;;  %v3607_v5 = vpack.c.bf16 %v2189_v61, %v2188_v60  ;;  %v3639_v6 = vpack.c.bf16 %v2221_v63, %v2220_v62  ;;  %v2198_v60 = vld [vmem:[%s5267_s10 + $0xf0] sm:$0xff] }
 0x907   : > { %v3591_v21 = vpack.c.bf16 %v1464_v15, %v1448_v13  ;;  %v2199_v61 = vld [vmem:[%s5267_s10 + $0xf8] sm:$0xff]  ;;  %v2230_v62 = vld [vmem:[%s5267_s10 + $0x1f0] sm:$0xff] }
 0x908   : > { %v3627_v63 = vpack.c.bf16 %v2199_v61, %v2198_v60  ;;  %v2267_v60 = vld [vmem:[%s5267_s10 + $0x318] sm:$0xff]  ;;  %v2252_v61 = vld [vmem:[%s5267_s10 + $0x2a0] sm:$0xff] }
 0x909   : > { %3550 = vmatpush1.bf16.msra.mxu0 %v3549_v18  ;;  %v1445_v18 = vld [vmem:[%s5265_s8 + $0x60] sm:$0xff] }
 0x90a   : > { %3560 = vmatprep.subr.bf16.mxu0 %v3559_v25  ;;  %v1478_v25 = vld [vmem:[%s5265_s8 + $0x168] sm:$0xff] }
 0x991   : > { %v1407_v53 = vpop.xlane.xlu0 %1406 }
 0x992   : > { %v1409_v54 = vmul.f32 0.03125, %v1407_v53  ;;  %v1444_v53 = vld [vmem:[%s5265_s8 + $0x58] sm:$0xff] }
 0x994   : > { %v1410_v55 = vsub.f32 %v1402_v51, %v1409_v54  ;;  %v1442_v51 = vld [vmem:[%s5265_s8 + $0x48] sm:$0xff]  ;;  %v1460_v54 = vld [vmem:[%s5265_s8 + $0xd8] sm:$0xff] }
 0x995   : > { %v3567_v59 = vpack.c.bf16 %v1458_v52, %v1442_v51  ;;  %v3575_v26 = vpack.c.bf16 %v1460_v54, %v1444_v53  ;;  %v2187_v51 = vld [vmem:[%s5267_s10 + $0x98] sm:$0xff]  ;;  %v2218_v52 = vld [vmem:[%s5267_s10 + $0x190] sm:$0xff] }
 0x996   : > { %v1411_v56 = vmul.f32 %v1410_v55, %v1410_v55  ;;  %v2219_v53 = vld [vmem:[%s5267_s10 + $0x198] sm:$0xff] }
 0x998   : > { %v1412_v57 = vsel %vm565_vm3, %v1411_v56, 0.0  ;;  %v3565_v56 = vpack.c.bf16 %v1487_v50, %v1471_v49  ;;  %v2201_v49 = vld [vmem:[%s5267_s10 + $0x108] sm:$0xff]  ;;  %v2186_v50 = vld [vmem:[%s5267_s10 + $0x90] sm:$0xff] }
 0x999   : > { %1413 = vadd.xlane.f32.xlu1 %v1412_v57  ;;  %v1441_v57 = vld [vmem:[%s5265_s8 + $0x40] sm:$0xff] }
 0x99a   : > { %v3569_v2 = vpack.c.bf16 %v1457_v58, %v1441_v57  ;;  %v3603_v57 = vpack.c.bf16 %v2187_v51, %v2186_v50  ;;  %v3635_v58 = vpack.c.bf16 %v2219_v53, %v2218_v52  ;;  %v2228_v50 = vld [vmem:[%s5267_s10 + $0x1e0] sm:$0xff]  ;;  %v2229_v51 = vld [vmem:[%s5267_s10 + $0x1e8] sm:$0xff] }
 0xa26   : > { %v1414_v27 = vpop.xlane.xlu1 %1413 }
 0xa27   : > { %v1415_v28 = vmul.f32 0.03125, %v1414_v27  ;;  %v1494_v27 = vld [vmem:[%s5265_s8 + $0x1e8] sm:$0xff] }
 0xa28   : > { %v3587_v34 = vpack.c.bf16 %v1494_v27, %v1478_v25  ;;  %v2224_v25 = vld [vmem:[%s5267_s10 + $0x1c0] sm:$0xff]  ;;  %v2225_v27 = vld [vmem:[%s5267_s10 + $0x1c8] sm:$0xff] }
 0xa29   : > { %v1416_v29 = vadd.f32 1e-05, %v1415_v28  ;;  %v1480_v28 = vld [vmem:[%s5265_s8 + $0x178] sm:$0xff] }
 0xa2b   : > { %3898 = vrsqrt.f32 %v1416_v29  ;;  %v1496_v29 = vld [vmem:[%s5265_s8 + $0x1f8] sm:$0xff] }
 0xa35   : > { %v3899_v31 = vpop.eup %3898 }
 0xa36   : > { %v1418_v35 = vmul.f32 %v3899_v31, %v1410_v55  ;;  %v3557_v55 = vpack.c.bf16 %v1485_v45, %v1469_v44  ;;  %v3593_v31 = vpack.c.bf16 %v1463_v24, %v1447_v23  ;;  %v2169_v44 = vld [vmem:[%s5267_s10 + $0x8] sm:$0xff]  ;;  %v3599_v45 = vpack.c.bf16 %v2185_v39, %v2184_v38  ;;  %v2192_v23 = vld [vmem:[%s5267_s10 + $0xc0] sm:$0xff]  ;;  %v2226_v38 = vld [vmem:[%s5267_s10 + $0x1d0] sm:$0xff] }
 0xa37   : > { %v2193_v24 = vld [vmem:[%s5267_s10 + $0xc8] sm:$0xff]  ;;  %v2227_v39 = vld [vmem:[%s5267_s10 + $0x1d8] sm:$0xff] }
 0xa38   : > { %v1425_v41 = vmul.f32 %v3100_v30, %v1418_v35  ;;  %v3585_v30 = vpack.c.bf16 %v1461_v19, %v1445_v18  ;;  %v3595_v35 = vpack.c.bf16 %v1496_v29, %v1480_v28  ;;  %v3611_v18 = vpack.c.bf16 %v2191_v10, %v2190_v9  ;;  %v2248_v9 = vld [vmem:[%s5267_s10 + $0x280] sm:$0xff]  ;;  %v2249_v10 = vld [vmem:[%s5267_s10 + $0x288] sm:$0xff] }
 0xa39   : > { %v3643_v19 = vpack.c.bf16 %v2223_v12, %v2222_v11  ;;  %v2280_v11 = vld [vmem:[%s5267_s10 + $0x380] sm:$0xff]  ;;  %v3663_v12 = vpack.c.bf16 %v2249_v10, %v2248_v9  ;;  %v2237_v10 = vld [vmem:[%s5267_s10 + $0x228] sm:$0xff] }
 0xa3a   : > { %v4254_v46 = vadd.f32 %v3101_v32, %v1425_v41  ;;  %v1477_v32 = vld [vmem:[%s5265_s8 + $0x160] sm:$0xff] }
 0xa3b   : > { %v3589_v41 = vpack.c.bf16 %v1493_v33, %v1477_v32  ;;  %v3615_v32 = vpack.c.bf16 %v2193_v24, %v2192_v23  ;;  %v3647_v33 = vpack.c.bf16 %v2225_v27, %v2224_v25  ;;  %v1497_v23 = vld [vmem:[%s5266_s9] sm:$0xff] }
 0xa3c   : > { %3102 = vmatmul.mubr.msk.f32.vlgmr.msra.gmra.mrb[14].mxu1 %vm565_vm3, %v4254_v46  ;;  %3103 = vmatmul.mubr.msk.f32.vlgmr.msra.gmra.mrb[8].mxu0 %vm565_vm3, %v4254_v46  ;;  %v2236_v9 = vld [vmem:[%s5267_s10 + $0x220] sm:$0xff] }
 0xa3d   : > { %3554 = vmatpush1.bf16.msra.mxu1 %v3553_v42  ;;  %3562 = vmatpush1.bf16.msra.mxu0 %v3561_v43  ;;  %v3597_v42 = vpack.c.bf16 %v1495_v37, %v1479_v36  ;;  %v2168_v43 = vld [vmem:[%s5267_s10] sm:$0xff]  ;;  %v2194_v36 = vld [vmem:[%s5267_s10 + $0xd0] sm:$0xff]  ;;  %v2195_v37 = vld [vmem:[%s5267_s10 + $0xd8] sm:$0xff] }
 0xa3e   : > { %3556 = vmatprep.subr.bf16.mxu1 %v3555_v47  ;;  %3564 = vmatprep.subr.bf16.mxu0 %v3563_v48  ;;  %v3631_v47 = vpack.c.bf16 %v2217_v4, %v2216_v40  ;;  %v2200_v48 = vld [vmem:[%s5267_s10 + $0x100] sm:$0xff]  ;;  %v3601_v54 = vpack.c.bf16 %v2169_v44, %v2168_v43  ;;  %v3619_v43 = vpack.c.bf16 %v2195_v37, %v2194_v36 }
 0xa3f   : > { %1790 = vmatprep.mubr.f32.mxu1 %v3913_v14  ;;  %1861 = vmatprep.mubr.f32.mxu0 %v3913_v14  ;;  %v3651_v44 = vpack.c.bf16 %v2227_v39, %v2226_v38  ;;  %v2264_v39 = vld [vmem:[%s5267_s10 + $0x300] sm:$0xff] }
 0xa41   : > { %3558 = vmatpush1.bf16.msra.mxu1 %v3557_v55  ;;  %3566 = vmatpush1.bf16.msra.mxu0 %v3565_v56  ;;  %v3633_v55 = vpack.c.bf16 %v2201_v49, %v2200_v48  ;;  %v2171_v56 = vld [vmem:[%s5267_s10 + $0x18] sm:$0xff]  ;;  %v2196_v48 = vld [vmem:[%s5267_s10 + $0xe0] sm:$0xff]  ;;  %v2197_v49 = vld [vmem:[%s5267_s10 + $0xe8] sm:$0xff] }
 0xa42   : > { %3568 = vmatprep.subr.bf16.mxu1 %v3567_v59  ;;  %3576 = vmatprep.subr.bf16.mxu0 %v3575_v26  ;;  %v2202_v59 = vld [vmem:[%s5267_s10 + $0x110] sm:$0xff]  ;;  %v2203_v26 = vld [vmem:[%s5267_s10 + $0x118] sm:$0xff] }
 0xa43   : > { %v3637_v1 = vpack.c.bf16 %v2203_v26, %v2202_v59 }
 0xa44   : > { %3104 = vmatmul.mubr.msk.f32.vlgmr.msra.gmra.mrb[16].mxu1 %vm565_vm3, %v4254_v46  ;;  %3105 = vmatmul.mubr.msk.f32.vlgmr.msra.gmra.mrb[10].mxu0 %vm565_vm3, %v4254_v46 }
 0xa45   : > { %3570 = vmatpush1.bf16.msra.mxu1 %v3569_v2  ;;  %3578 = vmatpush1.bf16.msra.mxu0 %v3577_v3  ;;  %v2172_v2 = vld [vmem:[%s5267_s10 + $0x20] sm:$0xff]  ;;  %v2173_v3 = vld [vmem:[%s5267_s10 + $0x28] sm:$0xff] }
 0xa46   : > { %3572 = vmatprep.subr.bf16.mxu1 %v3571_v7  ;;  %3580 = vmatprep.subr.bf16.mxu0 %v3579_v8  ;;  %v2204_v7 = vld [vmem:[%s5267_s10 + $0x120] sm:$0xff]  ;;  %v2205_v8 = vld [vmem:[%s5267_s10 + $0x128] sm:$0xff]  ;;  %v3609_v13 = vpack.c.bf16 %v2173_v3, %v2172_v2  ;;  %v2183_v2 = vld [vmem:[%s5267_s10 + $0x78] sm:$0xff] }
 0xa47   : > { %1932 = vmatprep.mubr.f32.mxu1 %v3913_v14  ;;  %2003 = vmatprep.mubr.f32.mxu0 %v3913_v14  ;;  %v3641_v15 = vpack.c.bf16 %v2205_v8, %v2204_v7  ;;  %v2215_v7 = vld [vmem:[%s5267_s10 + $0x178] sm:$0xff] }
 0xa49   : > { %3574 = vmatpush1.bf16.msra.mxu1 %v3573_v16  ;;  %3582 = vmatpush1.bf16.msra.mxu0 %v3581_v17  ;;  %v2174_v16 = vld [vmem:[%s5267_s10 + $0x30] sm:$0xff]  ;;  %v2175_v17 = vld [vmem:[%s5267_s10 + $0x38] sm:$0xff] }
 0xa4a   : > { %3584 = vmatprep.subr.bf16.mxu1 %v3583_v20  ;;  %3592 = vmatprep.subr.bf16.mxu0 %v3591_v21  ;;  %v2206_v20 = vld [vmem:[%s5267_s10 + $0x130] sm:$0xff]  ;;  %v2207_v21 = vld [vmem:[%s5267_s10 + $0x138] sm:$0xff]  ;;  %v3613_v28 = vpack.c.bf16 %v2175_v17, %v2174_v16  ;;  %v4585_v16 = vshrl.u32 %v472_v22, 7 }
 0xa4b   : > { %v3645_v29 = vpack.c.bf16 %v2207_v21, %v2206_v20 }
 0xa4c   : > { %3106 = vmatmul.mubr.msk.f32.vlgmr.msra.gmra.mrb[18].mxu1 %vm565_vm3, %v4254_v46  ;;  %3107 = vmatmul.mubr.msk.f32.vlgmr.msra.gmra.mrb[12].mxu0 %vm565_vm3, %v4254_v46  ;;  %v1527_v17 = vsub.s32 6, %v4585_v16  ;;  %v1503_v20 = vsub.s32 0, %v4585_v16  ;;  %v1511_v21 = vsub.s32 2, %v4585_v16  ;;  %v1507_v22 = vsub.s32 1, %v4585_v16 }
 0xa4d   : > { %3586 = vmatpush1.bf16.msra.mxu1 %v3585_v30  ;;  %3594 = vmatpush1.bf16.msra.mxu0 %v3593_v31  ;;  %v2176_v30 = vld [vmem:[%s5267_s10 + $0x40] sm:$0xff]  ;;  %v2177_v31 = vld [vmem:[%s5267_s10 + $0x48] sm:$0xff]  ;;  %v1515_v24 = vsub.s32 3, %v4585_v16 }
 0xa4e   : > { %3588 = vmatprep.subr.bf16.mxu1 %v3587_v34  ;;  %3596 = vmatprep.subr.bf16.mxu0 %v3595_v35  ;;  %v2208_v34 = vld [vmem:[%s5267_s10 + $0x140] sm:$0xff]  ;;  %v2209_v35 = vld [vmem:[%s5267_s10 + $0x148] sm:$0xff]  ;;  %v3617_v40 = vpack.c.bf16 %v2177_v31, %v2176_v30  ;;  %v1504_v25 = vrot.slane %v1497_v23, %v1503_v20  ;;  %v1512_v27 = vrot.slane %v1497_v23, %v1511_v21  ;;  %v1519_v30 = vsub.s32 4, %v4585_v16 }
 0xa4f   : > { %2074 = vmatprep.mubr.f32.mxu1 %v3913_v14  ;;  %2145 = vmatprep.mubr.f32.mxu0 %v3913_v14  ;;  %v2170_v14 = vld [vmem:[%s5267_s10 + $0x10] sm:$0xff]  ;;  %v3649_v4 = vpack.c.bf16 %v2209_v35, %v2208_v34  ;;  %v2233_v34 = vld [vmem:[%s5267_s10 + $0x208] sm:$0xff] }
 0xa50   : > { %v3605_v0 = vpack.c.bf16 %v2171_v56, %v2170_v14  ;;  %v3655_v14 = vpack.c.bf16 %v2229_v51, %v2228_v50  ;;  %v2181_v56 = vld [vmem:[%s5267_s10 + $0x68] sm:$0xff] }
 0xa51   : > { %3590 = vmatpush1.bf16.msra.mxu1 %v3589_v41  ;;  %3598 = vmatpush1.bf16.msra.mxu0 %v3597_v42  ;;  %v2178_v41 = vld [vmem:[%s5267_s10 + $0x50] sm:$0xff]  ;;  %v2179_v42 = vld [vmem:[%s5267_s10 + $0x58] sm:$0xff] }
 0xa52   : > { %3600 = vmatprep.subr.bf16.mxu1 %v3599_v45  ;;  %3632 = vmatprep.subr.bf16.mxu0 %v3631_v47  ;;  %v2210_v45 = vld [vmem:[%s5267_s10 + $0x150] sm:$0xff]  ;;  %v2211_v47 = vld [vmem:[%s5267_s10 + $0x158] sm:$0xff]  ;;  %v3621_v52 = vpack.c.bf16 %v2179_v42, %v2178_v41 }
 0xa53   : > { %v3653_v53 = vpack.c.bf16 %v2211_v47, %v2210_v45  ;;  %v2251_v45 = vld [vmem:[%s5267_s10 + $0x298] sm:$0xff]  ;;  %v2282_v47 = vld [vmem:[%s5267_s10 + $0x390] sm:$0xff] }
 0xa54   : > { %3108 = vmatmul.mubr.msk.f32.vlgmr.msra.gmra.mrb[20].mxu1 %vm565_vm3, %v4254_v46  ;;  %3109 = vmatmul.mubr.msk.f32.vlgmr.msra.gmra.mrb[14].mxu0 %vm565_vm3, %v4254_v46 }
 0xa55   : > { %3602 = vmatpush3.bf16.msra.mxu1 %v3601_v54  ;;  %3634 = vmatpush3.bf16.msra.mxu0 %v3633_v55  ;;  %v2180_v54 = vld [vmem:[%s5267_s10 + $0x60] sm:$0xff]  ;;  %v3623_v55 = vpack.c.bf16 %v2197_v49, %v2196_v48  ;;  %v2283_v48 = vld [vmem:[%s5267_s10 + $0x398] sm:$0xff]  ;;  %v1520_v49 = vrot.slane %v1497_v23, %v1519_v30 }
 0xa56   : > { %3604 = vmatprep.subr.bf16.mxu1 %v3603_v57  ;;  %3636 = vmatprep.subr.bf16.mxu0 %v3635_v58  ;;  %v2212_v57 = vld [vmem:[%s5267_s10 + $0x160] sm:$0xff]  ;;  %v2213_v58 = vld [vmem:[%s5267_s10 + $0x168] sm:$0xff]  ;;  %v3625_v59 = vpack.c.bf16 %v2181_v56, %v2180_v54  ;;  %v2266_v56 = vld [vmem:[%s5267_s10 + $0x310] sm:$0xff] }
 0xa57   : > { %v3657_v26 = vpack.c.bf16 %v2213_v58, %v2212_v57 }
 0xa59   : > { %3606 = vmatpush3.bf16.msra.mxu1 %v3605_v0  ;;  %3638 = vmatpush3.bf16.msra.mxu0 %v3637_v1  ;;  %v2231_v0 = vld [vmem:[%s5267_s10 + $0x1f8] sm:$0xff]  ;;  %v2182_v1 = vld [vmem:[%s5267_s10 + $0x70] sm:$0xff] }
 0xa5a   : > { %3608 = vmatprep.subr.bf16.mxu1 %v3607_v5  ;;  %3640 = vmatprep.subr.bf16.mxu0 %v3639_v6  ;;  %v3659_v3 = vpack.c.bf16 %v2231_v0, %v2230_v62  ;;  %v3629_v5 = vpack.c.bf16 %v2183_v2, %v2182_v1  ;;  %v2214_v6 = vld [vmem:[%s5267_s10 + $0x170] sm:$0xff]  ;;  %v2253_v62 = vld [vmem:[%s5267_s10 + $0x2a8] sm:$0xff]  ;;  %v2284_v1 = vld [vmem:[%s5267_s10 + $0x3a0] sm:$0xff] }
 0xa5b   : > { %v3661_v8 = vpack.c.bf16 %v2215_v7, %v2214_v6  ;;  %v2285_v2 = vld [vmem:[%s5267_s10 + $0x3a8] sm:$0xff]  ;;  %v3701_v7 = vpack.c.bf16 %v2267_v60, %v2266_v56  ;;  %v2272_v60 = vld [vmem:[%s5267_s10 + $0x340] sm:$0xff] }
 0xa5d   : > { %3610 = vmatpush3.bf16.msra.mxu1 %v3609_v13  ;;  %3642 = vmatpush3.bf16.msra.mxu0 %v3641_v15  ;;  %v2281_v13 = vld [vmem:[%s5267_s10 + $0x388] sm:$0xff] }
 0xa5e   : > { %3612 = vmatprep.subr.bf16.mxu1 %v3611_v18  ;;  %3644 = vmatprep.subr.bf16.mxu0 %v3643_v19  ;;  %v3695_v15 = vpack.c.bf16 %v2281_v13, %v2280_v11  ;;  %v4591_v18 = vld [vmem:[%s5266_s9 + $0x8] sm:$0xff] }
 0xa5f   : > { %v4594_v19 = vrot.slane %v4591_v18, %v1527_v17 }
 0xa61   : > { %3614 = vmatpush3.bf16.msra.mxu1 %v3613_v28  ;;  %3646 = vmatpush3.bf16.msra.mxu0 %v3645_v29  ;;  %v1508_v28 = vrot.slane %v1497_v23, %v1507_v22  ;;  %v1516_v29 = vrot.slane %v1497_v23, %v1515_v24 }
 0xa62   : > { %3616 = vmatprep.subr.bf16.mxu1 %v3615_v32  ;;  %3648 = vmatprep.subr.bf16.mxu0 %v3647_v33  ;;  %v2232_v33 = vld [vmem:[%s5267_s10 + $0x200] sm:$0xff] }
 0xa63   : > { %v3665_v50 = vpack.c.bf16 %v2233_v34, %v2232_v33  ;;  %v2287_v33 = vld [vmem:[%s5267_s10 + $0x3b8] sm:$0xff]  ;;  %v3673_v34 = vpack.c.bf16 %v2237_v10, %v2236_v9  ;;  %v2274_v9 = vld [vmem:[%s5267_s10 + $0x350] sm:$0xff]  ;;  %v1552_v10 = vrot.slane %v4591_v18, %v1519_v30 }
 0xa65   : > { %3618 = vmatpush3.bf16.msra.mxu1 %v3617_v40  ;;  %3650 = vmatpush3.bf16.msra.mxu0 %v3649_v4  ;;  %v2265_v40 = vld [vmem:[%s5267_s10 + $0x308] sm:$0xff]  ;;  %v2250_v4 = vld [vmem:[%s5267_s10 + $0x290] sm:$0xff] }
 0xa66   : > { %3620 = vmatprep.subr.bf16.mxu1 %v3619_v43  ;;  %3652 = vmatprep.subr.bf16.mxu0 %v3651_v44  ;;  %v1523_v43 = vsub.s32 5, %v4585_v16  ;;  %v1531_v44 = vsub.s32 7, %v4585_v16  ;;  %v3697_v54 = vpack.c.bf16 %v2265_v40, %v2264_v39  ;;  %v2238_v39 = vld [vmem:[%s5267_s10 + $0x230] sm:$0xff]  ;;  %v2239_v40 = vld [vmem:[%s5267_s10 + $0x238] sm:$0xff]  ;;  %v2244_v16 = vld [vmem:[%s5267_s10 + $0x260] sm:$0xff] }
 0xa68   : > { %v1532_v0 = vrot.slane %v1497_v23, %v1531_v44  ;;  %v1564_v30 = vrot.slane %v4591_v18, %v1531_v44 }
 0xa69   : > { %3622 = vmatpush3.bf16.msra.mxu1 %v3621_v52  ;;  %3654 = vmatpush3.bf16.msra.mxu0 %v3653_v53  ;;  %v1528_v53 = vrot.slane %v1497_v23, %v1527_v17  ;;  %v3703_v17 = vpack.c.bf16 %v2285_v2, %v2284_v1  ;;  %v2259_v1 = vld [vmem:[%s5267_s10 + $0x2d8] sm:$0xff]  ;;  %v2290_v2 = vld [vmem:[%s5267_s10 + $0x3d0] sm:$0xff] }
 0xa6a   : > { %3624 = vmatprep.subr.bf16.mxu1 %v3623_v55  ;;  %3656 = vmatprep.subr.bf16.mxu0 %v3655_v14  ;;  %v2234_v55 = vld [vmem:[%s5267_s10 + $0x210] sm:$0xff]  ;;  %v2235_v14 = vld [vmem:[%s5267_s10 + $0x218] sm:$0xff] }
 0xa6b   : > { %v3669_v6 = vpack.c.bf16 %v2235_v14, %v2234_v55 }
 0xa6d   : > { %3626 = vmatpush3.bf16.msra.mxu1 %v3625_v59  ;;  %3658 = vmatpush3.bf16.msra.mxu0 %v3657_v26  ;;  %v3667_v59 = vpack.c.bf16 %v2251_v45, %v2250_v4  ;;  %v3699_v26 = vpack.c.bf16 %v2283_v48, %v2282_v47  ;;  %v2270_v4 = vld [vmem:[%s5267_s10 + $0x330] sm:$0xff]  ;;  %v2271_v45 = vld [vmem:[%s5267_s10 + $0x338] sm:$0xff]  ;;  %v2256_v47 = vld [vmem:[%s5267_s10 + $0x2c0] sm:$0xff] }
 0xa6e   : > { %3628 = vmatprep.subr.bf16.mxu1 %v3627_v63  ;;  %3660 = vmatprep.subr.bf16.mxu0 %v3659_v3  ;;  %v1524_v63 = vrot.slane %v1497_v23, %v1523_v43  ;;  %v2268_v23 = vld [vmem:[%s5267_s10 + $0x320] sm:$0xff]  ;;  %v2257_v48 = vld [vmem:[%s5267_s10 + $0x2c8] sm:$0xff]  ;;  %v3709_v55 = vpack.c.bf16 %v2271_v45, %v2270_v4  ;;  %v2262_v4 = vld [vmem:[%s5267_s10 + $0x2f0] sm:$0xff] }
 0xa6f   : > { %v3679_v14 = vpack.c.bf16 %v2257_v48, %v2256_v47  ;;  %v2295_v45 = vld [vmem:[%s5267_s10 + $0x3f8] sm:$0xff] }
 0xa71   : > { %3630 = vmatpush3.bf16.msra.mxu1 %v3629_v5  ;;  %3662 = vmatpush3.bf16.msra.mxu0 %v3661_v8  ;;  %v3671_v8 = vpack.c.bf16 %v2253_v62, %v2252_v61  ;;  %v2273_v61 = vld [vmem:[%s5267_s10 + $0x348] sm:$0xff]  ;;  %v2258_v62 = vld [vmem:[%s5267_s10 + $0x2d0] sm:$0xff] }
 0xa72   : > { %3664 = vmatprep.subr.bf16.mxu1 %v3663_v12  ;;  %3696 = vmatprep.subr.bf16.mxu0 %v3695_v15 }
 0xb0f   : > { %v1650_v31 = vpop.f32.mrb[14].mxu1  ;;  %v1721_v32 = vpop.f32.mrb[8].mxu0 }
 0xb10   : > { %v1651_v35 = vadd.f32 %v1650_v31, %v1504_v25  ;;  %v1722_v36 = vadd.f32 %v1721_v32, %v1512_v27  ;;  %v1652_v37 = vpop.f32.mrb[15].mxu1  ;;  %v1723_v38 = vpop.f32.mrb[9].mxu0  ;;  %v2269_v25 = vld [vmem:[%s5267_s10 + $0x328] sm:$0xff]  ;;  %v2254_v27 = vld [vmem:[%s5267_s10 + $0x2b0] sm:$0xff]  ;;  %v2255_v31 = vld [vmem:[%s5267_s10 + $0x2b8] sm:$0xff] }
 0xb11   : > { %v1653_v41 = vadd.f32 %v1652_v37, %v1508_v28  ;;  %v1724_v42 = vadd.f32 %v1723_v38, %v1516_v29  ;;  %v2286_v32 = vld [vmem:[%s5267_s10 + $0x3b0] sm:$0xff]  ;;  %v1536_v37 = vrot.slane %v4591_v18, %v1503_v20  ;;  %v3705_v38 = vpack.c.bf16 %v2269_v25, %v2268_v23  ;;  %v2260_v23 = vld [vmem:[%s5267_s10 + $0x2e0] sm:$0xff]  ;;  %v2261_v25 = vld [vmem:[%s5267_s10 + $0x2e8] sm:$0xff] }
 0xb12   : > { %v2152_v57 = vmax.f32 %v1651_v35, 0.0  ;;  %v2154_v58 = vmax.f32 %v1722_v36, 0.0  ;;  %v3675_v20 = vpack.c.bf16 %v2255_v31, %v2254_v27  ;;  %v1556_v27 = vrot.slane %v4591_v18, %v1523_v43 }
 0xb13   : > { %v2153_v51 = vmax.f32 %v1653_v41, 0.0  ;;  %v2155_v52 = vmax.f32 %v1724_v42, 0.0  ;;  %v1544_v41 = vrot.slane %v4591_v18, %v1511_v21  ;;  %v3707_v42 = vpack.c.bf16 %v2287_v33, %v2286_v32 }
 0xb14   : > { %v1540_v21 = vrot.slane %v4591_v18, %v1507_v22  ;;  %v2240_v22 = vld [vmem:[%s5267_s10 + $0x240] sm:$0xff] }
 0xb15   : > { %2495 = vmatprep.mubr.f32.mxu1 %v2153_v51  ;;  %2565 = vmatprep.mubr.f32.mxu0 %v2155_v52  ;;  %v2289_v51 = vld [vmem:[%s5267_s10 + $0x3c8] sm:$0xff] }
 0xb16   : > { %2496 = vmatmul.mubr.f32.vlgmr.msra.gmra.mrb[22].mxu1 %v2152_v57  ;;  %2566 = vmatmul.mubr.f32.vlgmr.msra.gmra.mrb[16].mxu0 %v2154_v58 }
 0xb17   : > { %v1792_v3 = vpop.f32.mrb[16].mxu1  ;;  %v1863_v5 = vpop.f32.mrb[10].mxu0  ;;  %3666 = vmatpush3.bf16.msra.mxu1 %v3665_v50  ;;  %3698 = vmatpush3.bf16.msra.mxu0 %v3697_v54  ;;  %v2288_v50 = vld [vmem:[%s5267_s10 + $0x3c0] sm:$0xff]  ;;  %v3677_v54 = vpack.c.bf16 %v2239_v40, %v2238_v39  ;;  %v2277_v40 = vld [vmem:[%s5267_s10 + $0x368] sm:$0xff] }
 0xb18   : > { %v4674_v11 = vadd.f32 %v1792_v3, %v1520_v49  ;;  %v4676_v12 = vadd.f32 %v1863_v5, %v1528_v53  ;;  %v1794_v13 = vpop.f32.mrb[17].mxu1  ;;  %v1865_v15 = vpop.f32.mrb[11].mxu0  ;;  %3668 = vmatprep.subr.bf16.mxu1 %v3667_v59  ;;  %3700 = vmatprep.subr.bf16.mxu0 %v3699_v26  ;;  %v1548_v49 = vrot.slane %v4591_v18, %v1515_v24  ;;  %v2241_v24 = vld [vmem:[%s5267_s10 + $0x248] sm:$0xff]  ;;  %v2291_v3 = vld [vmem:[%s5267_s10 + $0x3d8] sm:$0xff]  ;;  %v2276_v39 = vld [vmem:[%s5267_s10 + $0x360] sm:$0xff] }
 0xb19   : > { %v1795_v28 = vadd.f32 %v1794_v13, %v1524_v63  ;;  %v1866_v29 = vadd.f32 %v1865_v15, %v1532_v0  ;;  %v3711_v26 = vpack.c.bf16 %v2289_v51, %v2288_v50  ;;  %v3681_v5 = vpack.c.bf16 %v2241_v24, %v2240_v22  ;;  %v2245_v18 = vld [vmem:[%s5267_s10 + $0x268] sm:$0xff] }
 0xb1a   : > { %v3683_v13 = vpack.c.bf16 %v2259_v1, %v2258_v62  ;;  %v3715_v15 = vpack.c.bf16 %v2291_v3, %v2290_v2  ;;  %v3689_v47 = vpack.c.bf16 %v2245_v18, %v2244_v16  ;;  %v3721_v48 = vpack.c.bf16 %v2277_v40, %v2276_v39  ;;  %v2345_v22 = vld [vmem:[%s5267_s10 + $0x588] sm:$0xff]  ;;  %v2328_v62 = vld [vmem:[%s5267_s10 + $0x500] sm:$0xff]  ;;  %v2314_v2 = vld [vmem:[%s5267_s10 + $0x490] sm:$0xff] }
 0xb1b   : > { %v2157_v35 = vmax.f32 %v1795_v28, 0.0  ;;  %v2159_v36 = vmax.f32 %v1866_v29, 0.0  ;;  %3670 = vmatpush3.bf16.msra.mxu1 %v3669_v6  ;;  %3702 = vmatpush3.bf16.msra.mxu0 %v3701_v7  ;;  %v3713_v6 = vpack.c.bf16 %v2273_v61, %v2272_v60  ;;  %v2242_v7 = vld [vmem:[%s5267_s10 + $0x250] sm:$0xff]  ;;  %v2292_v28 = vld [vmem:[%s5267_s10 + $0x3e0] sm:$0xff]  ;;  %v2293_v29 = vld [vmem:[%s5267_s10 + $0x3e8] sm:$0xff] }
 0xb1c   : > { %3672 = vmatprep.subr.bf16.mxu1 %v3671_v8  ;;  %3704 = vmatprep.subr.bf16.mxu0 %v3703_v17  ;;  %v2243_v8 = vld [vmem:[%s5267_s10 + $0x258] sm:$0xff]  ;;  %v2296_v60 = vld [vmem:[%s5267_s10 + $0x400] sm:$0xff]  ;;  %v2297_v61 = vld [vmem:[%s5267_s10 + $0x408] sm:$0xff] }
 0xb1d   : > { %2635 = vmatprep.mubr.f32.mxu1 %v2157_v35  ;;  %2705 = vmatprep.mubr.f32.mxu0 %v2159_v36  ;;  %v2275_v17 = vld [vmem:[%s5267_s10 + $0x358] sm:$0xff]  ;;  %v3685_v33 = vpack.c.bf16 %v2243_v8, %v2242_v7  ;;  %v3687_v35 = vpack.c.bf16 %v2261_v25, %v2260_v23  ;;  %v2329_v1 = vld [vmem:[%s5267_s10 + $0x508] sm:$0xff]  ;;  %v3729_v7 = vpack.c.bf16 %v2297_v61, %v2296_v60  ;;  %v2156_v8 = vmax.f32 %v4674_v11, 0.0  ;;  %v2354_v61 = vld [vmem:[%s5267_s10 + $0x5d0] sm:$0xff] }
 0xb1e   : > { %v2315_v3 = vld [vmem:[%s5267_s10 + $0x498] sm:$0xff]  ;;  %v2333_v18 = vld [vmem:[%s5267_s10 + $0x528] sm:$0xff] }
 0xb1f   : > { %v1934_v52 = vpop.f32.mrb[18].mxu1  ;;  %v2005_v53 = vpop.f32.mrb[12].mxu0  ;;  %3674 = vmatpush3.bf16.msra.mxu1 %v3673_v34  ;;  %3706 = vmatpush3.bf16.msra.mxu0 %v3705_v38  ;;  %v3717_v34 = vpack.c.bf16 %v2275_v17, %v2274_v9  ;;  %v3719_v38 = vpack.c.bf16 %v2293_v29, %v2292_v28  ;;  %v2158_v9 = vmax.f32 %v4676_v12, 0.0  ;;  %v2330_v17 = vld [vmem:[%s5267_s10 + $0x510] sm:$0xff]  ;;  %v3731_v11 = vpack.c.bf16 %v2315_v3, %v2314_v2  ;;  %v2331_v12 = vld [vmem:[%s5267_s10 + $0x518] sm:$0xff]  ;;  %v2349_v29 = vld [vmem:[%s5267_s10 + $0x5a8] sm:$0xff] }
 0xb20   : > { %v4738_v56 = vadd.f32 %v1934_v52, %v1536_v37  ;;  %v4740_v57 = vadd.f32 %v2005_v53, %v1544_v41  ;;  %v1936_v58 = vpop.f32.mrb[19].mxu1  ;;  %v2007_v59 = vpop.f32.mrb[13].mxu0  ;;  %3676 = vmatprep.subr.bf16.mxu1 %v3675_v20  ;;  %3708 = vmatprep.subr.bf16.mxu0 %v3707_v42  ;;  %v2263_v20 = vld [vmem:[%s5267_s10 + $0x2f8] sm:$0xff]  ;;  %v2294_v42 = vld [vmem:[%s5267_s10 + $0x3f0] sm:$0xff] }
 0xb21   : > { %v4751_v63 = vadd.f32 %v1936_v58, %v1540_v21  ;;  %v4753_v0 = vadd.f32 %v2007_v59, %v1548_v49  ;;  %v2246_v21 = vld [vmem:[%s5267_s10 + $0x270] sm:$0xff]  ;;  %v2247_v49 = vld [vmem:[%s5267_s10 + $0x278] sm:$0xff]  ;;  %v3691_v50 = vpack.c.bf16 %v2263_v20, %v2262_v4  ;;  %v3723_v51 = vpack.c.bf16 %v2295_v45, %v2294_v42 }
 0xb22   : > { %v2278_v52 = vld [vmem:[%s5267_s10 + $0x370] sm:$0xff]  ;;  %v2279_v53 = vld [vmem:[%s5267_s10 + $0x378] sm:$0xff]  ;;  %v3693_v24 = vpack.c.bf16 %v2247_v49, %v2246_v21  ;;  %v2320_v49 = vld [vmem:[%s5267_s10 + $0x4c0] sm:$0xff] }
 0xb23   : > { %3678 = vmatpush3.bf16.msra.mxu1 %v3677_v54  ;;  %3710 = vmatpush3.bf16.msra.mxu0 %v3709_v55  ;;  %v2312_v54 = vld [vmem:[%s5267_s10 + $0x480] sm:$0xff]  ;;  %v2313_v55 = vld [vmem:[%s5267_s10 + $0x488] sm:$0xff]  ;;  %v3725_v58 = vpack.c.bf16 %v2279_v53, %v2278_v52  ;;  %v2161_v23 = vmax.f32 %v4751_v63, 0.0  ;;  %v2163_v28 = vmax.f32 %v4753_v0, 0.0  ;;  %v2351_v39 = vld [vmem:[%s5267_s10 + $0x5b8] sm:$0xff] }
 0xb24   : > { %3680 = vmatprep.subr.bf16.mxu1 %v3679_v14  ;;  %3712 = vmatprep.subr.bf16.mxu0 %v3711_v26  ;;  %v2344_v14 = vld [vmem:[%s5267_s10 + $0x580] sm:$0xff]  ;;  %v3727_v59 = vpack.c.bf16 %v2313_v55, %v2312_v54  ;;  %v2302_v42 = vld [vmem:[%s5267_s10 + $0x430] sm:$0xff]  ;;  %v2303_v45 = vld [vmem:[%s5267_s10 + $0x438] sm:$0xff] }
 0xb25   : > { %v3759_v26 = vpack.c.bf16 %v2345_v22, %v2344_v14  ;;  %v2348_v63 = vld [vmem:[%s5267_s10 + $0x5a0] sm:$0xff]  ;;  %v2335_v21 = vld [vmem:[%s5267_s10 + $0x538] sm:$0xff]  ;;  %v2353_v52 = vld [vmem:[%s5267_s10 + $0x5c8] sm:$0xff]  ;;  %v3741_v53 = vpack.c.bf16 %v2303_v45, %v2302_v42 }
 0xb26   : > { %v2300_v0 = vld [vmem:[%s5267_s10 + $0x420] sm:$0xff]  ;;  %v3767_v16 = vpack.c.bf16 %v2349_v29, %v2348_v63  ;;  %v2305_v22 = vld [vmem:[%s5267_s10 + $0x448] sm:$0xff]  ;;  %v2323_v60 = vld [vmem:[%s5267_s10 + $0x4d8] sm:$0xff] }
 0xb27   : > { %v2076_v31 = vpop.f32.mrb[20].mxu1  ;;  %v2147_v32 = vpop.f32.mrb[14].mxu0  ;;  %3682 = vmatpush3.bf16.msra.mxu1 %v3681_v5  ;;  %3714 = vmatpush3.bf16.msra.mxu0 %v3713_v6  ;;  %v2346_v5 = vld [vmem:[%s5267_s10 + $0x590] sm:$0xff]  ;;  %v2347_v6 = vld [vmem:[%s5267_s10 + $0x598] sm:$0xff]  ;;  %v2304_v14 = vld [vmem:[%s5267_s10 + $0x440] sm:$0xff] }
 0xb28   : > { %v4803_v43 = vadd.f32 %v2076_v31, %v1552_v10  ;;  %v4806_v44 = vadd.f32 %v2147_v32, %v4594_v19  ;;  %v2078_v36 = vpop.f32.mrb[21].mxu1  ;;  %v2149_v37 = vpop.f32.mrb[15].mxu0  ;;  %3684 = vmatprep.subr.bf16.mxu1 %v3683_v13  ;;  %3716 = vmatprep.subr.bf16.mxu0 %v3715_v15  ;;  %v3761_v10 = vpack.c.bf16 %v2329_v1, %v2328_v62  ;;  %v2298_v13 = vld [vmem:[%s5267_s10 + $0x410] sm:$0xff]  ;;  %v2299_v15 = vld [vmem:[%s5267_s10 + $0x418] sm:$0xff]  ;;  %v2341_v63 = vld [vmem:[%s5267_s10 + $0x568] sm:$0xff] }
 0xb29   : > { %v4817_v41 = vadd.f32 %v2078_v36, %v1556_v27  ;;  %v4819_v19 = vadd.f32 %v2149_v37, %v1564_v30  ;;  %v3763_v25 = vpack.c.bf16 %v2347_v6, %v2346_v5  ;;  %v2316_v27 = vld [vmem:[%s5267_s10 + $0x4a0] sm:$0xff]  ;;  %v2317_v30 = vld [vmem:[%s5267_s10 + $0x4a8] sm:$0xff]  ;;  %v3733_v31 = vpack.c.bf16 %v2299_v15, %v2298_v13  ;;  %v2318_v36 = vld [vmem:[%s5267_s10 + $0x4b0] sm:$0xff] }
 0xb2a   : > { %v3765_v32 = vpack.c.bf16 %v2331_v12, %v2330_v17  ;;  %v2319_v37 = vld [vmem:[%s5267_s10 + $0x4b8] sm:$0xff]  ;;  %v3745_v1 = vpack.c.bf16 %v2305_v22, %v2304_v14  ;;  %v2306_v5 = vld [vmem:[%s5267_s10 + $0x450] sm:$0xff]  ;;  %v2325_v13 = vld [vmem:[%s5267_s10 + $0x4e8] sm:$0xff]  ;;  %v2160_v22 = vmax.f32 %v4738_v56, 0.0 }
 0xb2b   : > { %3686 = vmatpush3.bf16.msra.mxu1 %v3685_v33  ;;  %3718 = vmatpush3.bf16.msra.mxu0 %v3717_v34  ;;  %v3735_v33 = vpack.c.bf16 %v2317_v30, %v2316_v27  ;;  %v2301_v34 = vld [vmem:[%s5267_s10 + $0x428] sm:$0xff]  ;;  %v3739_v20 = vpack.c.bf16 %v2319_v37, %v2318_v36  ;;  %v2355_v62 = vld [vmem:[%s5267_s10 + $0x5d8] sm:$0xff]  ;;  %v2356_v15 = vld [vmem:[%s5267_s10 + $0x5e0] sm:$0xff] }
 0xb2c   : > { %3688 = vmatprep.subr.bf16.mxu1 %v3687_v35  ;;  %3720 = vmatprep.subr.bf16.mxu0 %v3719_v38  ;;  %v2332_v35 = vld [vmem:[%s5267_s10 + $0x520] sm:$0xff]  ;;  %v2350_v38 = vld [vmem:[%s5267_s10 + $0x5b0] sm:$0xff]  ;;  %v3737_v40 = vpack.c.bf16 %v2301_v34, %v2300_v0  ;;  %v2307_v6 = vld [vmem:[%s5267_s10 + $0x458] sm:$0xff] }
 0xb2d   : > { %v3769_v4 = vpack.c.bf16 %v2333_v18, %v2332_v35  ;;  %v2357_v17 = vld [vmem:[%s5267_s10 + $0x5e8] sm:$0xff]  ;;  %v2308_v12 = vld [vmem:[%s5267_s10 + $0x460] sm:$0xff]  ;;  %v2326_v29 = vld [vmem:[%s5267_s10 + $0x4f0] sm:$0xff] }
 0xb2e   : > { %v2309_v27 = vld [vmem:[%s5267_s10 + $0x468] sm:$0xff]  ;;  %v2340_v30 = vld [vmem:[%s5267_s10 + $0x560] sm:$0xff]  ;;  %v2311_v18 = vld [vmem:[%s5267_s10 + $0x478] sm:$0xff] }
 0xb2f   : > { %3690 = vmatpush3.bf16.msra.mxu1 %v3689_v47  ;;  %3722 = vmatpush3.bf16.msra.mxu0 %v3721_v48  ;;  %v2334_v47 = vld [vmem:[%s5267_s10 + $0x530] sm:$0xff]  ;;  %v3771_v48 = vpack.c.bf16 %v2351_v39, %v2350_v38  ;;  %v3753_v0 = vpack.c.bf16 %v2309_v27, %v2308_v12  ;;  %v3785_v34 = vpack.c.bf16 %v2341_v63, %v2340_v30  ;;  %v2343_v38 = vld [vmem:[%s5267_s10 + $0x578] sm:$0xff]  ;;  %v2376_v39 = vld [vmem:[%s5267_s10 + $0x680] sm:$0xff] }
 0xb30   : > { %3692 = vmatprep.subr.bf16.mxu1 %v3691_v50  ;;  %3724 = vmatprep.subr.bf16.mxu0 %v3723_v51  ;;  %v2321_v50 = vld [vmem:[%s5267_s10 + $0x4c8] sm:$0xff]  ;;  %v2352_v51 = vld [vmem:[%s5267_s10 + $0x5c0] sm:$0xff]  ;;  %v3773_v54 = vpack.c.bf16 %v2335_v21, %v2334_v47  ;;  %v2342_v36 = vld [vmem:[%s5267_s10 + $0x570] sm:$0xff] }
 0xb31   : > { %v3743_v55 = vpack.c.bf16 %v2321_v50, %v2320_v49  ;;  %v3789_v45 = vpack.c.bf16 %v2343_v38, %v2342_v36  ;;  %v2361_v21 = vld [vmem:[%s5267_s10 + $0x608] sm:$0xff]  ;;  %v2392_v50 = vld [vmem:[%s5267_s10 + $0x700] sm:$0xff]  ;;  %v2411_v14 = vld [vmem:[%s5267_s10 + $0x798] sm:$0xff] }
 0xb32   : > { %v2395_v56 = vld [vmem:[%s5267_s10 + $0x718] sm:$0xff]  ;;  %v2369_v38 = vld [vmem:[%s5267_s10 + $0x648] sm:$0xff] }
 0xb33   : > { %3694 = vmatpush3.bf16.msra.mxu1 %v3693_v24  ;;  %3726 = vmatpush3.bf16.msra.mxu0 %v3725_v58  ;;  %v2336_v24 = vld [vmem:[%s5267_s10 + $0x540] sm:$0xff]  ;;  %v3775_v58 = vpack.c.bf16 %v2353_v52, %v2352_v51  ;;  %v2393_v51 = vld [vmem:[%s5267_s10 + $0x708] sm:$0xff]  ;;  %v2378_v52 = vld [vmem:[%s5267_s10 + $0x690] sm:$0xff] }
 0xb34   : > { %3728 = vmatprep.subr.bf16.mxu1 %v3727_v59  ;;  %3760 = vmatprep.subr.bf16.mxu0 %v3759_v26  ;;  %v2337_v59 = vld [vmem:[%s5267_s10 + $0x548] sm:$0xff]  ;;  %v2322_v26 = vld [vmem:[%s5267_s10 + $0x4d0] sm:$0xff]  ;;  %v2367_v63 = vld [vmem:[%s5267_s10 + $0x638] sm:$0xff] }
 0xb35   : > { %v3777_v2 = vpack.c.bf16 %v2337_v59, %v2336_v24  ;;  %v3747_v3 = vpack.c.bf16 %v2323_v60, %v2322_v26  ;;  %v3825_v24 = vpack.c.bf16 %v2393_v51, %v2392_v50  ;;  %v2363_v59 = vld [vmem:[%s5267_s10 + $0x618] sm:$0xff]  ;;  %v2394_v26 = vld [vmem:[%s5267_s10 + $0x710] sm:$0xff]  ;;  %v2162_v60 = vmax.f32 %v4740_v57, 0.0  ;;  %v2412_v57 = vld [vmem:[%s5267_s10 + $0x7a0] sm:$0xff] }
 0xb36   : > { %2636 = vmatmul.mubr.f32.vlgmr.msra.gmra.mrb[24].mxu1 %v2156_v8  ;;  %2706 = vmatmul.mubr.f32.vlgmr.msra.gmra.mrb[18].mxu0 %v2158_v9  ;;  %v3779_v8 = vpack.c.bf16 %v2355_v62, %v2354_v61  ;;  %v2339_v9 = vld [vmem:[%s5267_s10 + $0x558] sm:$0xff]  ;;  %v2380_v62 = vld [vmem:[%s5267_s10 + $0x6a0] sm:$0xff]  ;;  %v2370_v50 = vld [vmem:[%s5267_s10 + $0x650] sm:$0xff] }
 0xb37   : > { %3730 = vmatpush3.bf16.msra.mxu1 %v3729_v7  ;;  %2775 = vmatprep.mubr.f32.mxu1 %v2161_v23  ;;  %v2338_v7 = vld [vmem:[%s5267_s10 + $0x550] sm:$0xff]  ;;  %v3749_v23 = vpack.c.bf16 %v2307_v6, %v2306_v5  ;;  %v2413_v5 = vld [vmem:[%s5267_s10 + $0x7a8] sm:$0xff]  ;;  %v2167_v6 = vmax.f32 %v4819_v19, 0.0  ;;  %v2371_v51 = vld [vmem:[%s5267_s10 + $0x658] sm:$0xff] }
 0xb38   : > { %3762 = vmatpush3.bf16.msra.mxu0 %v3761_v10  ;;  %2845 = vmatprep.mubr.f32.mxu0 %v2163_v28  ;;  %v2324_v10 = vld [vmem:[%s5267_s10 + $0x4e0] sm:$0xff]  ;;  %v3783_v28 = vpack.c.bf16 %v2357_v17, %v2356_v15  ;;  %v3831_v19 = vpack.c.bf16 %v2413_v5, %v2412_v57  ;;  %v2397_v15 = vld [vmem:[%s5267_s10 + $0x728] sm:$0xff]  ;;  %v2382_v17 = vld [vmem:[%s5267_s10 + $0x6b0] sm:$0xff] }
 0xb39   : > { %3732 = vmatprep.subr.bf16.mxu1 %v3731_v11  ;;  %3764 = vmatprep.subr.bf16.mxu0 %v3763_v25  ;;  %v3781_v11 = vpack.c.bf16 %v2339_v9, %v2338_v7  ;;  %v3751_v25 = vpack.c.bf16 %v2325_v13, %v2324_v10  ;;  %v2365_v10 = vld [vmem:[%s5267_s10 + $0x628] sm:$0xff]  ;;  %v2396_v13 = vld [vmem:[%s5267_s10 + $0x720] sm:$0xff]  ;;  %v2422_v57 = vld [vmem:[%s5267_s10 + $0x7f0] sm:$0xff] }
 0xb3a   : > { %v3833_v27 = vpack.c.bf16 %v2397_v15, %v2396_v13  ;;  %v2423_v5 = vld [vmem:[%s5267_s10 + $0x7f8] sm:$0xff]  ;;  %v2406_v13 = vld [vmem:[%s5267_s10 + $0x770] sm:$0xff] }
 0xb3b   : > { %3734 = vmatpush3.bf16.msra.mxu1 %v3733_v31  ;;  %v2327_v31 = vld [vmem:[%s5267_s10 + $0x4f8] sm:$0xff] }
 0xb3c   : > { %3766 = vmatpush3.bf16.msra.mxu0 %v3765_v32  ;;  %3736 = vmatprep.subr.bf16.mxu1 %v3735_v33  ;;  %v2358_v32 = vld [vmem:[%s5267_s10 + $0x5f0] sm:$0xff]  ;;  %v2359_v33 = vld [vmem:[%s5267_s10 + $0x5f8] sm:$0xff]  ;;  %v3755_v35 = vpack.c.bf16 %v2327_v31, %v2326_v29 }
 0xb3d   : > { %3768 = vmatprep.subr.bf16.mxu0 %v3767_v16  ;;  %v2310_v16 = vld [vmem:[%s5267_s10 + $0x470] sm:$0xff]  ;;  %v3787_v37 = vpack.c.bf16 %v2359_v33, %v2358_v32  ;;  %v2399_v32 = vld [vmem:[%s5267_s10 + $0x738] sm:$0xff]  ;;  %v2384_v33 = vld [vmem:[%s5267_s10 + $0x6c0] sm:$0xff] }
 0xb3e   : > { %v3757_v42 = vpack.c.bf16 %v2311_v18, %v2310_v16  ;;  %v2398_v29 = vld [vmem:[%s5267_s10 + $0x730] sm:$0xff] }
 0xb3f   : > { %3738 = vmatpush3.bf16.msra.mxu1 %v3737_v40  ;;  %v2377_v40 = vld [vmem:[%s5267_s10 + $0x688] sm:$0xff]  ;;  %v3837_v18 = vpack.c.bf16 %v2399_v32, %v2398_v29 }
 0xb40   : > { %3770 = vmatpush3.bf16.msra.mxu0 %v3769_v4  ;;  %3740 = vmatprep.subr.bf16.mxu1 %v3739_v20  ;;  %v2408_v4 = vld [vmem:[%s5267_s10 + $0x780] sm:$0xff]  ;;  %v2409_v20 = vld [vmem:[%s5267_s10 + $0x788] sm:$0xff]  ;;  %v3791_v47 = vpack.c.bf16 %v2377_v40, %v2376_v39 }
 0xb41   : > { %3772 = vmatprep.subr.bf16.mxu0 %v3771_v48  ;;  %v2360_v48 = vld [vmem:[%s5267_s10 + $0x600] sm:$0xff]  ;;  %v3823_v49 = vpack.c.bf16 %v2409_v20, %v2408_v4  ;;  %v2401_v4 = vld [vmem:[%s5267_s10 + $0x748] sm:$0xff]  ;;  %v2386_v20 = vld [vmem:[%s5267_s10 + $0x6d0] sm:$0xff] }
 0xb42   : > { %v2400_v39 = vld [vmem:[%s5267_s10 + $0x740] sm:$0xff] }
 0xb43   : > { %3742 = vmatpush3.bf16.msra.mxu1 %v3741_v53  ;;  %v2379_v53 = vld [vmem:[%s5267_s10 + $0x698] sm:$0xff] }
 0xb44   : > { %3774 = vmatpush3.bf16.msra.mxu0 %v3773_v54  ;;  %3744 = vmatprep.subr.bf16.mxu1 %v3743_v55  ;;  %v3793_v54 = vpack.c.bf16 %v2361_v21, %v2360_v48  ;;  %v2410_v55 = vld [vmem:[%s5267_s10 + $0x790] sm:$0xff]  ;;  %v3795_v61 = vpack.c.bf16 %v2379_v53, %v2378_v52  ;;  %v3841_v21 = vpack.c.bf16 %v2401_v4, %v2400_v39 }
 0xb45   : > { %3776 = vmatprep.subr.bf16.mxu0 %v3775_v58  ;;  %v2362_v58 = vld [vmem:[%s5267_s10 + $0x610] sm:$0xff] }
 0xb46   : > { %v3797_v7 = vpack.c.bf16 %v2363_v59, %v2362_v58  ;;  %v2402_v52 = vld [vmem:[%s5267_s10 + $0x750] sm:$0xff]  ;;  %v3813_v58 = vpack.c.bf16 %v2371_v51, %v2370_v50 }
 0xb47   : > { %3746 = vmatpush3.bf16.msra.mxu1 %v3745_v1  ;;  %v2381_v1 = vld [vmem:[%s5267_s10 + $0x6a8] sm:$0xff] }
 0xb48   : > { %3778 = vmatpush3.bf16.msra.mxu0 %v3777_v2  ;;  %3748 = vmatprep.subr.bf16.mxu1 %v3747_v3  ;;  %v2165_v2 = vmax.f32 %v4817_v41, 0.0  ;;  %v3827_v3 = vpack.c.bf16 %v2411_v14, %v2410_v55  ;;  %v3799_v9 = vpack.c.bf16 %v2381_v1, %v2380_v62  ;;  %v2364_v41 = vld [vmem:[%s5267_s10 + $0x620] sm:$0xff]  ;;  %v2389_v14 = vld [vmem:[%s5267_s10 + $0x6e8] sm:$0xff] }
 0xb49   : > { %3780 = vmatprep.subr.bf16.mxu0 %v3779_v8  ;;  %v3829_v8 = vpack.c.bf16 %v2395_v56, %v2394_v26  ;;  %v3801_v12 = vpack.c.bf16 %v2365_v10, %v2364_v41  ;;  %v2388_v55 = vld [vmem:[%s5267_s10 + $0x6e0] sm:$0xff]  ;;  %v2405_v1 = vld [vmem:[%s5267_s10 + $0x768] sm:$0xff]  ;;  %v2375_v41 = vld [vmem:[%s5267_s10 + $0x678] sm:$0xff]  ;;  %v3851_v10 = vpack.c.bf16 %v2423_v5, %v2422_v57 }
 0xb4a   : > { %v3815_v26 = vpack.c.bf16 %v2389_v14, %v2388_v55  ;;  %v2404_v56 = vld [vmem:[%s5267_s10 + $0x760] sm:$0xff] }
 0xb4b   : > { %3750 = vmatpush3.bf16.msra.mxu1 %v3749_v23  ;;  %v2383_v23 = vld [vmem:[%s5267_s10 + $0x6b8] sm:$0xff] }
 0xb4c   : > { %3782 = vmatpush3.bf16.msra.mxu0 %v3781_v11  ;;  %3752 = vmatprep.subr.bf16.mxu1 %v3751_v25  ;;  %v2414_v11 = vld [vmem:[%s5267_s10 + $0x7b0] sm:$0xff]  ;;  %v2415_v25 = vld [vmem:[%s5267_s10 + $0x7b8] sm:$0xff]  ;;  %v3803_v30 = vpack.c.bf16 %v2383_v23, %v2382_v17  ;;  %v2164_v23 = vmax.f32 %v4803_v43, 0.0 }
 0xb4d   : > { %3784 = vmatprep.subr.bf16.mxu0 %v3783_v28  ;;  %v2366_v28 = vld [vmem:[%s5267_s10 + $0x630] sm:$0xff]  ;;  %v3835_v31 = vpack.c.bf16 %v2415_v25, %v2414_v11  ;;  %v2166_v11 = vmax.f32 %v4806_v44, 0.0 }
 0xb4e   : > { %v3805_v16 = vpack.c.bf16 %v2367_v63, %v2366_v28 }
 0xb4f   : > { %3754 = vmatpush3.bf16.msra.mxu1 %v3753_v0  ;;  %v2385_v0 = vld [vmem:[%s5267_s10 + $0x6c8] sm:$0xff] }
 0xb50   : > { %3786 = vmatpush3.bf16.msra.mxu0 %v3785_v34  ;;  %3756 = vmatprep.subr.bf16.mxu1 %v3755_v35  ;;  %v2416_v34 = vld [vmem:[%s5267_s10 + $0x7c0] sm:$0xff]  ;;  %v2417_v35 = vld [vmem:[%s5267_s10 + $0x7c8] sm:$0xff]  ;;  %v3807_v36 = vpack.c.bf16 %v2385_v0, %v2384_v33 }
 0xb51   : > { %3788 = vmatprep.subr.bf16.mxu0 %v3787_v37  ;;  %v2368_v37 = vld [vmem:[%s5267_s10 + $0x640] sm:$0xff]  ;;  %v3839_v40 = vpack.c.bf16 %v2417_v35, %v2416_v34 }
 0xb52   : > { %v3809_v48 = vpack.c.bf16 %v2369_v38, %v2368_v37 }
 0xb53   : > { %3758 = vmatpush3.bf16.msra.mxu1 %v3757_v42  ;;  %v2387_v42 = vld [vmem:[%s5267_s10 + $0x6d8] sm:$0xff] }
 0xb54   : > { %3790 = vmatpush3.bf16.msra.mxu0 %v3789_v45  ;;  %3792 = vmatprep.subr.bf16.mxu1 %v3791_v47  ;;  %v2418_v45 = vld [vmem:[%s5267_s10 + $0x7d0] sm:$0xff]  ;;  %v2419_v47 = vld [vmem:[%s5267_s10 + $0x7d8] sm:$0xff] }
 0xb55   : > { %3824 = vmatprep.subr.bf16.mxu0 %v3823_v49  ;;  %v3811_v49 = vpack.c.bf16 %v2387_v42, %v2386_v20  ;;  %v3843_v53 = vpack.c.bf16 %v2419_v47, %v2418_v45 }
 0xb56   : > { %2776 = vmatmul.mubr.f32.vlgmr.msra.gmra.mrb[26].mxu1 %v2160_v22  ;;  %v2420_v22 = vld [vmem:[%s5267_s10 + $0x7e0] sm:$0xff] }
 0xb57   : > { %2846 = vmatmul.mubr.f32.vlgmr.msra.gmra.mrb[20].mxu0 %v2162_v60  ;;  %3794 = vmatpush3.bf16.msra.mxu1 %v3793_v54  ;;  %v2403_v54 = vld [vmem:[%s5267_s10 + $0x758] sm:$0xff]  ;;  %v2372_v60 = vld [vmem:[%s5267_s10 + $0x660] sm:$0xff] }
 0xb58   : > { %2915 = vmatprep.mubr.f32.mxu1 %v2165_v2  ;;  %3826 = vmatpush3.bf16.msra.mxu0 %v3825_v24  ;;  %v2421_v24 = vld [vmem:[%s5267_s10 + $0x7e8] sm:$0xff]  ;;  %v3845_v59 = vpack.c.bf16 %v2403_v54, %v2402_v52  ;;  %v2390_v2 = vld [vmem:[%s5267_s10 + $0x6f0] sm:$0xff] }
 0xb59   : > { %2985 = vmatprep.mubr.f32.mxu0 %v2167_v6  ;;  %3796 = vmatprep.subr.bf16.mxu1 %v3795_v61  ;;  %v2373_v61 = vld [vmem:[%s5267_s10 + $0x668] sm:$0xff]  ;;  %v3847_v62 = vpack.c.bf16 %v2421_v24, %v2420_v22 }
 0xb5a   : > { %3828 = vmatprep.subr.bf16.mxu0 %v3827_v3  ;;  %v2391_v3 = vld [vmem:[%s5267_s10 + $0x6f8] sm:$0xff]  ;;  %v3817_v6 = vpack.c.bf16 %v2373_v61, %v2372_v60 }
 0xb5b   : > { %3798 = vmatpush3.bf16.msra.mxu1 %v3797_v7  ;;  %v3849_v7 = vpack.c.bf16 %v2405_v1, %v2404_v56 }
 0xb5c   : > { %3830 = vmatpush3.bf16.msra.mxu0 %v3829_v8  ;;  %3800 = vmatprep.subr.bf16.mxu1 %v3799_v9  ;;  %v3819_v8 = vpack.c.bf16 %v2391_v3, %v2390_v2  ;;  %v2374_v9 = vld [vmem:[%s5267_s10 + $0x670] sm:$0xff] }
 0xb5d   : > { %3832 = vmatprep.subr.bf16.mxu0 %v3831_v19  ;;  %v2407_v19 = vld [vmem:[%s5267_s10 + $0x778] sm:$0xff]  ;;  %v3821_v15 = vpack.c.bf16 %v2375_v41, %v2374_v9 }
 0xb5e   : > { %v3853_v17 = vpack.c.bf16 %v2407_v19, %v2406_v13 }
 0xb5f   : > { %3802 = vmatpush3.bf16.msra.mxu1 %v3801_v12 }
 0xb60   : > { %3834 = vmatpush3.bf16.msra.mxu0 %v3833_v27  ;;  %3804 = vmatprep.subr.bf16.mxu1 %v3803_v30  ;;  %v3110_v27 = vld [vmem:[%s5268_s11] ss:$0 sm:$0xff] }
 0xb61   : > { %3836 = vmatprep.subr.bf16.mxu0 %v3835_v31 }
 0xb63   : > { %3806 = vmatpush3.bf16.msra.mxu1 %v3805_v16 }
 0xb64   : > { %3838 = vmatpush3.bf16.msra.mxu0 %v3837_v18  ;;  %3808 = vmatprep.subr.bf16.mxu1 %v3807_v36 }
 0xb65   : > { %3840 = vmatprep.subr.bf16.mxu0 %v3839_v40 }
 0xb67   : > { %3810 = vmatpush3.bf16.msra.mxu1 %v3809_v48 }
 0xb68   : > { %3842 = vmatpush3.bf16.msra.mxu0 %v3841_v21  ;;  %3812 = vmatprep.subr.bf16.mxu1 %v3811_v49 }
 0xb69   : > { %3844 = vmatprep.subr.bf16.mxu0 %v3843_v53 }
 0xb6b   : > { %3814 = vmatpush3.bf16.msra.mxu1 %v3813_v58 }
 0xb6c   : > { %3846 = vmatpush3.bf16.msra.mxu0 %v3845_v59  ;;  %3816 = vmatprep.subr.bf16.mxu1 %v3815_v26 }
 0xb6d   : > { %3848 = vmatprep.subr.bf16.mxu0 %v3847_v62  ;;  %v3112_v62 = vld [vmem:[%s5270_s13] ss:$0 sm:$0xff] }
 0xb6f   : > { %3818 = vmatpush3.bf16.msra.mxu1 %v3817_v6 }
 0xb70   : > { %3850 = vmatpush3.bf16.msra.mxu0 %v3849_v7  ;;  %3820 = vmatprep.subr.bf16.mxu1 %v3819_v8 }
 0xb71   : > { %3852 = vmatprep.subr.bf16.mxu0 %v3851_v10 }
 0xb73   : > { %3822 = vmatpush3.bf16.msra.mxu1 %v3821_v15 }
 0xb74   : > { %3854 = vmatpush3.bf16.msra.mxu0 %v3853_v17 }
 0xb76   : > { %2916 = vmatmul.mubr.f32.vlgmr.msra.gmra.mrb[28].mxu1 %v2164_v23 }
 0xb77   : > { %2986 = vmatmul.mubr.f32.vlgmr.msra.gmra.mrb[22].mxu0 %v2166_v11 }
 0xbe9   : > { %v3182_v25 = vpop.f32.mrb[22].mxu1  ;;  %v3217_v12 = vpop.f32.mrb[16].mxu0 }
 0xbea   : > { %v3183_v30 = vpop.f32.mrb[23].mxu1  ;;  %v3218_v28 = vpop.f32.mrb[17].mxu0 }
 0xbeb   : > { %v3184_v63 = vadd.f32 %v3183_v30, %v3182_v25  ;;  %v3219_v29 = vadd.f32 %v3218_v28, %v3217_v12 }
 0xbed   : > { %v2498_v31 = vadd.f32 %v3184_v63, %v3110_v27 }
 0xbef   : > { %v2568_v32 = vadd.f32 %v3219_v29, %v2498_v31 }
 0xc09   : > { %v3252_v33 = vpop.f32.mrb[24].mxu1  ;;  %v3287_v0 = vpop.f32.mrb[18].mxu0 }
 0xc0a   : > { %v3253_v43 = vpop.f32.mrb[25].mxu1  ;;  %v3288_v34 = vpop.f32.mrb[19].mxu0 }
 0xc0b   : > { %v3254_v35 = vadd.f32 %v3253_v43, %v3252_v33  ;;  %v3289_v44 = vadd.f32 %v3288_v34, %v3287_v0 }
 0xc0d   : > { %v2638_v16 = vadd.f32 %v3254_v35, %v2568_v32 }
 0xc0f   : > { %v2708_v18 = vadd.f32 %v3289_v44, %v2638_v16 }
 0xc29   : > { %v3322_v36 = vpop.f32.mrb[26].mxu1 }
 0xc2a   : > { %v3357_v37 = vpop.f32.mrb[20].mxu0  ;;  %v3323_v38 = vpop.f32.mrb[27].mxu1 }
 0xc2b   : > { %v3324_v39 = vadd.f32 %v3323_v38, %v3322_v36  ;;  %v3358_v40 = vpop.f32.mrb[21].mxu0 }
 0xc2c   : > { %v3359_v4 = vadd.f32 %v3358_v40, %v3357_v37 }
 0xc2d   : > { %v2778_v20 = vadd.f32 %v3324_v39, %v2708_v18 }
 0xc2f   : > { %v2848_v42 = vadd.f32 %v3359_v4, %v2778_v20 }
 0xc49   : > { %v3392_v45 = vpop.f32.mrb[28].mxu1 }
 0xc4a   : > { %v3427_v47 = vpop.f32.mrb[22].mxu0  ;;  %v3393_v48 = vpop.f32.mrb[29].mxu1 }
 0xc4b   : > { %v3394_v21 = vadd.f32 %v3393_v48, %v3392_v45  ;;  %v3428_v49 = vpop.f32.mrb[23].mxu0 }
 0xc4c   : > { %v3429_v50 = vadd.f32 %v3428_v49, %v3427_v47 }
 0xc4d   : > { %v2918_v51 = vadd.f32 %v3394_v21, %v2848_v42 }
 0xc4f   : > { %v2988_v52 = vadd.f32 %v3429_v50, %v2918_v51 }
 0xc51   : > { %v2991_v53 = vadd.f32 %v2988_v52, %v4254_v46  ;;  %v3111_v46 = vld [vmem:[%s5269_s12] ss:$0 sm:$0xff] }
 0xc53   : > { %v2994_v54 = vsel %vm565_vm3, %v2991_v53, 0.0 }
 0xc54   : > { %2995 = vadd.xlane.f32.xlu0 %v2994_v54 }
 0xce1   : > { %v2996_v55 = vpop.xlane.xlu0 %2995 }
 0xce2   : > { %v2997_v14 = vmul.f32 0.03125, %v2996_v55 }
 0xce4   : > { %v2998_v22 = vsub.f32 %v2991_v53, %v2997_v14 }
 0xce6   : > { %v2999_v24 = vmul.f32 %v2998_v22, %v2998_v22 }
 0xce8   : > { %v3000_v58 = vsel %vm565_vm3, %v2999_v24, 0.0 }
 0xce9   : > { %3001 = vadd.xlane.f32.xlu0 %v3000_v58 }
 0xd76   : > { %v3002_v59 = vpop.xlane.xlu0 %3001 }
 0xd77   : > { %v3003_v26 = vmul.f32 0.03125, %v3002_v59 }
 0xd79   : > { %v3004_v60 = vadd.f32 1e-05, %v3003_v26 }
 0xd7b   : > { %3900 = vrsqrt.f32 %v3004_v60 }
 0xd85   : > { %v3901_v61 = vpop.eup %3900 }
 0xd86   : > { %v3006_v56 = vmul.f32 %v3901_v61, %v2998_v22 }
 0xd88   : > { %v3013_v1 = vmul.f32 %v3111_v46, %v3006_v56 }
 0xd8a   : > { %v3020_v2 = vadd.f32 %v3112_v62, %v3013_v1 }
 0xd8c   : > { %3021 = vst.msk [vmem:[%s462_s22] sm:$0xff] %vm565_vm3, %v3020_v2 }
 0xd8d PF: > { %s24_s29 = sadd.s32 1, %s3908_s29  }
 0xd8e   : > { %p21_p4 = scmp.ge.s32.totalorder %s24_s29, 4  }
 0xd90   :  { %23 = sbr.rel (!%p21_p4) target bundleno = 1 (0x1), region = 106 }

// kernel: text_generation_transformer.5
= control target key start
LH: loop header
LB: loop body
LE: loop exit
PB: predicated region body
PF: predicated region fallthrough
CT: control target
= control target key end

     0   :  { %s3933_s18 = smov 0   ;;  %s5172_s0 = inlined_call_operand.vmem [shape: f32[16,32], index: 0, kind: input, shape index: {}]   ;;  %s5173_s1 = inlined_call_operand.vmem [shape: f32[32,96], index: 1, kind: input, shape index: {}]   ;;  %s5174_s2 = inlined_call_operand.vmem [shape: f32[1,96], index: 2, kind: input, shape index: {}]   ;;  %s5175_s3 = inlined_call_operand.vmem [shape: f32[32,32], index: 3, kind: input, shape index: {}]   ;;  %s5176_s4 = inlined_call_operand.vmem [shape: f32[1,32], index: 4, kind: input, shape index: {}]   ;;  %s5177_s5 = inlined_call_operand.vmem [shape: f32[1,32], index: 5, kind: input, shape index: {}]   ;;  %s5178_s6 = inlined_call_operand.vmem [shape: f32[1,32], index: 6, kind: input, shape index: {}]   ;;  %s5179_s7 = inlined_call_operand.vmem [shape: f32[32,2048], index: 7, kind: input, shape index: {}]   ;;  %s5180_s8 = inlined_call_operand.vmem [shape: f32[1,2048], index: 8, kind: input, shape index: {}]   ;;  %s5181_s9 = inlined_call_operand.vmem [shape: f32[2048,32], index: 9, kind: input, shape index: {}]   ;;  %s5182_s10 = inlined_call_operand.vmem [shape: f32[1,32], index: 10, kind: input, shape index: {}]   ;;  %s5183_s11 = inlined_call_operand.vmem [shape: f32[1,32], index: 11, kind: input, shape index: {}]   ;;  %s5184_s12 = inlined_call_operand.vmem [shape: f32[1,32], index: 12, kind: input, shape index: {}]   ;;  %s5185_s13 = inlined_call_operand.vmem [shape: f32[1,32], index: 13, kind: input, shape index: {}]   ;;  %s5186_s14 = inlined_call_operand.vmem [shape: f32[1,32], index: 14, kind: input, shape index: {}]   ;;  %s5187_s15 = inlined_call_operand.vmem [shape: f32[16,32], index: 15, kind: output, shape index: {}]  }
   0x1 LB: > { %s3041_s19 = sadd.s32 4294967295, %s3834_s18   ;;  %p3045_p0 = scmp.ge.s32.totalorder %s3834_s18, 1  ;;  %s3834_s18 = sphi %s3933_s18, %s25_s18  }
   0x2   : > { %p436_p1 = scmp.lt.s32.totalorder %s3834_s18, 3 }
   0x4   : > { %p437_p2 = pnand %p3045_p0, %p436_p1 }
   0x5   : > { %v491_v0 = vld [vmem:[%s5173_s1] sm:$0xff] (!%p437_p2)  ;;  %v492_v1 = vld [vmem:[%s5173_s1 + $0x8] sm:$0xff] (!%p437_p2)  ;;  %v493_v2 = vld [vmem:[%s5173_s1 + $0x10] sm:$0xff] (!%p437_p2)  ;;  %v3836_v3 = vmov (!%p437_p2), 0.0|0.0   ;;  %vm3837_vm0 = vmmov (!%p437_p2), 0   ;;  %v3838_v6 = vmov (!%p437_p2), 0.0  }
   0x6   : > { %440 = sbr.rel (%p437_p2) target bundleno = 3472 (0xd90), region = 80  ;;  %3449 = vmatprep.subr.bf16.mxu0 (!%p437_p2), %v3836_v3  ;;  %v3450_v4 = vpack.c.bf16 (!%p437_p2), %v492_v1, %v491_v0  ;;  %v494_v5 = vld [vmem:[%s5173_s1 + $0x18] sm:$0xff] (!%p437_p2)  ;;  %3395 = vmatprep.mubr.msk.f32.mxu0 (!%p437_p2), %vm3837_vm0, %v3838_v6  ;;  %p482_p3 = scmp.lt.s32.totalorder (!%p437_p2), %s3041_s19, 1  ;;  %vm502_vm1 = vcmask (!%p437_p2), 261120   ;;  %v3048_v9 = vld [vmem:[%s5174_s2] ss:$0 sm:$0xff] (!%p437_p2) }
   0x7   : > { %3398 = vmatprep.subr.mxu1 (!%p437_p2), %v3838_v6  ;;  %3400 = vmatprep.mubr.msk.f32.mxu1 (!%p437_p2), %vm3837_vm0, %v3838_v6  ;;  %v3453_v7 = vpack.c.bf16 (!%p437_p2), %v494_v5, %v493_v2  ;;  %s3839_s21 = smov (!%p437_p2), 64   ;;  %s3840_s22 = smov (!%p437_p2), 96   ;;  %vm580_vm2 = vcmask (!%p437_p2), 64512   ;;  %vm1251_vm3 = vcmask (!%p437_p2), 130048   ;;  %vm1253_vm4 = vcmask (!%p437_p2), 195584  }
   0x8   : > { %3451 = vmatpush3.bf16.msra.mxu0 (!%p437_p2), %v3450_v4  ;;  %s3841_s23 = smov (!%p437_p2), 88   ;;  %s3842_s24 = smov (!%p437_p2), 120  }
   0x9   : > { %3452 = vmatprep.subr.bf16.mxu0 (!%p437_p2), %v3836_v3  ;;  %s3843_s25 = smov (!%p437_p2), 80   ;;  %s3844_s26 = smov (!%p437_p2), 72  }
   0xa   : > { %s3845_s27 = smov (!%p437_p2), 112   ;;  %s3846_s29 = smov (!%p437_p2), 104  }
   0xb   : > { %s3847_s30 = smov (!%p437_p2), 56   ;;  %s3849_s17 = smov (!%p437_p2), 40  }
   0xc   : > { %3454 = vmatpush3.bf16.msra.mxu0 (!%p437_p2), %v3453_v7 }
   0xd   : > { %s5189_s19 = smov (!%p482_p3, %s3041_s19), 1  ;;  %3418 = vmatprep.subr.mxu0 %v3838_v6 }
   0xe   : > { %s3046_s28 = sshll.u32 %s5189_s19, 3 }
   0xf   : > { %s485_s16 = scalar_lea.vmem %s5172_s0, %s3046_s28 }
  0x10   : > { %v3968_v8 = vld [vmem:[%s485_s16] sm:$0xff]  ;;  %s3848_s16 = smov 48  }
  0x11   : > { %3396 = vmatmul.mubr.msk.f32.vlgmr.msra.gmra.mrb[0].mxu0 %vm502_vm1, %v3968_v8 }
  0x12   : > { %3420 = vmatprep.mubr.msk.f32.mxu0 %vm3837_vm0, %v3838_v6 }
  0xe4   : > { %v572_v10 = vpop.f32.mrb[0].mxu0 }
  0xe5   : > { %v3978_v11 = vadd.f32 %v3048_v9, %v572_v10  ;;  %v3397_v12 = vpop.f32.mrb[1].mxu0  ;;  %v1255_v10 = vld [vmem:[%s5175_s3] sm:$0xff] }
  0xe7   : > { %667 = vrot.lane.b32.xlu1 %v3978_v11, %s3839_s21  ;;  %578 = vrot.lane.b32.xlu0 %v3978_v11, %s3840_s22  ;;  %v576_v13 = vmul.f32 0.35355338, %v3978_v11  ;;  %s489_s21 = scalar_lea.vmem %s5187_s15, %s3046_s28 }
  0xeb   : > { %745 = vrot.lane.b32.xlu1 %v3978_v11, %s3841_s23 }
  0xef   : > { %743 = vrot.lane.b32.xlu1 %v576_v13, %s3842_s24 }
  0xf3   : > { %910 = vrot.lane.b32.xlu1 %v3978_v11, %s3843_s25 }
 0x159   : > { %v668_v14 = vpop.permute.xlu1 %667  ;;  %v579_v15 = vpop.permute.xlu0 %578 }
 0x15a   : > { %3399 = vmatpush3.xpose.msk.msra.mxu1 %vm580_vm2, %v579_v15 }
 0x15b   : > { %3403 = vmatprep.subr.mxu1 %v3838_v6 }
 0x15d   : > { %v746_v16 = vpop.permute.xlu1 %745  ;;  %3401 = vmatmul.mubr.msk.f32.vlgmr.msra.gmra.mrb[0].mxu1 %vm580_vm2, %v576_v13 }
 0x15e   : > { %3404 = vmatpush3.msra.mxu1 %v668_v14  ;;  %3405 = vmatprep.mubr.msk.f32.mxu1 %vm3837_vm0, %v3838_v6  ;;  %v1258_v14 = vld [vmem:[%s5175_s3 + $0x18] sm:$0xff] }
 0x15f   : > { %3408 = vmatprep.subr.mxu1 %v3838_v6 }
 0x161   : > { %v744_v17 = vpop.permute.xlu1 %743 }
 0x165   : > { %v911_v18 = vpop.permute.xlu1 %910 }
 0x166   : > { %3419 = vmatpush3.xpose.msk.msra.mxu0 %vm580_vm2, %v911_v18 }
 0x167   : > { %3428 = vmatprep.subr.mxu0 %v3838_v6 }
 0x230   : > { %v652_v19 = vpop.f32.mrb[0].mxu1 }
 0x231   : > { %v3402_v20 = vpop.f32.mrb[1].mxu1  ;;  %v656_v21 = vsel %vm580_vm2, %v652_v19, -inf }
 0x232   : > { %657 = vmax.xlane.f32.xlu0 %v656_v21 }
 0x248   : > { %1075 = vrot.lane.b32.xlu0 %v3978_v11, %s3844_s26 }
 0x2bf   : > { %v658_v22 = vpop.xlane.xlu0 %657 }
 0x2c0   : > { %v659_v23 = vsub.f32 %v652_v19, %v658_v22 }
 0x2c2   : > { %v660_v24 = vmul.f32 1.442695, %v659_v23 }
 0x2c3   : > { %v1076_v29 = vpop.permute.xlu0 %1075 }
 0x2c4   : > { %3806 = vpow2.f32 %v660_v24 }
 0x2ce   : > { %v3807_v25 = vpop.eup %3806 }
 0x2cf   : > { %v662_v26 = vsel %vm580_vm2, %v3807_v25, 0.0 }
 0x2d0   : > { %663 = vadd.xlane.f32.xlu1 %v662_v26 }
 0x2e1   : > { %908 = vrot.lane.b32.xlu1 %v576_v13, %s3845_s27 }
 0x2e5   : > { %1073 = vrot.lane.b32.xlu1 %v576_v13, %s3846_s29  ;;  %v1257_v13 = vld [vmem:[%s5175_s3 + $0x10] sm:$0xff]  ;;  %s3850_s29 = smov 8  }
 0x2e6   : > { %v3459_v15 = vpack.c.bf16 %v1258_v14, %v1257_v13  ;;  %v1390_v13 = vld [vmem:[%s5179_s7 + $0xa0] sm:$0xff] }
 0x35d   : > { %v664_v27 = vpop.xlane.xlu1 %663 }
 0x35e   : > { %3808 = vrcp.f32 %v664_v27  ;;  %v3062_v27 = vld [vmem:[%s5176_s4] ss:$0 sm:$0xff] }
 0x361   : > { %v909_v28 = vpop.permute.xlu1 %908 }
 0x362   : > { %3421 = vmatmul.mubr.msk.f32.vlgmr.msra.gmra.mrb[2].mxu0 %vm580_vm2, %v909_v28 }
 0x363   : > { %3429 = vmatpush3.xpose.msk.msra.mxu0 %vm580_vm2, %v1076_v29  ;;  %3430 = vmatprep.mubr.msk.f32.mxu0 %vm3837_vm0, %v3838_v6 }
 0x364   : > { %3455 = vmatprep.subr.bf16.mxu0 %v3836_v3 }
 0x365   : > { %v1074_v30 = vpop.permute.xlu1 %1073 }
 0x366   : > { %3431 = vmatmul.mubr.msk.f32.vlgmr.msra.gmra.mrb[4].mxu0 %vm580_vm2, %v1074_v30 }
 0x367   : > { %3446 = vmatprep.mubr.msk.f32.mxu0 %vm3837_vm0, %v3838_v6 }
 0x368   : > { %v3809_v31 = vpop.eup %3808 }
 0x369   : > { %v666_v32 = vmul.f32 %v3809_v31, %v3807_v25 }
 0x36b   : > { %3406 = vmatmul.mubr.msk.f32.vlgmr.msra.gmra.mrb[2].mxu1 %vm580_vm2, %v666_v32 }
 0x36c   : > { %3409 = vmatpush3.xpose.msk.msra.mxu1 %vm580_vm2, %v746_v16  ;;  %3410 = vmatprep.mubr.msk.f32.mxu1 %vm3837_vm0, %v3838_v6 }
 0x36d   : > { %3413 = vmatprep.subr.mxu1 %v3838_v6 }
 0x36f   : > { %3411 = vmatmul.mubr.msk.f32.vlgmr.msra.gmra.mrb[4].mxu1 %vm580_vm2, %v744_v17 }
 0x370   : > { %3415 = vmatprep.mubr.msk.f32.mxu1 %vm3837_vm0, %v3838_v6 }
 0x435   : > { %v982_v33 = vpop.f32.mrb[2].mxu0 }
 0x436   : > { %v3422_v34 = vpop.f32.mrb[3].mxu0  ;;  %v986_v35 = vsel %vm580_vm2, %v982_v33, -inf }
 0x437   : > { %987 = vmax.xlane.f32.xlu0 %v986_v35 }
 0x439   : > { %v1147_v36 = vpop.f32.mrb[4].mxu0 }
 0x43a   : > { %v3432_v37 = vpop.f32.mrb[5].mxu0  ;;  %v1151_v43 = vsel %vm580_vm2, %v1147_v36, -inf }
 0x43e   : > { %v4013_v38 = vpop.f32.mrb[2].mxu1 }
 0x43f   : > { %v3407_v39 = vpop.f32.mrb[3].mxu1 }
 0x440   : > { %v1387_v39 = vld [vmem:[%s5179_s7 + $0x88] sm:$0xff] }
 0x442   : > { %v817_v40 = vpop.f32.mrb[4].mxu1 }
 0x443   : > { %v3412_v41 = vpop.f32.mrb[5].mxu1  ;;  %v821_v42 = vsel %vm580_vm2, %v817_v40, -inf }
 0x444   : > { %822 = vmax.xlane.f32.xlu1 %v821_v42  ;;  %v1389_v41 = vld [vmem:[%s5179_s7 + $0x98] sm:$0xff]  ;;  %v1370_v42 = vld [vmem:[%s5179_s7] sm:$0xff] }
 0x448   : > { %1152 = vmax.xlane.f32.xlu1 %v1151_v43  ;;  %v1386_v43 = vld [vmem:[%s5179_s7 + $0x80] sm:$0xff] }
 0x4c4   : > { %v988_v44 = vpop.xlane.xlu0 %987 }
 0x4c5   : > { %v989_v45 = vsub.f32 %v982_v33, %v988_v44 }
 0x4c7   : > { %v990_v46 = vmul.f32 1.442695, %v989_v45  ;;  %v3463_v45 = vpack.c.bf16 %v1386_v43, %v1370_v42  ;;  %v1427_v42 = vld [vmem:[%s5179_s7 + $0x1c8] sm:$0xff]  ;;  %v1413_v43 = vld [vmem:[%s5179_s7 + $0x158] sm:$0xff] }
 0x4c9   : > { %3810 = vpow2.f32 %v990_v46  ;;  %v1372_v46 = vld [vmem:[%s5179_s7 + $0x10] sm:$0xff] }
 0x4d1   : > { %v823_v47 = vpop.xlane.xlu1 %822 }
 0x4d2   : > { %v824_v55 = vsub.f32 %v817_v40, %v823_v47  ;;  %v1388_v47 = vld [vmem:[%s5179_s7 + $0x90] sm:$0xff] }
 0x4d3   : > { %v3811_v48 = vpop.eup %3810 }
 0x4d4   : > { %v992_v49 = vsel %vm580_vm2, %v3811_v48, 0.0  ;;  %v825_v56 = vmul.f32 1.442695, %v824_v55  ;;  %v1418_v55 = vld [vmem:[%s5179_s7 + $0x180] sm:$0xff] }
 0x4d5   : > { %993 = vadd.xlane.f32.xlu1 %v992_v49  ;;  %v1153_v50 = vpop.xlane.xlu1 %1152  ;;  %v1403_v49 = vld [vmem:[%s5179_s7 + $0x108] sm:$0xff] }
 0x4d6   : > { %v1154_v51 = vsub.f32 %v1147_v36, %v1153_v50  ;;  %v1419_v50 = vld [vmem:[%s5179_s7 + $0x188] sm:$0xff] }
 0x4d8   : > { %v1155_v52 = vmul.f32 1.442695, %v1154_v51  ;;  %v1405_v51 = vld [vmem:[%s5179_s7 + $0x118] sm:$0xff] }
 0x4da   : > { %3812 = vpow2.f32 %v1155_v52  ;;  %v3465_v52 = vpack.c.bf16 %v1419_v50, %v1403_v49 }
 0x4db   : > { %3814 = vpow2.f32 %v825_v56 }
 0x4e4   : > { %v3813_v53 = vpop.eup %3812 }
 0x4e5   : > { %v1157_v54 = vsel %vm580_vm2, %v3813_v53, 0.0  ;;  %v3815_v57 = vpop.eup %3814 }
 0x4e6   : > { %832 = vrot.lane.b32.xlu1 %v3978_v11, %s3847_s30  ;;  %1158 = vadd.xlane.f32.xlu0 %v1157_v54  ;;  %v827_v58 = vsel %vm580_vm2, %v3815_v57, 0.0  ;;  %s3851_s30 = smov 16   ;;  %v1402_v54 = vld [vmem:[%s5179_s7 + $0x100] sm:$0xff] }
 0x4fc   : > { %997 = vrot.lane.b32.xlu0 %v3978_v11, %s3848_s16  ;;  %s3852_s16 = smov 24  }
 0x50a   : > { %828 = vadd.xlane.f32.xlu1 %v827_v58  ;;  %v1404_v58 = vld [vmem:[%s5179_s7 + $0x110] sm:$0xff] }
 0x51b   : > { %1162 = vrot.lane.b32.xlu1 %v3978_v11, %s3849_s17  ;;  %v1256_v11 = vld [vmem:[%s5175_s3 + $0x8] sm:$0xff] }
 0x51c   : > { %v3456_v12 = vpack.c.bf16 %v1256_v11, %v1255_v10  ;;  %v3065_v11 = vld [vmem:[%s5178_s6] ss:$0 sm:$0xff] }
 0x51e   : > { %3457 = vmatpush3.bf16.msra.mxu0 %v3456_v12  ;;  %v1374_v12 = vld [vmem:[%s5179_s7 + $0x20] sm:$0xff] }
 0x51f   : > { %3458 = vmatprep.subr.bf16.mxu0 %v3836_v3 }
 0x522   : > { %3460 = vmatpush3.bf16.msra.mxu0 %v3459_v15  ;;  %v1376_v15 = vld [vmem:[%s5179_s7 + $0x30] sm:$0xff] }
 0x562   : > { %v994_v59 = vpop.xlane.xlu1 %993 }
 0x566   : > { %v833_v60 = vpop.permute.xlu1 %832 }
 0x567   : > { %3414 = vmatpush3.msra.mxu1 %v833_v60 }
 0x568   : > { %3423 = vmatprep.subr.mxu1 %v3838_v6 }
 0x573   : > { %v1159_v62 = vpop.xlane.xlu0 %1158 }
 0x577   : > { %v998_v2 = vpop.permute.xlu0 %997 }
 0x597   : > { %v829_v61 = vpop.xlane.xlu1 %828 }
 0x598   : > { %3816 = vrcp.f32 %v829_v61  ;;  %v1375_v61 = vld [vmem:[%s5179_s7 + $0x28] sm:$0xff] }
 0x599   : > { %3818 = vrcp.f32 %v994_v59  ;;  %v1420_v59 = vld [vmem:[%s5179_s7 + $0x190] sm:$0xff] }
 0x59a   : > { %3820 = vrcp.f32 %v1159_v62  ;;  %v3475_v60 = vpack.c.bf16 %v1420_v59, %v1404_v58  ;;  %v1391_v62 = vld [vmem:[%s5179_s7 + $0xa8] sm:$0xff]  ;;  %v1382_v59 = vld [vmem:[%s5179_s7 + $0x60] sm:$0xff] }
 0x59b   : > { %v1163_v7 = vpop.permute.xlu1 %1162 }
 0x5a2   : > { %v3817_v63 = vpop.eup %3816 }
 0x5a3   : > { %v831_v0 = vmul.f32 %v3817_v63, %v3815_v57  ;;  %v3819_v1 = vpop.eup %3818  ;;  %v3467_v57 = vpack.c.bf16 %v1418_v55, %v1402_v54  ;;  %v1377_v63 = vld [vmem:[%s5179_s7 + $0x38] sm:$0xff]  ;;  %v1399_v54 = vld [vmem:[%s5179_s7 + $0xe8] sm:$0xff] }
 0x5a4   : > { %v996_v4 = vmul.f32 %v3819_v1, %v3811_v48  ;;  %v3821_v5 = vpop.eup %3820  ;;  %v3471_v48 = vpack.c.bf16 %v1388_v47, %v1372_v46  ;;  %v1393_v1 = vld [vmem:[%s5179_s7 + $0xb8] sm:$0xff]  ;;  %v1410_v47 = vld [vmem:[%s5179_s7 + $0x140] sm:$0xff] }
 0x5a5   : > { %3416 = vmatmul.mubr.msk.f32.vlgmr.msra.gmra.mrb[6].mxu1 %vm580_vm2, %v831_v0  ;;  %v1161_v9 = vmul.f32 %v3821_v5, %v3813_v53  ;;  %v1421_v53 = vld [vmem:[%s5179_s7 + $0x198] sm:$0xff]  ;;  %v3477_v0 = vpack.c.bf16 %v1391_v62, %v1375_v61 }
 0x5a6   : > { %3424 = vmatpush3.msra.mxu1 %v998_v2  ;;  %3425 = vmatprep.mubr.msk.f32.mxu1 %vm3837_vm0, %v3838_v6  ;;  %v3473_v56 = vpack.c.bf16 %v1421_v53, %v1405_v51  ;;  %v3485_v2 = vpack.c.bf16 %v1393_v1, %v1377_v63  ;;  %v1412_v51 = vld [vmem:[%s5179_s7 + $0x150] sm:$0xff]  ;;  %v1383_v53 = vld [vmem:[%s5179_s7 + $0x68] sm:$0xff]  ;;  %v1385_v55 = vld [vmem:[%s5179_s7 + $0x78] sm:$0xff] }
 0x5a7   : > { %3433 = vmatprep.subr.mxu1 %v3838_v6  ;;  %v3509_v61 = vpack.c.bf16 %v1399_v54, %v1383_v53  ;;  %v1384_v63 = vld [vmem:[%s5179_s7 + $0x70] sm:$0xff]  ;;  %v1415_v1 = vld [vmem:[%s5179_s7 + $0x168] sm:$0xff]  ;;  %v2160_v53 = vld [vmem:[%s5181_s9 + $0x1b8] sm:$0xff] }
 0x5a9   : > { %3426 = vmatmul.mubr.msk.f32.vlgmr.msra.gmra.mrb[8].mxu1 %vm580_vm2, %v996_v4 }
 0x5aa   : > { %3434 = vmatpush3.msra.mxu1 %v1163_v7  ;;  %3435 = vmatprep.mubr.msk.f32.mxu1 %vm3837_vm0, %v3838_v6 }
 0x5ad   : > { %3436 = vmatmul.mubr.msk.f32.vlgmr.msra.gmra.mrb[10].mxu1 %vm580_vm2, %v1161_v9  ;;  %v3064_v9 = vld [vmem:[%s5177_s5] ss:$0 sm:$0xff] }
 0x5ae   : > { %1585 = vmatprep.mubr.f32.mxu1 %v3838_v6 }
 0x678   : > { %v904_v16 = vpop.f32.mrb[6].mxu1 }
 0x679   : > { %1239 = vrot.lane.b32.xlu1 %v904_v16, %s3850_s29  ;;  %v3417_v17 = vpop.f32.mrb[7].mxu1  ;;  %v1392_v16 = vld [vmem:[%s5179_s7 + $0xb0] sm:$0xff] }
 0x67a   : > { %v1407_v17 = vld [vmem:[%s5179_s7 + $0x128] sm:$0xff] }
 0x67c   : > { %v1069_v18 = vpop.f32.mrb[8].mxu1 }
 0x67d   : > { %1243 = vrot.lane.b32.xlu0 %v1069_v18, %s3851_s30  ;;  %v3427_v19 = vpop.f32.mrb[9].mxu1  ;;  %v1423_v18 = vld [vmem:[%s5179_s7 + $0x1a8] sm:$0xff] }
 0x67e   : > { %v1409_v19 = vld [vmem:[%s5179_s7 + $0x138] sm:$0xff] }
 0x680   : > { %v1234_v20 = vpop.f32.mrb[10].mxu1 }
 0x681   : > { %1247 = vrot.lane.b32.xlu1 %v1234_v20, %s3852_s16  ;;  %v3437_v3 = vpop.f32.mrb[11].mxu1  ;;  %v1425_v20 = vld [vmem:[%s5179_s7 + $0x1b8] sm:$0xff] }
 0x6eb   : > { %v1240_v21 = vpop.permute.xlu1 %1239 }
 0x6ec   : > { %v1250_v23 = vsel %vm580_vm2, %v4013_v38, %v1240_v21  ;;  %v1371_v38 = vld [vmem:[%s5179_s7 + $0x8] sm:$0xff]  ;;  %v3479_v21 = vpack.c.bf16 %v1390_v13, %v1374_v12 }
 0x6ed   : > { %v3461_v40 = vpack.c.bf16 %v1387_v39, %v1371_v38 }
 0x6ef   : > { %v1244_v22 = vpop.permute.xlu0 %1243  ;;  %3462 = vmatprep.subr.bf16.mxu1 %v3461_v40  ;;  %v1396_v40 = vld [vmem:[%s5179_s7 + $0xd0] sm:$0xff] }
 0x6f0   : > { %v1252_v24 = vsel %vm1251_vm3, %v1250_v23, %v1244_v22  ;;  %3464 = vmatpush1.bf16.msra.mxu1 %v3463_v45  ;;  %v3487_v22 = vpack.c.bf16 %v1392_v16, %v1376_v15  ;;  %v1406_v23 = vld [vmem:[%s5179_s7 + $0x120] sm:$0xff]  ;;  %v1432_v15 = vld [vmem:[%s5179_s7 + $0x1f0] sm:$0xff] }
 0x6f1   : > { %3466 = vmatprep.subr.bf16.mxu1 %v3465_v52  ;;  %v1428_v52 = vld [vmem:[%s5179_s7 + $0x1d0] sm:$0xff]  ;;  %v2121_v16 = vld [vmem:[%s5181_s9 + $0x80] sm:$0xff] }
 0x6f2   : > { %v3507_v58 = vpack.c.bf16 %v1428_v52, %v1412_v51  ;;  %v2128_v51 = vld [vmem:[%s5181_s9 + $0xb8] sm:$0xff]  ;;  %v2159_v52 = vld [vmem:[%s5181_s9 + $0x1b0] sm:$0xff] }
 0x6f3   : > { %v1248_v25 = vpop.permute.xlu1 %1247 }
 0x6f4   : > { %v1254_v26 = vsel %vm1253_vm4, %v1252_v24, %v1248_v25  ;;  %3468 = vmatpush1.bf16.msra.mxu1 %v3467_v57  ;;  %v1422_v24 = vld [vmem:[%s5179_s7 + $0x1a0] sm:$0xff] }
 0x6f5   : > { %3447 = vmatmul.mubr.msk.f32.vlgmr.msra.gmra.mrb[6].mxu0 %vm502_vm1, %v1254_v26  ;;  %3478 = vmatprep.subr.bf16.mxu1 %v3477_v0  ;;  %v3481_v26 = vpack.c.bf16 %v1423_v18, %v1407_v17  ;;  %v1400_v0 = vld [vmem:[%s5179_s7 + $0xf0] sm:$0xff]  ;;  %v2122_v17 = vld [vmem:[%s5181_s9 + $0x88] sm:$0xff]  ;;  %v2153_v18 = vld [vmem:[%s5181_s9 + $0x180] sm:$0xff] }
 0x6f6   : > { %1656 = vmatprep.mubr.f32.mxu0 %v3838_v6 }
 0x7c8   : > { %v1335_v28 = vpop.f32.mrb[6].mxu0 }
 0x7c9   : > { %v1336_v29 = vadd.f32 %v3062_v27, %v1335_v28  ;;  %v3448_v30 = vpop.f32.mrb[7].mxu0  ;;  %v3489_v27 = vpack.c.bf16 %v1425_v20, %v1409_v19  ;;  %v1408_v28 = vld [vmem:[%s5179_s7 + $0x130] sm:$0xff]  ;;  %v2154_v19 = vld [vmem:[%s5181_s9 + $0x188] sm:$0xff] }
 0x7ca   : > { %v1379_v30 = vld [vmem:[%s5179_s7 + $0x48] sm:$0xff] }
 0x7cb   : > { %v1339_v31 = vadd.f32 %v1336_v29, %v3968_v8  ;;  %v1373_v8 = vld [vmem:[%s5179_s7 + $0x18] sm:$0xff]  ;;  %v1424_v29 = vld [vmem:[%s5179_s7 + $0x1b0] sm:$0xff] }
 0x7cc   : > { %v3469_v44 = vpack.c.bf16 %v1389_v41, %v1373_v8  ;;  %v1380_v8 = vld [vmem:[%s5179_s7 + $0x50] sm:$0xff]  ;;  %v1411_v41 = vld [vmem:[%s5179_s7 + $0x148] sm:$0xff] }
 0x7cd   : > { %v1342_v32 = vsel %vm502_vm1, %v1339_v31, 0.0  ;;  %v3503_v46 = vpack.c.bf16 %v1396_v40, %v1380_v8  ;;  %v3497_v49 = vpack.c.bf16 %v1427_v42, %v1411_v41  ;;  %v2126_v8 = vld [vmem:[%s5181_s9 + $0xa8] sm:$0xff]  ;;  %v2157_v40 = vld [vmem:[%s5181_s9 + $0x1a0] sm:$0xff] }
 0x7ce   : > { %1343 = vadd.xlane.f32.xlu0 %v1342_v32  ;;  %3470 = vmatprep.subr.bf16.mxu0 %v3469_v44  ;;  %v1381_v32 = vld [vmem:[%s5179_s7 + $0x58] sm:$0xff]  ;;  %v2158_v41 = vld [vmem:[%s5181_s9 + $0x1a8] sm:$0xff] }
 0x7cf   : > { %3472 = vmatpush1.bf16.msra.mxu0 %v3471_v48  ;;  %v1429_v44 = vld [vmem:[%s5179_s7 + $0x1d8] sm:$0xff]  ;;  %v1426_v48 = vld [vmem:[%s5179_s7 + $0x1c0] sm:$0xff] }
 0x7d0   : > { %3474 = vmatprep.subr.bf16.mxu0 %v3473_v56  ;;  %v3505_v50 = vpack.c.bf16 %v1429_v44, %v1413_v43  ;;  %v1401_v56 = vld [vmem:[%s5179_s7 + $0xf8] sm:$0xff]  ;;  %v3499_v57 = vpack.c.bf16 %v1426_v48, %v1410_v47  ;;  %v2109_v44 = vld [vmem:[%s5181_s9 + $0x20] sm:$0xff]  ;;  %v3565_v47 = vpack.c.bf16 %v2158_v41, %v2157_v40 }
 0x7d1   : > { %v3517_v62 = vpack.c.bf16 %v1401_v56, %v1385_v55  ;;  %v2141_v48 = vld [vmem:[%s5181_s9 + $0x120] sm:$0xff]  ;;  %v2111_v56 = vld [vmem:[%s5181_s9 + $0x30] sm:$0xff]  ;;  %v2168_v41 = vld [vmem:[%s5181_s9 + $0x1f8] sm:$0xff] }
 0x7d3   : > { %3476 = vmatpush1.bf16.msra.mxu0 %v3475_v60  ;;  %v1398_v60 = vld [vmem:[%s5179_s7 + $0xe0] sm:$0xff] }
 0x7d4   : > { %3486 = vmatprep.subr.bf16.mxu0 %v3485_v2  ;;  %v1431_v2 = vld [vmem:[%s5179_s7 + $0x1e8] sm:$0xff] }
 0x7d5   : > { %v3513_v12 = vpack.c.bf16 %v1431_v2, %v1415_v1  ;;  %v2162_v1 = vld [vmem:[%s5181_s9 + $0x1c8] sm:$0xff] }
 0x85b   : > { %v1344_v33 = vpop.xlane.xlu0 %1343 }
 0x85c   : > { %v1346_v34 = vmul.f32 0.03125, %v1344_v33  ;;  %v1397_v33 = vld [vmem:[%s5179_s7 + $0xd8] sm:$0xff] }
 0x85d   : > { %v3501_v39 = vpack.c.bf16 %v1397_v33, %v1381_v32 }
 0x85e   : > { %v1347_v35 = vsub.f32 %v1339_v31, %v1346_v34  ;;  %v1395_v31 = vld [vmem:[%s5179_s7 + $0xc8] sm:$0xff]  ;;  %v3483_v34 = vpack.c.bf16 %v1422_v24, %v1406_v23  ;;  %v3525_v23 = vpack.c.bf16 %v2122_v17, %v2121_v16  ;;  %v3557_v24 = vpack.c.bf16 %v2154_v19, %v2153_v18  ;;  %v2164_v16 = vld [vmem:[%s5181_s9 + $0x1d8] sm:$0xff]  ;;  %v2115_v19 = vld [vmem:[%s5181_s9 + $0x50] sm:$0xff] }
 0x85f   : > { %v3493_v38 = vpack.c.bf16 %v1395_v31, %v1379_v30  ;;  %v2155_v30 = vld [vmem:[%s5181_s9 + $0x190] sm:$0xff]  ;;  %v2156_v31 = vld [vmem:[%s5181_s9 + $0x198] sm:$0xff] }
 0x860   : > { %v1348_v36 = vmul.f32 %v1347_v35, %v1347_v35 }
 0x862   : > { %v1349_v37 = vsel %vm502_vm1, %v1348_v36, 0.0  ;;  %v1378_v36 = vld [vmem:[%s5179_s7 + $0x40] sm:$0xff] }
 0x863   : > { %1350 = vadd.xlane.f32.xlu1 %v1349_v37  ;;  %v1394_v37 = vld [vmem:[%s5179_s7 + $0xc0] sm:$0xff] }
 0x864   : > { %v3495_v45 = vpack.c.bf16 %v1394_v37, %v1378_v36  ;;  %v3561_v36 = vpack.c.bf16 %v2156_v31, %v2155_v30  ;;  %v2139_v37 = vld [vmem:[%s5181_s9 + $0x110] sm:$0xff]  ;;  %v2117_v31 = vld [vmem:[%s5181_s9 + $0x60] sm:$0xff] }
 0x8f0   : > { %v1351_v4 = vpop.xlane.xlu1 %1350 }
 0x8f1   : > { %v1352_v5 = vmul.f32 0.03125, %v1351_v4  ;;  %v1417_v4 = vld [vmem:[%s5179_s7 + $0x178] sm:$0xff] }
 0x8f3   : > { %v1353_v7 = vadd.f32 1e-05, %v1352_v5  ;;  %v1433_v5 = vld [vmem:[%s5179_s7 + $0x1f8] sm:$0xff] }
 0x8f4   : > { %v3521_v13 = vpack.c.bf16 %v1433_v5, %v1417_v4  ;;  %v2113_v5 = vld [vmem:[%s5181_s9 + $0x40] sm:$0xff] }
 0x8f5   : > { %3822 = vrsqrt.f32 %v1353_v7  ;;  %v3511_v7 = vpack.c.bf16 %v1398_v60, %v1382_v59  ;;  %v3569_v59 = vpack.c.bf16 %v2160_v53, %v2159_v52  ;;  %v2143_v60 = vld [vmem:[%s5181_s9 + $0x130] sm:$0xff]  ;;  %v2218_v53 = vld [vmem:[%s5181_s9 + $0x388] sm:$0xff] }
 0x8ff   : > { %v3823_v10 = vpop.eup %3822 }
 0x900   : > { %v1355_v14 = vmul.f32 %v3823_v10, %v1347_v35  ;;  %v3491_v35 = vpack.c.bf16 %v1424_v29, %v1408_v28  ;;  %v1414_v10 = vld [vmem:[%s5179_s7 + $0x160] sm:$0xff]  ;;  %v2123_v28 = vld [vmem:[%s5181_s9 + $0x90] sm:$0xff]  ;;  %v2124_v29 = vld [vmem:[%s5181_s9 + $0x98] sm:$0xff] }
 0x902   : > { %v1362_v3 = vmul.f32 %v3064_v9, %v1355_v14  ;;  %v3519_v9 = vpack.c.bf16 %v1400_v0, %v1384_v63  ;;  %v1416_v14 = vld [vmem:[%s5179_s7 + $0x170] sm:$0xff]  ;;  %v2130_v63 = vld [vmem:[%s5181_s9 + $0xc8] sm:$0xff]  ;;  %v2161_v0 = vld [vmem:[%s5181_s9 + $0x1c0] sm:$0xff] }
 0x904   : > { %v4152_v25 = vadd.f32 %v3065_v11, %v1362_v3  ;;  %v1430_v11 = vld [vmem:[%s5179_s7 + $0x1e0] sm:$0xff]  ;;  %v3523_v3 = vpack.c.bf16 %v1432_v15, %v1416_v14  ;;  %v2132_v14 = vld [vmem:[%s5181_s9 + $0xd8] sm:$0xff]  ;;  %v2163_v15 = vld [vmem:[%s5181_s9 + $0x1d0] sm:$0xff] }
 0x905   : > { %v3515_v20 = vpack.c.bf16 %v1430_v11, %v1414_v10  ;;  %v3573_v10 = vpack.c.bf16 %v2162_v1, %v2161_v0  ;;  %v2145_v11 = vld [vmem:[%s5181_s9 + $0x140] sm:$0xff] }
 0x906   : > { %3066 = vmatmul.mubr.msk.f32.vlgmr.msra.gmra.mrb[12].mxu1 %vm502_vm1, %v4152_v25  ;;  %3067 = vmatmul.mubr.msk.f32.vlgmr.msra.gmra.mrb[8].mxu0 %vm502_vm1, %v4152_v25 }
 0x907   : > { %3480 = vmatpush1.bf16.msra.mxu1 %v3479_v21  ;;  %3488 = vmatpush1.bf16.msra.mxu0 %v3487_v22  ;;  %v2105_v21 = vld [vmem:[%s5181_s9] sm:$0xff]  ;;  %v2106_v22 = vld [vmem:[%s5181_s9 + $0x8] sm:$0xff] }
 0x908   : > { %3482 = vmatprep.subr.bf16.mxu1 %v3481_v26  ;;  %3490 = vmatprep.subr.bf16.mxu0 %v3489_v27  ;;  %v2137_v26 = vld [vmem:[%s5181_s9 + $0x100] sm:$0xff]  ;;  %v2138_v27 = vld [vmem:[%s5181_s9 + $0x108] sm:$0xff]  ;;  %v3527_v32 = vpack.c.bf16 %v2106_v22, %v2105_v21  ;;  %v3577_v21 = vpack.c.bf16 %v2164_v16, %v2163_v15  ;;  %v2147_v22 = vld [vmem:[%s5181_s9 + $0x150] sm:$0xff] }
 0x909   : > { %1727 = vmatprep.mubr.f32.mxu1 %v3838_v6  ;;  %1798 = vmatprep.mubr.f32.mxu0 %v3838_v6  ;;  %v3559_v33 = vpack.c.bf16 %v2138_v27, %v2137_v26  ;;  %v2134_v26 = vld [vmem:[%s5181_s9 + $0xe8] sm:$0xff]  ;;  %v2165_v27 = vld [vmem:[%s5181_s9 + $0x1e0] sm:$0xff] }
 0x90a   : > { %v2201_v16 = vld [vmem:[%s5181_s9 + $0x300] sm:$0xff] }
 0x90b   : > { %3484 = vmatpush1.bf16.msra.mxu1 %v3483_v34  ;;  %3492 = vmatpush1.bf16.msra.mxu0 %v3491_v35  ;;  %v2108_v34 = vld [vmem:[%s5181_s9 + $0x18] sm:$0xff]  ;;  %v3529_v35 = vpack.c.bf16 %v2124_v29, %v2123_v28  ;;  %v2166_v28 = vld [vmem:[%s5181_s9 + $0x1e8] sm:$0xff] }
 0x90c   : > { %3494 = vmatprep.subr.bf16.mxu1 %v3493_v38  ;;  %3502 = vmatprep.subr.bf16.mxu0 %v3501_v39  ;;  %v2140_v38 = vld [vmem:[%s5181_s9 + $0x118] sm:$0xff]  ;;  %v2125_v39 = vld [vmem:[%s5181_s9 + $0xa0] sm:$0xff] }
 0x90d   : > { %v3563_v43 = vpack.c.bf16 %v2140_v38, %v2139_v37  ;;  %v2135_v38 = vld [vmem:[%s5181_s9 + $0xf0] sm:$0xff] }
 0x90e   : > { %3068 = vmatmul.mubr.msk.f32.vlgmr.msra.gmra.mrb[14].mxu1 %vm502_vm1, %v4152_v25  ;;  %3069 = vmatmul.mubr.msk.f32.vlgmr.msra.gmra.mrb[10].mxu0 %vm502_vm1, %v4152_v25 }
 0x90f   : > { %3496 = vmatpush1.bf16.msra.mxu1 %v3495_v45  ;;  %3504 = vmatpush1.bf16.msra.mxu0 %v3503_v46  ;;  %v2110_v45 = vld [vmem:[%s5181_s9 + $0x28] sm:$0xff]  ;;  %v3533_v46 = vpack.c.bf16 %v2126_v8, %v2125_v39  ;;  %v2136_v39 = vld [vmem:[%s5181_s9 + $0xf8] sm:$0xff]  ;;  %v2167_v8 = vld [vmem:[%s5181_s9 + $0x1f0] sm:$0xff] }
 0x910   : > { %3498 = vmatprep.subr.bf16.mxu1 %v3497_v49  ;;  %3506 = vmatprep.subr.bf16.mxu0 %v3505_v50  ;;  %v2142_v49 = vld [vmem:[%s5181_s9 + $0x128] sm:$0xff]  ;;  %v2127_v50 = vld [vmem:[%s5181_s9 + $0xb0] sm:$0xff]  ;;  %v3535_v54 = vpack.c.bf16 %v2110_v45, %v2109_v44  ;;  %v3553_v40 = vpack.c.bf16 %v2136_v39, %v2135_v38  ;;  %v3585_v44 = vpack.c.bf16 %v2168_v41, %v2167_v8 }
 0x911   : > { %1869 = vmatprep.mubr.f32.mxu1 %v3838_v6  ;;  %1940 = vmatprep.mubr.f32.mxu0 %v3838_v6  ;;  %v3567_v55 = vpack.c.bf16 %v2142_v49, %v2141_v48  ;;  %v2185_v49 = vld [vmem:[%s5181_s9 + $0x280] sm:$0xff]  ;;  %v2190_v8 = vld [vmem:[%s5181_s9 + $0x2a8] sm:$0xff] }
 0x912   : > { %v2222_v41 = vld [vmem:[%s5181_s9 + $0x3a8] sm:$0xff] }
 0x913   : > { %3500 = vmatpush1.bf16.msra.mxu1 %v3499_v57  ;;  %3508 = vmatpush1.bf16.msra.mxu0 %v3507_v58  ;;  %v2112_v57 = vld [vmem:[%s5181_s9 + $0x38] sm:$0xff]  ;;  %v3537_v58 = vpack.c.bf16 %v2128_v51, %v2127_v50  ;;  %v2186_v50 = vld [vmem:[%s5181_s9 + $0x288] sm:$0xff]  ;;  %v2217_v51 = vld [vmem:[%s5181_s9 + $0x380] sm:$0xff] }
 0x914   : > { %3510 = vmatprep.subr.bf16.mxu1 %v3509_v61  ;;  %3518 = vmatprep.subr.bf16.mxu0 %v3517_v62  ;;  %v2144_v61 = vld [vmem:[%s5181_s9 + $0x138] sm:$0xff]  ;;  %v2129_v62 = vld [vmem:[%s5181_s9 + $0xc0] sm:$0xff]  ;;  %v3539_v2 = vpack.c.bf16 %v2112_v57, %v2111_v56  ;;  %v3589_v52 = vpack.c.bf16 %v2186_v50, %v2185_v49 }
 0x915   : > { %v3571_v4 = vpack.c.bf16 %v2144_v61, %v2143_v60 }
 0x916   : > { %3070 = vmatmul.mubr.msk.f32.vlgmr.msra.gmra.mrb[16].mxu1 %vm502_vm1, %v4152_v25  ;;  %3071 = vmatmul.mubr.msk.f32.vlgmr.msra.gmra.mrb[12].mxu0 %vm502_vm1, %v4152_v25 }
 0x917   : > { %3512 = vmatpush1.bf16.msra.mxu1 %v3511_v7  ;;  %3520 = vmatpush1.bf16.msra.mxu0 %v3519_v9  ;;  %v2114_v7 = vld [vmem:[%s5181_s9 + $0x48] sm:$0xff]  ;;  %v3541_v9 = vpack.c.bf16 %v2130_v63, %v2129_v62  ;;  %v4500_v62 = vld [vmem:[%s5180_s8] sm:$0xff] }
 0x918   : > { %3514 = vmatprep.subr.bf16.mxu1 %v3513_v12  ;;  %3522 = vmatprep.subr.bf16.mxu0 %v3521_v13  ;;  %v2146_v12 = vld [vmem:[%s5181_s9 + $0x148] sm:$0xff]  ;;  %v2131_v13 = vld [vmem:[%s5181_s9 + $0xd0] sm:$0xff]  ;;  %v3543_v17 = vpack.c.bf16 %v2114_v7, %v2113_v5 }
 0x919   : > { %2011 = vmatprep.mubr.f32.mxu1 %v3838_v6  ;;  %2082 = vmatprep.mubr.f32.mxu0 %v3838_v6  ;;  %v2107_v6 = vld [vmem:[%s5181_s9 + $0x10] sm:$0xff]  ;;  %v3575_v18 = vpack.c.bf16 %v2146_v12, %v2145_v11  ;;  %v2170_v11 = vld [vmem:[%s5181_s9 + $0x208] sm:$0xff] }
 0x91a   : > { %v3531_v42 = vpack.c.bf16 %v2108_v34, %v2107_v6  ;;  %v2118_v6 = vld [vmem:[%s5181_s9 + $0x68] sm:$0xff]  ;;  %v2149_v34 = vld [vmem:[%s5181_s9 + $0x160] sm:$0xff] }
 0x91b   : > { %3516 = vmatpush1.bf16.msra.mxu1 %v3515_v20  ;;  %3524 = vmatpush1.bf16.msra.mxu0 %v3523_v3  ;;  %v2116_v20 = vld [vmem:[%s5181_s9 + $0x58] sm:$0xff]  ;;  %v3545_v3 = vpack.c.bf16 %v2132_v14, %v2131_v13 }
 0x91c   : > { %3526 = vmatprep.subr.bf16.mxu1 %v3525_v23  ;;  %3558 = vmatprep.subr.bf16.mxu0 %v3557_v24  ;;  %v2148_v23 = vld [vmem:[%s5181_s9 + $0x158] sm:$0xff]  ;;  %v2133_v24 = vld [vmem:[%s5181_s9 + $0xe0] sm:$0xff]  ;;  %v3547_v29 = vpack.c.bf16 %v2116_v20, %v2115_v19 }
 0x91d   : > { %v3579_v30 = vpack.c.bf16 %v2148_v23, %v2147_v22  ;;  %v2188_v22 = vld [vmem:[%s5181_s9 + $0x298] sm:$0xff]  ;;  %v2219_v23 = vld [vmem:[%s5181_s9 + $0x390] sm:$0xff] }
 0x91e   : > { %3072 = vmatmul.mubr.msk.f32.vlgmr.msra.gmra.mrb[18].mxu1 %vm502_vm1, %v4152_v25  ;;  %3073 = vmatmul.mubr.msk.f32.vlgmr.msra.gmra.mrb[14].mxu0 %vm502_vm1, %v4152_v25 }
 0x91f   : > { %3528 = vmatpush3.bf16.msra.mxu1 %v3527_v32  ;;  %3560 = vmatpush3.bf16.msra.mxu0 %v3559_v33  ;;  %v3549_v32 = vpack.c.bf16 %v2134_v26, %v2133_v24  ;;  %v3581_v33 = vpack.c.bf16 %v2166_v28, %v2165_v27  ;;  %v2220_v24 = vld [vmem:[%s5181_s9 + $0x398] sm:$0xff] }
 0x920   : > { %3530 = vmatprep.subr.bf16.mxu1 %v3529_v35  ;;  %3562 = vmatprep.subr.bf16.mxu0 %v3561_v36  ;;  %v2150_v35 = vld [vmem:[%s5181_s9 + $0x168] sm:$0xff]  ;;  %v3551_v36 = vpack.c.bf16 %v2118_v6, %v2117_v31  ;;  %v2172_v31 = vld [vmem:[%s5181_s9 + $0x218] sm:$0xff] }
 0x921   : > { %v3583_v37 = vpack.c.bf16 %v2150_v35, %v2149_v34  ;;  %v3625_v34 = vpack.c.bf16 %v2220_v24, %v2219_v23  ;;  %v2203_v35 = vld [vmem:[%s5181_s9 + $0x310] sm:$0xff] }
 0x923   : > { %3532 = vmatpush3.bf16.msra.mxu1 %v3531_v42  ;;  %3564 = vmatpush3.bf16.msra.mxu0 %v3563_v43  ;;  %v2119_v42 = vld [vmem:[%s5181_s9 + $0x70] sm:$0xff]  ;;  %v2120_v43 = vld [vmem:[%s5181_s9 + $0x78] sm:$0xff] }
 0x924   : > { %3534 = vmatprep.subr.bf16.mxu1 %v3533_v46  ;;  %3566 = vmatprep.subr.bf16.mxu0 %v3565_v47  ;;  %v3555_v45 = vpack.c.bf16 %v2120_v43, %v2119_v42  ;;  %v2151_v46 = vld [vmem:[%s5181_s9 + $0x170] sm:$0xff]  ;;  %v2152_v47 = vld [vmem:[%s5181_s9 + $0x178] sm:$0xff] }
 0x925   : > { %v3587_v48 = vpack.c.bf16 %v2152_v47, %v2151_v46  ;;  %v2173_v46 = vld [vmem:[%s5181_s9 + $0x220] sm:$0xff]  ;;  %v2174_v47 = vld [vmem:[%s5181_s9 + $0x228] sm:$0xff] }
 0x927   : > { %3536 = vmatpush3.bf16.msra.mxu1 %v3535_v54  ;;  %3568 = vmatpush3.bf16.msra.mxu0 %v3567_v55  ;;  %v3621_v54 = vpack.c.bf16 %v2218_v53, %v2217_v51  ;;  %v1438_v55 = vlaneseq  ;;  %v2206_v53 = vld [vmem:[%s5181_s9 + $0x328] sm:$0xff] }
 0x928   : > { %3538 = vmatprep.subr.bf16.mxu1 %v3537_v58  ;;  %3570 = vmatprep.subr.bf16.mxu0 %v3569_v59  ;;  %v4488_v58 = vld [vmem:[%s5180_s8 + $0x8] sm:$0xff] }
 0x929   : > { %v4482_v56 = vshrl.u32 %v1438_v55, 7 }
 0x92b   : > { %3540 = vmatpush3.bf16.msra.mxu1 %v3539_v2  ;;  %3572 = vmatpush3.bf16.msra.mxu0 %v3571_v4  ;;  %v1464_v57 = vsub.s32 6, %v4482_v56  ;;  %v1440_v60 = vsub.s32 0, %v4482_v56  ;;  %v1448_v61 = vsub.s32 2, %v4482_v56  ;;  %v1444_v63 = vsub.s32 1, %v4482_v56 }
 0x92c   : > { %3542 = vmatprep.subr.bf16.mxu1 %v3541_v9  ;;  %3574 = vmatprep.subr.bf16.mxu0 %v3573_v10  ;;  %v1452_v0 = vsub.s32 3, %v4482_v56  ;;  %v2169_v10 = vld [vmem:[%s5181_s9 + $0x200] sm:$0xff] }
 0x92d   : > { %v4493_v59 = vrot.slane %v4488_v58, %v1464_v57  ;;  %v1441_v1 = vrot.slane %v4500_v62, %v1440_v60  ;;  %v1449_v2 = vrot.slane %v4500_v62, %v1448_v61  ;;  %v1445_v4 = vrot.slane %v4500_v62, %v1444_v63 }
 0x92e   : > { %v1453_v5 = vrot.slane %v4500_v62, %v1452_v0  ;;  %v3591_v28 = vpack.c.bf16 %v2170_v11, %v2169_v10  ;;  %v1473_v11 = vrot.slane %v4488_v58, %v1440_v60 }
 0x92f   : > { %3544 = vmatpush3.bf16.msra.mxu1 %v3543_v17  ;;  %3576 = vmatpush3.bf16.msra.mxu0 %v3575_v18  ;;  %v2202_v17 = vld [vmem:[%s5181_s9 + $0x308] sm:$0xff]  ;;  %v2187_v18 = vld [vmem:[%s5181_s9 + $0x290] sm:$0xff] }
 0x930   : > { %3546 = vmatprep.subr.bf16.mxu1 %v3545_v3  ;;  %3578 = vmatprep.subr.bf16.mxu0 %v3577_v21  ;;  %v1460_v3 = vsub.s32 5, %v4482_v56  ;;  %v1468_v21 = vsub.s32 7, %v4482_v56  ;;  %v3593_v6 = vpack.c.bf16 %v2188_v22, %v2187_v18  ;;  %v2208_v18 = vld [vmem:[%s5181_s9 + $0x338] sm:$0xff]  ;;  %v2226_v22 = vld [vmem:[%s5181_s9 + $0x3c8] sm:$0xff] }
 0x932   : > { %v1461_v38 = vrot.slane %v4500_v62, %v1460_v3  ;;  %v1469_v39 = vrot.slane %v4500_v62, %v1468_v21 }
 0x933   : > { %3548 = vmatpush3.bf16.msra.mxu1 %v3547_v29  ;;  %3580 = vmatpush3.bf16.msra.mxu0 %v3579_v30  ;;  %v3623_v29 = vpack.c.bf16 %v2202_v17, %v2201_v16  ;;  %v2171_v30 = vld [vmem:[%s5181_s9 + $0x210] sm:$0xff]  ;;  %v1481_v16 = vrot.slane %v4488_v58, %v1448_v61  ;;  %v2225_v61 = vld [vmem:[%s5181_s9 + $0x3c0] sm:$0xff] }
 0x934   : > { %3550 = vmatprep.subr.bf16.mxu1 %v3549_v32  ;;  %3582 = vmatprep.subr.bf16.mxu0 %v3581_v33 }
 0x937   : > { %3552 = vmatpush3.bf16.msra.mxu1 %v3551_v36  ;;  %3584 = vmatpush3.bf16.msra.mxu0 %v3583_v37  ;;  %v2204_v36 = vld [vmem:[%s5181_s9 + $0x318] sm:$0xff]  ;;  %v2189_v37 = vld [vmem:[%s5181_s9 + $0x2a0] sm:$0xff] }
 0x938   : > { %3554 = vmatprep.subr.bf16.mxu1 %v3553_v40  ;;  %3586 = vmatprep.subr.bf16.mxu0 %v3585_v44  ;;  %v2221_v40 = vld [vmem:[%s5181_s9 + $0x3a0] sm:$0xff]  ;;  %v3595_v44 = vpack.c.bf16 %v2172_v31, %v2171_v30  ;;  %v3597_v50 = vpack.c.bf16 %v2190_v8, %v2189_v37  ;;  %v2178_v30 = vld [vmem:[%s5181_s9 + $0x248] sm:$0xff]  ;;  %v2195_v37 = vld [vmem:[%s5181_s9 + $0x2d0] sm:$0xff] }
 0x939   : > { %v3629_v51 = vpack.c.bf16 %v2222_v41, %v2221_v40  ;;  %v2228_v8 = vld [vmem:[%s5181_s9 + $0x3d8] sm:$0xff]  ;;  %v1456_v40 = vsub.s32 4, %v4482_v56  ;;  %v2329_v56 = vld [vmem:[%s5181_s9 + $0x700] sm:$0xff] }
 0x93b   : > { %3556 = vmatpush3.bf16.msra.mxu1 %v3555_v45  ;;  %3588 = vmatpush3.bf16.msra.mxu0 %v3587_v48  ;;  %v3627_v45 = vpack.c.bf16 %v2204_v36, %v2203_v35  ;;  %v2209_v35 = vld [vmem:[%s5181_s9 + $0x340] sm:$0xff]  ;;  %v2210_v36 = vld [vmem:[%s5181_s9 + $0x348] sm:$0xff] }
 0x93c   : > { %3590 = vmatprep.subr.bf16.mxu1 %v3589_v52  ;;  %3622 = vmatprep.subr.bf16.mxu0 %v3621_v54  ;;  %v2205_v52 = vld [vmem:[%s5181_s9 + $0x320] sm:$0xff]  ;;  %v2191_v54 = vld [vmem:[%s5181_s9 + $0x2b0] sm:$0xff] }
 0x9d9   : > { %v1587_v7 = vpop.f32.mrb[12].mxu1  ;;  %v1658_v9 = vpop.f32.mrb[8].mxu0 }
 0x9da   : > { %v1588_v12 = vadd.f32 %v1587_v7, %v1441_v1  ;;  %v1659_v13 = vadd.f32 %v1658_v9, %v1449_v2  ;;  %v1589_v14 = vpop.f32.mrb[13].mxu1  ;;  %v1660_v15 = vpop.f32.mrb[9].mxu0  ;;  %v2192_v2 = vld [vmem:[%s5181_s9 + $0x2b8] sm:$0xff]  ;;  %v3599_v7 = vpack.c.bf16 %v2174_v47, %v2173_v46  ;;  %v2211_v47 = vld [vmem:[%s5181_s9 + $0x350] sm:$0xff] }
 0x9db   : > { %v1590_v19 = vadd.f32 %v1589_v14, %v1445_v4  ;;  %v1661_v20 = vadd.f32 %v1660_v15, %v1453_v5  ;;  %v2223_v4 = vld [vmem:[%s5181_s9 + $0x3b0] sm:$0xff]  ;;  %v2224_v5 = vld [vmem:[%s5181_s9 + $0x3b8] sm:$0xff]  ;;  %v3601_v60 = vpack.c.bf16 %v2192_v2, %v2191_v54  ;;  %v2229_v54 = vld [vmem:[%s5181_s9 + $0x3e0] sm:$0xff] }
 0x9dc   : > { %v2089_v32 = vmax.f32 %v1588_v12, 0.0  ;;  %v2091_v33 = vmax.f32 %v1659_v13, 0.0  ;;  %v3631_v12 = vpack.c.bf16 %v2206_v53, %v2205_v52  ;;  %v2175_v13 = vld [vmem:[%s5181_s9 + $0x230] sm:$0xff]  ;;  %v2176_v14 = vld [vmem:[%s5181_s9 + $0x238] sm:$0xff]  ;;  %v3633_v17 = vpack.c.bf16 %v2224_v5, %v2223_v4  ;;  %v2197_v52 = vld [vmem:[%s5181_s9 + $0x2e0] sm:$0xff] }
 0x9dd   : > { %v2090_v26 = vmax.f32 %v1590_v19, 0.0  ;;  %v2092_v27 = vmax.f32 %v1661_v20, 0.0  ;;  %v2207_v15 = vld [vmem:[%s5181_s9 + $0x330] sm:$0xff]  ;;  %v2193_v19 = vld [vmem:[%s5181_s9 + $0x2c0] sm:$0xff]  ;;  %v2194_v20 = vld [vmem:[%s5181_s9 + $0x2c8] sm:$0xff] }
 0x9de   : > { %v2180_v46 = vld [vmem:[%s5181_s9 + $0x258] sm:$0xff]  ;;  %v2198_v53 = vld [vmem:[%s5181_s9 + $0x2e8] sm:$0xff] }
 0x9df   : > { %2432 = vmatprep.mubr.f32.mxu1 %v2090_v26  ;;  %2502 = vmatprep.mubr.f32.mxu0 %v2092_v27  ;;  %v3603_v26 = vpack.c.bf16 %v2176_v14, %v2175_v13  ;;  %v3635_v27 = vpack.c.bf16 %v2208_v18, %v2207_v15  ;;  %v2231_v18 = vld [vmem:[%s5181_s9 + $0x3f0] sm:$0xff] }
 0x9e0   : > { %2433 = vmatmul.mubr.f32.vlgmr.msra.gmra.mrb[20].mxu1 %v2089_v32  ;;  %2503 = vmatmul.mubr.f32.vlgmr.msra.gmra.mrb[16].mxu0 %v2091_v33 }
 0x9e1   : > { %v4572_v42 = vpop.f32.mrb[14].mxu1  ;;  %v4574_v43 = vpop.f32.mrb[10].mxu0  ;;  %3592 = vmatpush3.bf16.msra.mxu1 %v3591_v28  ;;  %3624 = vmatpush3.bf16.msra.mxu0 %v3623_v29  ;;  %v3605_v28 = vpack.c.bf16 %v2194_v20, %v2193_v19  ;;  %v2177_v29 = vld [vmem:[%s5181_s9 + $0x240] sm:$0xff]  ;;  %v2232_v19 = vld [vmem:[%s5181_s9 + $0x3f8] sm:$0xff]  ;;  %v1457_v20 = vrot.slane %v4500_v62, %v1456_v40 }
 0x9e2   : > { %v1731_v48 = vpop.f32.mrb[15].mxu1  ;;  %v1802_v49 = vpop.f32.mrb[11].mxu0  ;;  %3594 = vmatprep.subr.bf16.mxu1 %v3593_v6  ;;  %3626 = vmatprep.subr.bf16.mxu0 %v3625_v34  ;;  %v3637_v34 = vpack.c.bf16 %v2226_v22, %v2225_v61  ;;  %v3607_v41 = vpack.c.bf16 %v2178_v30, %v2177_v29  ;;  %v3649_v29 = vpack.c.bf16 %v2232_v19, %v2231_v18  ;;  %v2216_v30 = vld [vmem:[%s5181_s9 + $0x378] sm:$0xff]  ;;  %v2237_v18 = vld [vmem:[%s5181_s9 + $0x420] sm:$0xff]  ;;  %v2238_v19 = vld [vmem:[%s5181_s9 + $0x428] sm:$0xff] }
 0x9e3   : > { %v1732_v55 = vadd.f32 %v1731_v48, %v1461_v38  ;;  %v1803_v1 = vadd.f32 %v1802_v49, %v1469_v39  ;;  %v2196_v38 = vld [vmem:[%s5181_s9 + $0x2d8] sm:$0xff]  ;;  %v2227_v39 = vld [vmem:[%s5181_s9 + $0x3d0] sm:$0xff]  ;;  %v1489_v48 = vrot.slane %v4488_v58, %v1456_v40  ;;  %v1730_v40 = vadd.f32 %v4572_v42, %v1457_v20  ;;  %v2266_v42 = vld [vmem:[%s5181_s9 + $0x508] sm:$0xff] }
 0x9e4   : > { %v3609_v49 = vpack.c.bf16 %v2196_v38, %v2195_v37  ;;  %v1485_v37 = vrot.slane %v4488_v58, %v1452_v0  ;;  %v2234_v0 = vld [vmem:[%s5181_s9 + $0x408] sm:$0xff]  ;;  %v2269_v20 = vld [vmem:[%s5181_s9 + $0x520] sm:$0xff] }
 0x9e5   : > { %v2094_v9 = vmax.f32 %v1732_v55, 0.0  ;;  %v2096_v10 = vmax.f32 %v1803_v1, 0.0  ;;  %3596 = vmatpush3.bf16.msra.mxu1 %v3595_v44  ;;  %3628 = vmatpush3.bf16.msra.mxu0 %v3627_v45  ;;  %v3639_v44 = vpack.c.bf16 %v2210_v36, %v2209_v35  ;;  %v2179_v45 = vld [vmem:[%s5181_s9 + $0x250] sm:$0xff]  ;;  %v2230_v55 = vld [vmem:[%s5181_s9 + $0x3e8] sm:$0xff] }
 0x9e6   : > { %3598 = vmatprep.subr.bf16.mxu1 %v3597_v50  ;;  %3630 = vmatprep.subr.bf16.mxu0 %v3629_v51  ;;  %v3641_v50 = vpack.c.bf16 %v2228_v8, %v2227_v39  ;;  %v2212_v51 = vld [vmem:[%s5181_s9 + $0x358] sm:$0xff]  ;;  %v3611_v4 = vpack.c.bf16 %v2180_v46, %v2179_v45  ;;  %v3645_v15 = vpack.c.bf16 %v2230_v55, %v2229_v54  ;;  %v2250_v35 = vld [vmem:[%s5181_s9 + $0x488] sm:$0xff]  ;;  %v2265_v46 = vld [vmem:[%s5181_s9 + $0x500] sm:$0xff] }
 0x9e7   : > { %2572 = vmatprep.mubr.f32.mxu1 %v2094_v9  ;;  %2642 = vmatprep.mubr.f32.mxu0 %v2096_v10  ;;  %v3643_v5 = vpack.c.bf16 %v2212_v51, %v2211_v47  ;;  %v2181_v9 = vld [vmem:[%s5181_s9 + $0x260] sm:$0xff]  ;;  %v2182_v10 = vld [vmem:[%s5181_s9 + $0x268] sm:$0xff]  ;;  %v2093_v51 = vmax.f32 %v1730_v40, 0.0  ;;  %v2236_v54 = vld [vmem:[%s5181_s9 + $0x418] sm:$0xff] }
 0x9e8   : > { %v3615_v61 = vpack.c.bf16 %v2182_v10, %v2181_v9  ;;  %v2282_v36 = vld [vmem:[%s5181_s9 + $0x588] sm:$0xff]  ;;  %v2267_v55 = vld [vmem:[%s5181_s9 + $0x510] sm:$0xff] }
 0x9e9   : > { %v1871_v23 = vpop.f32.mrb[16].mxu1  ;;  %v1942_v24 = vpop.f32.mrb[12].mxu0  ;;  %3600 = vmatpush3.bf16.msra.mxu1 %v3599_v7  ;;  %3632 = vmatpush3.bf16.msra.mxu0 %v3631_v12  ;;  %v3613_v7 = vpack.c.bf16 %v2198_v53, %v2197_v52  ;;  %v2235_v53 = vld [vmem:[%s5181_s9 + $0x410] sm:$0xff]  ;;  %v2254_v9 = vld [vmem:[%s5181_s9 + $0x4a8] sm:$0xff] }
 0x9ea   : > { %v4636_v31 = vadd.f32 %v1871_v23, %v1473_v11  ;;  %v4638_v32 = vadd.f32 %v1942_v24, %v1481_v16  ;;  %v4640_v33 = vpop.f32.mrb[17].mxu1  ;;  %v4642_v6 = vpop.f32.mrb[13].mxu0  ;;  %3602 = vmatprep.subr.bf16.mxu1 %v3601_v60  ;;  %3634 = vmatprep.subr.bf16.mxu0 %v3633_v17  ;;  %v2213_v16 = vld [vmem:[%s5181_s9 + $0x360] sm:$0xff]  ;;  %v2214_v60 = vld [vmem:[%s5181_s9 + $0x368] sm:$0xff]  ;;  %v2200_v17 = vld [vmem:[%s5181_s9 + $0x2f8] sm:$0xff] }
 0x9eb   : > { %v3647_v22 = vpack.c.bf16 %v2214_v60, %v2213_v16  ;;  %v2183_v23 = vld [vmem:[%s5181_s9 + $0x270] sm:$0xff]  ;;  %v2184_v24 = vld [vmem:[%s5181_s9 + $0x278] sm:$0xff]  ;;  %v1945_v47 = vadd.f32 %v4642_v6, %v1485_v37  ;;  %v3687_v6 = vpack.c.bf16 %v2266_v42, %v2265_v46  ;;  %v2286_v16 = vld [vmem:[%s5181_s9 + $0x5a8] sm:$0xff]  ;;  %v3659_v60 = vpack.c.bf16 %v2236_v54, %v2235_v53 }
 0x9ec   : > { %v3619_v38 = vpack.c.bf16 %v2184_v24, %v2183_v23  ;;  %v2255_v23 = vld [vmem:[%s5181_s9 + $0x4b0] sm:$0xff]  ;;  %v2256_v24 = vld [vmem:[%s5181_s9 + $0x4b8] sm:$0xff]  ;;  %v2257_v37 = vld [vmem:[%s5181_s9 + $0x4c0] sm:$0xff] }
 0x9ed   : > { %3604 = vmatpush3.bf16.msra.mxu1 %v3603_v26  ;;  %3636 = vmatpush3.bf16.msra.mxu0 %v3635_v27  ;;  %v2215_v26 = vld [vmem:[%s5181_s9 + $0x370] sm:$0xff]  ;;  %v1465_v27 = vrot.slane %v4500_v62, %v1464_v57  ;;  %v1477_v57 = vrot.slane %v4488_v58, %v1444_v63  ;;  %v2281_v62 = vld [vmem:[%s5181_s9 + $0x580] sm:$0xff]  ;;  %v2100_v10 = vmax.f32 %v1945_v47, 0.0  ;;  %v2274_v42 = vld [vmem:[%s5181_s9 + $0x548] sm:$0xff] }
 0x9ee   : > { %3606 = vmatprep.subr.bf16.mxu1 %v3605_v28  ;;  %3638 = vmatprep.subr.bf16.mxu0 %v3637_v34  ;;  %v2249_v34 = vld [vmem:[%s5181_s9 + $0x480] sm:$0xff]  ;;  %v3651_v39 = vpack.c.bf16 %v2216_v30, %v2215_v26  ;;  %v2287_v26 = vld [vmem:[%s5181_s9 + $0x5b0] sm:$0xff]  ;;  %v3665_v30 = vpack.c.bf16 %v2256_v24, %v2255_v23  ;;  %v2260_v47 = vld [vmem:[%s5181_s9 + $0x4d8] sm:$0xff] }
 0x9ef   : > { %v3653_v8 = vpack.c.bf16 %v2250_v35, %v2249_v34  ;;  %v1801_v63 = vadd.f32 %v4574_v43, %v1465_v27  ;;  %v1874_v45 = vadd.f32 %v4640_v33, %v1477_v57  ;;  %v2251_v43 = vld [vmem:[%s5181_s9 + $0x490] sm:$0xff]  ;;  %v2288_v27 = vld [vmem:[%s5181_s9 + $0x5b8] sm:$0xff] }
 0x9f0   : > { %v2283_v33 = vld [vmem:[%s5181_s9 + $0x590] sm:$0xff]  ;;  %v2240_v35 = vld [vmem:[%s5181_s9 + $0x438] sm:$0xff] }
 0x9f1   : > { %v2013_v1 = vpop.f32.mrb[18].mxu1  ;;  %v2084_v2 = vpop.f32.mrb[14].mxu0  ;;  %3608 = vmatpush3.bf16.msra.mxu1 %v3607_v41  ;;  %3640 = vmatpush3.bf16.msra.mxu0 %v3639_v44  ;;  %v3685_v41 = vpack.c.bf16 %v2282_v36, %v2281_v62  ;;  %v2233_v44 = vld [vmem:[%s5181_s9 + $0x400] sm:$0xff]  ;;  %v2095_v52 = vmax.f32 %v1801_v63, 0.0  ;;  %v2239_v34 = vld [vmem:[%s5181_s9 + $0x430] sm:$0xff]  ;;  %v3697_v62 = vpack.c.bf16 %v2288_v27, %v2287_v26  ;;  %v2272_v36 = vld [vmem:[%s5181_s9 + $0x538] sm:$0xff] }
 0x9f2   : > { %v4694_v11 = vadd.f32 %v2013_v1, %v1489_v48  ;;  %v4697_v12 = vadd.f32 %v2084_v2, %v4493_v59  ;;  %v4699_v13 = vpop.f32.mrb[19].mxu1  ;;  %v4701_v14 = vpop.f32.mrb[15].mxu0  ;;  %3610 = vmatprep.subr.bf16.mxu1 %v3609_v49  ;;  %3642 = vmatprep.subr.bf16.mxu0 %v3641_v50  ;;  %v2199_v59 = vld [vmem:[%s5181_s9 + $0x2f0] sm:$0xff]  ;;  %v2252_v48 = vld [vmem:[%s5181_s9 + $0x498] sm:$0xff]  ;;  %v3655_v50 = vpack.c.bf16 %v2234_v0, %v2233_v44  ;;  %v2098_v1 = vmax.f32 %v1874_v45, 0.0  ;;  %v2241_v44 = vld [vmem:[%s5181_s9 + $0x440] sm:$0xff] }
 0x9f3   : > { %v3617_v28 = vpack.c.bf16 %v2200_v17, %v2199_v59  ;;  %v2284_v49 = vld [vmem:[%s5181_s9 + $0x598] sm:$0xff]  ;;  %v3657_v2 = vpack.c.bf16 %v2252_v48, %v2251_v43  ;;  %v2271_v57 = vld [vmem:[%s5181_s9 + $0x530] sm:$0xff]  ;;  %v3667_v40 = vpack.c.bf16 %v2240_v35, %v2239_v34  ;;  %v2242_v0 = vld [vmem:[%s5181_s9 + $0x448] sm:$0xff] }
 0x9f4   : > { %v3699_v63 = vpack.c.bf16 %v2272_v36, %v2271_v57  ;;  %v2273_v45 = vld [vmem:[%s5181_s9 + $0x540] sm:$0xff]  ;;  %v2259_v43 = vld [vmem:[%s5181_s9 + $0x4d0] sm:$0xff]  ;;  %v2248_v27 = vld [vmem:[%s5181_s9 + $0x478] sm:$0xff]  ;;  %v1493_v57 = vrot.slane %v4488_v58, %v1460_v3 }
 0x9f5   : > { %3612 = vmatpush3.bf16.msra.mxu1 %v3611_v4  ;;  %3644 = vmatpush3.bf16.msra.mxu0 %v3643_v5  ;;  %v3689_v4 = vpack.c.bf16 %v2284_v49, %v2283_v33  ;;  %v2268_v5 = vld [vmem:[%s5181_s9 + $0x518] sm:$0xff]  ;;  %v2291_v48 = vld [vmem:[%s5181_s9 + $0x5d0] sm:$0xff]  ;;  %v3671_v49 = vpack.c.bf16 %v2242_v0, %v2241_v44  ;;  %v2313_v34 = vld [vmem:[%s5181_s9 + $0x680] sm:$0xff] }
 0x9f6   : > { %3614 = vmatprep.subr.bf16.mxu1 %v3613_v7  ;;  %3646 = vmatprep.subr.bf16.mxu0 %v3645_v15  ;;  %v2253_v7 = vld [vmem:[%s5181_s9 + $0x4a0] sm:$0xff]  ;;  %v3691_v59 = vpack.c.bf16 %v2268_v5, %v2267_v55  ;;  %v2292_v33 = vld [vmem:[%s5181_s9 + $0x5d8] sm:$0xff]  ;;  %v2275_v53 = vld [vmem:[%s5181_s9 + $0x550] sm:$0xff] }
 0x9f7   : > { %v2285_v15 = vld [vmem:[%s5181_s9 + $0x5a0] sm:$0xff]  ;;  %v3661_v17 = vpack.c.bf16 %v2254_v9, %v2253_v7  ;;  %v3705_v54 = vpack.c.bf16 %v2292_v33, %v2291_v48  ;;  %v2276_v55 = vld [vmem:[%s5181_s9 + $0x558] sm:$0xff]  ;;  %v2294_v5 = vld [vmem:[%s5181_s9 + $0x5e8] sm:$0xff]  ;;  %v2099_v33 = vmax.f32 %v4638_v32, 0.0 }
 0x9f8   : > { %v3707_v9 = vpack.c.bf16 %v2276_v55, %v2275_v53  ;;  %v2247_v26 = vld [vmem:[%s5181_s9 + $0x470] sm:$0xff]  ;;  %v2314_v35 = vld [vmem:[%s5181_s9 + $0x688] sm:$0xff]  ;;  %v2297_v3 = vld [vmem:[%s5181_s9 + $0x600] sm:$0xff] }
 0x9f9   : > { %3616 = vmatpush3.bf16.msra.mxu1 %v3615_v61  ;;  %3648 = vmatpush3.bf16.msra.mxu0 %v3647_v22  ;;  %v3693_v61 = vpack.c.bf16 %v2286_v16, %v2285_v15  ;;  %v2270_v22 = vld [vmem:[%s5181_s9 + $0x528] sm:$0xff]  ;;  %v2245_v15 = vld [vmem:[%s5181_s9 + $0x460] sm:$0xff]  ;;  %v2316_v44 = vld [vmem:[%s5181_s9 + $0x698] sm:$0xff] }
 0x9fa   : > { %3618 = vmatprep.subr.bf16.mxu1 %v3617_v28  ;;  %3650 = vmatprep.subr.bf16.mxu0 %v3649_v29  ;;  %v3663_v28 = vpack.c.bf16 %v2238_v19, %v2237_v18  ;;  %v3695_v29 = vpack.c.bf16 %v2270_v22, %v2269_v20  ;;  %v2246_v16 = vld [vmem:[%s5181_s9 + $0x468] sm:$0xff]  ;;  %v2263_v18 = vld [vmem:[%s5181_s9 + $0x4f0] sm:$0xff]  ;;  %v2264_v19 = vld [vmem:[%s5181_s9 + $0x4f8] sm:$0xff] }
 0x9fb   : > { %v2295_v20 = vld [vmem:[%s5181_s9 + $0x5f0] sm:$0xff]  ;;  %v3679_v22 = vpack.c.bf16 %v2246_v16, %v2245_v15  ;;  %v3681_v24 = vpack.c.bf16 %v2264_v19, %v2263_v18  ;;  %v2346_v36 = vld [vmem:[%s5181_s9 + $0x788] sm:$0xff]  ;;  %v2349_v32 = vld [vmem:[%s5181_s9 + $0x7a0] sm:$0xff] }
 0x9fc   : > { %v2331_v48 = vld [vmem:[%s5181_s9 + $0x710] sm:$0xff]  ;;  %v2350_v53 = vld [vmem:[%s5181_s9 + $0x7a8] sm:$0xff]  ;;  %v2320_v16 = vld [vmem:[%s5181_s9 + $0x6b8] sm:$0xff] }
 0x9fd   : > { %3620 = vmatpush3.bf16.msra.mxu1 %v3619_v38  ;;  %3652 = vmatpush3.bf16.msra.mxu0 %v3651_v39  ;;  %v2258_v38 = vld [vmem:[%s5181_s9 + $0x4c8] sm:$0xff]  ;;  %v2289_v39 = vld [vmem:[%s5181_s9 + $0x5c0] sm:$0xff]  ;;  %v2319_v15 = vld [vmem:[%s5181_s9 + $0x6b0] sm:$0xff] }
 0x9fe   : > { %3654 = vmatprep.subr.bf16.mxu1 %v3653_v8  ;;  %3686 = vmatprep.subr.bf16.mxu0 %v3685_v41  ;;  %v2290_v8 = vld [vmem:[%s5181_s9 + $0x5c8] sm:$0xff]  ;;  %v3669_v41 = vpack.c.bf16 %v2258_v38, %v2257_v37  ;;  %v1501_v37 = vrot.slane %v4488_v58, %v1468_v21  ;;  %v3683_v38 = vpack.c.bf16 %v2248_v27, %v2247_v26  ;;  %v2321_v26 = vld [vmem:[%s5181_s9 + $0x6c0] sm:$0xff] }
 0x9ff   : > { %v3701_v46 = vpack.c.bf16 %v2290_v8, %v2289_v39  ;;  %v3717_v8 = vpack.c.bf16 %v2314_v35, %v2313_v34  ;;  %v2330_v58 = vld [vmem:[%s5181_s9 + $0x708] sm:$0xff]  ;;  %v2016_v21 = vadd.f32 %v4699_v13, %v1493_v57  ;;  %v2348_v13 = vld [vmem:[%s5181_s9 + $0x798] sm:$0xff]  ;;  %v3729_v19 = vpack.c.bf16 %v2320_v16, %v2319_v15  ;;  %v2305_v57 = vld [vmem:[%s5181_s9 + $0x640] sm:$0xff] }
 0xa00   : > { %2573 = vmatmul.mubr.f32.vlgmr.msra.gmra.mrb[22].mxu1 %v2093_v51  ;;  %2643 = vmatmul.mubr.f32.vlgmr.msra.gmra.mrb[18].mxu0 %v2095_v52  ;;  %v3673_v51 = vpack.c.bf16 %v2260_v47, %v2259_v43  ;;  %v2243_v52 = vld [vmem:[%s5181_s9 + $0x450] sm:$0xff]  ;;  %v2087_v0 = vadd.f32 %v4701_v14, %v1501_v37  ;;  %v3751_v43 = vpack.c.bf16 %v2330_v58, %v2329_v56  ;;  %v2300_v14 = vld [vmem:[%s5181_s9 + $0x618] sm:$0xff]  ;;  %v2322_v27 = vld [vmem:[%s5181_s9 + $0x6c8] sm:$0xff]  ;;  %v2101_v16 = vmax.f32 %v4694_v11, 0.0 }
 0xa01   : > { %3656 = vmatpush3.bf16.msra.mxu1 %v3655_v50  ;;  %2712 = vmatprep.mubr.f32.mxu1 %v2098_v1  ;;  %v3703_v50 = vpack.c.bf16 %v2274_v42, %v2273_v45  ;;  %v2261_v1 = vld [vmem:[%s5181_s9 + $0x4e0] sm:$0xff]  ;;  %v2097_v42 = vmax.f32 %v4636_v31, 0.0  ;;  %v2299_v47 = vld [vmem:[%s5181_s9 + $0x610] sm:$0xff]  ;;  %v2332_v31 = vld [vmem:[%s5181_s9 + $0x718] sm:$0xff]  ;;  %v3733_v35 = vpack.c.bf16 %v2322_v27, %v2321_v26 }
 0xa02   : > { %3688 = vmatpush3.bf16.msra.mxu0 %v3687_v6  ;;  %2782 = vmatprep.mubr.f32.mxu0 %v2100_v10  ;;  %v2244_v6 = vld [vmem:[%s5181_s9 + $0x458] sm:$0xff]  ;;  %v3723_v55 = vpack.c.bf16 %v2300_v14, %v2299_v47 }
 0xa03   : > { %3658 = vmatprep.subr.bf16.mxu1 %v3657_v2  ;;  %3690 = vmatprep.subr.bf16.mxu0 %v3689_v4  ;;  %v2262_v2 = vld [vmem:[%s5181_s9 + $0x4e8] sm:$0xff]  ;;  %v2293_v4 = vld [vmem:[%s5181_s9 + $0x5e0] sm:$0xff]  ;;  %v3675_v7 = vpack.c.bf16 %v2244_v6, %v2243_v52  ;;  %v2102_v52 = vmax.f32 %v2016_v21, 0.0  ;;  %v2307_v21 = vld [vmem:[%s5181_s9 + $0x650] sm:$0xff] }
 0xa04   : > { %v3677_v10 = vpack.c.bf16 %v2262_v2, %v2261_v1  ;;  %v3755_v1 = vpack.c.bf16 %v2332_v31, %v2331_v48  ;;  %v2341_v31 = vld [vmem:[%s5181_s9 + $0x760] sm:$0xff] }
 0xa05   : > { %3660 = vmatpush3.bf16.msra.mxu1 %v3659_v60  ;;  %v2277_v60 = vld [vmem:[%s5181_s9 + $0x560] sm:$0xff] }
 0xa06   : > { %3692 = vmatpush3.bf16.msra.mxu0 %v3691_v59  ;;  %3662 = vmatprep.subr.bf16.mxu1 %v3661_v17  ;;  %v3709_v59 = vpack.c.bf16 %v2294_v5, %v2293_v4  ;;  %v2278_v17 = vld [vmem:[%s5181_s9 + $0x568] sm:$0xff]  ;;  %v2301_v4 = vld [vmem:[%s5181_s9 + $0x620] sm:$0xff] }
 0xa07   : > { %3694 = vmatprep.subr.bf16.mxu0 %v3693_v61  ;;  %v2296_v61 = vld [vmem:[%s5181_s9 + $0x5f8] sm:$0xff]  ;;  %v3711_v23 = vpack.c.bf16 %v2278_v17, %v2277_v60  ;;  %v2302_v5 = vld [vmem:[%s5181_s9 + $0x628] sm:$0xff]  ;;  %v2351_v60 = vld [vmem:[%s5181_s9 + $0x7b0] sm:$0xff] }
 0xa08   : > { %v3727_v17 = vpack.c.bf16 %v2302_v5, %v2301_v4  ;;  %v2312_v4 = vld [vmem:[%s5181_s9 + $0x678] sm:$0xff] }
 0xa09   : > { %3664 = vmatpush3.bf16.msra.mxu1 %v3663_v28  ;;  %v2279_v28 = vld [vmem:[%s5181_s9 + $0x570] sm:$0xff] }
 0xa0a   : > { %3696 = vmatpush3.bf16.msra.mxu0 %v3695_v29  ;;  %3666 = vmatprep.subr.bf16.mxu1 %v3665_v30  ;;  %v3713_v29 = vpack.c.bf16 %v2296_v61, %v2295_v20  ;;  %v2280_v30 = vld [vmem:[%s5181_s9 + $0x578] sm:$0xff]  ;;  %v2303_v20 = vld [vmem:[%s5181_s9 + $0x630] sm:$0xff] }
 0xa0b   : > { %3698 = vmatprep.subr.bf16.mxu0 %v3697_v62  ;;  %v2345_v62 = vld [vmem:[%s5181_s9 + $0x780] sm:$0xff]  ;;  %v3715_v39 = vpack.c.bf16 %v2280_v30, %v2279_v28  ;;  %v2304_v61 = vld [vmem:[%s5181_s9 + $0x638] sm:$0xff] }
 0xa0c   : > { %v2353_v28 = vld [vmem:[%s5181_s9 + $0x7c0] sm:$0xff]  ;;  %v3731_v30 = vpack.c.bf16 %v2304_v61, %v2303_v20 }
 0xa0d   : > { %3668 = vmatpush3.bf16.msra.mxu1 %v3667_v40  ;;  %v2298_v40 = vld [vmem:[%s5181_s9 + $0x608] sm:$0xff] }
 0xa0e   : > { %3700 = vmatpush3.bf16.msra.mxu0 %v3699_v63  ;;  %3670 = vmatprep.subr.bf16.mxu1 %v3669_v41  ;;  %v3749_v63 = vpack.c.bf16 %v2346_v36, %v2345_v62  ;;  %v2315_v41 = vld [vmem:[%s5181_s9 + $0x690] sm:$0xff]  ;;  %v3719_v45 = vpack.c.bf16 %v2298_v40, %v2297_v3  ;;  %v2306_v62 = vld [vmem:[%s5181_s9 + $0x648] sm:$0xff]  ;;  %v2337_v36 = vld [vmem:[%s5181_s9 + $0x740] sm:$0xff] }
 0xa0f   : > { %3702 = vmatprep.subr.bf16.mxu0 %v3701_v46  ;;  %v2347_v46 = vld [vmem:[%s5181_s9 + $0x790] sm:$0xff]  ;;  %v2356_v40 = vld [vmem:[%s5181_s9 + $0x7d8] sm:$0xff] }
 0xa10   : > { %v3753_v6 = vpack.c.bf16 %v2348_v13, %v2347_v46  ;;  %v2355_v3 = vld [vmem:[%s5181_s9 + $0x7d0] sm:$0xff]  ;;  %v2325_v46 = vld [vmem:[%s5181_s9 + $0x6e0] sm:$0xff]  ;;  %v2326_v13 = vld [vmem:[%s5181_s9 + $0x6e8] sm:$0xff] }
 0xa11   : > { %3672 = vmatpush3.bf16.msra.mxu1 %v3671_v49  ;;  %v3721_v49 = vpack.c.bf16 %v2316_v44, %v2315_v41  ;;  %v2308_v41 = vld [vmem:[%s5181_s9 + $0x658] sm:$0xff]  ;;  %v2339_v44 = vld [vmem:[%s5181_s9 + $0x750] sm:$0xff]  ;;  %v3741_v48 = vpack.c.bf16 %v2326_v13, %v2325_v46 }
 0xa12   : > { %3704 = vmatpush3.bf16.msra.mxu0 %v3703_v50  ;;  %3674 = vmatprep.subr.bf16.mxu1 %v3673_v51  ;;  %v2317_v50 = vld [vmem:[%s5181_s9 + $0x6a0] sm:$0xff]  ;;  %v2318_v51 = vld [vmem:[%s5181_s9 + $0x6a8] sm:$0xff]  ;;  %v3739_v47 = vpack.c.bf16 %v2308_v41, %v2307_v21 }
 0xa13   : > { %3706 = vmatprep.subr.bf16.mxu0 %v3705_v54  ;;  %v2104_v54 = vmax.f32 %v2087_v0, 0.0  ;;  %v3725_v2 = vpack.c.bf16 %v2318_v51, %v2317_v50  ;;  %v3769_v0 = vpack.c.bf16 %v2356_v40, %v2355_v3  ;;  %v2342_v51 = vld [vmem:[%s5181_s9 + $0x768] sm:$0xff] }
 0xa15   : > { %3676 = vmatpush3.bf16.msra.mxu1 %v3675_v7  ;;  %v2333_v7 = vld [vmem:[%s5181_s9 + $0x720] sm:$0xff] }
 0xa16   : > { %3708 = vmatpush3.bf16.msra.mxu0 %v3707_v9  ;;  %3678 = vmatprep.subr.bf16.mxu1 %v3677_v10  ;;  %v3757_v9 = vpack.c.bf16 %v2350_v53, %v2349_v32  ;;  %v2334_v10 = vld [vmem:[%s5181_s9 + $0x728] sm:$0xff]  ;;  %v2359_v32 = vld [vmem:[%s5181_s9 + $0x7f0] sm:$0xff]  ;;  %v2360_v53 = vld [vmem:[%s5181_s9 + $0x7f8] sm:$0xff] }
 0xa17   : > { %3710 = vmatprep.subr.bf16.mxu0 %v3709_v59  ;;  %v2352_v59 = vld [vmem:[%s5181_s9 + $0x7b8] sm:$0xff]  ;;  %v3759_v18 = vpack.c.bf16 %v2334_v10, %v2333_v7  ;;  %v3777_v5 = vpack.c.bf16 %v2360_v53, %v2359_v32  ;;  %v2343_v7 = vld [vmem:[%s5181_s9 + $0x770] sm:$0xff] }
 0xa19   : > { %3680 = vmatpush3.bf16.msra.mxu1 %v3679_v22  ;;  %v2335_v22 = vld [vmem:[%s5181_s9 + $0x730] sm:$0xff] }
 0xa1a   : > { %3712 = vmatpush3.bf16.msra.mxu0 %v3711_v23  ;;  %3682 = vmatprep.subr.bf16.mxu1 %v3681_v24  ;;  %v3761_v23 = vpack.c.bf16 %v2352_v59, %v2351_v60  ;;  %v2336_v24 = vld [vmem:[%s5181_s9 + $0x738] sm:$0xff]  ;;  %v2103_v60 = vmax.f32 %v4697_v12, 0.0 }
 0xa1b   : > { %3714 = vmatprep.subr.bf16.mxu0 %v3713_v29  ;;  %v2354_v29 = vld [vmem:[%s5181_s9 + $0x7c8] sm:$0xff]  ;;  %v3763_v34 = vpack.c.bf16 %v2336_v24, %v2335_v22 }
 0xa1c   : > { %v3765_v37 = vpack.c.bf16 %v2354_v29, %v2353_v28 }
 0xa1d   : > { %3684 = vmatpush3.bf16.msra.mxu1 %v3683_v38  ;;  %v2338_v38 = vld [vmem:[%s5181_s9 + $0x748] sm:$0xff] }
 0xa1e   : > { %3716 = vmatpush3.bf16.msra.mxu0 %v3715_v39  ;;  %3718 = vmatprep.subr.bf16.mxu1 %v3717_v8  ;;  %v2323_v39 = vld [vmem:[%s5181_s9 + $0x6d0] sm:$0xff]  ;;  %v2324_v8 = vld [vmem:[%s5181_s9 + $0x6d8] sm:$0xff]  ;;  %v3767_v56 = vpack.c.bf16 %v2338_v38, %v2337_v36 }
 0xa1f   : > { %3750 = vmatprep.subr.bf16.mxu0 %v3749_v63  ;;  %v3735_v63 = vpack.c.bf16 %v2306_v62, %v2305_v57  ;;  %v3737_v58 = vpack.c.bf16 %v2324_v8, %v2323_v39 }
 0xa20   : > { %2713 = vmatmul.mubr.f32.vlgmr.msra.gmra.mrb[24].mxu1 %v2097_v42  ;;  %v2357_v42 = vld [vmem:[%s5181_s9 + $0x7e0] sm:$0xff] }
 0xa21   : > { %2783 = vmatmul.mubr.f32.vlgmr.msra.gmra.mrb[20].mxu0 %v2099_v33  ;;  %3720 = vmatpush3.bf16.msra.mxu1 %v3719_v45  ;;  %v2340_v45 = vld [vmem:[%s5181_s9 + $0x758] sm:$0xff]  ;;  %v2309_v33 = vld [vmem:[%s5181_s9 + $0x660] sm:$0xff] }
 0xa22   : > { %2852 = vmatprep.mubr.f32.mxu1 %v2102_v52  ;;  %3752 = vmatpush3.bf16.msra.mxu0 %v3751_v43  ;;  %v2358_v43 = vld [vmem:[%s5181_s9 + $0x7e8] sm:$0xff]  ;;  %v3771_v14 = vpack.c.bf16 %v2340_v45, %v2339_v44  ;;  %v2327_v52 = vld [vmem:[%s5181_s9 + $0x6f0] sm:$0xff] }
 0xa23   : > { %2922 = vmatprep.mubr.f32.mxu0 %v2104_v54  ;;  %3722 = vmatprep.subr.bf16.mxu1 %v3721_v49  ;;  %v2310_v49 = vld [vmem:[%s5181_s9 + $0x668] sm:$0xff]  ;;  %v3773_v50 = vpack.c.bf16 %v2358_v43, %v2357_v42 }
 0xa24   : > { %3754 = vmatprep.subr.bf16.mxu0 %v3753_v6  ;;  %v2328_v6 = vld [vmem:[%s5181_s9 + $0x6f8] sm:$0xff]  ;;  %v3743_v54 = vpack.c.bf16 %v2310_v49, %v2309_v33 }
 0xa25   : > { %3724 = vmatpush3.bf16.msra.mxu1 %v3723_v55  ;;  %v3775_v55 = vpack.c.bf16 %v2342_v51, %v2341_v31  ;;  %v3075_v31 = vld [vmem:[%s5183_s11] ss:$0 sm:$0xff] }
 0xa26   : > { %3756 = vmatpush3.bf16.msra.mxu0 %v3755_v1  ;;  %3726 = vmatprep.subr.bf16.mxu1 %v3725_v2  ;;  %v3745_v1 = vpack.c.bf16 %v2328_v6, %v2327_v52  ;;  %v2311_v2 = vld [vmem:[%s5181_s9 + $0x670] sm:$0xff] }
 0xa27   : > { %3758 = vmatprep.subr.bf16.mxu0 %v3757_v9  ;;  %v2344_v9 = vld [vmem:[%s5181_s9 + $0x778] sm:$0xff]  ;;  %v3747_v10 = vpack.c.bf16 %v2312_v4, %v2311_v2 }
 0xa28   : > { %v3779_v15 = vpack.c.bf16 %v2344_v9, %v2343_v7  ;;  %v3077_v9 = vld [vmem:[%s5185_s13] ss:$0 sm:$0xff] }
 0xa29   : > { %3728 = vmatpush3.bf16.msra.mxu1 %v3727_v17 }
 0xa2a   : > { %3760 = vmatpush3.bf16.msra.mxu0 %v3759_v18  ;;  %3730 = vmatprep.subr.bf16.mxu1 %v3729_v19  ;;  %v3074_v18 = vld [vmem:[%s5182_s10] ss:$0 sm:$0xff] }
 0xa2b   : > { %3762 = vmatprep.subr.bf16.mxu0 %v3761_v23 }
 0xa2d   : > { %3732 = vmatpush3.bf16.msra.mxu1 %v3731_v30 }
 0xa2e   : > { %3764 = vmatpush3.bf16.msra.mxu0 %v3763_v34  ;;  %3734 = vmatprep.subr.bf16.mxu1 %v3733_v35 }
 0xa2f   : > { %3766 = vmatprep.subr.bf16.mxu0 %v3765_v37 }
 0xa31   : > { %3736 = vmatpush3.bf16.msra.mxu1 %v3735_v63 }
 0xa32   : > { %3768 = vmatpush3.bf16.msra.mxu0 %v3767_v56  ;;  %3738 = vmatprep.subr.bf16.mxu1 %v3737_v58 }
 0xa33   : > { %3770 = vmatprep.subr.bf16.mxu0 %v3769_v0 }
 0xa35   : > { %3740 = vmatpush3.bf16.msra.mxu1 %v3739_v47 }
 0xa36   : > { %3772 = vmatpush3.bf16.msra.mxu0 %v3771_v14  ;;  %3742 = vmatprep.subr.bf16.mxu1 %v3741_v48 }
 0xa37   : > { %3774 = vmatprep.subr.bf16.mxu0 %v3773_v50  ;;  %v3076_v50 = vld [vmem:[%s5184_s12] ss:$0 sm:$0xff] }
 0xa39   : > { %3744 = vmatpush3.bf16.msra.mxu1 %v3743_v54 }
 0xa3a   : > { %3776 = vmatpush3.bf16.msra.mxu0 %v3775_v55  ;;  %3746 = vmatprep.subr.bf16.mxu1 %v3745_v1 }
 0xa3b   : > { %3778 = vmatprep.subr.bf16.mxu0 %v3777_v5 }
 0xa3d   : > { %3748 = vmatpush3.bf16.msra.mxu1 %v3747_v10 }
 0xa3e   : > { %3780 = vmatpush3.bf16.msra.mxu0 %v3779_v15  ;;  %v3078_v15 = vld [vmem:[%s5186_s14] ss:$0 sm:$0xff] }
 0xa40   : > { %2853 = vmatmul.mubr.f32.vlgmr.msra.gmra.mrb[26].mxu1 %v2101_v16 }
 0xa41   : > { %2923 = vmatmul.mubr.f32.vlgmr.msra.gmra.mrb[22].mxu0 %v2103_v60 }
 0xab3   : > { %v3139_v59 = vpop.f32.mrb[20].mxu1  ;;  %v3174_v17 = vpop.f32.mrb[16].mxu0 }
 0xab4   : > { %v3140_v19 = vpop.f32.mrb[21].mxu1  ;;  %v3175_v20 = vpop.f32.mrb[17].mxu0 }
 0xab5   : > { %v3141_v61 = vadd.f32 %v3140_v19, %v3139_v59  ;;  %v3176_v22 = vadd.f32 %v3175_v20, %v3174_v17 }
 0xab7   : > { %v2435_v23 = vadd.f32 %v3141_v61, %v3074_v18 }
 0xab9   : > { %v2505_v24 = vadd.f32 %v3176_v22, %v2435_v23 }
 0xad3   : > { %v3209_v26 = vpop.f32.mrb[22].mxu1  ;;  %v3244_v27 = vpop.f32.mrb[18].mxu0 }
 0xad4   : > { %v3210_v11 = vpop.f32.mrb[23].mxu1  ;;  %v3245_v28 = vpop.f32.mrb[19].mxu0 }
 0xad5   : > { %v3211_v29 = vadd.f32 %v3210_v11, %v3209_v26  ;;  %v3246_v12 = vadd.f32 %v3245_v28, %v3244_v27 }
 0xad7   : > { %v2575_v30 = vadd.f32 %v3211_v29, %v2505_v24 }
 0xad9   : > { %v2645_v34 = vadd.f32 %v3246_v12, %v2575_v30 }
 0xaf3   : > { %v3279_v35 = vpop.f32.mrb[24].mxu1 }
 0xaf4   : > { %v3314_v57 = vpop.f32.mrb[20].mxu0  ;;  %v3280_v62 = vpop.f32.mrb[25].mxu1 }
 0xaf5   : > { %v3281_v36 = vadd.f32 %v3280_v62, %v3279_v35  ;;  %v3315_v37 = vpop.f32.mrb[21].mxu0 }
 0xaf6   : > { %v3316_v38 = vadd.f32 %v3315_v37, %v3314_v57 }
 0xaf7   : > { %v2715_v39 = vadd.f32 %v3281_v36, %v2645_v34 }
 0xaf9   : > { %v2785_v8 = vadd.f32 %v3316_v38, %v2715_v39 }
 0xb13   : > { %v3349_v3 = vpop.f32.mrb[26].mxu1 }
 0xb14   : > { %v3384_v40 = vpop.f32.mrb[22].mxu0  ;;  %v3350_v63 = vpop.f32.mrb[27].mxu1 }
 0xb15   : > { %v3351_v56 = vadd.f32 %v3350_v63, %v3349_v3  ;;  %v3385_v58 = vpop.f32.mrb[23].mxu0 }
 0xb16   : > { %v3386_v21 = vadd.f32 %v3385_v58, %v3384_v40 }
 0xb17   : > { %v2855_v41 = vadd.f32 %v3351_v56, %v2785_v8 }
 0xb19   : > { %v2925_v44 = vadd.f32 %v3386_v21, %v2855_v41 }
 0xb1b   : > { %v2928_v0 = vadd.f32 %v2925_v44, %v4152_v25 }
 0xb1d   : > { %v2931_v45 = vsel %vm502_vm1, %v2928_v0, 0.0 }
 0xb1e   : > { %2932 = vadd.xlane.f32.xlu0 %v2931_v45 }
 0xbab   : > { %v2933_v46 = vpop.xlane.xlu0 %2932 }
 0xbac   : > { %v2934_v13 = vmul.f32 0.03125, %v2933_v46 }
 0xbae   : > { %v2935_v42 = vsub.f32 %v2928_v0, %v2934_v13 }
 0xbb0   : > { %v2936_v43 = vmul.f32 %v2935_v42, %v2935_v42 }
 0xbb2   : > { %v2937_v47 = vsel %vm502_vm1, %v2936_v43, 0.0 }
 0xbb3   : > { %2938 = vadd.xlane.f32.xlu0 %v2937_v47 }
 0xc40   : > { %v2939_v14 = vpop.xlane.xlu0 %2938 }
 0xc41   : > { %v2940_v48 = vmul.f32 0.03125, %v2939_v14 }
 0xc43   : > { %v2941_v33 = vadd.f32 1e-05, %v2940_v48 }
 0xc45   : > { %3824 = vrsqrt.f32 %v2941_v33 }
 0xc4f   : > { %v3825_v49 = vpop.eup %3824 }
 0xc50   : > { %v2943_v25 = vmul.f32 %v3825_v49, %v2935_v42 }
 0xc52   : > { %v2950_v51 = vmul.f32 %v3075_v31, %v2943_v25 }
 0xc54   : > { %v2957_v52 = vadd.f32 %v3076_v50, %v2950_v51 }
 0xc56   : > { %v2960_v6 = vsel %vm502_vm1, %v2957_v52, 0.0 }
 0xc57   : > { %2961 = vadd.xlane.f32.xlu1 %v2960_v6 }
 0xce4   : > { %v2962_v32 = vpop.xlane.xlu1 %2961 }
 0xce5   : > { %v2963_v53 = vmul.f32 0.03125, %v2962_v32 }
 0xce7   : > { %v2964_v54 = vsub.f32 %v2957_v52, %v2963_v53 }
 0xce9   : > { %v2965_v55 = vmul.f32 %v2964_v54, %v2964_v54 }
 0xceb   : > { %v2966_v1 = vsel %vm502_vm1, %v2965_v55, 0.0 }
 0xcec   : > { %2967 = vadd.xlane.f32.xlu0 %v2966_v1 }
 0xd79   : > { %v2968_v2 = vpop.xlane.xlu0 %2967 }
 0xd7a   : > { %v2969_v4 = vmul.f32 0.03125, %v2968_v2 }
 0xd7c   : > { %v2970_v5 = vadd.f32 1e-05, %v2969_v4 }
 0xd7e   : > { %3826 = vrsqrt.f32 %v2970_v5 }
 0xd88   : > { %v3827_v7 = vpop.eup %3826 }
 0xd89   : > { %v2972_v10 = vmul.f32 %v3827_v7, %v2964_v54 }
 0xd8b   : > { %v2979_v16 = vmul.f32 %v3077_v9, %v2972_v10 }
 0xd8d   : > { %v2986_v60 = vadd.f32 %v3078_v15, %v2979_v16 }
 0xd8f   : > { %2987 = vst.msk [vmem:[%s489_s21] sm:$0xff] %vm502_vm1, %v2986_v60 }
 0xd90 PF: > { %s25_s18 = sadd.s32 1, %s3834_s18  }
 0xd91   : > { %p22_p4 = scmp.ge.s32.totalorder %s25_s18, 4  }
 0xd93   :  { %24 = sbr.rel (!%p22_p4) target bundleno = 1 (0x1), region = 110 }

// kernel: text_generation_transformer.6
= control target key start
LH: loop header
LB: loop body
LE: loop exit
PB: predicated region body
PF: predicated region fallthrough
CT: control target
= control target key end

     0   :  { %s6847_s0 = inlined_call_operand.vmem [shape: s32[16,1], index: 0, kind: input, shape index: {}]   ;;  %s6848_s1 = inlined_call_operand.vmem [shape: f32[64,32], index: 1, kind: input, shape index: {}]   ;;  %s6849_s2 = inlined_call_operand.vmem [shape: f32[16,32], index: 2, kind: input, shape index: {}]   ;;  %s6850_s3 = inlined_call_operand.vmem [shape: f32[32,96], index: 3, kind: input, shape index: {}]   ;;  %s6851_s4 = inlined_call_operand.vmem [shape: f32[1,96], index: 4, kind: input, shape index: {}]   ;;  %s6852_s5 = inlined_call_operand.vmem [shape: f32[32,32], index: 5, kind: input, shape index: {}]   ;;  %s6853_s6 = inlined_call_operand.vmem [shape: f32[1,32], index: 6, kind: input, shape index: {}]   ;;  %s6854_s7 = inlined_call_operand.vmem [shape: f32[1,32], index: 7, kind: input, shape index: {}]   ;;  %s6855_s8 = inlined_call_operand.vmem [shape: f32[1,32], index: 8, kind: input, shape index: {}]   ;;  %s6856_s9 = inlined_call_operand.vmem [shape: f32[32,32], index: 9, kind: input, shape index: {}]   ;;  %s6857_s10 = inlined_call_operand.vmem [shape: f32[1,32], index: 10, kind: input, shape index: {}]   ;;  %s6858_s11 = inlined_call_operand.vmem [shape: f32[32,64], index: 11, kind: input, shape index: {}]   ;;  %s6859_s12 = inlined_call_operand.vmem [shape: f32[1,64], index: 12, kind: input, shape index: {}]   ;;  %s6860_s13 = inlined_call_operand.vmem [shape: f32[32,32], index: 13, kind: input, shape index: {}]   ;;  %s6861_s14 = inlined_call_operand.vmem [shape: f32[1,32], index: 14, kind: input, shape index: {}]   ;;  %s6862_s15 = inlined_call_operand.vmem [shape: f32[1,32], index: 15, kind: input, shape index: {}]   ;;  %s6863_s16 = inlined_call_operand.vmem [shape: f32[1,32], index: 16, kind: input, shape index: {}]   ;;  %s6864_s17 = inlined_call_operand.vmem [shape: f32[32,2048], index: 17, kind: input, shape index: {}]   ;;  %s6865_s18 = inlined_call_operand.vmem [shape: f32[1,2048], index: 18, kind: input, shape index: {}]   ;;  %s6866_s19 = inlined_call_operand.vmem [shape: f32[2048,32], index: 19, kind: input, shape index: {}]   ;;  %s6867_s20 = inlined_call_operand.vmem [shape: f32[1,32], index: 20, kind: input, shape index: {}]   ;;  %s6868_s21 = inlined_call_operand.vmem [shape: f32[1,32], index: 21, kind: input, shape index: {}]   ;;  %s6869_s22 = inlined_call_operand.vmem [shape: f32[1,32], index: 22, kind: input, shape index: {}]   ;;  %s6870_s23 = inlined_call_operand.vmem [shape: f32[16,32], index: 23, kind: output, shape index: {}]  }
   0x1   :  { %6889 = sst [smem:[#allocation2_spill]] %s6847_s0 }
   0x2   :  { %6890 = sst [smem:[#allocation3_spill]] %s6848_s1 }
   0x3   :  { %6891 = sst [smem:[#allocation4_spill]] %s6849_s2 }
   0x4   :  { %6892 = sst [smem:[#allocation5_spill]] %s6850_s3 }
   0x5   :  { %6893 = sst [smem:[#allocation6_spill]] %s6851_s4  ;;  %s5438_s4 = smov 0  }
   0x6   :  { %6894 = sst [smem:[#allocation7_spill]] %s6852_s5 }
   0x7   :  { %6895 = sst [smem:[#allocation8_spill]] %s6853_s6 }
   0x8   :  { %6896 = sst [smem:[#allocation9_spill]] %s6854_s7 }
   0x9 LB: > { %s4304_s30 = sadd.s32 4294967295, %s5298_s4   ;;  %p4308_p0 = scmp.ge.s32.totalorder %s5298_s4, 1  ;;  %s5298_s4 = sphi %s5438_s4, %s33_s4  }
   0xa   : > { %p645_p1 = scmp.lt.s32.totalorder %s5298_s4, 3 }
   0xc   : > { %p646_p2 = pnand %p4308_p0, %p645_p1 }
   0xd   : > { %p711_p3 = scmp.lt.s32.totalorder (!%p646_p2), %s4304_s30, 1  ;;  %s6897_s5 = sld [smem:[#allocation3_spill]] (!%p646_p2)  ;;  %v5300_v3 = vmov (!%p646_p2), 0   ;;  %v5301_v4 = vmov (!%p646_p2), 0.0|0.0   ;;  %vm5302_vm0 = vmmov (!%p646_p2), 0   ;;  %v5303_v14 = vmov (!%p646_p2), 0.0  }
   0xe   : > { %649 = sbr.rel (%p646_p2) target bundleno = 5199 (0x144f), region = 112  ;;  %5253 = vset.pattern.permute.xlu0 (!%p646_p2), %v5300_v3  ;;  %4865 = vmatprep.subr.bf16.mxu0 (!%p646_p2), %v5301_v4  ;;  %s6898_s26 = sld [smem:[#allocation2_spill]] (!%p646_p2)  ;;  %v732_v22 = vlaneseq (!%p646_p2)  ;;  %vm740_vm1 = vcmask (!%p646_p2), 523264   ;;  %vm826_vm3 = vcmask (!%p646_p2), 261120   ;;  %vm904_vm4 = vcmask (!%p646_p2), 64512  }
   0xf   : > { %4877 = vmatprep.subr.bf16.mxu1 (!%p646_p2), %v5301_v4  ;;  %4727 = vmatprep.mubr.msk.f32.mxu0 (!%p646_p2), %vm5302_vm0, %v5303_v14  ;;  %s6899_s0 = sld [smem:[#allocation5_spill]] (!%p646_p2)  ;;  %s6900_s7 = sld [smem:[#allocation6_spill]] (!%p646_p2)  ;;  %vm1575_vm5 = vcmask (!%p646_p2), 130048   ;;  %vm1577_vm6 = vcmask (!%p646_p2), 195584  }
  0x10   : > { %4738 = vmatprep.mubr.msk.f32.mxu1 (!%p646_p2), %vm5302_vm0, %v5303_v14  ;;  %v733_v23 = vand.u32 (!%p646_p2), 127, %v732_v22  ;;  %s6877_s29 = smov (!%p646_p2), 96   ;;  %s5305_s3 = smov (!%p646_p2), 64  }
  0x11   : > { %s6885_s24 = smov (!%p646_p2), 120   ;;  %s6876_s25 = smov (!%p646_p2), 80  }
  0x12   : > { %s6883_s1 = smov (!%p646_p2), 112   ;;  %s5312_s6 = smov (!%p646_p2), 56  }
  0x13   : > { %v724_v0 = vld [vmem:[%s6897_s5] sm:$0xff] (!%p646_p2)  ;;  %v725_v1 = vld [vmem:[%s6897_s5 + $0x8] sm:$0xff] (!%p646_p2)  ;;  %v726_v2 = vld [vmem:[%s6897_s5 + $0x10] sm:$0xff] (!%p646_p2)  ;;  %s5313_s27 = smov (!%p646_p2), 40  }
  0x14   : > { %v4866_v5 = vpack.c.bf16 (!%p646_p2), %v725_v1, %v724_v0  ;;  %v727_v6 = vld [vmem:[%s6897_s5 + $0x18] sm:$0xff] (!%p646_p2)  ;;  %v728_v8 = vld [vmem:[%s6897_s5 + $0x20] sm:$0xff] (!%p646_p2)  ;;  %v729_v9 = vld [vmem:[%s6897_s5 + $0x28] sm:$0xff] (!%p646_p2) }
  0x15   : > { %s6916_s30 = smov (!%p711_p3, %s4304_s30), 1  ;;  %v4869_v7 = vpack.c.bf16 %v727_v6, %v726_v2  ;;  %v4872_v11 = vpack.c.bf16 %v729_v9, %v728_v8  ;;  %v730_v12 = vld [vmem:[%s6897_s5 + $0x30] sm:$0xff]  ;;  %v731_v13 = vld [vmem:[%s6897_s5 + $0x38] sm:$0xff]  ;;  %v815_v15 = vld [vmem:[%s6899_s0] sm:$0xff]  ;;  %s6906_s5 = smov 112  }
  0x16   : > { %4867 = vmatpush3.bf16.msra.mxu0 %v4866_v5  ;;  %s5460_s28 = sshll.u32 %s6916_s30, 3  ;;  %v816_v16 = vld [vmem:[%s6899_s0 + $0x8] sm:$0xff]  ;;  %v817_v17 = vld [vmem:[%s6899_s0 + $0x10] sm:$0xff]  ;;  %v818_v19 = vld [vmem:[%s6899_s0 + $0x18] sm:$0xff]  ;;  %v4875_v20 = vpack.c.bf16 %v731_v13, %v730_v12  ;;  %s6878_s30 = smov 104  }
  0x17   : > { %4868 = vmatprep.subr.bf16.mxu0 %v5301_v4  ;;  %s714_s2 = scalar_lea.vmem %s6898_s26, %s5460_s28  ;;  %v4878_v18 = vpack.c.bf16 %v816_v16, %v815_v15  ;;  %v4881_v21 = vpack.c.bf16 %v818_v19, %v817_v17  ;;  %v4314_v28 = vld [vmem:[%s6900_s7] ss:$0 sm:$0xff]  ;;  %s6875_s26 = smov 72  }
  0x18   : > { %v723_v10 = vld [vmem:[%s714_s2] sm:$0xff]  ;;  %s6874_s2 = smov 88   ;;  %s5314_s7 = smov 48  }
  0x19   : > { %735 = vperm.xlu0 %5253, %v723_v10   ;;  %4879 = vmatpush3.bf16.msra.mxu1 %v4878_v18  ;;  %s6907_s0 = smov 104  }
  0x1a   : > { %4870 = vmatpush3.bf16.msra.mxu0 %v4869_v7  ;;  %4880 = vmatprep.subr.bf16.mxu1 %v5301_v4 }
  0x1b   : > { %4871 = vmatprep.subr.bf16.mxu0 %v5301_v4 }
  0x1d   : > { %4882 = vmatpush3.bf16.msra.mxu1 %v4881_v21 }
  0x1e   : > { %4873 = vmatpush3.bf16.msra.mxu0 %v4872_v11  ;;  %4741 = vmatprep.subr.mxu1 %v5303_v14 }
  0x1f   : > { %4874 = vmatprep.subr.bf16.mxu0 %v5301_v4 }
  0x22   : > { %4876 = vmatpush3.bf16.msra.mxu0 %v4875_v20 }
  0x23   : > { %4761 = vmatprep.subr.mxu0 %v5303_v14 }
  0x98   : > { %v736_v24 = vpop.permute.xlu0 %735 }
  0x99   : > { %vm737_vm2 = vcmp.eq.s32.totalorder %v736_v24, %v733_v23 }
  0x9a   : > { %v4312_v25 = vsel %vm737_vm2, 1.0, %v5303_v14 }
  0x9b   : > { %4728 = vmatmul.mubr.msk.f32.vlgmr.msra.gmra.mrb[0].mxu0 %vm740_vm1, %v4312_v25 }
  0x9c   : > { %4763 = vmatprep.mubr.msk.f32.mxu0 %vm5302_vm0, %v5303_v14 }
 0x16e   : > { %v5504_v26 = vpop.f32.mrb[0].mxu0 }
 0x16f   : > { %v4729_v27 = vpop.f32.mrb[1].mxu0  ;;  %4739 = vmatmul.mubr.msk.f32.vlgmr.msra.gmra.mrb[0].mxu1 %vm826_vm3, %v5504_v26 }
 0x170   : > { %4743 = vmatprep.mubr.msk.f32.mxu1 %vm5302_vm0, %v5303_v14 }
 0x242   : > { %v896_v29 = vpop.f32.mrb[0].mxu1 }
 0x243   : > { %v5513_v30 = vadd.f32 %v4314_v28, %v896_v29  ;;  %v4740_v31 = vpop.f32.mrb[1].mxu1 }
 0x245   : > { %902 = vrot.lane.b32.xlu0 %v5513_v30, %s6877_s29  ;;  %v900_v32 = vmul.f32 0.35355338, %v5513_v30  ;;  %s6909_s29 = smov 80  }
 0x249   : > { %991 = vrot.lane.b32.xlu0 %v5513_v30, %s5305_s3  ;;  %s6882_s3 = smov 8  }
 0x24d   : > { %1067 = vrot.lane.b32.xlu0 %v900_v32, %s6885_s24 }
 0x251   : > { %1234 = vrot.lane.b32.xlu0 %v5513_v30, %s6876_s25  ;;  %s6880_s25 = smov 24  }
 0x255   : > { %1232 = vrot.lane.b32.xlu0 %v900_v32, %s6883_s1 }
 0x259   : > { %1399 = vrot.lane.b32.xlu0 %v5513_v30, %s6875_s26  ;;  %s6904_s26 = sld [smem:[#allocation9_spill]] }
 0x2b7   : > { %v903_v33 = vpop.permute.xlu0 %902 }
 0x2b8   : > { %4742 = vmatpush3.xpose.msk.msra.mxu1 %vm904_vm4, %v903_v33 }
 0x2b9   : > { %4746 = vmatprep.subr.mxu1 %v5303_v14 }
 0x2bb   : > { %v992_v34 = vpop.permute.xlu0 %991  ;;  %4744 = vmatmul.mubr.msk.f32.vlgmr.msra.gmra.mrb[2].mxu1 %vm904_vm4, %v900_v32 }
 0x2bc   : > { %4747 = vmatpush3.msra.mxu1 %v992_v34  ;;  %4748 = vmatprep.mubr.msk.f32.mxu1 %vm5302_vm0, %v5303_v14 }
 0x2bd   : > { %4751 = vmatprep.subr.mxu1 %v5303_v14 }
 0x2bf   : > { %v1068_v35 = vpop.permute.xlu0 %1067 }
 0x2c3   : > { %v1235_v36 = vpop.permute.xlu0 %1234 }
 0x2c4   : > { %4762 = vmatpush3.xpose.msk.msra.mxu0 %vm904_vm4, %v1235_v36 }
 0x2c5   : > { %4771 = vmatprep.subr.mxu0 %v5303_v14 }
 0x2c7   : > { %v1233_v37 = vpop.permute.xlu0 %1232 }
 0x2c8   : > { %4764 = vmatmul.mubr.msk.f32.vlgmr.msra.gmra.mrb[2].mxu0 %vm904_vm4, %v1233_v37 }
 0x2c9   : > { %4773 = vmatprep.mubr.msk.f32.mxu0 %vm5302_vm0, %v5303_v14 }
 0x2cb   : > { %v1400_v38 = vpop.permute.xlu0 %1399 }
 0x2cc   : > { %4772 = vmatpush3.xpose.msk.msra.mxu0 %vm904_vm4, %v1400_v38 }
 0x2cd   : > { %4883 = vmatprep.subr.bf16.mxu0 %v5301_v4 }
 0x38e   : > { %v976_v39 = vpop.f32.mrb[2].mxu1 }
 0x38f   : > { %v4745_v40 = vpop.f32.mrb[3].mxu1  ;;  %v980_v41 = vsel %vm904_vm4, %v976_v39, -inf }
 0x390   : > { %981 = vmax.xlane.f32.xlu1 %v980_v41 }
 0x39b   : > { %v1306_v42 = vpop.f32.mrb[2].mxu0 }
 0x39c   : > { %v4765_v43 = vpop.f32.mrb[3].mxu0  ;;  %v1310_v49 = vsel %vm904_vm4, %v1306_v42, -inf }
 0x41d   : > { %v982_v44 = vpop.xlane.xlu1 %981 }
 0x41e   : > { %v983_v45 = vsub.f32 %v976_v39, %v982_v44 }
 0x420   : > { %v984_v46 = vmul.f32 1.442695, %v983_v45 }
 0x422   : > { %5254 = vpow2.f32 %v984_v46 }
 0x42c   : > { %v5255_v47 = vpop.eup %5254 }
 0x42d   : > { %v986_v48 = vsel %vm904_vm4, %v5255_v47, 0.0 }
 0x42e   : > { %987 = vadd.xlane.f32.xlu1 %v986_v48 }
 0x43f   : > { %1069 = vrot.lane.b32.xlu1 %v5513_v30, %s6874_s2  ;;  %s6881_s2 = smov 16  }
 0x443   : > { %1397 = vrot.lane.b32.xlu1 %v900_v32, %s6878_s30  ;;  %s6902_s30 = sld [smem:[#allocation8_spill]] }
 0x449   : > { %v4328_v48 = vld [vmem:[%s6902_s30] ss:$0 sm:$0xff]  ;;  %s6911_s30 = smov 88  }
 0x467   : > { %1311 = vmax.xlane.f32.xlu1 %v1310_v49 }
 0x4bb   : > { %v988_v50 = vpop.xlane.xlu1 %987 }
 0x4bc   : > { %5256 = vrcp.f32 %v988_v50 }
 0x4bf   : > { %v1070_v51 = vpop.permute.xlu1 %1069 }
 0x4c3   : > { %v1398_v52 = vpop.permute.xlu1 %1397 }
 0x4c4   : > { %4774 = vmatmul.mubr.msk.f32.vlgmr.msra.gmra.mrb[4].mxu0 %vm904_vm4, %v1398_v52 }
 0x4c5   : > { %4789 = vmatprep.mubr.msk.f32.mxu0 %vm5302_vm0, %v5303_v14 }
 0x4c6   : > { %v5257_v53 = vpop.eup %5256 }
 0x4c7   : > { %v990_v54 = vmul.f32 %v5257_v53, %v5255_v47 }
 0x4c9   : > { %4749 = vmatmul.mubr.msk.f32.vlgmr.msra.gmra.mrb[4].mxu1 %vm904_vm4, %v990_v54 }
 0x4ca   : > { %4752 = vmatpush3.xpose.msk.msra.mxu1 %vm904_vm4, %v1070_v51  ;;  %4753 = vmatprep.mubr.msk.f32.mxu1 %vm5302_vm0, %v5303_v14 }
 0x4cb   : > { %4756 = vmatprep.subr.mxu1 %v5303_v14 }
 0x4cd   : > { %4754 = vmatmul.mubr.msk.f32.vlgmr.msra.gmra.mrb[6].mxu1 %vm904_vm4, %v1068_v35 }
 0x4ce   : > { %4758 = vmatprep.mubr.msk.f32.mxu1 %vm5302_vm0, %v5303_v14 }
 0x4f4   : > { %v1312_v55 = vpop.xlane.xlu1 %1311 }
 0x4f5   : > { %v1313_v56 = vsub.f32 %v1306_v42, %v1312_v55 }
 0x4f7   : > { %v1314_v57 = vmul.f32 1.442695, %v1313_v56 }
 0x4f9   : > { %5258 = vpow2.f32 %v1314_v57 }
 0x503   : > { %v5259_v58 = vpop.eup %5258 }
 0x504   : > { %v1316_v59 = vsel %vm904_vm4, %v5259_v58, 0.0 }
 0x505   : > { %1317 = vadd.xlane.f32.xlu1 %v1316_v59  ;;  %v1778_v59 = vld [vmem:[%s6858_s11] sm:$0xff] }
 0x516   : > { %1156 = vrot.lane.b32.xlu1 %v5513_v30, %s5312_s6 }
 0x51a   : > { %1486 = vrot.lane.b32.xlu1 %v5513_v30, %s5313_s27  ;;  %s6901_s27 = sld [smem:[#allocation7_spill]] }
 0x520   : > { %v1580_v31 = vld [vmem:[%s6901_s27 + $0x8] sm:$0xff]  ;;  %v1581_v33 = vld [vmem:[%s6901_s27 + $0x10] sm:$0xff]  ;;  %v1582_v34 = vld [vmem:[%s6901_s27 + $0x18] sm:$0xff] }
 0x521   : > { %v4887_v35 = vpack.c.bf16 %v1582_v34, %v1581_v33 }
 0x592   : > { %v1318_v60 = vpop.xlane.xlu1 %1317 }
 0x596   : > { %v1157_v61 = vpop.permute.xlu1 %1156 }
 0x597   : > { %4757 = vmatpush3.msra.mxu1 %v1157_v61  ;;  %v1471_v62 = vpop.f32.mrb[4].mxu0 }
 0x598   : > { %v4775_v63 = vpop.f32.mrb[5].mxu0  ;;  %4766 = vmatprep.subr.mxu1 %v5303_v14  ;;  %v1475_v6 = vsel %vm904_vm4, %v1471_v62, -inf }
 0x59a   : > { %v1487_v28 = vpop.permute.xlu1 %1486 }
 0x59c   : > { %v5559_v0 = vpop.f32.mrb[4].mxu1 }
 0x59d   : > { %v4750_v1 = vpop.f32.mrb[5].mxu1 }
 0x59e   : > { %v1694_v1 = vld [vmem:[%s6856_s9] sm:$0xff] }
 0x5a0   : > { %v1141_v2 = vpop.f32.mrb[6].mxu1 }
 0x5a1   : > { %v4755_v3 = vpop.f32.mrb[7].mxu1  ;;  %v1145_v5 = vsel %vm904_vm4, %v1141_v2, -inf }
 0x5a2   : > { %1146 = vmax.xlane.f32.xlu0 %v1145_v5  ;;  %v1696_v5 = vld [vmem:[%s6856_s9 + $0x10] sm:$0xff] }
 0x5a6   : > { %1476 = vmax.xlane.f32.xlu0 %v1475_v6  ;;  %v1697_v6 = vld [vmem:[%s6856_s9 + $0x18] sm:$0xff] }
 0x62f   : > { %v1147_v7 = vpop.xlane.xlu0 %1146 }
 0x630   : > { %v1148_v8 = vsub.f32 %v1141_v2, %v1147_v7  ;;  %v1695_v2 = vld [vmem:[%s6856_s9 + $0x8] sm:$0xff]  ;;  %v4893_v7 = vpack.c.bf16 %v1697_v6, %v1696_v5 }
 0x631   : > { %v4890_v3 = vpack.c.bf16 %v1695_v2, %v1694_v1 }
 0x632   : > { %v1149_v11 = vmul.f32 1.442695, %v1148_v8 }
 0x633   : > { %v1477_v9 = vpop.xlane.xlu0 %1476 }
 0x634   : > { %v1478_v10 = vsub.f32 %v1471_v62, %v1477_v9  ;;  %v1781_v62 = vld [vmem:[%s6858_s11 + $0x18] sm:$0xff] }
 0x636   : > { %v1479_v12 = vmul.f32 1.442695, %v1478_v10 }
 0x638   : > { %5260 = vpow2.f32 %v1479_v12  ;;  %v4330_v12 = vld [vmem:[%s6904_s26] ss:$0 sm:$0xff]  ;;  %s6910_s26 = smov 72  }
 0x639   : > { %5262 = vpow2.f32 %v1149_v11 }
 0x642   : > { %v5261_v13 = vpop.eup %5260 }
 0x643   : > { %v1481_v15 = vsel %vm904_vm4, %v5261_v13, 0.0  ;;  %v5263_v16 = vpop.eup %5262 }
 0x644   : > { %1482 = vadd.xlane.f32.xlu0 %v1481_v15  ;;  %v1151_v17 = vsel %vm904_vm4, %v5263_v16, 0.0  ;;  %v4331_v15 = vld [vmem:[%s6855_s8] ss:$0 sm:$0xff] }
 0x648   : > { %1152 = vadd.xlane.f32.xlu0 %v1151_v17 }
 0x65e   : > { %1321 = vrot.lane.b32.xlu0 %v5513_v30, %s5314_s7  ;;  %v1579_v30 = vld [vmem:[%s6901_s27] sm:$0xff] }
 0x65f   : > { %v4884_v32 = vpack.c.bf16 %v1580_v31, %v1579_v30 }
 0x661   : > { %4885 = vmatpush3.bf16.msra.mxu0 %v4884_v32 }
 0x662   : > { %4886 = vmatprep.subr.bf16.mxu0 %v5301_v4 }
 0x665   : > { %4888 = vmatpush3.bf16.msra.mxu0 %v4887_v35 }
 0x666   : > { %4895 = vmatprep.subr.bf16.mxu0 %v5301_v4 }
 0x6d1   : > { %v1483_v18 = vpop.xlane.xlu0 %1482 }
 0x6d5   : > { %v1153_v19 = vpop.xlane.xlu0 %1152 }
 0x6d6   : > { %5264 = vrcp.f32 %v1153_v19 }
 0x6d7   : > { %5266 = vrcp.f32 %v1318_v60  ;;  %v1779_v60 = vld [vmem:[%s6858_s11 + $0x8] sm:$0xff] }
 0x6d8   : > { %5268 = vrcp.f32 %v1483_v18  ;;  %v4896_v61 = vpack.c.bf16 %v1779_v60, %v1778_v59  ;;  %v4334_v18 = vld [vmem:[%s6859_s12] ss:$0 sm:$0xff] }
 0x6d9   : > { %v1322_v24 = vpop.permute.xlu0 %1321 }
 0x6e0   : > { %v5265_v20 = vpop.eup %5264 }
 0x6e1   : > { %v1155_v21 = vmul.f32 %v5265_v20, %v5263_v16  ;;  %v5267_v23 = vpop.eup %5266 }
 0x6e2   : > { %v1320_v25 = vmul.f32 %v5267_v23, %v5259_v58  ;;  %v5269_v27 = vpop.eup %5268 }
 0x6e3   : > { %4759 = vmatmul.mubr.msk.f32.vlgmr.msra.gmra.mrb[8].mxu1 %vm904_vm4, %v1155_v21  ;;  %v1485_v29 = vmul.f32 %v5269_v27, %v5261_v13 }
 0x6e4   : > { %4767 = vmatpush3.msra.mxu1 %v1322_v24  ;;  %4768 = vmatprep.mubr.msk.f32.mxu1 %vm5302_vm0, %v5303_v14  ;;  %v4332_v24 = vld [vmem:[%s6857_s10] ss:$0 sm:$0xff] }
 0x6e5   : > { %4776 = vmatprep.subr.mxu1 %v5303_v14 }
 0x6e7   : > { %4769 = vmatmul.mubr.msk.f32.vlgmr.msra.gmra.mrb[10].mxu1 %vm904_vm4, %v1320_v25 }
 0x6e8   : > { %4777 = vmatpush3.msra.mxu1 %v1487_v28  ;;  %4778 = vmatprep.mubr.msk.f32.mxu1 %vm5302_vm0, %v5303_v14 }
 0x6e9   : > { %4889 = vmatprep.subr.bf16.mxu1 %v5301_v4 }
 0x6eb   : > { %4779 = vmatmul.mubr.msk.f32.vlgmr.msra.gmra.mrb[12].mxu1 %vm904_vm4, %v1485_v29 }
 0x6ec   : > { %4800 = vmatprep.mubr.msk.f32.mxu1 %vm5302_vm0, %v5303_v14  ;;  %4891 = vmatpush3.bf16.msra.mxu1 %v4890_v3 }
 0x6ed   : > { %4892 = vmatprep.subr.bf16.mxu1 %v5301_v4 }
 0x6f0   : > { %4894 = vmatpush3.bf16.msra.mxu1 %v4893_v7 }
 0x6f1   : > { %4814 = vmatprep.subr.mxu1 %v5303_v14 }
 0x7b6   : > { %v1228_v36 = vpop.f32.mrb[8].mxu1 }
 0x7b7   : > { %1563 = vrot.lane.b32.xlu1 %v1228_v36, %s6882_s3  ;;  %v4760_v37 = vpop.f32.mrb[9].mxu1 }
 0x7ba   : > { %v1393_v38 = vpop.f32.mrb[10].mxu1 }
 0x7bb   : > { %1567 = vrot.lane.b32.xlu0 %v1393_v38, %s6881_s2  ;;  %v4770_v39 = vpop.f32.mrb[11].mxu1  ;;  %s6903_s2 = sld [smem:[#allocation4_spill]] }
 0x7be   : > { %v1558_v40 = vpop.f32.mrb[12].mxu1 }
 0x7bf   : > { %1571 = vrot.lane.b32.xlu1 %v1558_v40, %s6880_s25  ;;  %v4780_v41 = vpop.f32.mrb[13].mxu1  ;;  %s6905_s25 = smov 120  }
 0x7c1   : > { %s718_s3 = scalar_lea.vmem %s6903_s2, %s5460_s28 }
 0x829   : > { %v1564_v42 = vpop.permute.xlu1 %1563 }
 0x82a   : > { %v1574_v44 = vsel %vm904_vm4, %v5559_v0, %v1564_v42  ;;  %v814_v0 = vld [vmem:[%s718_s3] sm:$0xff]  ;;  %s6908_s3 = smov 96  }
 0x82d   : > { %v1568_v43 = vpop.permute.xlu0 %1567 }
 0x82e   : > { %v1576_v45 = vsel %vm1575_vm5, %v1574_v44, %v1568_v43 }
 0x831   : > { %v1572_v46 = vpop.permute.xlu1 %1571 }
 0x832   : > { %v1578_v47 = vsel %vm1577_vm6, %v1576_v45, %v1572_v46 }
 0x833   : > { %4790 = vmatmul.mubr.msk.f32.vlgmr.msra.gmra.mrb[6].mxu0 %vm826_vm3, %v1578_v47 }
 0x834   : > { %4811 = vmatprep.mubr.msk.f32.mxu0 %vm5302_vm0, %v5303_v14  ;;  %4897 = vmatpush3.bf16.msra.mxu0 %v4896_v61 }
 0x835   : > { %4898 = vmatprep.subr.bf16.mxu0 %v5301_v4 }
 0x906   : > { %v1659_v49 = vpop.f32.mrb[6].mxu0 }
 0x907   : > { %v1660_v50 = vadd.f32 %v4328_v48, %v1659_v49  ;;  %v4791_v51 = vpop.f32.mrb[7].mxu0 }
 0x909   : > { %v1663_v52 = vadd.f32 %v1660_v50, %v5504_v26  ;;  %v1780_v26 = vld [vmem:[%s6858_s11 + $0x10] sm:$0xff] }
 0x90a   : > { %v4899_v63 = vpack.c.bf16 %v1781_v62, %v1780_v26 }
 0x90b   : > { %v1666_v53 = vsel %vm826_vm3, %v1663_v52, 0.0 }
 0x90c   : > { %1667 = vadd.xlane.f32.xlu0 %v1666_v53  ;;  %4900 = vmatpush3.bf16.msra.mxu0 %v4899_v63 }
 0x90d   : > { %4824 = vmatprep.subr.mxu0 %v5303_v14 }
 0x90f   : > { %4812 = vmatmul.mubr.msk.f32.vlgmr.msra.gmra.mrb[8].mxu0 %vm826_vm3, %v814_v0 }
 0x910   : > { %4826 = vmatprep.mubr.msk.f32.mxu0 %vm5302_vm0, %v5303_v14 }
 0x999   : > { %v1668_v54 = vpop.xlane.xlu0 %1667 }
 0x99a   : > { %v1670_v55 = vmul.f32 0.03125, %v1668_v54 }
 0x99c   : > { %v1671_v56 = vsub.f32 %v1663_v52, %v1670_v55 }
 0x99e   : > { %v1672_v57 = vmul.f32 %v1671_v56, %v1671_v56 }
 0x9a0   : > { %v1673_v58 = vsel %vm826_vm3, %v1672_v57, 0.0 }
 0x9a1   : > { %1674 = vadd.xlane.f32.xlu1 %v1673_v58 }
 0x9e2   : > { %v1858_v19 = vpop.f32.mrb[8].mxu0 }
 0x9e3   : > { %v5657_v20 = vadd.f32 %v4334_v18, %v1858_v19  ;;  %v4813_v21 = vpop.f32.mrb[9].mxu0 }
 0x9e5   : > { %2028 = vrot.lane.b32.xlu0 %v5657_v20, %s6905_s25 }
 0x9e9   : > { %2193 = vrot.lane.b32.xlu0 %v5657_v20, %s6906_s5 }
 0x9ed   : > { %2358 = vrot.lane.b32.xlu0 %v5657_v20, %s6907_s0 }
 0xa2e   : > { %v1675_v8 = vpop.xlane.xlu1 %1674 }
 0xa2f   : > { %v1676_v9 = vmul.f32 0.03125, %v1675_v8 }
 0xa31   : > { %v1677_v10 = vadd.f32 1e-05, %v1676_v9 }
 0xa33   : > { %5270 = vrsqrt.f32 %v1677_v10 }
 0xa3d   : > { %v5271_v11 = vpop.eup %5270 }
 0xa3e   : > { %v1679_v13 = vmul.f32 %v5271_v11, %v1671_v56 }
 0xa40   : > { %v1686_v16 = vmul.f32 %v4330_v12, %v1679_v13 }
 0xa42   : > { %v5648_v17 = vadd.f32 %v4331_v15, %v1686_v16 }
 0xa44   : > { %4801 = vmatmul.mubr.msk.f32.vlgmr.msra.gmra.mrb[14].mxu1 %vm826_vm3, %v5648_v17 }
 0xa45   : > { %4816 = vmatprep.mubr.msk.f32.mxu1 %vm5302_vm0, %v5303_v14  ;;  %4815 = vmatpush3.xpose.msk.msra.mxu1 %vm904_vm4, %v5657_v20 }
 0xa46   : > { %4819 = vmatprep.subr.mxu1 %v5303_v14 }
 0xa57   : > { %v2029_v23 = vpop.permute.xlu0 %2028 }
 0xa58   : > { %4825 = vmatpush3.xpose.msk.msra.mxu0 %vm904_vm4, %v2029_v23 }
 0xa59   : > { %4834 = vmatprep.subr.mxu0 %v5303_v14 }
 0xa5b   : > { %v2194_v30 = vpop.permute.xlu0 %2193 }
 0xa5f   : > { %v2359_v33 = vpop.permute.xlu0 %2358 }
 0xb17   : > { %v1774_v25 = vpop.f32.mrb[14].mxu1 }
 0xb18   : > { %v1775_v27 = vadd.f32 %v4332_v24, %v1774_v25  ;;  %v4802_v28 = vpop.f32.mrb[15].mxu1  ;;  %v2536_v24 = vld [vmem:[%s6860_s13] sm:$0xff]  ;;  %v2537_v25 = vld [vmem:[%s6860_s13 + $0x8] sm:$0xff] }
 0xb19   : > { %v2538_v28 = vld [vmem:[%s6860_s13 + $0x10] sm:$0xff] }
 0xb1a   : > { %v1862_v29 = vmul.f32 0.35355338, %v1775_v27  ;;  %v4902_v27 = vpack.c.bf16 %v2537_v25, %v2536_v24  ;;  %v4350_v24 = vld [vmem:[%s6862_s15] ss:$0 sm:$0xff] }
 0xb1c   : > { %2026 = vrot.lane.b32.xlu1 %v1862_v29, %s6905_s25  ;;  %4817 = vmatmul.mubr.msk.f32.vlgmr.msra.gmra.mrb[16].mxu1 %vm904_vm4, %v1862_v29 }
 0xb1d   : > { %4821 = vmatprep.mubr.msk.f32.mxu1 %vm5302_vm0, %v5303_v14 }
 0xb20   : > { %2191 = vrot.lane.b32.xlu1 %v1862_v29, %s6906_s5 }
 0xb24   : > { %2356 = vrot.lane.b32.xlu1 %v1862_v29, %s6907_s0  ;;  %v2539_v29 = vld [vmem:[%s6860_s13 + $0x18] sm:$0xff] }
 0xb8e   : > { %v2027_v31 = vpop.permute.xlu1 %2026 }
 0xb8f   : > { %4827 = vmatmul.mubr.msk.f32.vlgmr.msra.gmra.mrb[10].mxu0 %vm904_vm4, %v2027_v31 }
 0xb90   : > { %4835 = vmatpush3.xpose.msk.msra.mxu0 %vm904_vm4, %v2194_v30  ;;  %4836 = vmatprep.mubr.msk.f32.mxu0 %vm5302_vm0, %v5303_v14  ;;  %v4905_v30 = vpack.c.bf16 %v2539_v29, %v2538_v28  ;;  %v2654_v28 = vld [vmem:[%s6864_s17 + $0x20] sm:$0xff] }
 0xb91   : > { %4844 = vmatprep.subr.mxu0 %v5303_v14  ;;  %v2670_v29 = vld [vmem:[%s6864_s17 + $0xa0] sm:$0xff] }
 0xb92   : > { %v2192_v32 = vpop.permute.xlu1 %2191 }
 0xb93   : > { %4837 = vmatmul.mubr.msk.f32.vlgmr.msra.gmra.mrb[12].mxu0 %vm904_vm4, %v2192_v32 }
 0xb94   : > { %4845 = vmatpush3.xpose.msk.msra.mxu0 %vm904_vm4, %v2359_v33  ;;  %4846 = vmatprep.mubr.msk.f32.mxu0 %vm5302_vm0, %v5303_v14 }
 0xb95   : > { %4901 = vmatprep.subr.bf16.mxu0 %v5301_v4 }
 0xb96   : > { %v2357_v34 = vpop.permute.xlu1 %2356 }
 0xb97   : > { %4847 = vmatmul.mubr.msk.f32.vlgmr.msra.gmra.mrb[14].mxu0 %vm904_vm4, %v2357_v34 }
 0xb98   : > { %4862 = vmatprep.mubr.msk.f32.mxu0 %vm5302_vm0, %v5303_v14  ;;  %4903 = vmatpush3.bf16.msra.mxu0 %v4902_v27  ;;  %v4351_v27 = vld [vmem:[%s6863_s16] ss:$0 sm:$0xff] }
 0xb99   : > { %4904 = vmatprep.subr.bf16.mxu0 %v5301_v4 }
 0xb9c   : > { %4906 = vmatpush3.bf16.msra.mxu0 %v4905_v30 }
 0xbef   : > { %v1935_v35 = vpop.f32.mrb[16].mxu1 }
 0xbf0   : > { %v4818_v36 = vpop.f32.mrb[17].mxu1  ;;  %v1939_v37 = vsel %vm904_vm4, %v1935_v35, -inf }
 0xbf1   : > { %1940 = vmax.xlane.f32.xlu0 %v1939_v37 }
 0xc62   : > { %v2100_v38 = vpop.f32.mrb[10].mxu0 }
 0xc63   : > { %v4828_v39 = vpop.f32.mrb[11].mxu0  ;;  %v2104_v40 = vsel %vm904_vm4, %v2100_v38, -inf }
 0xc64   : > { %2105 = vmax.xlane.f32.xlu1 %v2104_v40 }
 0xc66   : > { %v2265_v41 = vpop.f32.mrb[12].mxu0 }
 0xc67   : > { %v4838_v42 = vpop.f32.mrb[13].mxu0  ;;  %v2269_v43 = vsel %vm904_vm4, %v2265_v41, -inf }
 0xc68   : > { %2270 = vmax.xlane.f32.xlu0 %v2269_v43  ;;  %v4348_v42 = vld [vmem:[%s6861_s14] ss:$0 sm:$0xff] }
 0xc6a   : > { %v2430_v44 = vpop.f32.mrb[14].mxu0 }
 0xc6b   : > { %v4848_v45 = vpop.f32.mrb[15].mxu0  ;;  %v2434_v46 = vsel %vm904_vm4, %v2430_v44, -inf }
 0xc6c   : > { %2435 = vmax.xlane.f32.xlu0 %v2434_v46 }
 0xc75   : > { %1950 = vrot.lane.b32.xlu1 %v5657_v20, %s6908_s3  ;;  %s6912_s3 = smov 8  }
 0xc7e   : > { %v1941_v47 = vpop.xlane.xlu0 %1940 }
 0xc7f   : > { %v1942_v48 = vsub.f32 %v1935_v35, %v1941_v47 }
 0xc81   : > { %v1943_v49 = vmul.f32 1.442695, %v1942_v48 }
 0xc83   : > { %5272 = vpow2.f32 %v1943_v49 }
 0xc8d   : > { %v5273_v50 = vpop.eup %5272 }
 0xc8e   : > { %v1945_v51 = vsel %vm904_vm4, %v5273_v50, 0.0 }
 0xc99   : > { %1946 = vadd.xlane.f32.xlu1 %v1945_v51 }
 0xcf1   : > { %v2106_v52 = vpop.xlane.xlu1 %2105 }
 0xcf2   : > { %v2107_v53 = vsub.f32 %v2100_v38, %v2106_v52 }
 0xcf4   : > { %v2108_v54 = vmul.f32 1.442695, %v2107_v53  ;;  %v2651_v53 = vld [vmem:[%s6864_s17 + $0x8] sm:$0xff] }
 0xcf5   : > { %v1951_v55 = vpop.permute.xlu1 %1950  ;;  %v2271_v56 = vpop.xlane.xlu0 %2270 }
 0xcf6   : > { %5274 = vpow2.f32 %v2108_v54  ;;  %v2272_v57 = vsub.f32 %v2265_v41, %v2271_v56  ;;  %4820 = vmatpush3.msra.mxu1 %v1951_v55  ;;  %v2667_v54 = vld [vmem:[%s6864_s17 + $0x88] sm:$0xff]  ;;  %v2669_v56 = vld [vmem:[%s6864_s17 + $0x98] sm:$0xff] }
 0xcf7   : > { %4829 = vmatprep.subr.mxu1 %v5303_v14  ;;  %v4907_v55 = vpack.c.bf16 %v2667_v54, %v2651_v53  ;;  %v2674_v53 = vld [vmem:[%s6864_s17 + $0xc0] sm:$0xff] }
 0xcf8   : > { %v2273_v58 = vmul.f32 1.442695, %v2272_v57  ;;  %v2650_v57 = vld [vmem:[%s6864_s17] sm:$0xff] }
 0xcf9   : > { %v2436_v59 = vpop.xlane.xlu0 %2435 }
 0xcfa   : > { %5276 = vpow2.f32 %v2273_v58  ;;  %v2437_v60 = vsub.f32 %v2430_v44, %v2436_v59  ;;  %v2666_v58 = vld [vmem:[%s6864_s17 + $0x80] sm:$0xff] }
 0xcfc   : > { %v2438_v61 = vmul.f32 1.442695, %v2437_v60  ;;  %v4909_v60 = vpack.c.bf16 %v2666_v58, %v2650_v57  ;;  %v2691_v57 = vld [vmem:[%s6864_s17 + $0x148] sm:$0xff] }
 0xcfd   : > { %v2707_v58 = vld [vmem:[%s6864_s17 + $0x1c8] sm:$0xff] }
 0xcfe   : > { %5278 = vpow2.f32 %v2438_v61  ;;  %v2652_v61 = vld [vmem:[%s6864_s17 + $0x10] sm:$0xff] }
 0xd00   : > { %v5275_v26 = vpop.eup %5274 }
 0xd01   : > { %v2110_v62 = vsel %vm904_vm4, %v5275_v26, 0.0 }
 0xd02   : > { %2111 = vadd.xlane.f32.xlu0 %v2110_v62 }
 0xd04   : > { %v5277_v63 = vpop.eup %5276 }
 0xd05   : > { %v2275_v0 = vsel %vm904_vm4, %v5277_v63, 0.0 }
 0xd06   : > { %2276 = vadd.xlane.f32.xlu1 %v2275_v0  ;;  %v2699_v0 = vld [vmem:[%s6864_s17 + $0x188] sm:$0xff] }
 0xd08   : > { %v5279_v1 = vpop.eup %5278 }
 0xd09   : > { %v2440_v2 = vsel %vm904_vm4, %v5279_v1, 0.0 }
 0xd0a   : > { %2441 = vadd.xlane.f32.xlu0 %v2440_v2 }
 0xd17   : > { %2280 = vrot.lane.b32.xlu1 %v5657_v20, %s6909_s29  ;;  %s6913_s29 = smov 16  }
 0xd1b   : > { %2445 = vrot.lane.b32.xlu1 %v5657_v20, %s6910_s26  ;;  %s6914_s26 = smov 24  }
 0xd20   : > { %2115 = vrot.lane.b32.xlu0 %v5657_v20, %s6911_s30 }
 0xd26   : > { %v1947_v3 = vpop.xlane.xlu1 %1946 }
 0xd27   : > { %5280 = vrcp.f32 %v1947_v3  ;;  %v2701_v3 = vld [vmem:[%s6864_s17 + $0x198] sm:$0xff] }
 0xd31   : > { %v5281_v5 = vpop.eup %5280 }
 0xd32   : > { %v1949_v6 = vmul.f32 %v5281_v5, %v5273_v50  ;;  %v2682_v5 = vld [vmem:[%s6864_s17 + $0x100] sm:$0xff] }
 0xd34   : > { %4822 = vmatmul.mubr.msk.f32.vlgmr.msra.gmra.mrb[18].mxu1 %vm904_vm4, %v1949_v6  ;;  %v2698_v6 = vld [vmem:[%s6864_s17 + $0x180] sm:$0xff] }
 0xd35   : > { %4831 = vmatprep.mubr.msk.f32.mxu1 %vm5302_vm0, %v5303_v14 }
 0xd8f   : > { %v2112_v7 = vpop.xlane.xlu0 %2111 }
 0xd90   : > { %5282 = vrcp.f32 %v2112_v7 }
 0xd93   : > { %v2277_v8 = vpop.xlane.xlu1 %2276 }
 0xd94   : > { %5284 = vrcp.f32 %v2277_v8  ;;  %v4913_v8 = vpack.c.bf16 %v2698_v6, %v2682_v5  ;;  %v2663_v5 = vld [vmem:[%s6864_s17 + $0x68] sm:$0xff] }
 0xd95   : > { %v2679_v6 = vld [vmem:[%s6864_s17 + $0xe8] sm:$0xff] }
 0xd97   : > { %v2442_v9 = vpop.xlane.xlu0 %2441  ;;  %v2281_v12 = vpop.permute.xlu1 %2280 }
 0xd98   : > { %5286 = vrcp.f32 %v2442_v9  ;;  %v2684_v9 = vld [vmem:[%s6864_s17 + $0x110] sm:$0xff] }
 0xd9a   : > { %v5283_v10 = vpop.eup %5282 }
 0xd9b   : > { %v2114_v11 = vmul.f32 %v5283_v10, %v5275_v26  ;;  %v2116_v13 = vpop.permute.xlu0 %2115  ;;  %v2446_v18 = vpop.permute.xlu1 %2445  ;;  %v2668_v26 = vld [vmem:[%s6864_s17 + $0x90] sm:$0xff] }
 0xd9c   : > { %4830 = vmatpush3.msra.mxu1 %v2116_v13  ;;  %v4917_v62 = vpack.c.bf16 %v2668_v26, %v2652_v61  ;;  %v2700_v10 = vld [vmem:[%s6864_s17 + $0x190] sm:$0xff]  ;;  %v2671_v13 = vld [vmem:[%s6864_s17 + $0xa8] sm:$0xff] }
 0xd9d   : > { %4832 = vmatmul.mubr.msk.f32.vlgmr.msra.gmra.mrb[20].mxu1 %vm904_vm4, %v2114_v11  ;;  %4839 = vmatprep.subr.mxu1 %v5303_v14  ;;  %v4921_v11 = vpack.c.bf16 %v2700_v10, %v2684_v9 }
 0xd9e   : > { %v5285_v15 = vpop.eup %5284  ;;  %4840 = vmatpush3.msra.mxu1 %v2281_v12  ;;  %4841 = vmatprep.mubr.msk.f32.mxu1 %vm5302_vm0, %v5303_v14  ;;  %v2655_v12 = vld [vmem:[%s6864_s17 + $0x28] sm:$0xff] }
 0xd9f   : > { %v2279_v16 = vmul.f32 %v5285_v15, %v5277_v63  ;;  %4849 = vmatprep.subr.mxu1 %v5303_v14  ;;  %v2683_v63 = vld [vmem:[%s6864_s17 + $0x108] sm:$0xff]  ;;  %v2657_v15 = vld [vmem:[%s6864_s17 + $0x38] sm:$0xff] }
 0xda0   : > { %v4911_v2 = vpack.c.bf16 %v2699_v0, %v2683_v63  ;;  %v2706_v63 = vld [vmem:[%s6864_s17 + $0x1c0] sm:$0xff]  ;;  %v4943_v0 = vpack.c.bf16 %v2707_v58, %v2691_v57  ;;  %v3438_v58 = vld [vmem:[%s6866_s19 + $0x1a8] sm:$0xff] }
 0xda1   : > { %4842 = vmatmul.mubr.msk.f32.vlgmr.msra.gmra.mrb[22].mxu1 %vm904_vm4, %v2279_v16  ;;  %v4923_v16 = vpack.c.bf16 %v2671_v13, %v2655_v12  ;;  %v2678_v12 = vld [vmem:[%s6864_s17 + $0xe0] sm:$0xff]  ;;  %v4955_v13 = vpack.c.bf16 %v2679_v6, %v2663_v5  ;;  %v3439_v5 = vld [vmem:[%s6866_s19 + $0x1b0] sm:$0xff]  ;;  %v3440_v6 = vld [vmem:[%s6866_s19 + $0x1b8] sm:$0xff] }
 0xda2   : > { %v5287_v19 = vpop.eup %5286  ;;  %4850 = vmatpush3.msra.mxu1 %v2446_v18  ;;  %4851 = vmatprep.mubr.msk.f32.mxu1 %vm5302_vm0, %v5303_v14  ;;  %v2673_v18 = vld [vmem:[%s6864_s17 + $0xb8] sm:$0xff]  ;;  %v3437_v57 = vld [vmem:[%s6866_s19 + $0x1a0] sm:$0xff] }
 0xda3   : > { %v2444_v20 = vmul.f32 %v5287_v19, %v5279_v1  ;;  %4908 = vmatprep.subr.bf16.mxu1 %v4907_v55  ;;  %v2685_v1 = vld [vmem:[%s6864_s17 + $0x118] sm:$0xff]  ;;  %v4931_v19 = vpack.c.bf16 %v2673_v18, %v2657_v15  ;;  %v2660_v55 = vld [vmem:[%s6864_s17 + $0x50] sm:$0xff] }
 0xda4   : > { %v4919_v7 = vpack.c.bf16 %v2701_v3, %v2685_v1  ;;  %v2708_v3 = vld [vmem:[%s6864_s17 + $0x1d0] sm:$0xff] }
 0xda5   : > { %4852 = vmatmul.mubr.msk.f32.vlgmr.msra.gmra.mrb[24].mxu1 %vm904_vm4, %v2444_v20  ;;  %v2680_v18 = vld [vmem:[%s6864_s17 + $0xf0] sm:$0xff] }
 0xda6   : > { %2865 = vmatprep.mubr.f32.mxu1 %v5303_v14  ;;  %4910 = vmatpush1.bf16.msra.mxu1 %v4909_v60  ;;  %v2709_v60 = vld [vmem:[%s6864_s17 + $0x1d8] sm:$0xff] }
 0xda7   : > { %4912 = vmatprep.subr.bf16.mxu1 %v4911_v2  ;;  %v2692_v2 = vld [vmem:[%s6864_s17 + $0x150] sm:$0xff] }
 0xda8   : > { %v4953_v10 = vpack.c.bf16 %v2708_v3, %v2692_v2  ;;  %v3407_v2 = vld [vmem:[%s6866_s19 + $0xb0] sm:$0xff]  ;;  %v3408_v3 = vld [vmem:[%s6866_s19 + $0xb8] sm:$0xff] }
 0xdaa   : > { %4914 = vmatpush1.bf16.msra.mxu1 %v4913_v8  ;;  %v2681_v8 = vld [vmem:[%s6864_s17 + $0xf8] sm:$0xff] }
 0xdab   : > { %4924 = vmatprep.subr.bf16.mxu1 %v4923_v16  ;;  %v2664_v16 = vld [vmem:[%s6864_s17 + $0x70] sm:$0xff] }
 0xe07   : > { %v2022_v21 = vpop.f32.mrb[18].mxu1 }
 0xe08   : > { %v4823_v23 = vpop.f32.mrb[19].mxu1 }
 0xe70   : > { %v2187_v31 = vpop.f32.mrb[20].mxu1 }
 0xe71   : > { %2522 = vrot.lane.b32.xlu0 %v2187_v31, %s6912_s3  ;;  %v4833_v32 = vpop.f32.mrb[21].mxu1  ;;  %v2656_v31 = vld [vmem:[%s6864_s17 + $0x30] sm:$0xff] }
 0xe72   : > { %v2672_v32 = vld [vmem:[%s6864_s17 + $0xb0] sm:$0xff] }
 0xe74   : > { %v2352_v33 = vpop.f32.mrb[22].mxu1 }
 0xe75   : > { %2526 = vrot.lane.b32.xlu1 %v2352_v33, %s6913_s29  ;;  %v4843_v34 = vpop.f32.mrb[23].mxu1  ;;  %v2687_v33 = vld [vmem:[%s6864_s17 + $0x128] sm:$0xff]  ;;  %s722_s29 = scalar_lea.vmem %s6870_s23, %s5460_s28 }
 0xe76   : > { %v2703_v34 = vld [vmem:[%s6864_s17 + $0x1a8] sm:$0xff] }
 0xe78   : > { %v2517_v35 = vpop.f32.mrb[24].mxu1 }
 0xe79   : > { %2530 = vrot.lane.b32.xlu0 %v2517_v35, %s6914_s26  ;;  %v4853_v4 = vpop.f32.mrb[25].mxu1  ;;  %v2689_v35 = vld [vmem:[%s6864_s17 + $0x138] sm:$0xff] }
 0xe7a   : > { %v2705_v4 = vld [vmem:[%s6864_s17 + $0x1b8] sm:$0xff] }
 0xee3   : > { %v2523_v36 = vpop.permute.xlu0 %2522 }
 0xee4   : > { %v2533_v38 = vsel %vm904_vm4, %v2022_v21, %v2523_v36 }
 0xee7   : > { %v2527_v37 = vpop.permute.xlu1 %2526 }
 0xee8   : > { %v2534_v39 = vsel %vm1575_vm5, %v2533_v38, %v2527_v37  ;;  %v4925_v37 = vpack.c.bf16 %v2670_v29, %v2654_v28  ;;  %v4933_v38 = vpack.c.bf16 %v2672_v32, %v2656_v31  ;;  %v2710_v28 = vld [vmem:[%s6864_s17 + $0x1e0] sm:$0xff]  ;;  %v2696_v31 = vld [vmem:[%s6864_s17 + $0x170] sm:$0xff] }
 0xee9   : > { %v2712_v32 = vld [vmem:[%s6864_s17 + $0x1f0] sm:$0xff] }
 0xeeb   : > { %v2531_v40 = vpop.permute.xlu0 %2530 }
 0xeec   : > { %v2535_v41 = vsel %vm1577_vm6, %v2534_v39, %v2531_v40  ;;  %v2686_v39 = vld [vmem:[%s6864_s17 + $0x120] sm:$0xff] }
 0xeed   : > { %4863 = vmatmul.mubr.msk.f32.vlgmr.msra.gmra.mrb[16].mxu0 %vm826_vm3, %v2535_v41  ;;  %v2702_v40 = vld [vmem:[%s6864_s17 + $0x1a0] sm:$0xff] }
 0xeee   : > { %2936 = vmatprep.mubr.f32.mxu0 %v5303_v14 }
 0xfc0   : > { %v2616_v43 = vpop.f32.mrb[16].mxu0 }
 0xfc1   : > { %v2617_v44 = vadd.f32 %v4348_v42, %v2616_v43  ;;  %v4864_v45 = vpop.f32.mrb[17].mxu0  ;;  %v4927_v42 = vpack.c.bf16 %v2703_v34, %v2687_v33  ;;  %v4935_v43 = vpack.c.bf16 %v2705_v4, %v2689_v35  ;;  %v3401_v33 = vld [vmem:[%s6866_s19 + $0x80] sm:$0xff]  ;;  %v3402_v34 = vld [vmem:[%s6866_s19 + $0x88] sm:$0xff] }
 0xfc2   : > { %v2704_v45 = vld [vmem:[%s6864_s17 + $0x1b0] sm:$0xff]  ;;  %v3433_v35 = vld [vmem:[%s6866_s19 + $0x180] sm:$0xff]  ;;  %v3434_v4 = vld [vmem:[%s6866_s19 + $0x188] sm:$0xff] }
 0xfc3   : > { %v2620_v46 = vadd.f32 %v2617_v44, %v5648_v17  ;;  %v2653_v17 = vld [vmem:[%s6864_s17 + $0x18] sm:$0xff]  ;;  %v2688_v44 = vld [vmem:[%s6864_s17 + $0x130] sm:$0xff] }
 0xfc4   : > { %v4915_v59 = vpack.c.bf16 %v2669_v56, %v2653_v17  ;;  %v2676_v56 = vld [vmem:[%s6864_s17 + $0xd0] sm:$0xff] }
 0xfc5   : > { %v2623_v47 = vsel %vm826_vm3, %v2620_v46, 0.0  ;;  %v4949_v26 = vpack.c.bf16 %v2676_v56, %v2660_v55  ;;  %v3405_v55 = vld [vmem:[%s6866_s19 + $0xa0] sm:$0xff]  ;;  %v3406_v56 = vld [vmem:[%s6866_s19 + $0xa8] sm:$0xff] }
 0xfc6   : > { %2624 = vadd.xlane.f32.xlu1 %v2623_v47  ;;  %4916 = vmatprep.subr.bf16.mxu0 %v4915_v59  ;;  %v2675_v47 = vld [vmem:[%s6864_s17 + $0xc8] sm:$0xff]  ;;  %v2693_v59 = vld [vmem:[%s6864_s17 + $0x158] sm:$0xff] }
 0xfc7   : > { %4918 = vmatpush1.bf16.msra.mxu0 %v4917_v62  ;;  %v2690_v62 = vld [vmem:[%s6864_s17 + $0x140] sm:$0xff]  ;;  %v4951_v1 = vpack.c.bf16 %v2709_v60, %v2693_v59 }
 0xfc8   : > { %4920 = vmatprep.subr.bf16.mxu0 %v4919_v7  ;;  %v2665_v7 = vld [vmem:[%s6864_s17 + $0x78] sm:$0xff]  ;;  %v4945_v9 = vpack.c.bf16 %v2706_v63, %v2690_v62  ;;  %v4979_v62 = vpack.c.bf16 %v3406_v56, %v3405_v55  ;;  %v5011_v63 = vpack.c.bf16 %v3438_v58, %v3437_v57  ;;  %v3415_v55 = vld [vmem:[%s6866_s19 + $0xf0] sm:$0xff] }
 0xfc9   : > { %v4963_v15 = vpack.c.bf16 %v2681_v8, %v2665_v7  ;;  %v3416_v56 = vld [vmem:[%s6866_s19 + $0xf8] sm:$0xff]  ;;  %v3447_v57 = vld [vmem:[%s6866_s19 + $0x1f0] sm:$0xff] }
 0xfca   : > { %v4999_v58 = vpack.c.bf16 %v3416_v56, %v3415_v55  ;;  %v3484_v55 = vld [vmem:[%s6866_s19 + $0x318] sm:$0xff]  ;;  %v3469_v56 = vld [vmem:[%s6866_s19 + $0x2a0] sm:$0xff] }
 0xfcb   : > { %4922 = vmatpush1.bf16.msra.mxu0 %v4921_v11  ;;  %v2662_v11 = vld [vmem:[%s6864_s17 + $0x60] sm:$0xff] }
 0xfcc   : > { %4932 = vmatprep.subr.bf16.mxu0 %v4931_v19  ;;  %v2695_v19 = vld [vmem:[%s6864_s17 + $0x168] sm:$0xff] }
0x1053   : > { %v2625_v48 = vpop.xlane.xlu1 %2624 }
0x1054   : > { %v2626_v49 = vmul.f32 0.03125, %v2625_v48  ;;  %v2661_v48 = vld [vmem:[%s6864_s17 + $0x58] sm:$0xff] }
0x1056   : > { %v2627_v50 = vsub.f32 %v2620_v46, %v2626_v49  ;;  %v2659_v46 = vld [vmem:[%s6864_s17 + $0x48] sm:$0xff]  ;;  %v2677_v49 = vld [vmem:[%s6864_s17 + $0xd8] sm:$0xff] }
0x1057   : > { %v4939_v54 = vpack.c.bf16 %v2675_v47, %v2659_v46  ;;  %v4947_v17 = vpack.c.bf16 %v2677_v49, %v2661_v48  ;;  %v3404_v46 = vld [vmem:[%s6866_s19 + $0x98] sm:$0xff]  ;;  %v3435_v47 = vld [vmem:[%s6866_s19 + $0x190] sm:$0xff] }
0x1058   : > { %v2628_v51 = vmul.f32 %v2627_v50, %v2627_v50  ;;  %v3436_v48 = vld [vmem:[%s6866_s19 + $0x198] sm:$0xff] }
0x105a   : > { %v2629_v52 = vsel %vm826_vm3, %v2628_v51, 0.0  ;;  %v4937_v51 = vpack.c.bf16 %v2704_v45, %v2688_v44  ;;  %v3418_v44 = vld [vmem:[%s6866_s19 + $0x108] sm:$0xff]  ;;  %v3403_v45 = vld [vmem:[%s6866_s19 + $0x90] sm:$0xff] }
0x105b   : > { %2630 = vadd.xlane.f32.xlu0 %v2629_v52  ;;  %v2658_v52 = vld [vmem:[%s6864_s17 + $0x40] sm:$0xff] }
0x105c   : > { %v4941_v61 = vpack.c.bf16 %v2674_v53, %v2658_v52  ;;  %v4975_v52 = vpack.c.bf16 %v3404_v46, %v3403_v45  ;;  %v5007_v53 = vpack.c.bf16 %v3436_v48, %v3435_v47  ;;  %v3445_v45 = vld [vmem:[%s6866_s19 + $0x1e0] sm:$0xff]  ;;  %v3446_v46 = vld [vmem:[%s6866_s19 + $0x1e8] sm:$0xff] }
0x10e8   : > { %v2631_v20 = vpop.xlane.xlu0 %2630 }
0x10e9   : > { %v2632_v21 = vmul.f32 0.03125, %v2631_v20  ;;  %v2711_v20 = vld [vmem:[%s6864_s17 + $0x1e8] sm:$0xff] }
0x10ea   : > { %v4959_v29 = vpack.c.bf16 %v2711_v20, %v2695_v19  ;;  %v3441_v19 = vld [vmem:[%s6866_s19 + $0x1c0] sm:$0xff]  ;;  %v3442_v20 = vld [vmem:[%s6866_s19 + $0x1c8] sm:$0xff] }
0x10eb   : > { %v2633_v23 = vadd.f32 1e-05, %v2632_v21  ;;  %v2697_v21 = vld [vmem:[%s6864_s17 + $0x178] sm:$0xff] }
0x10ed   : > { %5288 = vrsqrt.f32 %v2633_v23  ;;  %v2713_v23 = vld [vmem:[%s6864_s17 + $0x1f8] sm:$0xff] }
0x10f7   : > { %v5289_v25 = vpop.eup %5288 }
0x10f8   : > { %v2635_v30 = vmul.f32 %v5289_v25, %v2627_v50  ;;  %v4929_v50 = vpack.c.bf16 %v2702_v40, %v2686_v39  ;;  %v4965_v25 = vpack.c.bf16 %v2680_v18, %v2664_v16  ;;  %v3386_v39 = vld [vmem:[%s6866_s19 + $0x8] sm:$0xff]  ;;  %v4971_v40 = vpack.c.bf16 %v3402_v34, %v3401_v33  ;;  %v3409_v16 = vld [vmem:[%s6866_s19 + $0xc0] sm:$0xff]  ;;  %v3443_v33 = vld [vmem:[%s6866_s19 + $0x1d0] sm:$0xff] }
0x10f9   : > { %v3410_v18 = vld [vmem:[%s6866_s19 + $0xc8] sm:$0xff]  ;;  %v3444_v34 = vld [vmem:[%s6866_s19 + $0x1d8] sm:$0xff] }
0x10fa   : > { %v2642_v36 = vmul.f32 %v4350_v24, %v2635_v30  ;;  %v4957_v24 = vpack.c.bf16 %v2678_v12, %v2662_v11  ;;  %v4967_v30 = vpack.c.bf16 %v2713_v23, %v2697_v21  ;;  %v4983_v11 = vpack.c.bf16 %v3408_v3, %v3407_v2  ;;  %v3465_v2 = vld [vmem:[%s6866_s19 + $0x280] sm:$0xff]  ;;  %v3466_v3 = vld [vmem:[%s6866_s19 + $0x288] sm:$0xff] }
0x10fb   : > { %v5015_v12 = vpack.c.bf16 %v3440_v6, %v3439_v5  ;;  %v3497_v5 = vld [vmem:[%s6866_s19 + $0x380] sm:$0xff]  ;;  %v5035_v6 = vpack.c.bf16 %v3466_v3, %v3465_v2  ;;  %v3454_v3 = vld [vmem:[%s6866_s19 + $0x228] sm:$0xff] }
0x10fc   : > { %v5845_v41 = vadd.f32 %v4351_v27, %v2642_v36  ;;  %v2694_v27 = vld [vmem:[%s6864_s17 + $0x160] sm:$0xff] }
0x10fd   : > { %v4961_v36 = vpack.c.bf16 %v2710_v28, %v2694_v27  ;;  %v4987_v27 = vpack.c.bf16 %v3410_v18, %v3409_v16  ;;  %v5019_v28 = vpack.c.bf16 %v3442_v20, %v3441_v19  ;;  %v2714_v16 = vld [vmem:[%s6865_s18] sm:$0xff] }
0x10fe   : > { %4352 = vmatmul.mubr.msk.f32.vlgmr.msra.gmra.mrb[26].mxu1 %vm826_vm3, %v5845_v41  ;;  %4353 = vmatmul.mubr.msk.f32.vlgmr.msra.gmra.mrb[18].mxu0 %vm826_vm3, %v5845_v41  ;;  %v3453_v2 = vld [vmem:[%s6866_s19 + $0x220] sm:$0xff] }
0x10ff   : > { %4926 = vmatpush1.bf16.msra.mxu1 %v4925_v37  ;;  %4934 = vmatpush1.bf16.msra.mxu0 %v4933_v38  ;;  %v4969_v37 = vpack.c.bf16 %v2712_v32, %v2696_v31  ;;  %v3385_v38 = vld [vmem:[%s6866_s19] sm:$0xff]  ;;  %v3411_v31 = vld [vmem:[%s6866_s19 + $0xd0] sm:$0xff]  ;;  %v3412_v32 = vld [vmem:[%s6866_s19 + $0xd8] sm:$0xff] }
0x1100   : > { %4928 = vmatprep.subr.bf16.mxu1 %v4927_v42  ;;  %4936 = vmatprep.subr.bf16.mxu0 %v4935_v43  ;;  %v5003_v42 = vpack.c.bf16 %v3434_v4, %v3433_v35  ;;  %v3417_v43 = vld [vmem:[%s6866_s19 + $0x100] sm:$0xff]  ;;  %v4973_v49 = vpack.c.bf16 %v3386_v39, %v3385_v38  ;;  %v4991_v38 = vpack.c.bf16 %v3412_v32, %v3411_v31 }
0x1101   : > { %3007 = vmatprep.mubr.f32.mxu1 %v5303_v14  ;;  %3078 = vmatprep.mubr.f32.mxu0 %v5303_v14  ;;  %v5023_v39 = vpack.c.bf16 %v3444_v34, %v3443_v33  ;;  %v3481_v34 = vld [vmem:[%s6866_s19 + $0x300] sm:$0xff] }
0x1103   : > { %4930 = vmatpush1.bf16.msra.mxu1 %v4929_v50  ;;  %4938 = vmatpush1.bf16.msra.mxu0 %v4937_v51  ;;  %v5005_v50 = vpack.c.bf16 %v3418_v44, %v3417_v43  ;;  %v3388_v51 = vld [vmem:[%s6866_s19 + $0x18] sm:$0xff]  ;;  %v3413_v43 = vld [vmem:[%s6866_s19 + $0xe0] sm:$0xff]  ;;  %v3414_v44 = vld [vmem:[%s6866_s19 + $0xe8] sm:$0xff] }
0x1104   : > { %4940 = vmatprep.subr.bf16.mxu1 %v4939_v54  ;;  %4948 = vmatprep.subr.bf16.mxu0 %v4947_v17  ;;  %v3419_v54 = vld [vmem:[%s6866_s19 + $0x110] sm:$0xff]  ;;  %v3420_v17 = vld [vmem:[%s6866_s19 + $0x118] sm:$0xff] }
0x1105   : > { %v5009_v60 = vpack.c.bf16 %v3420_v17, %v3419_v54 }
0x1106   : > { %4354 = vmatmul.mubr.msk.f32.vlgmr.msra.gmra.mrb[28].mxu1 %vm826_vm3, %v5845_v41  ;;  %4355 = vmatmul.mubr.msk.f32.vlgmr.msra.gmra.mrb[20].mxu0 %vm826_vm3, %v5845_v41 }
0x1107   : > { %4942 = vmatpush1.bf16.msra.mxu1 %v4941_v61  ;;  %4950 = vmatpush1.bf16.msra.mxu0 %v4949_v26  ;;  %v3389_v61 = vld [vmem:[%s6866_s19 + $0x20] sm:$0xff]  ;;  %v3390_v26 = vld [vmem:[%s6866_s19 + $0x28] sm:$0xff] }
0x1108   : > { %4944 = vmatprep.subr.bf16.mxu1 %v4943_v0  ;;  %4952 = vmatprep.subr.bf16.mxu0 %v4951_v1  ;;  %v3421_v0 = vld [vmem:[%s6866_s19 + $0x120] sm:$0xff]  ;;  %v3422_v1 = vld [vmem:[%s6866_s19 + $0x128] sm:$0xff]  ;;  %v4981_v7 = vpack.c.bf16 %v3390_v26, %v3389_v61  ;;  %v3400_v61 = vld [vmem:[%s6866_s19 + $0x78] sm:$0xff] }
0x1109   : > { %3149 = vmatprep.mubr.f32.mxu1 %v5303_v14  ;;  %3220 = vmatprep.mubr.f32.mxu0 %v5303_v14  ;;  %v5013_v8 = vpack.c.bf16 %v3422_v1, %v3421_v0  ;;  %v3432_v0 = vld [vmem:[%s6866_s19 + $0x178] sm:$0xff] }
0x110b   : > { %4946 = vmatpush1.bf16.msra.mxu1 %v4945_v9  ;;  %4954 = vmatpush1.bf16.msra.mxu0 %v4953_v10  ;;  %v3391_v9 = vld [vmem:[%s6866_s19 + $0x30] sm:$0xff]  ;;  %v3392_v10 = vld [vmem:[%s6866_s19 + $0x38] sm:$0xff] }
0x110c   : > { %4956 = vmatprep.subr.bf16.mxu1 %v4955_v13  ;;  %4964 = vmatprep.subr.bf16.mxu0 %v4963_v15  ;;  %v3423_v13 = vld [vmem:[%s6866_s19 + $0x130] sm:$0xff]  ;;  %v3424_v15 = vld [vmem:[%s6866_s19 + $0x138] sm:$0xff]  ;;  %v4985_v21 = vpack.c.bf16 %v3392_v10, %v3391_v9  ;;  %v6176_v9 = vshrl.u32 %v732_v22, 7 }
0x110d   : > { %v5017_v23 = vpack.c.bf16 %v3424_v15, %v3423_v13 }
0x110e   : > { %4356 = vmatmul.mubr.msk.f32.vlgmr.msra.gmra.mrb[30].mxu1 %vm826_vm3, %v5845_v41  ;;  %4357 = vmatmul.mubr.msk.f32.vlgmr.msra.gmra.mrb[22].mxu0 %vm826_vm3, %v5845_v41  ;;  %v2744_v10 = vsub.s32 6, %v6176_v9  ;;  %v2720_v13 = vsub.s32 0, %v6176_v9  ;;  %v2728_v15 = vsub.s32 2, %v6176_v9  ;;  %v2724_v22 = vsub.s32 1, %v6176_v9 }
0x110f   : > { %4958 = vmatpush1.bf16.msra.mxu1 %v4957_v24  ;;  %4966 = vmatpush1.bf16.msra.mxu0 %v4965_v25  ;;  %v3393_v24 = vld [vmem:[%s6866_s19 + $0x40] sm:$0xff]  ;;  %v3394_v25 = vld [vmem:[%s6866_s19 + $0x48] sm:$0xff]  ;;  %v2732_v18 = vsub.s32 3, %v6176_v9 }
0x1110   : > { %4960 = vmatprep.subr.bf16.mxu1 %v4959_v29  ;;  %4968 = vmatprep.subr.bf16.mxu0 %v4967_v30  ;;  %v3425_v29 = vld [vmem:[%s6866_s19 + $0x140] sm:$0xff]  ;;  %v3426_v30 = vld [vmem:[%s6866_s19 + $0x148] sm:$0xff]  ;;  %v4989_v35 = vpack.c.bf16 %v3394_v25, %v3393_v24  ;;  %v2721_v19 = vrot.slane %v2714_v16, %v2720_v13  ;;  %v2729_v20 = vrot.slane %v2714_v16, %v2728_v15  ;;  %v2736_v24 = vsub.s32 4, %v6176_v9 }
0x1111   : > { %3291 = vmatprep.mubr.f32.mxu1 %v5303_v14  ;;  %3362 = vmatprep.mubr.f32.mxu0 %v5303_v14  ;;  %v3387_v14 = vld [vmem:[%s6866_s19 + $0x10] sm:$0xff]  ;;  %v5021_v4 = vpack.c.bf16 %v3426_v30, %v3425_v29  ;;  %v3450_v29 = vld [vmem:[%s6866_s19 + $0x208] sm:$0xff] }
0x1112   : > { %v4977_v59 = vpack.c.bf16 %v3388_v51, %v3387_v14  ;;  %v5027_v14 = vpack.c.bf16 %v3446_v46, %v3445_v45  ;;  %v3398_v51 = vld [vmem:[%s6866_s19 + $0x68] sm:$0xff] }
0x1113   : > { %4962 = vmatpush1.bf16.msra.mxu1 %v4961_v36  ;;  %4970 = vmatpush1.bf16.msra.mxu0 %v4969_v37  ;;  %v3395_v36 = vld [vmem:[%s6866_s19 + $0x50] sm:$0xff]  ;;  %v3396_v37 = vld [vmem:[%s6866_s19 + $0x58] sm:$0xff] }
0x1114   : > { %4972 = vmatprep.subr.bf16.mxu1 %v4971_v40  ;;  %5004 = vmatprep.subr.bf16.mxu0 %v5003_v42  ;;  %v3427_v40 = vld [vmem:[%s6866_s19 + $0x150] sm:$0xff]  ;;  %v3428_v42 = vld [vmem:[%s6866_s19 + $0x158] sm:$0xff]  ;;  %v4993_v47 = vpack.c.bf16 %v3396_v37, %v3395_v36 }
0x1115   : > { %v5025_v48 = vpack.c.bf16 %v3428_v42, %v3427_v40  ;;  %v3468_v40 = vld [vmem:[%s6866_s19 + $0x298] sm:$0xff]  ;;  %v3499_v42 = vld [vmem:[%s6866_s19 + $0x390] sm:$0xff] }
0x1116   : > { %4358 = vmatmul.mubr.msk.f32.vlgmr.msra.gmra.mrb[32].mxu1 %vm826_vm3, %v5845_v41  ;;  %4359 = vmatmul.mubr.msk.f32.vlgmr.msra.gmra.mrb[24].mxu0 %vm826_vm3, %v5845_v41 }
0x1117   : > { %4974 = vmatpush3.bf16.msra.mxu1 %v4973_v49  ;;  %5006 = vmatpush3.bf16.msra.mxu0 %v5005_v50  ;;  %v3397_v49 = vld [vmem:[%s6866_s19 + $0x60] sm:$0xff]  ;;  %v4995_v50 = vpack.c.bf16 %v3414_v44, %v3413_v43  ;;  %v3500_v43 = vld [vmem:[%s6866_s19 + $0x398] sm:$0xff]  ;;  %v2737_v44 = vrot.slane %v2714_v16, %v2736_v24 }
0x1118   : > { %4976 = vmatprep.subr.bf16.mxu1 %v4975_v52  ;;  %5008 = vmatprep.subr.bf16.mxu0 %v5007_v53  ;;  %v3429_v52 = vld [vmem:[%s6866_s19 + $0x160] sm:$0xff]  ;;  %v3430_v53 = vld [vmem:[%s6866_s19 + $0x168] sm:$0xff]  ;;  %v4997_v54 = vpack.c.bf16 %v3398_v51, %v3397_v49  ;;  %v3483_v51 = vld [vmem:[%s6866_s19 + $0x310] sm:$0xff] }
0x1119   : > { %v5029_v17 = vpack.c.bf16 %v3430_v53, %v3429_v52 }
0x111b   : > { %4978 = vmatpush3.bf16.msra.mxu1 %v4977_v59  ;;  %5010 = vmatpush3.bf16.msra.mxu0 %v5009_v60  ;;  %v3448_v59 = vld [vmem:[%s6866_s19 + $0x1f8] sm:$0xff]  ;;  %v3399_v60 = vld [vmem:[%s6866_s19 + $0x70] sm:$0xff] }
0x111c   : > { %4980 = vmatprep.subr.bf16.mxu1 %v4979_v62  ;;  %5012 = vmatprep.subr.bf16.mxu0 %v5011_v63  ;;  %v5031_v26 = vpack.c.bf16 %v3448_v59, %v3447_v57  ;;  %v5001_v62 = vpack.c.bf16 %v3400_v61, %v3399_v60  ;;  %v3431_v63 = vld [vmem:[%s6866_s19 + $0x170] sm:$0xff]  ;;  %v3470_v57 = vld [vmem:[%s6866_s19 + $0x2a8] sm:$0xff]  ;;  %v3501_v60 = vld [vmem:[%s6866_s19 + $0x3a0] sm:$0xff] }
0x111d   : > { %v5033_v1 = vpack.c.bf16 %v3432_v0, %v3431_v63  ;;  %v3502_v61 = vld [vmem:[%s6866_s19 + $0x3a8] sm:$0xff]  ;;  %v5073_v0 = vpack.c.bf16 %v3484_v55, %v3483_v51  ;;  %v3489_v55 = vld [vmem:[%s6866_s19 + $0x340] sm:$0xff] }
0x111f   : > { %4982 = vmatpush3.bf16.msra.mxu1 %v4981_v7  ;;  %5014 = vmatpush3.bf16.msra.mxu0 %v5013_v8  ;;  %v3498_v7 = vld [vmem:[%s6866_s19 + $0x388] sm:$0xff] }
0x1120   : > { %4984 = vmatprep.subr.bf16.mxu1 %v4983_v11  ;;  %5016 = vmatprep.subr.bf16.mxu0 %v5015_v12  ;;  %v5067_v8 = vpack.c.bf16 %v3498_v7, %v3497_v5  ;;  %v6182_v11 = vld [vmem:[%s6865_s18 + $0x8] sm:$0xff] }
0x1121   : > { %v6185_v12 = vrot.slane %v6182_v11, %v2744_v10 }
0x1123   : > { %4986 = vmatpush3.bf16.msra.mxu1 %v4985_v21  ;;  %5018 = vmatpush3.bf16.msra.mxu0 %v5017_v23  ;;  %v2725_v21 = vrot.slane %v2714_v16, %v2724_v22  ;;  %v2733_v23 = vrot.slane %v2714_v16, %v2732_v18 }
0x1124   : > { %4988 = vmatprep.subr.bf16.mxu1 %v4987_v27  ;;  %5020 = vmatprep.subr.bf16.mxu0 %v5019_v28  ;;  %v3449_v28 = vld [vmem:[%s6866_s19 + $0x200] sm:$0xff] }
0x1125   : > { %v5037_v45 = vpack.c.bf16 %v3450_v29, %v3449_v28  ;;  %v3504_v28 = vld [vmem:[%s6866_s19 + $0x3b8] sm:$0xff]  ;;  %v5045_v29 = vpack.c.bf16 %v3454_v3, %v3453_v2  ;;  %v3491_v2 = vld [vmem:[%s6866_s19 + $0x350] sm:$0xff]  ;;  %v2769_v3 = vrot.slane %v6182_v11, %v2736_v24 }
0x1127   : > { %4990 = vmatpush3.bf16.msra.mxu1 %v4989_v35  ;;  %5022 = vmatpush3.bf16.msra.mxu0 %v5021_v4  ;;  %v3482_v35 = vld [vmem:[%s6866_s19 + $0x308] sm:$0xff]  ;;  %v3467_v4 = vld [vmem:[%s6866_s19 + $0x290] sm:$0xff] }
0x1128   : > { %4992 = vmatprep.subr.bf16.mxu1 %v4991_v38  ;;  %5024 = vmatprep.subr.bf16.mxu0 %v5023_v39  ;;  %v2740_v38 = vsub.s32 5, %v6176_v9  ;;  %v2748_v39 = vsub.s32 7, %v6176_v9  ;;  %v5069_v49 = vpack.c.bf16 %v3482_v35, %v3481_v34  ;;  %v3455_v34 = vld [vmem:[%s6866_s19 + $0x230] sm:$0xff]  ;;  %v3456_v35 = vld [vmem:[%s6866_s19 + $0x238] sm:$0xff]  ;;  %v3461_v9 = vld [vmem:[%s6866_s19 + $0x260] sm:$0xff] }
0x112a   : > { %v2749_v59 = vrot.slane %v2714_v16, %v2748_v39  ;;  %v2781_v24 = vrot.slane %v6182_v11, %v2748_v39 }
0x112b   : > { %4994 = vmatpush3.bf16.msra.mxu1 %v4993_v47  ;;  %5026 = vmatpush3.bf16.msra.mxu0 %v5025_v48  ;;  %v2745_v48 = vrot.slane %v2714_v16, %v2744_v10  ;;  %v5075_v10 = vpack.c.bf16 %v3502_v61, %v3501_v60  ;;  %v3476_v60 = vld [vmem:[%s6866_s19 + $0x2d8] sm:$0xff]  ;;  %v3507_v61 = vld [vmem:[%s6866_s19 + $0x3d0] sm:$0xff] }
0x112c   : > { %4996 = vmatprep.subr.bf16.mxu1 %v4995_v50  ;;  %5028 = vmatprep.subr.bf16.mxu0 %v5027_v14  ;;  %v3451_v50 = vld [vmem:[%s6866_s19 + $0x210] sm:$0xff]  ;;  %v3452_v14 = vld [vmem:[%s6866_s19 + $0x218] sm:$0xff] }
0x112d   : > { %v5041_v63 = vpack.c.bf16 %v3452_v14, %v3451_v50 }
0x112f   : > { %4998 = vmatpush3.bf16.msra.mxu1 %v4997_v54  ;;  %5030 = vmatpush3.bf16.msra.mxu0 %v5029_v17  ;;  %v5039_v54 = vpack.c.bf16 %v3468_v40, %v3467_v4  ;;  %v5071_v17 = vpack.c.bf16 %v3500_v43, %v3499_v42  ;;  %v3487_v4 = vld [vmem:[%s6866_s19 + $0x330] sm:$0xff]  ;;  %v3488_v40 = vld [vmem:[%s6866_s19 + $0x338] sm:$0xff]  ;;  %v3473_v42 = vld [vmem:[%s6866_s19 + $0x2c0] sm:$0xff] }
0x1130   : > { %5000 = vmatprep.subr.bf16.mxu1 %v4999_v58  ;;  %5032 = vmatprep.subr.bf16.mxu0 %v5031_v26  ;;  %v2741_v58 = vrot.slane %v2714_v16, %v2740_v38  ;;  %v3485_v16 = vld [vmem:[%s6866_s19 + $0x320] sm:$0xff]  ;;  %v3474_v43 = vld [vmem:[%s6866_s19 + $0x2c8] sm:$0xff]  ;;  %v5081_v50 = vpack.c.bf16 %v3488_v40, %v3487_v4  ;;  %v3479_v4 = vld [vmem:[%s6866_s19 + $0x2f0] sm:$0xff] }
0x1131   : > { %v5051_v14 = vpack.c.bf16 %v3474_v43, %v3473_v42  ;;  %v3512_v40 = vld [vmem:[%s6866_s19 + $0x3f8] sm:$0xff] }
0x1133   : > { %5002 = vmatpush3.bf16.msra.mxu1 %v5001_v62  ;;  %5034 = vmatpush3.bf16.msra.mxu0 %v5033_v1  ;;  %v5043_v1 = vpack.c.bf16 %v3470_v57, %v3469_v56  ;;  %v3490_v56 = vld [vmem:[%s6866_s19 + $0x348] sm:$0xff]  ;;  %v3475_v57 = vld [vmem:[%s6866_s19 + $0x2d0] sm:$0xff] }
0x1134   : > { %5036 = vmatprep.subr.bf16.mxu1 %v5035_v6  ;;  %5068 = vmatprep.subr.bf16.mxu0 %v5067_v8 }
0x11d1   : > { %v2867_v25 = vpop.f32.mrb[26].mxu1  ;;  %v2938_v27 = vpop.f32.mrb[18].mxu0 }
0x11d2   : > { %v2868_v30 = vadd.f32 %v2867_v25, %v2721_v19  ;;  %v2939_v31 = vadd.f32 %v2938_v27, %v2729_v20  ;;  %v2869_v32 = vpop.f32.mrb[27].mxu1  ;;  %v2940_v33 = vpop.f32.mrb[19].mxu0  ;;  %v3486_v19 = vld [vmem:[%s6866_s19 + $0x328] sm:$0xff]  ;;  %v3471_v20 = vld [vmem:[%s6866_s19 + $0x2b0] sm:$0xff]  ;;  %v3472_v25 = vld [vmem:[%s6866_s19 + $0x2b8] sm:$0xff] }
0x11d3   : > { %v2870_v36 = vadd.f32 %v2869_v32, %v2725_v21  ;;  %v2941_v37 = vadd.f32 %v2940_v33, %v2733_v23  ;;  %v3503_v27 = vld [vmem:[%s6866_s19 + $0x3b0] sm:$0xff]  ;;  %v2753_v32 = vrot.slane %v6182_v11, %v2720_v13  ;;  %v5077_v33 = vpack.c.bf16 %v3486_v19, %v3485_v16  ;;  %v3477_v16 = vld [vmem:[%s6866_s19 + $0x2e0] sm:$0xff]  ;;  %v3478_v19 = vld [vmem:[%s6866_s19 + $0x2e8] sm:$0xff] }
0x11d4   : > { %v3369_v52 = vmax.f32 %v2868_v30, 0.0  ;;  %v3371_v53 = vmax.f32 %v2939_v31, 0.0  ;;  %v5047_v13 = vpack.c.bf16 %v3472_v25, %v3471_v20  ;;  %v2773_v20 = vrot.slane %v6182_v11, %v2740_v38 }
0x11d5   : > { %v3370_v46 = vmax.f32 %v2870_v36, 0.0  ;;  %v3372_v47 = vmax.f32 %v2941_v37, 0.0  ;;  %v2761_v36 = vrot.slane %v6182_v11, %v2728_v15  ;;  %v5079_v37 = vpack.c.bf16 %v3504_v28, %v3503_v27 }
0x11d6   : > { %v2757_v15 = vrot.slane %v6182_v11, %v2724_v22  ;;  %v3457_v22 = vld [vmem:[%s6866_s19 + $0x240] sm:$0xff] }
0x11d7   : > { %3712 = vmatprep.mubr.f32.mxu1 %v3370_v46  ;;  %3782 = vmatprep.mubr.f32.mxu0 %v3372_v47  ;;  %v3506_v46 = vld [vmem:[%s6866_s19 + $0x3c8] sm:$0xff] }
0x11d8   : > { %3713 = vmatmul.mubr.f32.vlgmr.msra.gmra.mrb[34].mxu1 %v3369_v52  ;;  %3783 = vmatmul.mubr.f32.vlgmr.msra.gmra.mrb[26].mxu0 %v3371_v53 }
0x11d9   : > { %v3009_v26 = vpop.f32.mrb[28].mxu1  ;;  %v3080_v62 = vpop.f32.mrb[20].mxu0  ;;  %5038 = vmatpush3.bf16.msra.mxu1 %v5037_v45  ;;  %5070 = vmatpush3.bf16.msra.mxu0 %v5069_v49  ;;  %v3505_v45 = vld [vmem:[%s6866_s19 + $0x3c0] sm:$0xff]  ;;  %v5049_v49 = vpack.c.bf16 %v3456_v35, %v3455_v34  ;;  %v3494_v35 = vld [vmem:[%s6866_s19 + $0x368] sm:$0xff] }
0x11da   : > { %v6265_v5 = vadd.f32 %v3009_v26, %v2737_v44  ;;  %v6267_v6 = vadd.f32 %v3080_v62, %v2745_v48  ;;  %v3011_v7 = vpop.f32.mrb[29].mxu1  ;;  %v3082_v8 = vpop.f32.mrb[21].mxu0  ;;  %5040 = vmatprep.subr.bf16.mxu1 %v5039_v54  ;;  %5072 = vmatprep.subr.bf16.mxu0 %v5071_v17  ;;  %v2765_v44 = vrot.slane %v6182_v11, %v2732_v18  ;;  %v3458_v18 = vld [vmem:[%s6866_s19 + $0x248] sm:$0xff]  ;;  %v3508_v26 = vld [vmem:[%s6866_s19 + $0x3d8] sm:$0xff]  ;;  %v3493_v34 = vld [vmem:[%s6866_s19 + $0x360] sm:$0xff] }
0x11db   : > { %v3012_v21 = vadd.f32 %v3011_v7, %v2741_v58  ;;  %v3083_v23 = vadd.f32 %v3082_v8, %v2749_v59  ;;  %v5083_v17 = vpack.c.bf16 %v3506_v46, %v3505_v45  ;;  %v5053_v62 = vpack.c.bf16 %v3458_v18, %v3457_v22  ;;  %v3462_v11 = vld [vmem:[%s6866_s19 + $0x268] sm:$0xff] }
0x11dc   : > { %v5055_v7 = vpack.c.bf16 %v3476_v60, %v3475_v57  ;;  %v5087_v8 = vpack.c.bf16 %v3508_v26, %v3507_v61  ;;  %v5061_v42 = vpack.c.bf16 %v3462_v11, %v3461_v9  ;;  %v5093_v43 = vpack.c.bf16 %v3494_v35, %v3493_v34  ;;  %v3562_v22 = vld [vmem:[%s6866_s19 + $0x588] sm:$0xff]  ;;  %v3545_v57 = vld [vmem:[%s6866_s19 + $0x500] sm:$0xff]  ;;  %v3531_v61 = vld [vmem:[%s6866_s19 + $0x490] sm:$0xff] }
0x11dd   : > { %v3374_v30 = vmax.f32 %v3012_v21, 0.0  ;;  %v3376_v31 = vmax.f32 %v3083_v23, 0.0  ;;  %5042 = vmatpush3.bf16.msra.mxu1 %v5041_v63  ;;  %5074 = vmatpush3.bf16.msra.mxu0 %v5073_v0  ;;  %v5085_v63 = vpack.c.bf16 %v3490_v56, %v3489_v55  ;;  %v3459_v0 = vld [vmem:[%s6866_s19 + $0x250] sm:$0xff]  ;;  %v3509_v21 = vld [vmem:[%s6866_s19 + $0x3e0] sm:$0xff]  ;;  %v3510_v23 = vld [vmem:[%s6866_s19 + $0x3e8] sm:$0xff] }
0x11de   : > { %5044 = vmatprep.subr.bf16.mxu1 %v5043_v1  ;;  %5076 = vmatprep.subr.bf16.mxu0 %v5075_v10  ;;  %v3460_v1 = vld [vmem:[%s6866_s19 + $0x258] sm:$0xff]  ;;  %v3513_v55 = vld [vmem:[%s6866_s19 + $0x400] sm:$0xff]  ;;  %v3514_v56 = vld [vmem:[%s6866_s19 + $0x408] sm:$0xff] }
0x11df   : > { %3852 = vmatprep.mubr.f32.mxu1 %v3374_v30  ;;  %3922 = vmatprep.mubr.f32.mxu0 %v3376_v31  ;;  %v3492_v10 = vld [vmem:[%s6866_s19 + $0x358] sm:$0xff]  ;;  %v5057_v28 = vpack.c.bf16 %v3460_v1, %v3459_v0  ;;  %v5059_v30 = vpack.c.bf16 %v3478_v19, %v3477_v16  ;;  %v3546_v60 = vld [vmem:[%s6866_s19 + $0x508] sm:$0xff]  ;;  %v5101_v0 = vpack.c.bf16 %v3514_v56, %v3513_v55  ;;  %v3373_v1 = vmax.f32 %v6265_v5, 0.0  ;;  %v3571_v56 = vld [vmem:[%s6866_s19 + $0x5d0] sm:$0xff] }
0x11e0   : > { %v3532_v26 = vld [vmem:[%s6866_s19 + $0x498] sm:$0xff]  ;;  %v3550_v11 = vld [vmem:[%s6866_s19 + $0x528] sm:$0xff] }
0x11e1   : > { %v3151_v47 = vpop.f32.mrb[30].mxu1  ;;  %v3222_v48 = vpop.f32.mrb[22].mxu0  ;;  %5046 = vmatpush3.bf16.msra.mxu1 %v5045_v29  ;;  %5078 = vmatpush3.bf16.msra.mxu0 %v5077_v33  ;;  %v5089_v29 = vpack.c.bf16 %v3492_v10, %v3491_v2  ;;  %v5091_v33 = vpack.c.bf16 %v3510_v23, %v3509_v21  ;;  %v3375_v2 = vmax.f32 %v6267_v6, 0.0  ;;  %v3547_v10 = vld [vmem:[%s6866_s19 + $0x510] sm:$0xff]  ;;  %v5103_v5 = vpack.c.bf16 %v3532_v26, %v3531_v61  ;;  %v3548_v6 = vld [vmem:[%s6866_s19 + $0x518] sm:$0xff]  ;;  %v3566_v23 = vld [vmem:[%s6866_s19 + $0x5a8] sm:$0xff] }
0x11e2   : > { %v6329_v51 = vadd.f32 %v3151_v47, %v2753_v32  ;;  %v6331_v52 = vadd.f32 %v3222_v48, %v2761_v36  ;;  %v3153_v53 = vpop.f32.mrb[31].mxu1  ;;  %v3224_v54 = vpop.f32.mrb[23].mxu0  ;;  %5048 = vmatprep.subr.bf16.mxu1 %v5047_v13  ;;  %5080 = vmatprep.subr.bf16.mxu0 %v5079_v37  ;;  %v3480_v13 = vld [vmem:[%s6866_s19 + $0x2f8] sm:$0xff]  ;;  %v3511_v37 = vld [vmem:[%s6866_s19 + $0x3f0] sm:$0xff] }
0x11e3   : > { %v6342_v58 = vadd.f32 %v3153_v53, %v2757_v15  ;;  %v6344_v59 = vadd.f32 %v3224_v54, %v2765_v44  ;;  %v3463_v15 = vld [vmem:[%s6866_s19 + $0x270] sm:$0xff]  ;;  %v3464_v44 = vld [vmem:[%s6866_s19 + $0x278] sm:$0xff]  ;;  %v5063_v45 = vpack.c.bf16 %v3480_v13, %v3479_v4  ;;  %v5095_v46 = vpack.c.bf16 %v3512_v40, %v3511_v37 }
0x11e4   : > { %v3495_v47 = vld [vmem:[%s6866_s19 + $0x370] sm:$0xff]  ;;  %v3496_v48 = vld [vmem:[%s6866_s19 + $0x378] sm:$0xff]  ;;  %v5065_v18 = vpack.c.bf16 %v3464_v44, %v3463_v15  ;;  %v3537_v44 = vld [vmem:[%s6866_s19 + $0x4c0] sm:$0xff] }
0x11e5   : > { %5050 = vmatpush3.bf16.msra.mxu1 %v5049_v49  ;;  %5082 = vmatpush3.bf16.msra.mxu0 %v5081_v50  ;;  %v3529_v49 = vld [vmem:[%s6866_s19 + $0x480] sm:$0xff]  ;;  %v3530_v50 = vld [vmem:[%s6866_s19 + $0x488] sm:$0xff]  ;;  %v5097_v53 = vpack.c.bf16 %v3496_v48, %v3495_v47  ;;  %v3378_v16 = vmax.f32 %v6342_v58, 0.0  ;;  %v3380_v21 = vmax.f32 %v6344_v59, 0.0  ;;  %v3568_v34 = vld [vmem:[%s6866_s19 + $0x5b8] sm:$0xff] }
0x11e6   : > { %5052 = vmatprep.subr.bf16.mxu1 %v5051_v14  ;;  %5084 = vmatprep.subr.bf16.mxu0 %v5083_v17  ;;  %v3561_v14 = vld [vmem:[%s6866_s19 + $0x580] sm:$0xff]  ;;  %v5099_v54 = vpack.c.bf16 %v3530_v50, %v3529_v49  ;;  %v3519_v37 = vld [vmem:[%s6866_s19 + $0x430] sm:$0xff]  ;;  %v3520_v40 = vld [vmem:[%s6866_s19 + $0x438] sm:$0xff] }
0x11e7   : > { %v5131_v17 = vpack.c.bf16 %v3562_v22, %v3561_v14  ;;  %v3565_v58 = vld [vmem:[%s6866_s19 + $0x5a0] sm:$0xff]  ;;  %v3552_v15 = vld [vmem:[%s6866_s19 + $0x538] sm:$0xff]  ;;  %v3570_v47 = vld [vmem:[%s6866_s19 + $0x5c8] sm:$0xff]  ;;  %v5113_v48 = vpack.c.bf16 %v3520_v40, %v3519_v37 }
0x11e8   : > { %v3517_v59 = vld [vmem:[%s6866_s19 + $0x420] sm:$0xff]  ;;  %v5139_v9 = vpack.c.bf16 %v3566_v23, %v3565_v58  ;;  %v3522_v22 = vld [vmem:[%s6866_s19 + $0x448] sm:$0xff]  ;;  %v3540_v55 = vld [vmem:[%s6866_s19 + $0x4d8] sm:$0xff] }
0x11e9   : > { %v3293_v25 = vpop.f32.mrb[32].mxu1  ;;  %v3364_v27 = vpop.f32.mrb[24].mxu0  ;;  %5054 = vmatpush3.bf16.msra.mxu1 %v5053_v62  ;;  %5086 = vmatpush3.bf16.msra.mxu0 %v5085_v63  ;;  %v3563_v62 = vld [vmem:[%s6866_s19 + $0x590] sm:$0xff]  ;;  %v3564_v63 = vld [vmem:[%s6866_s19 + $0x598] sm:$0xff]  ;;  %v3521_v14 = vld [vmem:[%s6866_s19 + $0x440] sm:$0xff] }
0x11ea   : > { %v6394_v38 = vadd.f32 %v3293_v25, %v2769_v3  ;;  %v6397_v39 = vadd.f32 %v3364_v27, %v6185_v12  ;;  %v3295_v31 = vpop.f32.mrb[33].mxu1  ;;  %v3366_v32 = vpop.f32.mrb[25].mxu0  ;;  %5056 = vmatprep.subr.bf16.mxu1 %v5055_v7  ;;  %5088 = vmatprep.subr.bf16.mxu0 %v5087_v8  ;;  %v5133_v3 = vpack.c.bf16 %v3546_v60, %v3545_v57  ;;  %v3515_v7 = vld [vmem:[%s6866_s19 + $0x410] sm:$0xff]  ;;  %v3516_v8 = vld [vmem:[%s6866_s19 + $0x418] sm:$0xff]  ;;  %v3558_v58 = vld [vmem:[%s6866_s19 + $0x568] sm:$0xff] }
0x11eb   : > { %v6408_v36 = vadd.f32 %v3295_v31, %v2773_v20  ;;  %v6410_v12 = vadd.f32 %v3366_v32, %v2781_v24  ;;  %v5135_v19 = vpack.c.bf16 %v3564_v63, %v3563_v62  ;;  %v3533_v20 = vld [vmem:[%s6866_s19 + $0x4a0] sm:$0xff]  ;;  %v3534_v24 = vld [vmem:[%s6866_s19 + $0x4a8] sm:$0xff]  ;;  %v5105_v25 = vpack.c.bf16 %v3516_v8, %v3515_v7  ;;  %v3535_v31 = vld [vmem:[%s6866_s19 + $0x4b0] sm:$0xff] }
0x11ec   : > { %v5137_v27 = vpack.c.bf16 %v3548_v6, %v3547_v10  ;;  %v3536_v32 = vld [vmem:[%s6866_s19 + $0x4b8] sm:$0xff]  ;;  %v5117_v60 = vpack.c.bf16 %v3522_v22, %v3521_v14  ;;  %v3523_v62 = vld [vmem:[%s6866_s19 + $0x450] sm:$0xff]  ;;  %v3542_v7 = vld [vmem:[%s6866_s19 + $0x4e8] sm:$0xff]  ;;  %v3377_v22 = vmax.f32 %v6329_v51, 0.0 }
0x11ed   : > { %5058 = vmatpush3.bf16.msra.mxu1 %v5057_v28  ;;  %5090 = vmatpush3.bf16.msra.mxu0 %v5089_v29  ;;  %v5107_v28 = vpack.c.bf16 %v3534_v24, %v3533_v20  ;;  %v3518_v29 = vld [vmem:[%s6866_s19 + $0x428] sm:$0xff]  ;;  %v5111_v13 = vpack.c.bf16 %v3536_v32, %v3535_v31  ;;  %v3572_v57 = vld [vmem:[%s6866_s19 + $0x5d8] sm:$0xff]  ;;  %v3573_v8 = vld [vmem:[%s6866_s19 + $0x5e0] sm:$0xff] }
0x11ee   : > { %5060 = vmatprep.subr.bf16.mxu1 %v5059_v30  ;;  %5092 = vmatprep.subr.bf16.mxu0 %v5091_v33  ;;  %v3549_v30 = vld [vmem:[%s6866_s19 + $0x520] sm:$0xff]  ;;  %v3567_v33 = vld [vmem:[%s6866_s19 + $0x5b0] sm:$0xff]  ;;  %v5109_v35 = vpack.c.bf16 %v3518_v29, %v3517_v59  ;;  %v3524_v63 = vld [vmem:[%s6866_s19 + $0x458] sm:$0xff] }
0x11ef   : > { %v5141_v4 = vpack.c.bf16 %v3550_v11, %v3549_v30  ;;  %v3574_v10 = vld [vmem:[%s6866_s19 + $0x5e8] sm:$0xff]  ;;  %v3525_v6 = vld [vmem:[%s6866_s19 + $0x460] sm:$0xff]  ;;  %v3543_v23 = vld [vmem:[%s6866_s19 + $0x4f0] sm:$0xff] }
0x11f0   : > { %v3526_v20 = vld [vmem:[%s6866_s19 + $0x468] sm:$0xff]  ;;  %v3557_v24 = vld [vmem:[%s6866_s19 + $0x560] sm:$0xff]  ;;  %v3528_v11 = vld [vmem:[%s6866_s19 + $0x478] sm:$0xff] }
0x11f1   : > { %5062 = vmatpush3.bf16.msra.mxu1 %v5061_v42  ;;  %5094 = vmatpush3.bf16.msra.mxu0 %v5093_v43  ;;  %v3551_v42 = vld [vmem:[%s6866_s19 + $0x530] sm:$0xff]  ;;  %v5143_v43 = vpack.c.bf16 %v3568_v34, %v3567_v33  ;;  %v5125_v59 = vpack.c.bf16 %v3526_v20, %v3525_v6  ;;  %v5157_v29 = vpack.c.bf16 %v3558_v58, %v3557_v24  ;;  %v3560_v33 = vld [vmem:[%s6866_s19 + $0x578] sm:$0xff]  ;;  %v3593_v34 = vld [vmem:[%s6866_s19 + $0x680] sm:$0xff] }
0x11f2   : > { %5064 = vmatprep.subr.bf16.mxu1 %v5063_v45  ;;  %5096 = vmatprep.subr.bf16.mxu0 %v5095_v46  ;;  %v3538_v45 = vld [vmem:[%s6866_s19 + $0x4c8] sm:$0xff]  ;;  %v3569_v46 = vld [vmem:[%s6866_s19 + $0x5c0] sm:$0xff]  ;;  %v5145_v49 = vpack.c.bf16 %v3552_v15, %v3551_v42  ;;  %v3559_v31 = vld [vmem:[%s6866_s19 + $0x570] sm:$0xff] }
0x11f3   : > { %v5115_v50 = vpack.c.bf16 %v3538_v45, %v3537_v44  ;;  %v5161_v40 = vpack.c.bf16 %v3560_v33, %v3559_v31  ;;  %v3578_v15 = vld [vmem:[%s6866_s19 + $0x608] sm:$0xff]  ;;  %v3609_v45 = vld [vmem:[%s6866_s19 + $0x700] sm:$0xff]  ;;  %v3628_v14 = vld [vmem:[%s6866_s19 + $0x798] sm:$0xff] }
0x11f4   : > { %v3612_v51 = vld [vmem:[%s6866_s19 + $0x718] sm:$0xff]  ;;  %v3586_v33 = vld [vmem:[%s6866_s19 + $0x648] sm:$0xff] }
0x11f5   : > { %5066 = vmatpush3.bf16.msra.mxu1 %v5065_v18  ;;  %5098 = vmatpush3.bf16.msra.mxu0 %v5097_v53  ;;  %v3553_v18 = vld [vmem:[%s6866_s19 + $0x540] sm:$0xff]  ;;  %v5147_v53 = vpack.c.bf16 %v3570_v47, %v3569_v46  ;;  %v3610_v46 = vld [vmem:[%s6866_s19 + $0x708] sm:$0xff]  ;;  %v3595_v47 = vld [vmem:[%s6866_s19 + $0x690] sm:$0xff] }
0x11f6   : > { %5100 = vmatprep.subr.bf16.mxu1 %v5099_v54  ;;  %5132 = vmatprep.subr.bf16.mxu0 %v5131_v17  ;;  %v3554_v54 = vld [vmem:[%s6866_s19 + $0x548] sm:$0xff]  ;;  %v3539_v17 = vld [vmem:[%s6866_s19 + $0x4d0] sm:$0xff]  ;;  %v3584_v58 = vld [vmem:[%s6866_s19 + $0x638] sm:$0xff] }
0x11f7   : > { %v5149_v61 = vpack.c.bf16 %v3554_v54, %v3553_v18  ;;  %v5119_v26 = vpack.c.bf16 %v3540_v55, %v3539_v17  ;;  %v5197_v18 = vpack.c.bf16 %v3610_v46, %v3609_v45  ;;  %v3580_v54 = vld [vmem:[%s6866_s19 + $0x618] sm:$0xff]  ;;  %v3611_v17 = vld [vmem:[%s6866_s19 + $0x710] sm:$0xff]  ;;  %v3379_v55 = vmax.f32 %v6331_v52, 0.0  ;;  %v3629_v52 = vld [vmem:[%s6866_s19 + $0x7a0] sm:$0xff] }
0x11f8   : > { %3853 = vmatmul.mubr.f32.vlgmr.msra.gmra.mrb[36].mxu1 %v3373_v1  ;;  %3923 = vmatmul.mubr.f32.vlgmr.msra.gmra.mrb[28].mxu0 %v3375_v2  ;;  %v5151_v1 = vpack.c.bf16 %v3572_v57, %v3571_v56  ;;  %v3556_v2 = vld [vmem:[%s6866_s19 + $0x558] sm:$0xff]  ;;  %v3597_v57 = vld [vmem:[%s6866_s19 + $0x6a0] sm:$0xff]  ;;  %v3587_v45 = vld [vmem:[%s6866_s19 + $0x650] sm:$0xff] }
0x11f9   : > { %5102 = vmatpush3.bf16.msra.mxu1 %v5101_v0  ;;  %3992 = vmatprep.mubr.f32.mxu1 %v3378_v16  ;;  %v3555_v0 = vld [vmem:[%s6866_s19 + $0x550] sm:$0xff]  ;;  %v5121_v16 = vpack.c.bf16 %v3524_v63, %v3523_v62  ;;  %v3630_v62 = vld [vmem:[%s6866_s19 + $0x7a8] sm:$0xff]  ;;  %v3384_v63 = vmax.f32 %v6410_v12, 0.0  ;;  %v3588_v46 = vld [vmem:[%s6866_s19 + $0x658] sm:$0xff] }
0x11fa   : > { %5134 = vmatpush3.bf16.msra.mxu0 %v5133_v3  ;;  %4062 = vmatprep.mubr.f32.mxu0 %v3380_v21  ;;  %v3541_v3 = vld [vmem:[%s6866_s19 + $0x4e0] sm:$0xff]  ;;  %v5155_v21 = vpack.c.bf16 %v3574_v10, %v3573_v8  ;;  %v5203_v12 = vpack.c.bf16 %v3630_v62, %v3629_v52  ;;  %v3614_v8 = vld [vmem:[%s6866_s19 + $0x728] sm:$0xff]  ;;  %v3599_v10 = vld [vmem:[%s6866_s19 + $0x6b0] sm:$0xff] }
0x11fb   : > { %5104 = vmatprep.subr.bf16.mxu1 %v5103_v5  ;;  %5136 = vmatprep.subr.bf16.mxu0 %v5135_v19  ;;  %v5153_v5 = vpack.c.bf16 %v3556_v2, %v3555_v0  ;;  %v5123_v19 = vpack.c.bf16 %v3542_v7, %v3541_v3  ;;  %v3582_v3 = vld [vmem:[%s6866_s19 + $0x628] sm:$0xff]  ;;  %v3613_v7 = vld [vmem:[%s6866_s19 + $0x720] sm:$0xff]  ;;  %v3639_v52 = vld [vmem:[%s6866_s19 + $0x7f0] sm:$0xff] }
0x11fc   : > { %v5205_v20 = vpack.c.bf16 %v3614_v8, %v3613_v7  ;;  %v3640_v62 = vld [vmem:[%s6866_s19 + $0x7f8] sm:$0xff]  ;;  %v3623_v7 = vld [vmem:[%s6866_s19 + $0x770] sm:$0xff] }
0x11fd   : > { %5106 = vmatpush3.bf16.msra.mxu1 %v5105_v25  ;;  %v3544_v25 = vld [vmem:[%s6866_s19 + $0x4f8] sm:$0xff] }
0x11fe   : > { %5138 = vmatpush3.bf16.msra.mxu0 %v5137_v27  ;;  %5108 = vmatprep.subr.bf16.mxu1 %v5107_v28  ;;  %v3575_v27 = vld [vmem:[%s6866_s19 + $0x5f0] sm:$0xff]  ;;  %v3576_v28 = vld [vmem:[%s6866_s19 + $0x5f8] sm:$0xff]  ;;  %v5127_v30 = vpack.c.bf16 %v3544_v25, %v3543_v23 }
0x11ff   : > { %5140 = vmatprep.subr.bf16.mxu0 %v5139_v9  ;;  %v3527_v9 = vld [vmem:[%s6866_s19 + $0x470] sm:$0xff]  ;;  %v5159_v32 = vpack.c.bf16 %v3576_v28, %v3575_v27  ;;  %v3616_v27 = vld [vmem:[%s6866_s19 + $0x738] sm:$0xff]  ;;  %v3601_v28 = vld [vmem:[%s6866_s19 + $0x6c0] sm:$0xff] }
0x1200   : > { %v5129_v37 = vpack.c.bf16 %v3528_v11, %v3527_v9  ;;  %v3615_v23 = vld [vmem:[%s6866_s19 + $0x730] sm:$0xff] }
0x1201   : > { %5110 = vmatpush3.bf16.msra.mxu1 %v5109_v35  ;;  %v3594_v35 = vld [vmem:[%s6866_s19 + $0x688] sm:$0xff]  ;;  %v5209_v11 = vpack.c.bf16 %v3616_v27, %v3615_v23 }
0x1202   : > { %5142 = vmatpush3.bf16.msra.mxu0 %v5141_v4  ;;  %5112 = vmatprep.subr.bf16.mxu1 %v5111_v13  ;;  %v3625_v4 = vld [vmem:[%s6866_s19 + $0x780] sm:$0xff]  ;;  %v3626_v13 = vld [vmem:[%s6866_s19 + $0x788] sm:$0xff]  ;;  %v5163_v42 = vpack.c.bf16 %v3594_v35, %v3593_v34 }
0x1203   : > { %5144 = vmatprep.subr.bf16.mxu0 %v5143_v43  ;;  %v3577_v43 = vld [vmem:[%s6866_s19 + $0x600] sm:$0xff]  ;;  %v5195_v44 = vpack.c.bf16 %v3626_v13, %v3625_v4  ;;  %v3618_v4 = vld [vmem:[%s6866_s19 + $0x748] sm:$0xff]  ;;  %v3603_v13 = vld [vmem:[%s6866_s19 + $0x6d0] sm:$0xff] }
0x1204   : > { %v3617_v34 = vld [vmem:[%s6866_s19 + $0x740] sm:$0xff] }
0x1205   : > { %5114 = vmatpush3.bf16.msra.mxu1 %v5113_v48  ;;  %v3596_v48 = vld [vmem:[%s6866_s19 + $0x698] sm:$0xff] }
0x1206   : > { %5146 = vmatpush3.bf16.msra.mxu0 %v5145_v49  ;;  %5116 = vmatprep.subr.bf16.mxu1 %v5115_v50  ;;  %v5165_v49 = vpack.c.bf16 %v3578_v15, %v3577_v43  ;;  %v3627_v50 = vld [vmem:[%s6866_s19 + $0x790] sm:$0xff]  ;;  %v5167_v56 = vpack.c.bf16 %v3596_v48, %v3595_v47  ;;  %v5213_v15 = vpack.c.bf16 %v3618_v4, %v3617_v34 }
0x1207   : > { %5148 = vmatprep.subr.bf16.mxu0 %v5147_v53  ;;  %v3579_v53 = vld [vmem:[%s6866_s19 + $0x610] sm:$0xff] }
0x1208   : > { %v5169_v0 = vpack.c.bf16 %v3580_v54, %v3579_v53  ;;  %v3619_v47 = vld [vmem:[%s6866_s19 + $0x750] sm:$0xff]  ;;  %v5185_v53 = vpack.c.bf16 %v3588_v46, %v3587_v45 }
0x1209   : > { %5118 = vmatpush3.bf16.msra.mxu1 %v5117_v60  ;;  %v3598_v60 = vld [vmem:[%s6866_s19 + $0x6a8] sm:$0xff] }
0x120a   : > { %5150 = vmatpush3.bf16.msra.mxu0 %v5149_v61  ;;  %5120 = vmatprep.subr.bf16.mxu1 %v5119_v26  ;;  %v3382_v61 = vmax.f32 %v6408_v36, 0.0  ;;  %v5199_v26 = vpack.c.bf16 %v3628_v14, %v3627_v50  ;;  %v5171_v2 = vpack.c.bf16 %v3598_v60, %v3597_v57  ;;  %v3581_v36 = vld [vmem:[%s6866_s19 + $0x620] sm:$0xff]  ;;  %v3606_v14 = vld [vmem:[%s6866_s19 + $0x6e8] sm:$0xff] }
0x120b   : > { %5152 = vmatprep.subr.bf16.mxu0 %v5151_v1  ;;  %v5201_v1 = vpack.c.bf16 %v3612_v51, %v3611_v17  ;;  %v5173_v6 = vpack.c.bf16 %v3582_v3, %v3581_v36  ;;  %v3605_v50 = vld [vmem:[%s6866_s19 + $0x6e0] sm:$0xff]  ;;  %v3622_v60 = vld [vmem:[%s6866_s19 + $0x768] sm:$0xff]  ;;  %v3592_v36 = vld [vmem:[%s6866_s19 + $0x678] sm:$0xff]  ;;  %v5223_v3 = vpack.c.bf16 %v3640_v62, %v3639_v52 }
0x120c   : > { %v5187_v17 = vpack.c.bf16 %v3606_v14, %v3605_v50  ;;  %v3621_v51 = vld [vmem:[%s6866_s19 + $0x760] sm:$0xff] }
0x120d   : > { %5122 = vmatpush3.bf16.msra.mxu1 %v5121_v16  ;;  %v3600_v16 = vld [vmem:[%s6866_s19 + $0x6b8] sm:$0xff] }
0x120e   : > { %5154 = vmatpush3.bf16.msra.mxu0 %v5153_v5  ;;  %5124 = vmatprep.subr.bf16.mxu1 %v5123_v19  ;;  %v3631_v5 = vld [vmem:[%s6866_s19 + $0x7b0] sm:$0xff]  ;;  %v3632_v19 = vld [vmem:[%s6866_s19 + $0x7b8] sm:$0xff]  ;;  %v5175_v24 = vpack.c.bf16 %v3600_v16, %v3599_v10  ;;  %v3381_v16 = vmax.f32 %v6394_v38, 0.0 }
0x120f   : > { %5156 = vmatprep.subr.bf16.mxu0 %v5155_v21  ;;  %v3583_v21 = vld [vmem:[%s6866_s19 + $0x630] sm:$0xff]  ;;  %v5207_v25 = vpack.c.bf16 %v3632_v19, %v3631_v5  ;;  %v3383_v5 = vmax.f32 %v6397_v39, 0.0 }
0x1210   : > { %v5177_v9 = vpack.c.bf16 %v3584_v58, %v3583_v21 }
0x1211   : > { %5126 = vmatpush3.bf16.msra.mxu1 %v5125_v59  ;;  %v3602_v59 = vld [vmem:[%s6866_s19 + $0x6c8] sm:$0xff] }
0x1212   : > { %5158 = vmatpush3.bf16.msra.mxu0 %v5157_v29  ;;  %5128 = vmatprep.subr.bf16.mxu1 %v5127_v30  ;;  %v3633_v29 = vld [vmem:[%s6866_s19 + $0x7c0] sm:$0xff]  ;;  %v3634_v30 = vld [vmem:[%s6866_s19 + $0x7c8] sm:$0xff]  ;;  %v5179_v31 = vpack.c.bf16 %v3602_v59, %v3601_v28 }
0x1213   : > { %5160 = vmatprep.subr.bf16.mxu0 %v5159_v32  ;;  %v3585_v32 = vld [vmem:[%s6866_s19 + $0x640] sm:$0xff]  ;;  %v5211_v35 = vpack.c.bf16 %v3634_v30, %v3633_v29 }
0x1214   : > { %v5181_v43 = vpack.c.bf16 %v3586_v33, %v3585_v32 }
0x1215   : > { %5130 = vmatpush3.bf16.msra.mxu1 %v5129_v37  ;;  %v3604_v37 = vld [vmem:[%s6866_s19 + $0x6d8] sm:$0xff] }
0x1216   : > { %5162 = vmatpush3.bf16.msra.mxu0 %v5161_v40  ;;  %5164 = vmatprep.subr.bf16.mxu1 %v5163_v42  ;;  %v3635_v40 = vld [vmem:[%s6866_s19 + $0x7d0] sm:$0xff]  ;;  %v3636_v42 = vld [vmem:[%s6866_s19 + $0x7d8] sm:$0xff] }
0x1217   : > { %5196 = vmatprep.subr.bf16.mxu0 %v5195_v44  ;;  %v5183_v44 = vpack.c.bf16 %v3604_v37, %v3603_v13  ;;  %v5215_v48 = vpack.c.bf16 %v3636_v42, %v3635_v40 }
0x1218   : > { %3993 = vmatmul.mubr.f32.vlgmr.msra.gmra.mrb[38].mxu1 %v3377_v22  ;;  %v3637_v22 = vld [vmem:[%s6866_s19 + $0x7e0] sm:$0xff] }
0x1219   : > { %4063 = vmatmul.mubr.f32.vlgmr.msra.gmra.mrb[30].mxu0 %v3379_v55  ;;  %5166 = vmatpush3.bf16.msra.mxu1 %v5165_v49  ;;  %v3620_v49 = vld [vmem:[%s6866_s19 + $0x758] sm:$0xff]  ;;  %v3589_v55 = vld [vmem:[%s6866_s19 + $0x660] sm:$0xff] }
0x121a   : > { %4132 = vmatprep.mubr.f32.mxu1 %v3382_v61  ;;  %5198 = vmatpush3.bf16.msra.mxu0 %v5197_v18  ;;  %v3638_v18 = vld [vmem:[%s6866_s19 + $0x7e8] sm:$0xff]  ;;  %v5217_v54 = vpack.c.bf16 %v3620_v49, %v3619_v47  ;;  %v3607_v61 = vld [vmem:[%s6866_s19 + $0x6f0] sm:$0xff] }
0x121b   : > { %4202 = vmatprep.mubr.f32.mxu0 %v3384_v63  ;;  %5168 = vmatprep.subr.bf16.mxu1 %v5167_v56  ;;  %v3590_v56 = vld [vmem:[%s6866_s19 + $0x668] sm:$0xff]  ;;  %v5219_v57 = vpack.c.bf16 %v3638_v18, %v3637_v22 }
0x121c   : > { %5200 = vmatprep.subr.bf16.mxu0 %v5199_v26  ;;  %v3608_v26 = vld [vmem:[%s6866_s19 + $0x6f8] sm:$0xff]  ;;  %v5189_v63 = vpack.c.bf16 %v3590_v56, %v3589_v55 }
0x121d   : > { %5170 = vmatpush3.bf16.msra.mxu1 %v5169_v0  ;;  %v5221_v0 = vpack.c.bf16 %v3622_v60, %v3621_v51 }
0x121e   : > { %5202 = vmatpush3.bf16.msra.mxu0 %v5201_v1  ;;  %5172 = vmatprep.subr.bf16.mxu1 %v5171_v2  ;;  %v5191_v1 = vpack.c.bf16 %v3608_v26, %v3607_v61  ;;  %v3591_v2 = vld [vmem:[%s6866_s19 + $0x670] sm:$0xff] }
0x121f   : > { %5204 = vmatprep.subr.bf16.mxu0 %v5203_v12  ;;  %v3624_v12 = vld [vmem:[%s6866_s19 + $0x778] sm:$0xff]  ;;  %v5193_v8 = vpack.c.bf16 %v3592_v36, %v3591_v2 }
0x1220   : > { %v5225_v10 = vpack.c.bf16 %v3624_v12, %v3623_v7 }
0x1221   : > { %5174 = vmatpush3.bf16.msra.mxu1 %v5173_v6 }
0x1222   : > { %5206 = vmatpush3.bf16.msra.mxu0 %v5205_v20  ;;  %5176 = vmatprep.subr.bf16.mxu1 %v5175_v24  ;;  %v4360_v20 = vld [vmem:[%s6867_s20] ss:$0 sm:$0xff] }
0x1223   : > { %5208 = vmatprep.subr.bf16.mxu0 %v5207_v25 }
0x1225   : > { %5178 = vmatpush3.bf16.msra.mxu1 %v5177_v9 }
0x1226   : > { %5210 = vmatpush3.bf16.msra.mxu0 %v5209_v11  ;;  %5180 = vmatprep.subr.bf16.mxu1 %v5179_v31 }
0x1227   : > { %5212 = vmatprep.subr.bf16.mxu0 %v5211_v35 }
0x1229   : > { %5182 = vmatpush3.bf16.msra.mxu1 %v5181_v43 }
0x122a   : > { %5214 = vmatpush3.bf16.msra.mxu0 %v5213_v15  ;;  %5184 = vmatprep.subr.bf16.mxu1 %v5183_v44 }
0x122b   : > { %5216 = vmatprep.subr.bf16.mxu0 %v5215_v48 }
0x122d   : > { %5186 = vmatpush3.bf16.msra.mxu1 %v5185_v53 }
0x122e   : > { %5218 = vmatpush3.bf16.msra.mxu0 %v5217_v54  ;;  %5188 = vmatprep.subr.bf16.mxu1 %v5187_v17 }
0x122f   : > { %5220 = vmatprep.subr.bf16.mxu0 %v5219_v57  ;;  %v4362_v57 = vld [vmem:[%s6869_s22] ss:$0 sm:$0xff] }
0x1231   : > { %5190 = vmatpush3.bf16.msra.mxu1 %v5189_v63 }
0x1232   : > { %5222 = vmatpush3.bf16.msra.mxu0 %v5221_v0  ;;  %5192 = vmatprep.subr.bf16.mxu1 %v5191_v1 }
0x1233   : > { %5224 = vmatprep.subr.bf16.mxu0 %v5223_v3 }
0x1235   : > { %5194 = vmatpush3.bf16.msra.mxu1 %v5193_v8 }
0x1236   : > { %5226 = vmatpush3.bf16.msra.mxu0 %v5225_v10 }
0x1238   : > { %4133 = vmatmul.mubr.f32.vlgmr.msra.gmra.mrb[40].mxu1 %v3381_v16 }
0x1239   : > { %4203 = vmatmul.mubr.f32.vlgmr.msra.gmra.mrb[32].mxu0 %v3383_v5 }
0x12ab   : > { %v4463_v19 = vpop.f32.mrb[34].mxu1  ;;  %v4498_v6 = vpop.f32.mrb[26].mxu0 }
0x12ac   : > { %v4464_v24 = vpop.f32.mrb[35].mxu1  ;;  %v4499_v21 = vpop.f32.mrb[27].mxu0 }
0x12ad   : > { %v4465_v58 = vadd.f32 %v4464_v24, %v4463_v19  ;;  %v4500_v23 = vadd.f32 %v4499_v21, %v4498_v6 }
0x12af   : > { %v3715_v25 = vadd.f32 %v4465_v58, %v4360_v20 }
0x12b1   : > { %v3785_v27 = vadd.f32 %v4500_v23, %v3715_v25 }
0x12cb   : > { %v4533_v28 = vpop.f32.mrb[36].mxu1  ;;  %v4568_v59 = vpop.f32.mrb[28].mxu0 }
0x12cc   : > { %v4534_v38 = vpop.f32.mrb[37].mxu1  ;;  %v4569_v29 = vpop.f32.mrb[29].mxu0 }
0x12cd   : > { %v4535_v30 = vadd.f32 %v4534_v38, %v4533_v28  ;;  %v4570_v39 = vadd.f32 %v4569_v29, %v4568_v59 }
0x12cf   : > { %v3855_v9 = vadd.f32 %v4535_v30, %v3785_v27 }
0x12d1   : > { %v3925_v11 = vadd.f32 %v4570_v39, %v3855_v9 }
0x12eb   : > { %v4603_v31 = vpop.f32.mrb[38].mxu1 }
0x12ec   : > { %v4638_v32 = vpop.f32.mrb[30].mxu0  ;;  %v4604_v33 = vpop.f32.mrb[39].mxu1 }
0x12ed   : > { %v4605_v34 = vadd.f32 %v4604_v33, %v4603_v31  ;;  %v4639_v35 = vpop.f32.mrb[31].mxu0 }
0x12ee   : > { %v4640_v4 = vadd.f32 %v4639_v35, %v4638_v32 }
0x12ef   : > { %v3995_v13 = vadd.f32 %v4605_v34, %v3925_v11 }
0x12f1   : > { %v4065_v37 = vadd.f32 %v4640_v4, %v3995_v13 }
0x130b   : > { %v4673_v40 = vpop.f32.mrb[40].mxu1 }
0x130c   : > { %v4708_v42 = vpop.f32.mrb[32].mxu0  ;;  %v4674_v43 = vpop.f32.mrb[41].mxu1 }
0x130d   : > { %v4675_v15 = vadd.f32 %v4674_v43, %v4673_v40  ;;  %v4709_v44 = vpop.f32.mrb[33].mxu0 }
0x130e   : > { %v4710_v45 = vadd.f32 %v4709_v44, %v4708_v42 }
0x130f   : > { %v4135_v46 = vadd.f32 %v4675_v15, %v4065_v37 }
0x1311   : > { %v4205_v47 = vadd.f32 %v4710_v45, %v4135_v46 }
0x1313   : > { %v4208_v48 = vadd.f32 %v4205_v47, %v5845_v41  ;;  %v4361_v41 = vld [vmem:[%s6868_s21] ss:$0 sm:$0xff] }
0x1315   : > { %v4211_v49 = vsel %vm826_vm3, %v4208_v48, 0.0 }
0x1316   : > { %4212 = vadd.xlane.f32.xlu0 %v4211_v49 }
0x13a3   : > { %v4213_v50 = vpop.xlane.xlu0 %4212 }
0x13a4   : > { %v4214_v14 = vmul.f32 0.03125, %v4213_v50 }
0x13a6   : > { %v4215_v22 = vsub.f32 %v4208_v48, %v4214_v14 }
0x13a8   : > { %v4216_v18 = vmul.f32 %v4215_v22, %v4215_v22 }
0x13aa   : > { %v4217_v53 = vsel %vm826_vm3, %v4216_v18, 0.0 }
0x13ab   : > { %4218 = vadd.xlane.f32.xlu1 %v4217_v53 }
0x1438   : > { %v4219_v54 = vpop.xlane.xlu1 %4218 }
0x1439   : > { %v4220_v17 = vmul.f32 0.03125, %v4219_v54 }
0x143b   : > { %v4221_v55 = vadd.f32 1e-05, %v4220_v17 }
0x143d   : > { %5290 = vrsqrt.f32 %v4221_v55 }
0x1447   : > { %v5291_v56 = vpop.eup %5290 }
0x1448   : > { %v4223_v51 = vmul.f32 %v5291_v56, %v4215_v22 }
0x144a   : > { %v4230_v60 = vmul.f32 %v4361_v41, %v4223_v51 }
0x144c   : > { %v4237_v61 = vadd.f32 %v4362_v57, %v4230_v60 }
0x144e   : > { %4238 = vst.msk [vmem:[%s722_s29] sm:$0xff] %vm826_vm3, %v4237_v61 }
0x144f PF: > { %s33_s4 = sadd.s32 1, %s5298_s4  }
0x1450   : > { %p30_p4 = scmp.ge.s32.totalorder %s33_s4, 4  }
0x1452   :  { %32 = sbr.rel (!%p30_p4) target bundleno = 9 (0x9), region = 145 }

// kernel: text_generation_transformer.7
= control target key start
LH: loop header
LB: loop body
LE: loop exit
PB: predicated region body
PF: predicated region fallthrough
CT: control target
= control target key end

     0   :  { %s7160_s0 = inlined_call_operand.vmem [shape: f32[16,32], index: 0, kind: input, shape index: {}]   ;;  %s7161_s1 = inlined_call_operand.vmem [shape: f32[16,32], index: 1, kind: input, shape index: {}]   ;;  %s7162_s2 = inlined_call_operand.vmem [shape: f32[32,96], index: 2, kind: input, shape index: {}]   ;;  %s7163_s3 = inlined_call_operand.vmem [shape: f32[1,96], index: 3, kind: input, shape index: {}]   ;;  %s7164_s4 = inlined_call_operand.vmem [shape: f32[32,32], index: 4, kind: input, shape index: {}]   ;;  %s7165_s5 = inlined_call_operand.vmem [shape: f32[1,32], index: 5, kind: input, shape index: {}]   ;;  %s7166_s6 = inlined_call_operand.vmem [shape: f32[1,32], index: 6, kind: input, shape index: {}]   ;;  %s7167_s7 = inlined_call_operand.vmem [shape: f32[1,32], index: 7, kind: input, shape index: {}]   ;;  %s7168_s8 = inlined_call_operand.vmem [shape: f32[32,32], index: 8, kind: input, shape index: {}]   ;;  %s7169_s9 = inlined_call_operand.vmem [shape: f32[1,32], index: 9, kind: input, shape index: {}]   ;;  %s7170_s10 = inlined_call_operand.vmem [shape: f32[32,64], index: 10, kind: input, shape index: {}]   ;;  %s7171_s11 = inlined_call_operand.vmem [shape: f32[1,64], index: 11, kind: input, shape index: {}]   ;;  %s7172_s12 = inlined_call_operand.vmem [shape: f32[32,32], index: 12, kind: input, shape index: {}]   ;;  %s7173_s13 = inlined_call_operand.vmem [shape: f32[1,32], index: 13, kind: input, shape index: {}]   ;;  %s7174_s14 = inlined_call_operand.vmem [shape: f32[1,32], index: 14, kind: input, shape index: {}]   ;;  %s7175_s15 = inlined_call_operand.vmem [shape: f32[1,32], index: 15, kind: input, shape index: {}]   ;;  %s7176_s16 = inlined_call_operand.vmem [shape: f32[32,2048], index: 16, kind: input, shape index: {}]   ;;  %s7177_s17 = inlined_call_operand.vmem [shape: f32[1,2048], index: 17, kind: input, shape index: {}]   ;;  %s7178_s18 = inlined_call_operand.vmem [shape: f32[2048,32], index: 18, kind: input, shape index: {}]   ;;  %s7179_s19 = inlined_call_operand.vmem [shape: f32[1,32], index: 19, kind: input, shape index: {}]   ;;  %s7180_s20 = inlined_call_operand.vmem [shape: f32[1,32], index: 20, kind: input, shape index: {}]   ;;  %s7181_s21 = inlined_call_operand.vmem [shape: f32[1,32], index: 21, kind: input, shape index: {}]   ;;  %s7182_s22 = inlined_call_operand.hbm [shape: f32[1,32], index: 22, kind: input, shape index: {}]   ;;  %s7183_s23 = inlined_call_operand.hbm [shape: f32[1,32], index: 23, kind: input, shape index: {}]   ;;  %s7184_s24 = inlined_call_operand.vmem [shape: f32[32,128], index: 24, kind: input, shape index: {}]   ;;  %s7185_s25 = inlined_call_operand.vmem [shape: f32[1,128], index: 25, kind: input, shape index: {}]   ;;  %s7186_s26 = inlined_call_operand.vmem [shape: f32[16,128], index: 26, kind: output, shape index: {}]  }
   0x1   :  { %7209 = sst [smem:[#allocation8_spill]] %s7160_s0 }
   0x2   :  { %7210 = sst [smem:[#allocation9_spill]] %s7161_s1 }
   0x3   :  { %7211 = sst [smem:[#allocation10_spill]] %s7162_s2 }
   0x4   :  { %7212 = sst [smem:[#allocation11_spill]] %s7163_s3 }
   0x5   :  { %7213 = sst [smem:[#allocation12_spill]] %s7164_s4 }
   0x6   :  { %7214 = sst [smem:[#allocation13_spill]] %s7165_s5 }
   0x7   :  { %7215 = sst [smem:[#allocation14_spill]] %s7166_s6 }
   0x8   :  { %7216 = sst [smem:[#allocation15_spill]] %s7167_s7 }
   0x9   :  { %7217 = sst [smem:[#allocation16_spill]] %s7168_s8 }
   0xa   :  { %7218 = sst [smem:[#allocation17_spill]] %s7169_s9 }
   0xb   :  { %7219 = sst [smem:[#allocation18_spill]] %s7170_s10 }
   0xc   :  { %31 = vsyncpa [#allocation3], 0 }
   0xd   :  { %32 = vsyncpa [#allocation5], 0  ;;  %s5679_s27 = smov 0  }
   0xe LB: > { %s5685_s3 = sadd.s32 4294967295, %s5523_s27   ;;  %p4458_p0 = scmp.ge.s32.totalorder %s5523_s27, 1  ;;  %s5523_s27 = sphi %s5679_s27, %s38_s27  }
   0xf   : > { %p625_p1 = scmp.lt.s32.totalorder %s5523_s27, 3  ;;  %p7191_p2 = scmp.eq.s32.totalorder %s5685_s3, 0 }
  0x10   : > { %s5525_s28 = smov [#allocation2]   ;;  %s5526_s4 = smov [#allocation4]  }
  0x11   : > { %p5690_p3 = pnand %p4458_p0, %p625_p1  ;;  %s698_s8 = sshll.u32 %s5525_s28, 4  ;;  %s699_s8 = int_to_ptr.vmem [resolvable:$true] %s698_s8 }
  0x12   : > { %s709_s29 = sshll.u32 %s5526_s4, 4  ;;  %s5453_s2 = scalar_lea.hbm %s7182_s22, 16  ;;  %s5702_s29 = int_to_ptr.vmem [resolvable:$true] %s709_s29 }
  0x13   : > { %s7220_s7 = scalar_select %p5690_p3, 1, 0 }
  0x14   : > { %p5375_p4 = pneg %p5690_p3  ;;  %p5454_p6 = scmp.ne.s32.totalorder %s7182_s22, %s5453_s2 }
  0x15   : > { %p5460_p10 = scmp.lt.u32.totalorder %s5453_s2, %s7182_s22 }
  0x16   : > { %p5698_p5 = pnand %p7191_p2, %p5375_p4 }
  0x18   : > { %p5455_p7 = pneg %p5698_p5 }
  0x1a   : > { %p5456_p8 = pnand %p5455_p7, %p5454_p6 }
  0x1c   : > { %p5457_p9 = pneg %p5456_p8 }
  0x1e   : > { %p5462_p11 = pnand %p5460_p10, %p5457_p9 }
  0x20   : > { %5465 = shalt.err (!%p5462_p11)
}
  0x21   : > { %s5466_s28 = scalar_lea.vmem %s699_s8, 16  ;;  %s5473_s4 = scalar_lea.vmem %s699_s8, 32 }
  0x22   : > { %p5467_p12 = scmp.ne.s32.totalorder %s699_s8, %s5466_s28  ;;  %p5474_p1 = scmp.lt.s32.totalorder %s699_s8, %s699_s8 }
  0x23   : > { %p5475_p4 = scmp.lt.s32.totalorder %s5473_s4, %s5466_s28 }
  0x24   : > { %p5469_p13 = pnand %p5467_p12, %p5455_p7 }
  0x25   : > { %p5476_p2 = por %p5475_p4, %p5474_p1 }
  0x26   : > { %p5470_p0 = pneg %p5469_p13 }
  0x28   : > { %p5477_p3 = pnand %p5476_p2, %p5470_p0 }
  0x2a   : > { %5480 = shalt.err (!%p5477_p3)
}
  0x2b   : > { %5378 = dma.hbm_to_vmem [thread:$0]  (!%p5698_p5), %s7182_s22, 16, %s699_s8, [#allocation3]  }
  0x2c   : > { %s5481_s10 = scalar_lea.hbm %s7183_s23, 16 }
  0x2d   : > { %p5482_p6 = scmp.ne.s32.totalorder %s7183_s23, %s5481_s10  ;;  %p5488_p3 = scmp.lt.u32.totalorder %s5481_s10, %s7183_s23 }
  0x2f   : > { %p5484_p8 = pnand %p5482_p6, %p5455_p7 }
  0x31   : > { %p5485_p2 = pneg %p5484_p8 }
  0x33   : > { %p5490_p9 = pnand %p5488_p3, %p5485_p2 }
  0x35   : > { %5493 = shalt.err (!%p5490_p9)
}
  0x36   : > { %s5494_s8 = scalar_lea.vmem %s5702_s29, 16  ;;  %s5501_s9 = scalar_lea.vmem %s5702_s29, 32 }
  0x37   : > { %p5495_p10 = scmp.ne.s32.totalorder %s5702_s29, %s5494_s8  ;;  %p5502_p13 = scmp.lt.s32.totalorder %s5702_s29, %s5702_s29 }
  0x38   : > { %p5503_p0 = scmp.lt.s32.totalorder %s5501_s9, %s5494_s8 }
  0x39   : > { %p5497_p11 = pnand %p5495_p10, %p5455_p7 }
  0x3a   : > { %p5504_p1 = por %p5503_p0, %p5502_p13 }
  0x3b   : > { %p5498_p12 = pneg %p5497_p11 }
  0x3d   : > { %p5505_p4 = pnand %p5504_p1, %p5498_p12 }
  0x3f   : > { %5508 = shalt.err (!%p5505_p4)
}
  0x40   : > { %5381 = dma.hbm_to_vmem [thread:$0]  (!%p5698_p5), %s7183_s23, 16, %s5702_s29, [#allocation5]  }
  0x41   : > { %p7222_p6 = scmp.ne.s32.totalorder %s7220_s7, 0 }
  0x42   : > { %p7223_p7 = scmp.eq.s32.totalorder (!%p7222_p6), %s5685_s3, 0 }
  0x43   : > { %742 = sbr.rel (%p7222_p6) target bundleno = 4964 (0x1364), region = 124 }
  0x4a   : > { %5514 = dma.done.wait (%p7223_p7), [#allocation3], 16   ;;  %p7224_p8 = pmov %p7223_p7 }
  0x4b   : > { %p7225_p2 = pmov %p7223_p7 }
  0x4c   : > { %5516 = vsyncadd (%p7224_p8), [#allocation3], 4294967280 }
  0x4d   : > { %5518 = dma.done.wait (%p7225_p2), [#allocation5], 16   ;;  %p7226_p3 = pmov %p7225_p2 }
  0x4e   : > { %p818_p9 = scmp.lt.s32.totalorder %s5685_s3, 1  ;;  %v5527_v0 = vmov 0.0|0.0   ;;  %vm5528_vm0 = vmmov 0   ;;  %v5529_v1 = vmov 0.0   ;;  %s7227_s0 = sld [smem:[#allocation10_spill]]  ;;  %vm843_vm1 = vcmask 261120  }
  0x4f   : > { %5520 = vsyncadd (%p7226_p3), [#allocation5], 4294967280  ;;  %5011 = vmatprep.subr.bf16.mxu0 %v5527_v0  ;;  %4873 = vmatprep.mubr.msk.f32.mxu0 %vm5528_vm0, %v5529_v1  ;;  %s7228_s2 = sld [smem:[#allocation8_spill]]  ;;  %s7229_s5 = sld [smem:[#allocation11_spill]]  ;;  %vm921_vm2 = vcmask 64512   ;;  %vm1592_vm3 = vcmask 130048  }
  0x50   : > { %4876 = vmatprep.subr.mxu1 %v5529_v1  ;;  %4878 = vmatprep.mubr.msk.f32.mxu1 %vm5528_vm0, %v5529_v1  ;;  %s7249_s3 = smov (!%p818_p9, %s5685_s3), 1  ;;  %s7199_s10 = smov 96   ;;  %vm1594_vm4 = vcmask 195584  }
  0x51   : > { %s5782_s8 = sshll.u32 %s7249_s3, 3  ;;  %s7204_s6 = smov 120  }
  0x52   : > { %s7193_s1 = smov 88   ;;  %s7195_s28 = smov 80  }
  0x53   : > { %s7202_s4 = smov 112   ;;  %s7194_s9 = smov 72  }
  0x54   : > { %v832_v2 = vld [vmem:[%s7227_s0] sm:$0xff]  ;;  %v833_v3 = vld [vmem:[%s7227_s0 + $0x8] sm:$0xff]  ;;  %v834_v4 = vld [vmem:[%s7227_s0 + $0x10] sm:$0xff]  ;;  %s7200_s30 = smov 104   ;;  %s5539_s3 = smov 48  }
  0x55   : > { %v5012_v5 = vpack.c.bf16 %v833_v3, %v832_v2  ;;  %v835_v6 = vld [vmem:[%s7227_s0 + $0x18] sm:$0xff]  ;;  %s821_s7 = scalar_lea.vmem %s7228_s2, %s5782_s8  ;;  %v4468_v9 = vld [vmem:[%s7229_s5] ss:$0 sm:$0xff]  ;;  %s5537_s2 = smov 56  }
  0x56   : > { %v5015_v7 = vpack.c.bf16 %v835_v6, %v834_v4  ;;  %v5789_v8 = vld [vmem:[%s821_s7] sm:$0xff]  ;;  %s5538_s7 = smov 64   ;;  %s5540_s29 = smov 40  }
  0x57   : > { %5013 = vmatpush3.bf16.msra.mxu0 %v5012_v5  ;;  %s7231_s5 = sld [smem:[#allocation13_spill]]  ;;  %s7234_s0 = sld [smem:[#allocation16_spill]] }
  0x58   : > { %5014 = vmatprep.subr.bf16.mxu0 %v5527_v0 }
  0x5b   : > { %5016 = vmatpush3.bf16.msra.mxu0 %v5015_v7 }
  0x5c   : > { %4886 = vmatprep.subr.mxu0 %v5529_v1 }
  0x5e   : > { %4874 = vmatmul.mubr.msk.f32.vlgmr.msra.gmra.mrb[0].mxu0 %vm843_vm1, %v5789_v8 }
  0x5f   : > { %4888 = vmatprep.mubr.msk.f32.mxu0 %vm5528_vm0, %v5529_v1 }
 0x131   : > { %v913_v10 = vpop.f32.mrb[0].mxu0 }
 0x132   : > { %v5799_v11 = vadd.f32 %v4468_v9, %v913_v10  ;;  %v4875_v12 = vpop.f32.mrb[1].mxu0 }
 0x134   : > { %919 = vrot.lane.b32.xlu0 %v5799_v11, %s7199_s10  ;;  %v917_v13 = vmul.f32 0.35355338, %v5799_v11 }
 0x136   : > { %1084 = vrot.lane.b32.xlu1 %v917_v13, %s7204_s6 }
 0x138   : > { %1086 = vrot.lane.b32.xlu0 %v5799_v11, %s7193_s1  ;;  %s7198_s1 = smov 8  }
 0x13a   : > { %1251 = vrot.lane.b32.xlu1 %v5799_v11, %s7195_s28  ;;  %s7232_s28 = sld [smem:[#allocation18_spill]] }
 0x13c   : > { %1249 = vrot.lane.b32.xlu0 %v917_v13, %s7202_s4  ;;  %s7233_s4 = sld [smem:[#allocation9_spill]] }
 0x13e   : > { %1416 = vrot.lane.b32.xlu1 %v5799_v11, %s7194_s9  ;;  %s7242_s9 = smov 80  }
 0x140   : > { %1414 = vrot.lane.b32.xlu0 %v917_v13, %s7200_s30  ;;  %s7239_s30 = smov 104  }
 0x142   : > { %s825_s6 = scalar_lea.vmem %s7233_s4, %s5782_s8  ;;  %s7237_s4 = smov 120  }
 0x1a6   : > { %v920_v14 = vpop.permute.xlu0 %919 }
 0x1a7   : > { %4877 = vmatpush3.xpose.msk.msra.mxu1 %vm921_vm2, %v920_v14 }
 0x1a8   : > { %v1085_v15 = vpop.permute.xlu1 %1084  ;;  %4881 = vmatprep.subr.mxu1 %v5529_v1 }
 0x1aa   : > { %v1087_v16 = vpop.permute.xlu0 %1086  ;;  %4879 = vmatmul.mubr.msk.f32.vlgmr.msra.gmra.mrb[0].mxu1 %vm921_vm2, %v917_v13 }
 0x1ab   : > { %4887 = vmatpush3.xpose.msk.msra.mxu0 %vm921_vm2, %v1087_v16  ;;  %4883 = vmatprep.mubr.msk.f32.mxu1 %vm5528_vm0, %v5529_v1 }
 0x1ac   : > { %v1252_v17 = vpop.permute.xlu1 %1251  ;;  %4896 = vmatprep.subr.mxu0 %v5529_v1 }
 0x1ae   : > { %4889 = vmatmul.mubr.msk.f32.vlgmr.msra.gmra.mrb[2].mxu0 %vm921_vm2, %v1085_v15  ;;  %v1250_v18 = vpop.permute.xlu0 %1249 }
 0x1af   : > { %4897 = vmatpush3.xpose.msk.msra.mxu0 %vm921_vm2, %v1252_v17  ;;  %4898 = vmatprep.mubr.msk.f32.mxu0 %vm5528_vm0, %v5529_v1 }
 0x1b0   : > { %4906 = vmatprep.subr.mxu0 %v5529_v1  ;;  %v1417_v19 = vpop.permute.xlu1 %1416 }
 0x1b2   : > { %4899 = vmatmul.mubr.msk.f32.vlgmr.msra.gmra.mrb[4].mxu0 %vm921_vm2, %v1250_v18  ;;  %v1415_v20 = vpop.permute.xlu0 %1414 }
 0x1b3   : > { %4907 = vmatpush3.xpose.msk.msra.mxu0 %vm921_vm2, %v1417_v19  ;;  %4908 = vmatprep.mubr.msk.f32.mxu0 %vm5528_vm0, %v5529_v1 }
 0x1b4   : > { %5017 = vmatprep.subr.bf16.mxu0 %v5527_v0 }
 0x1b6   : > { %4909 = vmatmul.mubr.msk.f32.vlgmr.msra.gmra.mrb[6].mxu0 %vm921_vm2, %v1415_v20 }
 0x1b7   : > { %4924 = vmatprep.mubr.msk.f32.mxu0 %vm5528_vm0, %v5529_v1 }
 0x27d   : > { %v993_v21 = vpop.f32.mrb[0].mxu1 }
 0x27e   : > { %v4880_v22 = vpop.f32.mrb[1].mxu1  ;;  %v997_v23 = vsel %vm921_vm2, %v993_v21, -inf }
 0x27f   : > { %998 = vmax.xlane.f32.xlu1 %v997_v23 }
 0x281   : > { %v1158_v24 = vpop.f32.mrb[2].mxu0 }
 0x282   : > { %v4890_v25 = vpop.f32.mrb[3].mxu0  ;;  %v1162_v26 = vsel %vm921_vm2, %v1158_v24, -inf }
 0x283   : > { %1163 = vmax.xlane.f32.xlu0 %v1162_v26 }
 0x285   : > { %v1323_v27 = vpop.f32.mrb[4].mxu0 }
 0x286   : > { %v4900_v28 = vpop.f32.mrb[5].mxu0  ;;  %v1327_v29 = vsel %vm921_vm2, %v1323_v27, -inf }
 0x287   : > { %1328 = vmax.xlane.f32.xlu0 %v1327_v29  ;;  %v4482_v28 = vld [vmem:[%s7231_s5] ss:$0 sm:$0xff]  ;;  %s7236_s5 = sld [smem:[#allocation15_spill]] }
 0x289   : > { %v1488_v30 = vpop.f32.mrb[6].mxu0 }
 0x28a   : > { %v4910_v31 = vpop.f32.mrb[7].mxu0  ;;  %v1492_v32 = vsel %vm921_vm2, %v1488_v30, -inf }
 0x28b   : > { %1493 = vmax.xlane.f32.xlu1 %v1492_v32 }
 0x29c   : > { %1173 = vrot.lane.b32.xlu1 %v5799_v11, %s5537_s2  ;;  %s7241_s2 = smov 96  }
 0x30c   : > { %v999_v33 = vpop.xlane.xlu1 %998 }
 0x30d   : > { %v1000_v34 = vsub.f32 %v993_v21, %v999_v33 }
 0x30f   : > { %v1001_v35 = vmul.f32 1.442695, %v1000_v34 }
 0x310   : > { %v1164_v36 = vpop.xlane.xlu0 %1163 }
 0x311   : > { %5413 = vpow2.f32 %v1001_v35  ;;  %v1165_v37 = vsub.f32 %v1158_v24, %v1164_v36 }
 0x313   : > { %v1166_v38 = vmul.f32 1.442695, %v1165_v37 }
 0x314   : > { %v1329_v48 = vpop.xlane.xlu0 %1328 }
 0x315   : > { %5415 = vpow2.f32 %v1166_v38  ;;  %v1330_v49 = vsub.f32 %v1323_v27, %v1329_v48  ;;  %v1713_v48 = vld [vmem:[%s7234_s0 + $0x10] sm:$0xff] }
 0x317   : > { %v1331_v50 = vmul.f32 1.442695, %v1330_v49  ;;  %v1714_v49 = vld [vmem:[%s7234_s0 + $0x18] sm:$0xff] }
 0x318   : > { %v1494_v39 = vpop.xlane.xlu1 %1493 }
 0x319   : > { %v1495_v40 = vsub.f32 %v1488_v30, %v1494_v39  ;;  %v1795_v39 = vld [vmem:[%s7232_s28] sm:$0xff] }
 0x31b   : > { %v5414_v41 = vpop.eup %5413  ;;  %v1496_v42 = vmul.f32 1.442695, %v1495_v40  ;;  %v1796_v40 = vld [vmem:[%s7232_s28 + $0x8] sm:$0xff] }
 0x31c   : > { %v1003_v43 = vsel %vm921_vm2, %v5414_v41, 0.0  ;;  %v1174_v53 = vpop.permute.xlu1 %1173 }
 0x31d   : > { %5417 = vpow2.f32 %v1496_v42  ;;  %1004 = vadd.xlane.f32.xlu0 %v1003_v43  ;;  %v1798_v42 = vld [vmem:[%s7232_s28 + $0x18] sm:$0xff] }
 0x31e   : > { %5419 = vpow2.f32 %v1331_v50  ;;  %v5027_v50 = vpack.c.bf16 %v1714_v49, %v1713_v48 }
 0x31f   : > { %v5416_v44 = vpop.eup %5415 }
 0x320   : > { %v1168_v45 = vsel %vm921_vm2, %v5416_v44, 0.0 }
 0x321   : > { %1169 = vadd.xlane.f32.xlu1 %v1168_v45  ;;  %v1711_v45 = vld [vmem:[%s7234_s0] sm:$0xff] }
 0x327   : > { %v5418_v46 = vpop.eup %5417 }
 0x328   : > { %v1498_v47 = vsel %vm921_vm2, %v5418_v46, 0.0  ;;  %v5420_v51 = vpop.eup %5419 }
 0x329   : > { %1499 = vadd.xlane.f32.xlu1 %v1498_v47  ;;  %v1333_v52 = vsel %vm921_vm2, %v5420_v51, 0.0 }
 0x333   : > { %1008 = vrot.lane.b32.xlu0 %v5799_v11, %s5538_s7  ;;  %s7230_s7 = sld [smem:[#allocation12_spill]] }
 0x339   : > { %v1596_v7 = vld [vmem:[%s7230_s7] sm:$0xff]  ;;  %v1597_v9 = vld [vmem:[%s7230_s7 + $0x8] sm:$0xff]  ;;  %v1598_v15 = vld [vmem:[%s7230_s7 + $0x10] sm:$0xff] }
 0x33a   : > { %1338 = vrot.lane.b32.xlu1 %v5799_v11, %s5539_s3  ;;  %v5018_v10 = vpack.c.bf16 %v1597_v9, %v1596_v7  ;;  %v1599_v16 = vld [vmem:[%s7230_s7 + $0x18] sm:$0xff]  ;;  %s7197_s3 = smov 16  }
 0x33b   : > { %v5021_v17 = vpack.c.bf16 %v1599_v16, %v1598_v15 }
 0x33c   : > { %5019 = vmatpush3.bf16.msra.mxu0 %v5018_v10 }
 0x33d   : > { %5020 = vmatprep.subr.bf16.mxu0 %v5527_v0 }
 0x340   : > { %5022 = vmatpush3.bf16.msra.mxu0 %v5021_v17 }
 0x341   : > { %5029 = vmatprep.subr.bf16.mxu0 %v5527_v0 }
 0x352   : > { %1334 = vadd.xlane.f32.xlu0 %v1333_v52 }
 0x368   : > { %1503 = vrot.lane.b32.xlu0 %v5799_v11, %s5540_s29  ;;  %s7196_s29 = smov 24  }
 0x3aa   : > { %v1005_v54 = vpop.xlane.xlu0 %1004 }
 0x3ab   : > { %5421 = vrcp.f32 %v1005_v54 }
 0x3ae   : > { %v1009_v55 = vpop.permute.xlu0 %1008  ;;  %v1170_v56 = vpop.xlane.xlu1 %1169 }
 0x3af   : > { %5423 = vrcp.f32 %v1170_v56  ;;  %4882 = vmatpush3.msra.mxu1 %v1009_v55 }
 0x3b0   : > { %4891 = vmatprep.subr.mxu1 %v5529_v1 }
 0x3b5   : > { %v5422_v57 = vpop.eup %5421 }
 0x3b6   : > { %v1007_v58 = vmul.f32 %v5422_v57, %v5414_v41  ;;  %v1500_v59 = vpop.xlane.xlu1 %1499  ;;  %v1797_v41 = vld [vmem:[%s7232_s28 + $0x10] sm:$0xff]  ;;  %v4485_v57 = vld [vmem:[%s7236_s5] ss:$0 sm:$0xff]  ;;  %s7243_s5 = smov 72  }
 0x3b7   : > { %v5033_v43 = vpack.c.bf16 %v1798_v42, %v1797_v41 }
 0x3b8   : > { %4884 = vmatmul.mubr.msk.f32.vlgmr.msra.gmra.mrb[2].mxu1 %vm921_vm2, %v1007_v58 }
 0x3b9   : > { %v5424_v60 = vpop.eup %5423  ;;  %4892 = vmatpush3.msra.mxu1 %v1174_v53  ;;  %4893 = vmatprep.mubr.msk.f32.mxu1 %vm5528_vm0, %v5529_v1 }
 0x3ba   : > { %v1172_v61 = vmul.f32 %v5424_v60, %v5416_v44  ;;  %v1339_v62 = vpop.permute.xlu1 %1338  ;;  %4901 = vmatprep.subr.mxu1 %v5529_v1  ;;  %v831_v44 = vld [vmem:[%s825_s6] sm:$0xff]  ;;  %s7238_s6 = smov 112  }
 0x3bb   : > { %v4488_v60 = vld [vmem:[%s7171_s11] ss:$0 sm:$0xff] }
 0x3bc   : > { %4894 = vmatmul.mubr.msk.f32.vlgmr.msra.gmra.mrb[4].mxu1 %vm921_vm2, %v1172_v61 }
 0x3bd   : > { %4902 = vmatpush3.msra.mxu1 %v1339_v62  ;;  %4903 = vmatprep.mubr.msk.f32.mxu1 %vm5528_vm0, %v5529_v1 }
 0x3be   : > { %4911 = vmatprep.subr.mxu1 %v5529_v1 }
 0x3df   : > { %v1335_v63 = vpop.xlane.xlu0 %1334 }
 0x3e0   : > { %5425 = vrcp.f32 %v1335_v63 }
 0x3e1   : > { %5427 = vrcp.f32 %v1500_v59 }
 0x3e3   : > { %v1504_v5 = vpop.permute.xlu0 %1503 }
 0x3ea   : > { %v5426_v2 = vpop.eup %5425 }
 0x3eb   : > { %v1337_v3 = vmul.f32 %v5426_v2, %v5420_v51  ;;  %v5428_v4 = vpop.eup %5427 }
 0x3ec   : > { %v1502_v6 = vmul.f32 %v5428_v4, %v5418_v46  ;;  %v1712_v46 = vld [vmem:[%s7234_s0 + $0x8] sm:$0xff]  ;;  %s829_s0 = scalar_lea.vmem %s7186_s26, %s5782_s8 }
 0x3ed   : > { %4904 = vmatmul.mubr.msk.f32.vlgmr.msra.gmra.mrb[6].mxu1 %vm921_vm2, %v1337_v3  ;;  %v5024_v47 = vpack.c.bf16 %v1712_v46, %v1711_v45 }
 0x3ee   : > { %4912 = vmatpush3.msra.mxu1 %v1504_v5  ;;  %4913 = vmatprep.mubr.msk.f32.mxu1 %vm5528_vm0, %v5529_v1 }
 0x3ef   : > { %5023 = vmatprep.subr.bf16.mxu1 %v5527_v0 }
 0x3f1   : > { %4914 = vmatmul.mubr.msk.f32.vlgmr.msra.gmra.mrb[8].mxu1 %vm921_vm2, %v1502_v6 }
 0x3f2   : > { %4935 = vmatprep.mubr.msk.f32.mxu1 %vm5528_vm0, %v5529_v1  ;;  %5025 = vmatpush3.bf16.msra.mxu1 %v5024_v47 }
 0x3f3   : > { %5026 = vmatprep.subr.bf16.mxu1 %v5527_v0 }
 0x3f6   : > { %5028 = vmatpush3.bf16.msra.mxu1 %v5027_v50 }
 0x3f7   : > { %4949 = vmatprep.subr.mxu1 %v5529_v1 }
 0x48b   : > { %v1080_v11 = vpop.f32.mrb[2].mxu1 }
 0x48c   : > { %v4885_v12 = vpop.f32.mrb[3].mxu1 }
 0x48f   : > { %v1245_v13 = vpop.f32.mrb[4].mxu1 }
 0x490   : > { %1580 = vrot.lane.b32.xlu1 %v1245_v13, %s7198_s1  ;;  %v4895_v14 = vpop.f32.mrb[5].mxu1  ;;  %s7244_s1 = smov 88  }
 0x4c0   : > { %v1410_v18 = vpop.f32.mrb[6].mxu1 }
 0x4c1   : > { %1584 = vrot.lane.b32.xlu0 %v1410_v18, %s7197_s3  ;;  %v4905_v19 = vpop.f32.mrb[7].mxu1 }
 0x4c4   : > { %v1575_v20 = vpop.f32.mrb[8].mxu1 }
 0x4c5   : > { %1588 = vrot.lane.b32.xlu1 %v1575_v20, %s7196_s29  ;;  %v4915_v21 = vpop.f32.mrb[9].mxu1  ;;  %s7235_s29 = sld [smem:[#allocation14_spill]] }
 0x4cb   : > { %v4484_v55 = vld [vmem:[%s7235_s29] ss:$0 sm:$0xff]  ;;  %s7240_s29 = sld [smem:[#allocation17_spill]] }
 0x4d1   : > { %v4486_v3 = vld [vmem:[%s7240_s29] ss:$0 sm:$0xff] }
 0x502   : > { %v1581_v22 = vpop.permute.xlu1 %1580 }
 0x503   : > { %v1591_v24 = vsel %vm921_vm2, %v1080_v11, %v1581_v22 }
 0x533   : > { %v1585_v23 = vpop.permute.xlu0 %1584 }
 0x534   : > { %v1593_v25 = vsel %vm1592_vm3, %v1591_v24, %v1585_v23 }
 0x537   : > { %v1589_v26 = vpop.permute.xlu1 %1588 }
 0x538   : > { %v1595_v27 = vsel %vm1594_vm4, %v1593_v25, %v1589_v26 }
 0x539   : > { %4925 = vmatmul.mubr.msk.f32.vlgmr.msra.gmra.mrb[8].mxu0 %vm843_vm1, %v1595_v27 }
 0x53a   : > { %4946 = vmatprep.mubr.msk.f32.mxu0 %vm5528_vm0, %v5529_v1 }
 0x60c   : > { %v1676_v29 = vpop.f32.mrb[8].mxu0 }
 0x60d   : > { %v1677_v30 = vadd.f32 %v4482_v28, %v1676_v29  ;;  %v4926_v31 = vpop.f32.mrb[9].mxu0 }
 0x60f   : > { %v1680_v32 = vadd.f32 %v1677_v30, %v5789_v8  ;;  %v5030_v8 = vpack.c.bf16 %v1796_v40, %v1795_v39 }
 0x611   : > { %v1683_v33 = vsel %vm843_vm1, %v1680_v32, 0.0  ;;  %5031 = vmatpush3.bf16.msra.mxu0 %v5030_v8 }
 0x612   : > { %1684 = vadd.xlane.f32.xlu0 %v1683_v33  ;;  %5032 = vmatprep.subr.bf16.mxu0 %v5527_v0 }
 0x615   : > { %5034 = vmatpush3.bf16.msra.mxu0 %v5033_v43 }
 0x616   : > { %4959 = vmatprep.subr.mxu0 %v5529_v1 }
 0x618   : > { %4947 = vmatmul.mubr.msk.f32.vlgmr.msra.gmra.mrb[10].mxu0 %vm843_vm1, %v831_v44 }
 0x619   : > { %4961 = vmatprep.mubr.msk.f32.mxu0 %vm5528_vm0, %v5529_v1 }
 0x69f   : > { %v1685_v34 = vpop.xlane.xlu0 %1684 }
 0x6a0   : > { %v1687_v35 = vmul.f32 0.03125, %v1685_v34 }
 0x6a2   : > { %v1688_v36 = vsub.f32 %v1680_v32, %v1687_v35 }
 0x6a4   : > { %v1689_v37 = vmul.f32 %v1688_v36, %v1688_v36 }
 0x6a6   : > { %v1690_v38 = vsel %vm843_vm1, %v1689_v37, 0.0 }
 0x6a7   : > { %1691 = vadd.xlane.f32.xlu1 %v1690_v38 }
 0x6eb   : > { %v1875_v61 = vpop.f32.mrb[10].mxu0 }
 0x6ec   : > { %v5940_v62 = vadd.f32 %v4488_v60, %v1875_v61  ;;  %v4948_v63 = vpop.f32.mrb[11].mxu0 }
 0x6ee   : > { %2045 = vrot.lane.b32.xlu0 %v5940_v62, %s7237_s4 }
 0x6f2   : > { %2210 = vrot.lane.b32.xlu0 %v5940_v62, %s7238_s6 }
 0x6f6   : > { %2375 = vrot.lane.b32.xlu0 %v5940_v62, %s7239_s30 }
 0x734   : > { %v1692_v51 = vpop.xlane.xlu1 %1691 }
 0x735   : > { %v1693_v52 = vmul.f32 0.03125, %v1692_v51 }
 0x737   : > { %v1694_v53 = vadd.f32 1e-05, %v1693_v52 }
 0x739   : > { %5429 = vrsqrt.f32 %v1694_v53 }
 0x743   : > { %v5430_v54 = vpop.eup %5429 }
 0x744   : > { %v1696_v56 = vmul.f32 %v5430_v54, %v1688_v36 }
 0x746   : > { %v1703_v58 = vmul.f32 %v4484_v55, %v1696_v56 }
 0x748   : > { %v5931_v59 = vadd.f32 %v4485_v57, %v1703_v58 }
 0x74a   : > { %4936 = vmatmul.mubr.msk.f32.vlgmr.msra.gmra.mrb[10].mxu1 %vm843_vm1, %v5931_v59 }
 0x74b   : > { %4951 = vmatprep.mubr.msk.f32.mxu1 %vm5528_vm0, %v5529_v1  ;;  %4950 = vmatpush3.xpose.msk.msra.mxu1 %vm921_vm2, %v5940_v62 }
 0x74c   : > { %4954 = vmatprep.subr.mxu1 %v5529_v1 }
 0x760   : > { %v2046_v2 = vpop.permute.xlu0 %2045 }
 0x761   : > { %4960 = vmatpush3.xpose.msk.msra.mxu0 %vm921_vm2, %v2046_v2  ;;  %v2553_v2 = vld [vmem:[%s7172_s12] sm:$0xff] }
 0x762   : > { %4969 = vmatprep.subr.mxu0 %v5529_v1 }
 0x764   : > { %v2211_v9 = vpop.permute.xlu0 %2210 }
 0x768   : > { %v2376_v12 = vpop.permute.xlu0 %2375 }
 0x81d   : > { %v1791_v4 = vpop.f32.mrb[10].mxu1 }
 0x81e   : > { %v1792_v5 = vadd.f32 %v4486_v3, %v1791_v4  ;;  %v4937_v6 = vpop.f32.mrb[11].mxu1  ;;  %v2554_v3 = vld [vmem:[%s7172_s12 + $0x8] sm:$0xff] }
 0x81f   : > { %v5036_v4 = vpack.c.bf16 %v2554_v3, %v2553_v2  ;;  %v2556_v6 = vld [vmem:[%s7172_s12 + $0x18] sm:$0xff]  ;;  %v4504_v2 = vld [vmem:[%s7174_s14] ss:$0 sm:$0xff] }
 0x820   : > { %v1879_v7 = vmul.f32 0.35355338, %v1792_v5  ;;  %v2555_v5 = vld [vmem:[%s7172_s12 + $0x10] sm:$0xff] }
 0x822   : > { %2043 = vrot.lane.b32.xlu1 %v1879_v7, %s7237_s4  ;;  %4952 = vmatmul.mubr.msk.f32.vlgmr.msra.gmra.mrb[12].mxu1 %vm921_vm2, %v1879_v7 }
 0x823   : > { %4956 = vmatprep.mubr.msk.f32.mxu1 %vm5528_vm0, %v5529_v1 }
 0x826   : > { %2208 = vrot.lane.b32.xlu1 %v1879_v7, %s7238_s6 }
 0x82a   : > { %2373 = vrot.lane.b32.xlu1 %v1879_v7, %s7239_s30  ;;  %v5039_v7 = vpack.c.bf16 %v2556_v6, %v2555_v5  ;;  %v2671_v5 = vld [vmem:[%s7176_s16 + $0x20] sm:$0xff] }
 0x82b   : > { %v2687_v6 = vld [vmem:[%s7176_s16 + $0xa0] sm:$0xff] }
 0x894   : > { %v2044_v10 = vpop.permute.xlu1 %2043 }
 0x895   : > { %4962 = vmatmul.mubr.msk.f32.vlgmr.msra.gmra.mrb[12].mxu0 %vm921_vm2, %v2044_v10 }
 0x896   : > { %4970 = vmatpush3.xpose.msk.msra.mxu0 %vm921_vm2, %v2211_v9  ;;  %4971 = vmatprep.mubr.msk.f32.mxu0 %vm5528_vm0, %v5529_v1 }
 0x897   : > { %4979 = vmatprep.subr.mxu0 %v5529_v1 }
 0x898   : > { %v2209_v11 = vpop.permute.xlu1 %2208 }
 0x899   : > { %4972 = vmatmul.mubr.msk.f32.vlgmr.msra.gmra.mrb[14].mxu0 %vm921_vm2, %v2209_v11 }
 0x89a   : > { %4980 = vmatpush3.xpose.msk.msra.mxu0 %vm921_vm2, %v2376_v12  ;;  %4981 = vmatprep.mubr.msk.f32.mxu0 %vm5528_vm0, %v5529_v1 }
 0x89b   : > { %5035 = vmatprep.subr.bf16.mxu0 %v5527_v0 }
 0x89c   : > { %v2374_v13 = vpop.permute.xlu1 %2373 }
 0x89d   : > { %4982 = vmatmul.mubr.msk.f32.vlgmr.msra.gmra.mrb[16].mxu0 %vm921_vm2, %v2374_v13 }
 0x89e   : > { %4997 = vmatprep.mubr.msk.f32.mxu0 %vm5528_vm0, %v5529_v1  ;;  %5037 = vmatpush3.bf16.msra.mxu0 %v5036_v4  ;;  %v4505_v4 = vld [vmem:[%s7175_s15] ss:$0 sm:$0xff] }
 0x89f   : > { %5038 = vmatprep.subr.bf16.mxu0 %v5527_v0 }
 0x8a2   : > { %5040 = vmatpush3.bf16.msra.mxu0 %v5039_v7 }
 0x8f5   : > { %v1952_v14 = vpop.f32.mrb[12].mxu1 }
 0x8f6   : > { %v4953_v15 = vpop.f32.mrb[13].mxu1  ;;  %v1956_v16 = vsel %vm921_vm2, %v1952_v14, -inf }
 0x8f7   : > { %1957 = vmax.xlane.f32.xlu0 %v1956_v16 }
 0x968   : > { %v2117_v17 = vpop.f32.mrb[12].mxu0 }
 0x969   : > { %v4963_v18 = vpop.f32.mrb[13].mxu0  ;;  %v2121_v19 = vsel %vm921_vm2, %v2117_v17, -inf }
 0x96a   : > { %2122 = vmax.xlane.f32.xlu1 %v2121_v19 }
 0x96c   : > { %v2282_v20 = vpop.f32.mrb[14].mxu0 }
 0x96d   : > { %v4973_v21 = vpop.f32.mrb[15].mxu0  ;;  %v2286_v22 = vsel %vm921_vm2, %v2282_v20, -inf }
 0x96e   : > { %2287 = vmax.xlane.f32.xlu0 %v2286_v22  ;;  %v4502_v21 = vld [vmem:[%s7173_s13] ss:$0 sm:$0xff] }
 0x970   : > { %v2447_v23 = vpop.f32.mrb[16].mxu0 }
 0x971   : > { %v4983_v24 = vpop.f32.mrb[17].mxu0  ;;  %v2451_v25 = vsel %vm921_vm2, %v2447_v23, -inf }
 0x972   : > { %2452 = vmax.xlane.f32.xlu0 %v2451_v25 }
 0x97b   : > { %1967 = vrot.lane.b32.xlu1 %v5940_v62, %s7241_s2 }
 0x984   : > { %v1958_v26 = vpop.xlane.xlu0 %1957 }
 0x985   : > { %v1959_v27 = vsub.f32 %v1952_v14, %v1958_v26 }
 0x987   : > { %v1960_v28 = vmul.f32 1.442695, %v1959_v27 }
 0x989   : > { %5431 = vpow2.f32 %v1960_v28 }
 0x993   : > { %v5432_v29 = vpop.eup %5431 }
 0x994   : > { %v1962_v30 = vsel %vm921_vm2, %v5432_v29, 0.0 }
 0x99f   : > { %1963 = vadd.xlane.f32.xlu1 %v1962_v30 }
 0x9f7   : > { %v2123_v31 = vpop.xlane.xlu1 %2122 }
 0x9f8   : > { %v2124_v32 = vsub.f32 %v2117_v17, %v2123_v31 }
 0x9fa   : > { %v2125_v33 = vmul.f32 1.442695, %v2124_v32  ;;  %v2668_v32 = vld [vmem:[%s7176_s16 + $0x8] sm:$0xff] }
 0x9fb   : > { %v1968_v34 = vpop.permute.xlu1 %1967  ;;  %v2288_v35 = vpop.xlane.xlu0 %2287 }
 0x9fc   : > { %5433 = vpow2.f32 %v2125_v33  ;;  %v2289_v36 = vsub.f32 %v2282_v20, %v2288_v35  ;;  %4955 = vmatpush3.msra.mxu1 %v1968_v34  ;;  %v2684_v33 = vld [vmem:[%s7176_s16 + $0x88] sm:$0xff]  ;;  %v2686_v35 = vld [vmem:[%s7176_s16 + $0x98] sm:$0xff] }
 0x9fd   : > { %4964 = vmatprep.subr.mxu1 %v5529_v1  ;;  %v5041_v34 = vpack.c.bf16 %v2684_v33, %v2668_v32  ;;  %v2691_v32 = vld [vmem:[%s7176_s16 + $0xc0] sm:$0xff] }
 0x9fe   : > { %v2290_v37 = vmul.f32 1.442695, %v2289_v36  ;;  %v2667_v36 = vld [vmem:[%s7176_s16] sm:$0xff] }
 0x9ff   : > { %v2453_v38 = vpop.xlane.xlu0 %2452 }
 0xa00   : > { %5435 = vpow2.f32 %v2290_v37  ;;  %v2454_v39 = vsub.f32 %v2447_v23, %v2453_v38  ;;  %v2683_v37 = vld [vmem:[%s7176_s16 + $0x80] sm:$0xff] }
 0xa02   : > { %v2455_v40 = vmul.f32 1.442695, %v2454_v39  ;;  %v5043_v39 = vpack.c.bf16 %v2683_v37, %v2667_v36  ;;  %v2708_v36 = vld [vmem:[%s7176_s16 + $0x148] sm:$0xff] }
 0xa03   : > { %v2724_v37 = vld [vmem:[%s7176_s16 + $0x1c8] sm:$0xff] }
 0xa04   : > { %5437 = vpow2.f32 %v2455_v40  ;;  %v2669_v40 = vld [vmem:[%s7176_s16 + $0x10] sm:$0xff] }
 0xa06   : > { %v5434_v8 = vpop.eup %5433 }
 0xa07   : > { %v2127_v41 = vsel %vm921_vm2, %v5434_v8, 0.0 }
 0xa08   : > { %2128 = vadd.xlane.f32.xlu0 %v2127_v41 }
 0xa0a   : > { %v5436_v42 = vpop.eup %5435 }
 0xa0b   : > { %v2292_v43 = vsel %vm921_vm2, %v5436_v42, 0.0 }
 0xa0c   : > { %2293 = vadd.xlane.f32.xlu1 %v2292_v43  ;;  %v2716_v43 = vld [vmem:[%s7176_s16 + $0x188] sm:$0xff] }
 0xa0e   : > { %v5438_v44 = vpop.eup %5437 }
 0xa0f   : > { %v2457_v45 = vsel %vm921_vm2, %v5438_v44, 0.0 }
 0xa10   : > { %2458 = vadd.xlane.f32.xlu0 %v2457_v45 }
 0xa1d   : > { %2297 = vrot.lane.b32.xlu1 %v5940_v62, %s7242_s9  ;;  %s7245_s9 = smov 8  }
 0xa21   : > { %2462 = vrot.lane.b32.xlu1 %v5940_v62, %s7243_s5  ;;  %s7246_s5 = smov 16  }
 0xa26   : > { %2132 = vrot.lane.b32.xlu0 %v5940_v62, %s7244_s1  ;;  %s7247_s1 = smov 24  }
 0xa2c   : > { %v1964_v46 = vpop.xlane.xlu1 %1963 }
 0xa2d   : > { %5439 = vrcp.f32 %v1964_v46  ;;  %v2718_v46 = vld [vmem:[%s7176_s16 + $0x198] sm:$0xff] }
 0xa37   : > { %v5440_v47 = vpop.eup %5439 }
 0xa38   : > { %v1966_v48 = vmul.f32 %v5440_v47, %v5432_v29  ;;  %v2699_v47 = vld [vmem:[%s7176_s16 + $0x100] sm:$0xff] }
 0xa3a   : > { %4957 = vmatmul.mubr.msk.f32.vlgmr.msra.gmra.mrb[14].mxu1 %vm921_vm2, %v1966_v48  ;;  %v2715_v48 = vld [vmem:[%s7176_s16 + $0x180] sm:$0xff] }
 0xa3b   : > { %4966 = vmatprep.mubr.msk.f32.mxu1 %vm5528_vm0, %v5529_v1 }
 0xa95   : > { %v2129_v49 = vpop.xlane.xlu0 %2128 }
 0xa96   : > { %5441 = vrcp.f32 %v2129_v49 }
 0xa99   : > { %v2294_v50 = vpop.xlane.xlu1 %2293 }
 0xa9a   : > { %5443 = vrcp.f32 %v2294_v50  ;;  %v5047_v50 = vpack.c.bf16 %v2715_v48, %v2699_v47  ;;  %v2680_v47 = vld [vmem:[%s7176_s16 + $0x68] sm:$0xff] }
 0xa9b   : > { %v2696_v48 = vld [vmem:[%s7176_s16 + $0xe8] sm:$0xff] }
 0xa9d   : > { %v2459_v51 = vpop.xlane.xlu0 %2458  ;;  %v2298_v54 = vpop.permute.xlu1 %2297 }
 0xa9e   : > { %5445 = vrcp.f32 %v2459_v51  ;;  %v2701_v51 = vld [vmem:[%s7176_s16 + $0x110] sm:$0xff] }
 0xaa0   : > { %v5442_v52 = vpop.eup %5441 }
 0xaa1   : > { %v2131_v53 = vmul.f32 %v5442_v52, %v5434_v8  ;;  %v2133_v55 = vpop.permute.xlu0 %2132  ;;  %v2463_v58 = vpop.permute.xlu1 %2462  ;;  %v2685_v8 = vld [vmem:[%s7176_s16 + $0x90] sm:$0xff] }
 0xaa2   : > { %4965 = vmatpush3.msra.mxu1 %v2133_v55  ;;  %v5051_v41 = vpack.c.bf16 %v2685_v8, %v2669_v40  ;;  %v2717_v52 = vld [vmem:[%s7176_s16 + $0x190] sm:$0xff]  ;;  %v2688_v55 = vld [vmem:[%s7176_s16 + $0xa8] sm:$0xff] }
 0xaa3   : > { %4967 = vmatmul.mubr.msk.f32.vlgmr.msra.gmra.mrb[16].mxu1 %vm921_vm2, %v2131_v53  ;;  %4974 = vmatprep.subr.mxu1 %v5529_v1  ;;  %v5055_v53 = vpack.c.bf16 %v2717_v52, %v2701_v51 }
 0xaa4   : > { %v5444_v56 = vpop.eup %5443  ;;  %4975 = vmatpush3.msra.mxu1 %v2298_v54  ;;  %4976 = vmatprep.mubr.msk.f32.mxu1 %vm5528_vm0, %v5529_v1  ;;  %v2672_v54 = vld [vmem:[%s7176_s16 + $0x28] sm:$0xff] }
 0xaa5   : > { %v2296_v57 = vmul.f32 %v5444_v56, %v5436_v42  ;;  %4984 = vmatprep.subr.mxu1 %v5529_v1  ;;  %v2700_v42 = vld [vmem:[%s7176_s16 + $0x108] sm:$0xff]  ;;  %v2674_v56 = vld [vmem:[%s7176_s16 + $0x38] sm:$0xff] }
 0xaa6   : > { %v5045_v45 = vpack.c.bf16 %v2716_v43, %v2700_v42  ;;  %v2723_v42 = vld [vmem:[%s7176_s16 + $0x1c0] sm:$0xff]  ;;  %v5077_v43 = vpack.c.bf16 %v2724_v37, %v2708_v36  ;;  %v3423_v36 = vld [vmem:[%s7178_s18 + $0xa8] sm:$0xff] }
 0xaa7   : > { %4977 = vmatmul.mubr.msk.f32.vlgmr.msra.gmra.mrb[18].mxu1 %vm921_vm2, %v2296_v57  ;;  %v5057_v57 = vpack.c.bf16 %v2688_v55, %v2672_v54  ;;  %v2695_v54 = vld [vmem:[%s7176_s16 + $0xe0] sm:$0xff]  ;;  %v5089_v55 = vpack.c.bf16 %v2696_v48, %v2680_v47  ;;  %v3425_v47 = vld [vmem:[%s7178_s18 + $0xb8] sm:$0xff]  ;;  %v3456_v48 = vld [vmem:[%s7178_s18 + $0x1b0] sm:$0xff] }
 0xaa8   : > { %v5446_v60 = vpop.eup %5445  ;;  %4985 = vmatpush3.msra.mxu1 %v2463_v58  ;;  %4986 = vmatprep.mubr.msk.f32.mxu1 %vm5528_vm0, %v5529_v1  ;;  %v2690_v58 = vld [vmem:[%s7176_s16 + $0xb8] sm:$0xff]  ;;  %v3454_v37 = vld [vmem:[%s7178_s18 + $0x1a0] sm:$0xff] }
 0xaa9   : > { %v2461_v61 = vmul.f32 %v5446_v60, %v5438_v44  ;;  %5042 = vmatprep.subr.bf16.mxu1 %v5041_v34  ;;  %v2702_v44 = vld [vmem:[%s7176_s16 + $0x118] sm:$0xff]  ;;  %v5065_v60 = vpack.c.bf16 %v2690_v58, %v2674_v56  ;;  %v2677_v34 = vld [vmem:[%s7176_s16 + $0x50] sm:$0xff] }
 0xaaa   : > { %v5053_v49 = vpack.c.bf16 %v2718_v46, %v2702_v44  ;;  %v2725_v46 = vld [vmem:[%s7176_s16 + $0x1d0] sm:$0xff] }
 0xaab   : > { %4987 = vmatmul.mubr.msk.f32.vlgmr.msra.gmra.mrb[20].mxu1 %vm921_vm2, %v2461_v61  ;;  %v2697_v58 = vld [vmem:[%s7176_s16 + $0xf0] sm:$0xff] }
 0xaac   : > { %2882 = vmatprep.mubr.f32.mxu1 %v5529_v1  ;;  %5044 = vmatpush1.bf16.msra.mxu1 %v5043_v39  ;;  %v2726_v39 = vld [vmem:[%s7176_s16 + $0x1d8] sm:$0xff] }
 0xaad   : > { %5046 = vmatprep.subr.bf16.mxu1 %v5045_v45  ;;  %v2709_v45 = vld [vmem:[%s7176_s16 + $0x150] sm:$0xff] }
 0xaae   : > { %v5087_v52 = vpack.c.bf16 %v2725_v46, %v2709_v45  ;;  %v3439_v45 = vld [vmem:[%s7178_s18 + $0x128] sm:$0xff]  ;;  %v3424_v46 = vld [vmem:[%s7178_s18 + $0xb0] sm:$0xff] }
 0xab0   : > { %5048 = vmatpush1.bf16.msra.mxu1 %v5047_v50  ;;  %v2698_v50 = vld [vmem:[%s7176_s16 + $0xf8] sm:$0xff] }
 0xab1   : > { %5058 = vmatprep.subr.bf16.mxu1 %v5057_v57  ;;  %v2681_v57 = vld [vmem:[%s7176_s16 + $0x70] sm:$0xff] }
 0xb0d   : > { %v2039_v62 = vpop.f32.mrb[14].mxu1 }
 0xb0e   : > { %v4958_v63 = vpop.f32.mrb[15].mxu1 }
 0xb76   : > { %v2204_v9 = vpop.f32.mrb[16].mxu1 }
 0xb77   : > { %2539 = vrot.lane.b32.xlu0 %v2204_v9, %s7245_s9  ;;  %v4968_v10 = vpop.f32.mrb[17].mxu1  ;;  %v2673_v9 = vld [vmem:[%s7176_s16 + $0x30] sm:$0xff] }
 0xb78   : > { %v2689_v10 = vld [vmem:[%s7176_s16 + $0xb0] sm:$0xff] }
 0xb7a   : > { %v2369_v11 = vpop.f32.mrb[18].mxu1 }
 0xb7b   : > { %2543 = vrot.lane.b32.xlu1 %v2369_v11, %s7246_s5  ;;  %v4978_v12 = vpop.f32.mrb[19].mxu1  ;;  %v2704_v11 = vld [vmem:[%s7176_s16 + $0x128] sm:$0xff] }
 0xb7c   : > { %v2720_v12 = vld [vmem:[%s7176_s16 + $0x1a8] sm:$0xff] }
 0xb7e   : > { %v2534_v13 = vpop.f32.mrb[20].mxu1 }
 0xb7f   : > { %2547 = vrot.lane.b32.xlu0 %v2534_v13, %s7247_s1  ;;  %v4988_v14 = vpop.f32.mrb[21].mxu1  ;;  %v2706_v13 = vld [vmem:[%s7176_s16 + $0x138] sm:$0xff] }
 0xb80   : > { %v2722_v14 = vld [vmem:[%s7176_s16 + $0x1b8] sm:$0xff] }
 0xbe9   : > { %v2540_v15 = vpop.permute.xlu0 %2539 }
 0xbea   : > { %v2550_v17 = vsel %vm921_vm2, %v2039_v62, %v2540_v15 }
 0xbed   : > { %v2544_v16 = vpop.permute.xlu1 %2543 }
 0xbee   : > { %v2551_v18 = vsel %vm1592_vm3, %v2550_v17, %v2544_v16  ;;  %v5059_v16 = vpack.c.bf16 %v2687_v6, %v2671_v5  ;;  %v5067_v17 = vpack.c.bf16 %v2689_v10, %v2673_v9  ;;  %v2727_v5 = vld [vmem:[%s7176_s16 + $0x1e0] sm:$0xff]  ;;  %v2713_v9 = vld [vmem:[%s7176_s16 + $0x170] sm:$0xff] }
 0xbef   : > { %v2729_v10 = vld [vmem:[%s7176_s16 + $0x1f0] sm:$0xff] }
 0xbf1   : > { %v2548_v19 = vpop.permute.xlu0 %2547 }
 0xbf2   : > { %v2552_v20 = vsel %vm1594_vm4, %v2551_v18, %v2548_v19  ;;  %v2703_v18 = vld [vmem:[%s7176_s16 + $0x120] sm:$0xff] }
 0xbf3   : > { %4998 = vmatmul.mubr.msk.f32.vlgmr.msra.gmra.mrb[18].mxu0 %vm843_vm1, %v2552_v20  ;;  %v2719_v19 = vld [vmem:[%s7176_s16 + $0x1a0] sm:$0xff] }
 0xbf4   : > { %2953 = vmatprep.mubr.f32.mxu0 %v5529_v1 }
 0xcc6   : > { %v2633_v22 = vpop.f32.mrb[18].mxu0 }
 0xcc7   : > { %v2634_v23 = vadd.f32 %v4502_v21, %v2633_v22  ;;  %v4999_v24 = vpop.f32.mrb[19].mxu0  ;;  %v5061_v21 = vpack.c.bf16 %v2720_v12, %v2704_v11  ;;  %v5069_v22 = vpack.c.bf16 %v2722_v14, %v2706_v13  ;;  %v3418_v11 = vld [vmem:[%s7178_s18 + $0x80] sm:$0xff]  ;;  %v3419_v12 = vld [vmem:[%s7178_s18 + $0x88] sm:$0xff] }
 0xcc8   : > { %v2721_v24 = vld [vmem:[%s7176_s16 + $0x1b0] sm:$0xff]  ;;  %v3450_v13 = vld [vmem:[%s7178_s18 + $0x180] sm:$0xff]  ;;  %v3451_v14 = vld [vmem:[%s7178_s18 + $0x188] sm:$0xff] }
 0xcc9   : > { %v2637_v25 = vadd.f32 %v2634_v23, %v5931_v59  ;;  %v2670_v59 = vld [vmem:[%s7176_s16 + $0x18] sm:$0xff]  ;;  %v2705_v23 = vld [vmem:[%s7176_s16 + $0x130] sm:$0xff] }
 0xcca   : > { %v5049_v38 = vpack.c.bf16 %v2686_v35, %v2670_v59  ;;  %v2693_v35 = vld [vmem:[%s7176_s16 + $0xd0] sm:$0xff] }
 0xccb   : > { %v2640_v26 = vsel %vm843_vm1, %v2637_v25, 0.0  ;;  %v5083_v8 = vpack.c.bf16 %v2693_v35, %v2677_v34  ;;  %v3437_v34 = vld [vmem:[%s7178_s18 + $0x118] sm:$0xff]  ;;  %v3422_v35 = vld [vmem:[%s7178_s18 + $0xa0] sm:$0xff] }
 0xccc   : > { %2641 = vadd.xlane.f32.xlu1 %v2640_v26  ;;  %5050 = vmatprep.subr.bf16.mxu0 %v5049_v38  ;;  %v2692_v26 = vld [vmem:[%s7176_s16 + $0xc8] sm:$0xff]  ;;  %v2710_v38 = vld [vmem:[%s7176_s16 + $0x158] sm:$0xff] }
 0xccd   : > { %5052 = vmatpush1.bf16.msra.mxu0 %v5051_v41  ;;  %v2707_v41 = vld [vmem:[%s7176_s16 + $0x140] sm:$0xff]  ;;  %v5085_v44 = vpack.c.bf16 %v2726_v39, %v2710_v38  ;;  %v3455_v38 = vld [vmem:[%s7178_s18 + $0x1a8] sm:$0xff] }
 0xcce   : > { %5054 = vmatprep.subr.bf16.mxu0 %v5053_v49  ;;  %v2682_v49 = vld [vmem:[%s7176_s16 + $0x78] sm:$0xff]  ;;  %v5079_v51 = vpack.c.bf16 %v2723_v42, %v2707_v41  ;;  %v3407_v41 = vld [vmem:[%s7178_s18 + $0x28] sm:$0xff]  ;;  %v5113_v42 = vpack.c.bf16 %v3423_v36, %v3422_v35  ;;  %v3432_v36 = vld [vmem:[%s7178_s18 + $0xf0] sm:$0xff] }
 0xccf   : > { %v5097_v56 = vpack.c.bf16 %v2698_v50, %v2682_v49  ;;  %v3457_v49 = vld [vmem:[%s7178_s18 + $0x1b8] sm:$0xff] }
 0xcd1   : > { %5056 = vmatpush1.bf16.msra.mxu0 %v5055_v53  ;;  %v2679_v53 = vld [vmem:[%s7176_s16 + $0x60] sm:$0xff] }
 0xcd2   : > { %5066 = vmatprep.subr.bf16.mxu0 %v5065_v60  ;;  %v2712_v60 = vld [vmem:[%s7176_s16 + $0x168] sm:$0xff] }
 0xd59   : > { %v2642_v27 = vpop.xlane.xlu1 %2641 }
 0xd5a   : > { %v2643_v28 = vmul.f32 0.03125, %v2642_v27  ;;  %v2678_v27 = vld [vmem:[%s7176_s16 + $0x58] sm:$0xff] }
 0xd5c   : > { %v2644_v29 = vsub.f32 %v2637_v25, %v2643_v28  ;;  %v2676_v25 = vld [vmem:[%s7176_s16 + $0x48] sm:$0xff]  ;;  %v2694_v28 = vld [vmem:[%s7176_s16 + $0xd8] sm:$0xff] }
 0xd5d   : > { %v5073_v33 = vpack.c.bf16 %v2692_v26, %v2676_v25  ;;  %v5081_v59 = vpack.c.bf16 %v2694_v28, %v2678_v27  ;;  %v3421_v25 = vld [vmem:[%s7178_s18 + $0x98] sm:$0xff]  ;;  %v3452_v26 = vld [vmem:[%s7178_s18 + $0x190] sm:$0xff] }
 0xd5e   : > { %v2645_v30 = vmul.f32 %v2644_v29, %v2644_v29  ;;  %v3453_v27 = vld [vmem:[%s7178_s18 + $0x198] sm:$0xff] }
 0xd60   : > { %v2646_v31 = vsel %vm843_vm1, %v2645_v30, 0.0  ;;  %v5071_v30 = vpack.c.bf16 %v2721_v24, %v2705_v23  ;;  %v3435_v23 = vld [vmem:[%s7178_s18 + $0x108] sm:$0xff]  ;;  %v3420_v24 = vld [vmem:[%s7178_s18 + $0x90] sm:$0xff] }
 0xd61   : > { %2647 = vadd.xlane.f32.xlu0 %v2646_v31  ;;  %v2675_v31 = vld [vmem:[%s7176_s16 + $0x40] sm:$0xff] }
 0xd62   : > { %v5075_v40 = vpack.c.bf16 %v2691_v32, %v2675_v31  ;;  %v3405_v31 = vld [vmem:[%s7178_s18 + $0x18] sm:$0xff]  ;;  %v5109_v32 = vpack.c.bf16 %v3421_v25, %v3420_v24  ;;  %v3431_v24 = vld [vmem:[%s7178_s18 + $0xe8] sm:$0xff]  ;;  %v3462_v25 = vld [vmem:[%s7178_s18 + $0x1e0] sm:$0xff] }
 0xdee   : > { %v2648_v61 = vpop.xlane.xlu0 %2647 }
 0xdef   : > { %v2649_v62 = vmul.f32 0.03125, %v2648_v61  ;;  %v2728_v61 = vld [vmem:[%s7176_s16 + $0x1e8] sm:$0xff] }
 0xdf0   : > { %v5093_v6 = vpack.c.bf16 %v2728_v61, %v2712_v60  ;;  %v3427_v60 = vld [vmem:[%s7178_s18 + $0xc8] sm:$0xff]  ;;  %v3458_v61 = vld [vmem:[%s7178_s18 + $0x1c0] sm:$0xff] }
 0xdf1   : > { %v2650_v63 = vadd.f32 1e-05, %v2649_v62  ;;  %v2714_v62 = vld [vmem:[%s7176_s16 + $0x178] sm:$0xff] }
 0xdf3   : > { %5447 = vrsqrt.f32 %v2650_v63  ;;  %v2730_v63 = vld [vmem:[%s7176_s16 + $0x1f8] sm:$0xff] }
 0xdfd   : > { %v5448_v3 = vpop.eup %5447 }
 0xdfe   : > { %v2652_v7 = vmul.f32 %v5448_v3, %v2644_v29  ;;  %v5063_v29 = vpack.c.bf16 %v2719_v19, %v2703_v18  ;;  %v5099_v3 = vpack.c.bf16 %v2697_v58, %v2681_v57  ;;  %v3403_v18 = vld [vmem:[%s7178_s18 + $0x8] sm:$0xff]  ;;  %v5105_v19 = vpack.c.bf16 %v3419_v12, %v3418_v11  ;;  %v3441_v57 = vld [vmem:[%s7178_s18 + $0x138] sm:$0xff]  ;;  %v3426_v58 = vld [vmem:[%s7178_s18 + $0xc0] sm:$0xff] }
 0xdff   : > { %v3429_v11 = vld [vmem:[%s7178_s18 + $0xd8] sm:$0xff]  ;;  %v3460_v12 = vld [vmem:[%s7178_s18 + $0x1d0] sm:$0xff] }
 0xe00   : > { %v2659_v15 = vmul.f32 %v4504_v2, %v2652_v7  ;;  %v5091_v2 = vpack.c.bf16 %v2695_v54, %v2679_v53  ;;  %v5101_v7 = vpack.c.bf16 %v2730_v63, %v2714_v62  ;;  %v3409_v53 = vld [vmem:[%s7178_s18 + $0x38] sm:$0xff]  ;;  %v5117_v54 = vpack.c.bf16 %v3425_v47, %v3424_v46  ;;  %v3459_v62 = vld [vmem:[%s7178_s18 + $0x1c8] sm:$0xff]  ;;  %v3482_v47 = vld [vmem:[%s7178_s18 + $0x280] sm:$0xff] }
 0xe02   : > { %v6128_v20 = vadd.f32 %v4505_v4, %v2659_v15  ;;  %v2711_v4 = vld [vmem:[%s7176_s16 + $0x160] sm:$0xff] }
 0xe03   : > { %v5095_v15 = vpack.c.bf16 %v2727_v5, %v2711_v4  ;;  %v3411_v4 = vld [vmem:[%s7178_s18 + $0x48] sm:$0xff]  ;;  %v5121_v5 = vpack.c.bf16 %v3427_v60, %v3426_v58 }
 0xe04   : > { %4506 = vmatmul.mubr.msk.f32.vlgmr.msra.gmra.mrb[22].mxu1 %vm843_vm1, %v6128_v20  ;;  %4507 = vmatmul.mubr.msk.f32.vlgmr.msra.gmra.mrb[20].mxu0 %vm843_vm1, %v6128_v20 }
 0xe05   : > { %5060 = vmatpush1.bf16.msra.mxu1 %v5059_v16  ;;  %5068 = vmatpush1.bf16.msra.mxu0 %v5067_v17  ;;  %v5103_v16 = vpack.c.bf16 %v2729_v10, %v2713_v9  ;;  %v3402_v17 = vld [vmem:[%s7178_s18] sm:$0xff]  ;;  %v3443_v9 = vld [vmem:[%s7178_s18 + $0x148] sm:$0xff]  ;;  %v3428_v10 = vld [vmem:[%s7178_s18 + $0xd0] sm:$0xff] }
 0xe06   : > { %5062 = vmatprep.subr.bf16.mxu1 %v5061_v21  ;;  %5070 = vmatprep.subr.bf16.mxu0 %v5069_v22  ;;  %v5137_v21 = vpack.c.bf16 %v3451_v14, %v3450_v13  ;;  %v3434_v22 = vld [vmem:[%s7178_s18 + $0x100] sm:$0xff]  ;;  %v5107_v28 = vpack.c.bf16 %v3403_v18, %v3402_v17  ;;  %v3461_v13 = vld [vmem:[%s7178_s18 + $0x1d8] sm:$0xff]  ;;  %v5125_v18 = vpack.c.bf16 %v3429_v11, %v3428_v10  ;;  %v3467_v10 = vld [vmem:[%s7178_s18 + $0x208] sm:$0xff] }
 0xe07   : > { %3024 = vmatprep.mubr.f32.mxu1 %v5529_v1  ;;  %3095 = vmatprep.mubr.f32.mxu0 %v5529_v1  ;;  %v3413_v17 = vld [vmem:[%s7178_s18 + $0x58] sm:$0xff] }
 0xe09   : > { %5064 = vmatpush1.bf16.msra.mxu1 %v5063_v29  ;;  %5072 = vmatpush1.bf16.msra.mxu0 %v5071_v30  ;;  %v5139_v29 = vpack.c.bf16 %v3435_v23, %v3434_v22  ;;  %v3404_v30 = vld [vmem:[%s7178_s18 + $0x10] sm:$0xff]  ;;  %v3445_v22 = vld [vmem:[%s7178_s18 + $0x158] sm:$0xff]  ;;  %v3430_v23 = vld [vmem:[%s7178_s18 + $0xe0] sm:$0xff] }
 0xe0a   : > { %5074 = vmatprep.subr.bf16.mxu1 %v5073_v33  ;;  %5082 = vmatprep.subr.bf16.mxu0 %v5081_v59  ;;  %v5141_v33 = vpack.c.bf16 %v3453_v27, %v3452_v26  ;;  %v3436_v59 = vld [vmem:[%s7178_s18 + $0x110] sm:$0xff]  ;;  %v5111_v39 = vpack.c.bf16 %v3405_v31, %v3404_v30  ;;  %v3463_v26 = vld [vmem:[%s7178_s18 + $0x1e8] sm:$0xff]  ;;  %v5129_v30 = vpack.c.bf16 %v3431_v24, %v3430_v23  ;;  %v3485_v23 = vld [vmem:[%s7178_s18 + $0x298] sm:$0xff] }
 0xe0b   : > { %v5161_v31 = vpack.c.bf16 %v3463_v26, %v3462_v25  ;;  %v3516_v24 = vld [vmem:[%s7178_s18 + $0x390] sm:$0xff]  ;;  %v3517_v25 = vld [vmem:[%s7178_s18 + $0x398] sm:$0xff] }
 0xe0c   : > { %4508 = vmatmul.mubr.msk.f32.vlgmr.msra.gmra.mrb[24].mxu1 %vm843_vm1, %v6128_v20  ;;  %4509 = vmatmul.mubr.msk.f32.vlgmr.msra.gmra.mrb[22].mxu0 %vm843_vm1, %v6128_v20 }
 0xe0d   : > { %5076 = vmatpush1.bf16.msra.mxu1 %v5075_v40  ;;  %5084 = vmatpush1.bf16.msra.mxu0 %v5083_v8  ;;  %v5143_v40 = vpack.c.bf16 %v3437_v34, %v3436_v59  ;;  %v3406_v8 = vld [vmem:[%s7178_s18 + $0x20] sm:$0xff]  ;;  %v3447_v59 = vld [vmem:[%s7178_s18 + $0x168] sm:$0xff] }
 0xe0e   : > { %5078 = vmatprep.subr.bf16.mxu1 %v5077_v43  ;;  %5086 = vmatprep.subr.bf16.mxu0 %v5085_v44  ;;  %v5145_v43 = vpack.c.bf16 %v3455_v38, %v3454_v37  ;;  %v3438_v44 = vld [vmem:[%s7178_s18 + $0x120] sm:$0xff]  ;;  %v5115_v50 = vpack.c.bf16 %v3407_v41, %v3406_v8  ;;  %v3433_v37 = vld [vmem:[%s7178_s18 + $0xf8] sm:$0xff]  ;;  %v3464_v38 = vld [vmem:[%s7178_s18 + $0x1f0] sm:$0xff] }
 0xe0f   : > { %3166 = vmatprep.mubr.f32.mxu1 %v5529_v1  ;;  %3237 = vmatprep.mubr.f32.mxu0 %v5529_v1  ;;  %v3416_v8 = vld [vmem:[%s7178_s18 + $0x70] sm:$0xff]  ;;  %v3417_v41 = vld [vmem:[%s7178_s18 + $0x78] sm:$0xff] }
 0xe11   : > { %5080 = vmatpush1.bf16.msra.mxu1 %v5079_v51  ;;  %5088 = vmatpush1.bf16.msra.mxu0 %v5087_v52  ;;  %v5147_v51 = vpack.c.bf16 %v3439_v45, %v3438_v44  ;;  %v3408_v52 = vld [vmem:[%s7178_s18 + $0x30] sm:$0xff]  ;;  %v3449_v45 = vld [vmem:[%s7178_s18 + $0x178] sm:$0xff] }
 0xe12   : > { %5090 = vmatprep.subr.bf16.mxu1 %v5089_v55  ;;  %5098 = vmatprep.subr.bf16.mxu0 %v5097_v56  ;;  %v5149_v55 = vpack.c.bf16 %v3457_v49, %v3456_v48  ;;  %v3440_v56 = vld [vmem:[%s7178_s18 + $0x130] sm:$0xff]  ;;  %v5119_v63 = vpack.c.bf16 %v3409_v53, %v3408_v52  ;;  %v3483_v48 = vld [vmem:[%s7178_s18 + $0x288] sm:$0xff]  ;;  %v3514_v49 = vld [vmem:[%s7178_s18 + $0x380] sm:$0xff]  ;;  %v2735_v53 = vlaneseq }
 0xe13   : > { %v3448_v44 = vld [vmem:[%s7178_s18 + $0x170] sm:$0xff] }
 0xe14   : > { %4510 = vmatmul.mubr.msk.f32.vlgmr.msra.gmra.mrb[26].mxu1 %vm843_vm1, %v6128_v20  ;;  %4511 = vmatmul.mubr.msk.f32.vlgmr.msra.gmra.mrb[24].mxu0 %vm843_vm1, %v6128_v20  ;;  %v5167_v46 = vpack.c.bf16 %v3449_v45, %v3448_v44 }
 0xe15   : > { %5092 = vmatpush1.bf16.msra.mxu1 %v5091_v2  ;;  %5100 = vmatpush1.bf16.msra.mxu0 %v5099_v3  ;;  %v5151_v2 = vpack.c.bf16 %v3441_v57, %v3440_v56  ;;  %v3410_v3 = vld [vmem:[%s7178_s18 + $0x40] sm:$0xff]  ;;  %v6464_v56 = vld [vmem:[%s7177_s17 + $0x8] sm:$0xff] }
 0xe16   : > { %5094 = vmatprep.subr.bf16.mxu1 %v5093_v6  ;;  %5102 = vmatprep.subr.bf16.mxu0 %v5101_v7  ;;  %v5153_v6 = vpack.c.bf16 %v3459_v62, %v3458_v61  ;;  %v3442_v7 = vld [vmem:[%s7178_s18 + $0x140] sm:$0xff]  ;;  %v5123_v14 = vpack.c.bf16 %v3411_v4, %v3410_v3 }
 0xe17   : > { %3308 = vmatprep.mubr.f32.mxu1 %v5529_v1  ;;  %3379 = vmatprep.mubr.f32.mxu0 %v5529_v1  ;;  %v6476_v61 = vld [vmem:[%s7177_s17] sm:$0xff] }
 0xe19   : > { %5096 = vmatpush1.bf16.msra.mxu1 %v5095_v15  ;;  %5104 = vmatpush1.bf16.msra.mxu0 %v5103_v16  ;;  %v5155_v15 = vpack.c.bf16 %v3443_v9, %v3442_v7  ;;  %v3412_v16 = vld [vmem:[%s7178_s18 + $0x50] sm:$0xff]  ;;  %v3466_v9 = vld [vmem:[%s7178_s18 + $0x200] sm:$0xff] }
 0xe1a   : > { %5106 = vmatprep.subr.bf16.mxu1 %v5105_v19  ;;  %5138 = vmatprep.subr.bf16.mxu0 %v5137_v21  ;;  %v5157_v19 = vpack.c.bf16 %v3461_v13, %v3460_v12  ;;  %v3444_v21 = vld [vmem:[%s7178_s18 + $0x150] sm:$0xff]  ;;  %v5127_v27 = vpack.c.bf16 %v3413_v17, %v3412_v16  ;;  %v3499_v16 = vld [vmem:[%s7178_s18 + $0x308] sm:$0xff] }
 0xe1b   : > { %v3484_v17 = vld [vmem:[%s7178_s18 + $0x290] sm:$0xff] }
 0xe1c   : > { %4512 = vmatmul.mubr.msk.f32.vlgmr.msra.gmra.mrb[28].mxu1 %vm843_vm1, %v6128_v20  ;;  %4513 = vmatmul.mubr.msk.f32.vlgmr.msra.gmra.mrb[26].mxu0 %vm843_vm1, %v6128_v20 }
 0xe1d   : > { %5108 = vmatpush3.bf16.msra.mxu1 %v5107_v28  ;;  %5140 = vmatpush3.bf16.msra.mxu0 %v5139_v29  ;;  %v5159_v28 = vpack.c.bf16 %v3445_v22, %v3444_v21  ;;  %v3414_v29 = vld [vmem:[%s7178_s18 + $0x60] sm:$0xff] }
 0xe1e   : > { %5110 = vmatprep.subr.bf16.mxu1 %v5109_v32  ;;  %5142 = vmatprep.subr.bf16.mxu0 %v5141_v33  ;;  %v3415_v32 = vld [vmem:[%s7178_s18 + $0x68] sm:$0xff]  ;;  %v3446_v33 = vld [vmem:[%s7178_s18 + $0x160] sm:$0xff] }
 0xe1f   : > { %v5131_v34 = vpack.c.bf16 %v3415_v32, %v3414_v29  ;;  %v5163_v35 = vpack.c.bf16 %v3447_v59, %v3446_v33  ;;  %v5173_v59 = vpack.c.bf16 %v3485_v23, %v3484_v17  ;;  %v3490_v23 = vld [vmem:[%s7178_s18 + $0x2c0] sm:$0xff] }
 0xe21   : > { %5112 = vmatpush3.bf16.msra.mxu1 %v5111_v39  ;;  %5144 = vmatpush3.bf16.msra.mxu0 %v5143_v40  ;;  %v5133_v39 = vpack.c.bf16 %v3433_v37, %v3432_v36  ;;  %v3465_v40 = vld [vmem:[%s7178_s18 + $0x1f8] sm:$0xff]  ;;  %v3486_v37 = vld [vmem:[%s7178_s18 + $0x2a0] sm:$0xff] }
 0xe22   : > { %5114 = vmatprep.subr.bf16.mxu1 %v5113_v42  ;;  %5146 = vmatprep.subr.bf16.mxu0 %v5145_v43  ;;  %v5165_v42 = vpack.c.bf16 %v3465_v40, %v3464_v38  ;;  %v5135_v43 = vpack.c.bf16 %v3417_v41, %v3416_v8  ;;  %v3501_v36 = vld [vmem:[%s7178_s18 + $0x318] sm:$0xff]  ;;  %v3487_v40 = vld [vmem:[%s7178_s18 + $0x2a8] sm:$0xff]  ;;  %v3518_v8 = vld [vmem:[%s7178_s18 + $0x3a0] sm:$0xff] }
 0xe23   : > { %v3519_v41 = vld [vmem:[%s7178_s18 + $0x3a8] sm:$0xff] }
 0xe25   : > { %5116 = vmatpush3.bf16.msra.mxu1 %v5115_v50  ;;  %5148 = vmatpush3.bf16.msra.mxu0 %v5147_v51  ;;  %v5169_v50 = vpack.c.bf16 %v3483_v48, %v3482_v47  ;;  %v3515_v51 = vld [vmem:[%s7178_s18 + $0x388] sm:$0xff] }
 0xe26   : > { %5118 = vmatprep.subr.bf16.mxu1 %v5117_v54  ;;  %5150 = vmatprep.subr.bf16.mxu0 %v5149_v55  ;;  %v5201_v52 = vpack.c.bf16 %v3515_v51, %v3514_v49  ;;  %v6458_v54 = vshrl.u32 %v2735_v53, 7  ;;  %v3471_v47 = vld [vmem:[%s7178_s18 + $0x228] sm:$0xff]  ;;  %v5209_v51 = vpack.c.bf16 %v3519_v41, %v3518_v8  ;;  %v3524_v8 = vld [vmem:[%s7178_s18 + $0x3d0] sm:$0xff]  ;;  %v3525_v41 = vld [vmem:[%s7178_s18 + $0x3d8] sm:$0xff] }
 0xe27   : > { %v3503_v53 = vld [vmem:[%s7178_s18 + $0x328] sm:$0xff] }
 0xe28   : > { %v2761_v55 = vsub.s32 6, %v6458_v54  ;;  %v2737_v58 = vsub.s32 0, %v6458_v54  ;;  %v2745_v60 = vsub.s32 2, %v6458_v54  ;;  %v2741_v62 = vsub.s32 1, %v6458_v54 }
 0xe29   : > { %5120 = vmatpush3.bf16.msra.mxu1 %v5119_v63  ;;  %5152 = vmatpush3.bf16.msra.mxu0 %v5151_v2  ;;  %v2749_v63 = vsub.s32 3, %v6458_v54  ;;  %v2757_v21 = vsub.s32 5, %v6458_v54  ;;  %v2765_v22 = vsub.s32 7, %v6458_v54 }
 0xe2a   : > { %5122 = vmatprep.subr.bf16.mxu1 %v5121_v5  ;;  %5154 = vmatprep.subr.bf16.mxu0 %v5153_v6  ;;  %v6469_v57 = vrot.slane %v6464_v56, %v2761_v55  ;;  %v2738_v2 = vrot.slane %v6476_v61, %v2737_v58  ;;  %v2746_v3 = vrot.slane %v6476_v61, %v2745_v60 }
 0xe2b   : > { %v2742_v4 = vrot.slane %v6476_v61, %v2741_v62  ;;  %v2750_v5 = vrot.slane %v6476_v61, %v2749_v63  ;;  %v2758_v38 = vrot.slane %v6476_v61, %v2757_v21  ;;  %v2778_v17 = vrot.slane %v6464_v56, %v2745_v60  ;;  %v3522_v60 = vld [vmem:[%s7178_s18 + $0x3c0] sm:$0xff] }
 0xe2d   : > { %5124 = vmatpush3.bf16.msra.mxu1 %v5123_v14  ;;  %5156 = vmatpush3.bf16.msra.mxu0 %v5155_v15  ;;  %v3498_v15 = vld [vmem:[%s7178_s18 + $0x300] sm:$0xff] }
 0xe2e   : > { %5126 = vmatprep.subr.bf16.mxu1 %v5125_v18  ;;  %5158 = vmatprep.subr.bf16.mxu0 %v5157_v19  ;;  %v5203_v29 = vpack.c.bf16 %v3499_v16, %v3498_v15  ;;  %v3473_v15 = vld [vmem:[%s7178_s18 + $0x238] sm:$0xff]  ;;  %v3504_v16 = vld [vmem:[%s7178_s18 + $0x330] sm:$0xff] }
 0xe31   : > { %5128 = vmatpush3.bf16.msra.mxu1 %v5127_v27  ;;  %5160 = vmatpush3.bf16.msra.mxu0 %v5159_v28  ;;  %v5171_v28 = vpack.c.bf16 %v3467_v10, %v3466_v9 }
 0xe32   : > { %5130 = vmatprep.subr.bf16.mxu1 %v5129_v30  ;;  %5162 = vmatprep.subr.bf16.mxu0 %v5161_v31  ;;  %v3468_v30 = vld [vmem:[%s7178_s18 + $0x210] sm:$0xff]  ;;  %v3469_v31 = vld [vmem:[%s7178_s18 + $0x218] sm:$0xff] }
 0xe33   : > { %v5175_v44 = vpack.c.bf16 %v3469_v31, %v3468_v30  ;;  %v3474_v31 = vld [vmem:[%s7178_s18 + $0x240] sm:$0xff] }
 0xe35   : > { %5132 = vmatpush3.bf16.msra.mxu1 %v5131_v34  ;;  %5164 = vmatpush3.bf16.msra.mxu0 %v5163_v35  ;;  %v5205_v34 = vpack.c.bf16 %v3517_v25, %v3516_v24  ;;  %v3500_v35 = vld [vmem:[%s7178_s18 + $0x310] sm:$0xff]  ;;  %v3491_v24 = vld [vmem:[%s7178_s18 + $0x2c8] sm:$0xff] }
 0xe36   : > { %5134 = vmatprep.subr.bf16.mxu1 %v5133_v39  ;;  %5166 = vmatprep.subr.bf16.mxu0 %v5165_v42  ;;  %v2766_v39 = vrot.slane %v6476_v61, %v2765_v22  ;;  %v5207_v45 = vpack.c.bf16 %v3501_v36, %v3500_v35  ;;  %v3523_v25 = vld [vmem:[%s7178_s18 + $0x3c8] sm:$0xff]  ;;  %v5185_v30 = vpack.c.bf16 %v3491_v24, %v3490_v23  ;;  %v3497_v23 = vld [vmem:[%s7178_s18 + $0x2f8] sm:$0xff]  ;;  %v3528_v24 = vld [vmem:[%s7178_s18 + $0x3f0] sm:$0xff] }
 0xe37   : > { %v5217_v36 = vpack.c.bf16 %v3523_v25, %v3522_v60  ;;  %v3529_v60 = vld [vmem:[%s7178_s18 + $0x3f8] sm:$0xff] }
 0xe39   : > { %5136 = vmatpush3.bf16.msra.mxu1 %v5135_v43  ;;  %5168 = vmatpush3.bf16.msra.mxu0 %v5167_v46  ;;  %v3470_v46 = vld [vmem:[%s7178_s18 + $0x220] sm:$0xff] }
 0xe3a   : > { %5170 = vmatprep.subr.bf16.mxu1 %v5169_v50  ;;  %5202 = vmatprep.subr.bf16.mxu0 %v5201_v52  ;;  %v5177_v50 = vpack.c.bf16 %v3487_v40, %v3486_v37  ;;  %v3502_v52 = vld [vmem:[%s7178_s18 + $0x320] sm:$0xff]  ;;  %v5179_v9 = vpack.c.bf16 %v3471_v47, %v3470_v46  ;;  %v3493_v40 = vld [vmem:[%s7178_s18 + $0x2d8] sm:$0xff]  ;;  %v3476_v47 = vld [vmem:[%s7178_s18 + $0x250] sm:$0xff] }
 0xe3b   : > { %v3506_v37 = vld [vmem:[%s7178_s18 + $0x340] sm:$0xff] }
 0xed7   : > { %v2884_v6 = vpop.f32.mrb[22].mxu1  ;;  %v2955_v7 = vpop.f32.mrb[20].mxu0 }
 0xed8   : > { %v2885_v11 = vadd.f32 %v2884_v6, %v2738_v2  ;;  %v2956_v12 = vadd.f32 %v2955_v7, %v2746_v3  ;;  %v2886_v13 = vpop.f32.mrb[23].mxu1  ;;  %v2957_v14 = vpop.f32.mrb[21].mxu0  ;;  %v3488_v2 = vld [vmem:[%s7178_s18 + $0x2b0] sm:$0xff]  ;;  %v3521_v7 = vld [vmem:[%s7178_s18 + $0x3b8] sm:$0xff] }
 0xed9   : > { %v2887_v18 = vadd.f32 %v2886_v13, %v2742_v4  ;;  %v2958_v19 = vadd.f32 %v2957_v14, %v2750_v5  ;;  %v3489_v5 = vld [vmem:[%s7178_s18 + $0x2b8] sm:$0xff]  ;;  %v3520_v6 = vld [vmem:[%s7178_s18 + $0x3b0] sm:$0xff]  ;;  %v5211_v13 = vpack.c.bf16 %v3503_v53, %v3502_v52  ;;  %v5221_v52 = vpack.c.bf16 %v3525_v41, %v3524_v8 }
 0xeda   : > { %v3386_v32 = vmax.f32 %v2885_v11, 0.0  ;;  %v3388_v33 = vmax.f32 %v2956_v12, 0.0  ;;  %v2770_v12 = vrot.slane %v6464_v56, %v2737_v58  ;;  %v3472_v14 = vld [vmem:[%s7178_s18 + $0x230] sm:$0xff]  ;;  %v5181_v58 = vpack.c.bf16 %v3489_v5, %v3488_v2  ;;  %v3509_v53 = vld [vmem:[%s7178_s18 + $0x358] sm:$0xff]  ;;  %v3494_v2 = vld [vmem:[%s7178_s18 + $0x2e0] sm:$0xff] }
 0xedb   : > { %v3387_v26 = vmax.f32 %v2887_v18, 0.0  ;;  %v3389_v27 = vmax.f32 %v2958_v19, 0.0  ;;  %v5213_v18 = vpack.c.bf16 %v3521_v7, %v3520_v6  ;;  %v3505_v19 = vld [vmem:[%s7178_s18 + $0x338] sm:$0xff]  ;;  %v3527_v5 = vld [vmem:[%s7178_s18 + $0x3e8] sm:$0xff]  ;;  %v2782_v8 = vrot.slane %v6464_v56, %v2749_v63 }
 0xedc   : > { %v3531_v63 = vld [vmem:[%s7178_s18 + $0x408] sm:$0xff] }
 0xedd   : > { %3729 = vmatprep.mubr.f32.mxu1 %v3387_v26  ;;  %3799 = vmatprep.mubr.f32.mxu0 %v3389_v27 }
 0xede   : > { %3730 = vmatmul.mubr.f32.vlgmr.msra.gmra.mrb[30].mxu1 %v3386_v32  ;;  %3800 = vmatmul.mubr.f32.vlgmr.msra.gmra.mrb[28].mxu0 %v3388_v33  ;;  %v3475_v32 = vld [vmem:[%s7178_s18 + $0x248] sm:$0xff] }
 0xedf   : > { %v6548_v42 = vpop.f32.mrb[24].mxu1  ;;  %v6550_v43 = vpop.f32.mrb[22].mxu0  ;;  %5172 = vmatpush3.bf16.msra.mxu1 %v5171_v28  ;;  %5204 = vmatpush3.bf16.msra.mxu0 %v5203_v29  ;;  %v5183_v28 = vpack.c.bf16 %v3473_v15, %v3472_v14  ;;  %v5215_v29 = vpack.c.bf16 %v3505_v19, %v3504_v16  ;;  %v3511_v19 = vld [vmem:[%s7178_s18 + $0x368] sm:$0xff] }
 0xee0   : > { %v3028_v48 = vpop.f32.mrb[25].mxu1  ;;  %v3099_v49 = vpop.f32.mrb[23].mxu0  ;;  %5174 = vmatprep.subr.bf16.mxu1 %v5173_v59  ;;  %5206 = vmatprep.subr.bf16.mxu0 %v5205_v34 }
 0xee1   : > { %v3029_v3 = vadd.f32 %v3028_v48, %v2758_v38  ;;  %v3100_v4 = vadd.f32 %v3099_v49, %v2766_v39  ;;  %v3507_v38 = vld [vmem:[%s7178_s18 + $0x348] sm:$0xff]  ;;  %v3492_v39 = vld [vmem:[%s7178_s18 + $0x2d0] sm:$0xff]  ;;  %v3477_v48 = vld [vmem:[%s7178_s18 + $0x258] sm:$0xff] }
 0xee2   : > { %v5219_v46 = vpack.c.bf16 %v3507_v38, %v3506_v37  ;;  %v3508_v49 = vld [vmem:[%s7178_s18 + $0x350] sm:$0xff]  ;;  %v3513_v37 = vld [vmem:[%s7178_s18 + $0x378] sm:$0xff]  ;;  %v3546_v38 = vld [vmem:[%s7178_s18 + $0x480] sm:$0xff] }
 0xee3   : > { %v3391_v10 = vmax.f32 %v3029_v3, 0.0  ;;  %v3393_v11 = vmax.f32 %v3100_v4, 0.0  ;;  %5176 = vmatpush3.bf16.msra.mxu1 %v5175_v44  ;;  %5208 = vmatpush3.bf16.msra.mxu0 %v5207_v45  ;;  %v2753_v44 = vsub.s32 4, %v6458_v54  ;;  %v5187_v45 = vpack.c.bf16 %v3475_v32, %v3474_v31  ;;  %v3495_v3 = vld [vmem:[%s7178_s18 + $0x2e8] sm:$0xff]  ;;  %v3526_v4 = vld [vmem:[%s7178_s18 + $0x3e0] sm:$0xff] }
 0xee4   : > { %5178 = vmatprep.subr.bf16.mxu1 %v5177_v50  ;;  %5210 = vmatprep.subr.bf16.mxu0 %v5209_v51  ;;  %v5189_v51 = vpack.c.bf16 %v3493_v40, %v3492_v39  ;;  %v2762_v31 = vrot.slane %v6476_v61, %v2761_v55  ;;  %v3547_v39 = vld [vmem:[%s7178_s18 + $0x488] sm:$0xff]  ;;  %v2774_v55 = vrot.slane %v6464_v56, %v2741_v62  ;;  %v3626_v54 = vld [vmem:[%s7178_s18 + $0x700] sm:$0xff] }
 0xee5   : > { %3869 = vmatprep.mubr.f32.mxu1 %v3391_v10  ;;  %3939 = vmatprep.mubr.f32.mxu0 %v3393_v11  ;;  %v2786_v50 = vrot.slane %v6464_v56, %v2753_v44  ;;  %v5223_v10 = vpack.c.bf16 %v3509_v53, %v3508_v49  ;;  %v5193_v11 = vpack.c.bf16 %v3495_v3, %v3494_v2  ;;  %v3579_v40 = vld [vmem:[%s7178_s18 + $0x588] sm:$0xff]  ;;  %v3581_v53 = vld [vmem:[%s7178_s18 + $0x598] sm:$0xff] }
 0xee6   : > { %v2754_v25 = vrot.slane %v6476_v61, %v2753_v44  ;;  %v3578_v61 = vld [vmem:[%s7178_s18 + $0x580] sm:$0xff]  ;;  %v3098_v62 = vadd.f32 %v6550_v43, %v2762_v31  ;;  %v3548_v43 = vld [vmem:[%s7178_s18 + $0x490] sm:$0xff]  ;;  %v3553_v31 = vld [vmem:[%s7178_s18 + $0x4b8] sm:$0xff] }
 0xee7   : > { %v3168_v26 = vpop.f32.mrb[26].mxu1  ;;  %v3239_v27 = vpop.f32.mrb[24].mxu0  ;;  %5180 = vmatpush3.bf16.msra.mxu1 %v5179_v9  ;;  %5212 = vmatpush3.bf16.msra.mxu0 %v5211_v13  ;;  %v5191_v9 = vpack.c.bf16 %v3477_v48, %v3476_v47  ;;  %v3479_v13 = vld [vmem:[%s7178_s18 + $0x268] sm:$0xff]  ;;  %v5265_v47 = vpack.c.bf16 %v3579_v40, %v3578_v61  ;;  %v3530_v48 = vld [vmem:[%s7178_s18 + $0x400] sm:$0xff]  ;;  %v3537_v61 = vld [vmem:[%s7178_s18 + $0x438] sm:$0xff] }
 0xee8   : > { %v6612_v33 = vadd.f32 %v3168_v26, %v2770_v12  ;;  %v6614_v59 = vadd.f32 %v3239_v27, %v2778_v17  ;;  %v6616_v34 = vpop.f32.mrb[27].mxu1  ;;  %v6618_v35 = vpop.f32.mrb[25].mxu0  ;;  %5182 = vmatprep.subr.bf16.mxu1 %v5181_v58  ;;  %5214 = vmatprep.subr.bf16.mxu0 %v5213_v18  ;;  %v3478_v12 = vld [vmem:[%s7178_s18 + $0x260] sm:$0xff]  ;;  %v5225_v58 = vpack.c.bf16 %v3527_v5, %v3526_v4  ;;  %v3392_v4 = vmax.f32 %v3098_v62, 0.0  ;;  %v3532_v5 = vld [vmem:[%s7178_s18 + $0x410] sm:$0xff]  ;;  %v3587_v62 = vld [vmem:[%s7178_s18 + $0x5c8] sm:$0xff] }
 0xee9   : > { %v3510_v18 = vld [vmem:[%s7178_s18 + $0x360] sm:$0xff]  ;;  %v5195_v26 = vpack.c.bf16 %v3479_v13, %v3478_v12  ;;  %v3171_v49 = vadd.f32 %v6616_v34, %v2774_v55  ;;  %v3580_v34 = vld [vmem:[%s7178_s18 + $0x590] sm:$0xff]  ;;  %v5235_v2 = vpack.c.bf16 %v3531_v63, %v3530_v48  ;;  %v3565_v12 = vld [vmem:[%s7178_s18 + $0x518] sm:$0xff] }
 0xeea   : > { %v5227_v27 = vpack.c.bf16 %v3511_v19, %v3510_v18  ;;  %v3550_v13 = vld [vmem:[%s7178_s18 + $0x4a0] sm:$0xff]  ;;  %v3536_v55 = vld [vmem:[%s7178_s18 + $0x430] sm:$0xff] }
 0xeeb   : > { %5184 = vmatpush3.bf16.msra.mxu1 %v5183_v28  ;;  %5216 = vmatpush3.bf16.msra.mxu0 %v5215_v29  ;;  %v3480_v28 = vld [vmem:[%s7178_s18 + $0x270] sm:$0xff]  ;;  %v3481_v29 = vld [vmem:[%s7178_s18 + $0x278] sm:$0xff]  ;;  %v3582_v19 = vld [vmem:[%s7178_s18 + $0x5a0] sm:$0xff] }
 0xeec   : > { %5186 = vmatprep.subr.bf16.mxu1 %v5185_v30  ;;  %5218 = vmatprep.subr.bf16.mxu0 %v5217_v36  ;;  %v3512_v30 = vld [vmem:[%s7178_s18 + $0x370] sm:$0xff]  ;;  %v5229_v36 = vpack.c.bf16 %v3529_v60, %v3528_v24  ;;  %v5199_v41 = vpack.c.bf16 %v3481_v29, %v3480_v28  ;;  %v3567_v29 = vld [vmem:[%s7178_s18 + $0x528] sm:$0xff] }
 0xeed   : > { %v5231_v44 = vpack.c.bf16 %v3513_v37, %v3512_v30  ;;  %v3552_v30 = vld [vmem:[%s7178_s18 + $0x4b0] sm:$0xff] }
 0xeee   : > { %v3568_v40 = vld [vmem:[%s7178_s18 + $0x530] sm:$0xff] }
 0xeef   : > { %v3310_v6 = vpop.f32.mrb[28].mxu1  ;;  %v3381_v7 = vpop.f32.mrb[26].mxu0  ;;  %5188 = vmatpush3.bf16.msra.mxu1 %v5187_v45  ;;  %5220 = vmatpush3.bf16.msra.mxu0 %v5219_v46  ;;  %v5233_v45 = vpack.c.bf16 %v3547_v39, %v3546_v38  ;;  %v3027_v46 = vadd.f32 %v6548_v42, %v2754_v25  ;;  %v3563_v42 = vld [vmem:[%s7178_s18 + $0x508] sm:$0xff]  ;;  %v3534_v25 = vld [vmem:[%s7178_s18 + $0x420] sm:$0xff]  ;;  %v5245_v39 = vpack.c.bf16 %v3553_v31, %v3552_v30  ;;  %v3593_v30 = vld [vmem:[%s7178_s18 + $0x5f8] sm:$0xff] }
 0xef0   : > { %v6670_v14 = vadd.f32 %v3310_v6, %v2786_v50  ;;  %v6673_v15 = vadd.f32 %v3381_v7, %v6469_v57  ;;  %v6675_v16 = vpop.f32.mrb[29].mxu1  ;;  %v6677_v17 = vpop.f32.mrb[27].mxu0  ;;  %5190 = vmatprep.subr.bf16.mxu1 %v5189_v51  ;;  %5222 = vmatprep.subr.bf16.mxu0 %v5221_v52  ;;  %v3496_v57 = vld [vmem:[%s7178_s18 + $0x2f0] sm:$0xff]  ;;  %v3562_v50 = vld [vmem:[%s7178_s18 + $0x500] sm:$0xff]  ;;  %v3242_v51 = vadd.f32 %v6618_v35, %v2782_v8  ;;  %v3549_v52 = vld [vmem:[%s7178_s18 + $0x498] sm:$0xff] }
 0xef1   : > { %v5197_v32 = vpack.c.bf16 %v3497_v23, %v3496_v57  ;;  %v3390_v3 = vmax.f32 %v3027_v46, 0.0  ;;  %v5267_v35 = vpack.c.bf16 %v3563_v42, %v3562_v50  ;;  %v3533_v6 = vld [vmem:[%s7178_s18 + $0x418] sm:$0xff]  ;;  %v3564_v7 = vld [vmem:[%s7178_s18 + $0x510] sm:$0xff]  ;;  %v3583_v57 = vld [vmem:[%s7178_s18 + $0x5a8] sm:$0xff] }
 0xef2   : > { %v3397_v18 = vmax.f32 %v3242_v51, 0.0  ;;  %v5239_v23 = vpack.c.bf16 %v3533_v6, %v3532_v5  ;;  %v5271_v24 = vpack.c.bf16 %v3565_v12, %v3564_v7  ;;  %v5273_v28 = vpack.c.bf16 %v3583_v57, %v3582_v19  ;;  %v3586_v46 = vld [vmem:[%s7178_s18 + $0x5c0] sm:$0xff]  ;;  %v3539_v50 = vld [vmem:[%s7178_s18 + $0x448] sm:$0xff]  ;;  %v3540_v5 = vld [vmem:[%s7178_s18 + $0x450] sm:$0xff] }
 0xef3   : > { %5192 = vmatpush3.bf16.msra.mxu1 %v5191_v9  ;;  %5224 = vmatpush3.bf16.msra.mxu0 %v5223_v10  ;;  %v3395_v9 = vmax.f32 %v3171_v49, 0.0  ;;  %v5237_v10 = vpack.c.bf16 %v3549_v52, %v3548_v43  ;;  %v3538_v49 = vld [vmem:[%s7178_s18 + $0x440] sm:$0xff]  ;;  %v5281_v43 = vpack.c.bf16 %v3587_v62, %v3586_v46  ;;  %v3571_v51 = vld [vmem:[%s7178_s18 + $0x548] sm:$0xff]  ;;  %v3556_v52 = vld [vmem:[%s7178_s18 + $0x4d0] sm:$0xff]  ;;  %v2798_v46 = vrot.slane %v6464_v56, %v2765_v22 }
 0xef4   : > { %5194 = vmatprep.subr.bf16.mxu1 %v5193_v11  ;;  %5226 = vmatprep.subr.bf16.mxu0 %v5225_v58  ;;  %v5269_v11 = vpack.c.bf16 %v3581_v53, %v3580_v34  ;;  %v3551_v58 = vld [vmem:[%s7178_s18 + $0x4a8] sm:$0xff]  ;;  %v3570_v42 = vld [vmem:[%s7178_s18 + $0x540] sm:$0xff]  ;;  %v3557_v34 = vld [vmem:[%s7178_s18 + $0x4d8] sm:$0xff] }
 0xef5   : > { %v5241_v60 = vpack.c.bf16 %v3551_v58, %v3550_v13  ;;  %v3588_v53 = vld [vmem:[%s7178_s18 + $0x5d0] sm:$0xff]  ;;  %v3541_v6 = vld [vmem:[%s7178_s18 + $0x458] sm:$0xff]  ;;  %v3559_v12 = vld [vmem:[%s7178_s18 + $0x4e8] sm:$0xff] }
 0xef6   : > { %v3572_v7 = vld [vmem:[%s7178_s18 + $0x550] sm:$0xff]  ;;  %v3590_v13 = vld [vmem:[%s7178_s18 + $0x5e0] sm:$0xff]  ;;  %v3591_v58 = vld [vmem:[%s7178_s18 + $0x5e8] sm:$0xff] }
 0xef7   : > { %5196 = vmatpush3.bf16.msra.mxu1 %v5195_v26  ;;  %5228 = vmatpush3.bf16.msra.mxu0 %v5227_v27  ;;  %v3535_v26 = vld [vmem:[%s7178_s18 + $0x428] sm:$0xff]  ;;  %v3566_v27 = vld [vmem:[%s7178_s18 + $0x520] sm:$0xff] }
 0xef8   : > { %5198 = vmatprep.subr.bf16.mxu1 %v5197_v32  ;;  %5230 = vmatprep.subr.bf16.mxu0 %v5229_v36  ;;  %v3584_v32 = vld [vmem:[%s7178_s18 + $0x5b0] sm:$0xff]  ;;  %v3585_v36 = vld [vmem:[%s7178_s18 + $0x5b8] sm:$0xff]  ;;  %v5243_v37 = vpack.c.bf16 %v3535_v26, %v3534_v25  ;;  %v5275_v38 = vpack.c.bf16 %v3567_v29, %v3566_v27  ;;  %v5289_v25 = vpack.c.bf16 %v3591_v58, %v3590_v13  ;;  %v3575_v26 = vld [vmem:[%s7178_s18 + $0x568] sm:$0xff] }
 0xef9   : > { %v5277_v8 = vpack.c.bf16 %v3585_v36, %v3584_v32  ;;  %v3560_v27 = vld [vmem:[%s7178_s18 + $0x4f0] sm:$0xff] }
 0xefa   : > { %v3592_v29 = vld [vmem:[%s7178_s18 + $0x5f0] sm:$0xff] }
 0xefb   : > { %5200 = vmatpush3.bf16.msra.mxu1 %v5199_v41  ;;  %5232 = vmatpush3.bf16.msra.mxu0 %v5231_v44  ;;  %v3569_v41 = vld [vmem:[%s7178_s18 + $0x538] sm:$0xff]  ;;  %v3554_v44 = vld [vmem:[%s7178_s18 + $0x4c0] sm:$0xff] }
 0xefc   : > { %5234 = vmatprep.subr.bf16.mxu1 %v5233_v45  ;;  %5266 = vmatprep.subr.bf16.mxu0 %v5265_v47  ;;  %v3555_v45 = vld [vmem:[%s7178_s18 + $0x4c8] sm:$0xff]  ;;  %v5247_v47 = vpack.c.bf16 %v3537_v61, %v3536_v55  ;;  %v5279_v48 = vpack.c.bf16 %v3569_v41, %v3568_v40  ;;  %v5293_v55 = vpack.c.bf16 %v3593_v30, %v3592_v29  ;;  %v3577_v61 = vld [vmem:[%s7178_s18 + $0x578] sm:$0xff]  ;;  %v3610_v40 = vld [vmem:[%s7178_s18 + $0x680] sm:$0xff] }
 0xefd   : > { %v5249_v63 = vpack.c.bf16 %v3555_v45, %v3554_v44  ;;  %v2790_v41 = vrot.slane %v6464_v56, %v2757_v21  ;;  %v3642_v44 = vld [vmem:[%s7178_s18 + $0x780] sm:$0xff]  ;;  %v3643_v45 = vld [vmem:[%s7178_s18 + $0x788] sm:$0xff] }
 0xefe   : > { %3870 = vmatmul.mubr.f32.vlgmr.msra.gmra.mrb[32].mxu1 %v3390_v3  ;;  %3940 = vmatmul.mubr.f32.vlgmr.msra.gmra.mrb[30].mxu0 %v3392_v4  ;;  %v5251_v3 = vpack.c.bf16 %v3539_v50, %v3538_v49  ;;  %v5283_v4 = vpack.c.bf16 %v3571_v51, %v3570_v42  ;;  %v3594_v21 = vld [vmem:[%s7178_s18 + $0x600] sm:$0xff]  ;;  %v5329_v49 = vpack.c.bf16 %v3643_v45, %v3642_v44  ;;  %v3627_v56 = vld [vmem:[%s7178_s18 + $0x708] sm:$0xff]  ;;  %v3612_v50 = vld [vmem:[%s7178_s18 + $0x690] sm:$0xff] }
 0xeff   : > { %5236 = vmatpush3.bf16.msra.mxu1 %v5235_v2  ;;  %4009 = vmatprep.mubr.f32.mxu1 %v3395_v9  ;;  %v3589_v2 = vld [vmem:[%s7178_s18 + $0x5d8] sm:$0xff]  ;;  %v3313_v22 = vadd.f32 %v6675_v16, %v2790_v41  ;;  %v3602_v45 = vld [vmem:[%s7178_s18 + $0x640] sm:$0xff] }
 0xf00   : > { %5268 = vmatpush3.bf16.msra.mxu0 %v5267_v35  ;;  %4079 = vmatprep.mubr.f32.mxu0 %v3397_v18  ;;  %v5253_v35 = vpack.c.bf16 %v3557_v34, %v3556_v52  ;;  %v5285_v9 = vpack.c.bf16 %v3589_v2, %v3588_v53  ;;  %v5255_v18 = vpack.c.bf16 %v3541_v6, %v3540_v5  ;;  %v3613_v42 = vld [vmem:[%s7178_s18 + $0x698] sm:$0xff]  ;;  %v3644_v52 = vld [vmem:[%s7178_s18 + $0x790] sm:$0xff]  ;;  %v3394_v34 = vmax.f32 %v6612_v33, 0.0  ;;  %v3614_v5 = vld [vmem:[%s7178_s18 + $0x6a0] sm:$0xff] }
 0xf01   : > { %5238 = vmatprep.subr.bf16.mxu1 %v5237_v10  ;;  %5270 = vmatprep.subr.bf16.mxu0 %v5269_v11  ;;  %v3573_v10 = vld [vmem:[%s7178_s18 + $0x558] sm:$0xff]  ;;  %v3558_v11 = vld [vmem:[%s7178_s18 + $0x4e0] sm:$0xff]  ;;  %v5331_v53 = vpack.c.bf16 %v3627_v56, %v3626_v54  ;;  %v3596_v2 = vld [vmem:[%s7178_s18 + $0x610] sm:$0xff] }
 0xf02   : > { %v5287_v19 = vpack.c.bf16 %v3573_v10, %v3572_v7  ;;  %v5257_v57 = vpack.c.bf16 %v3559_v12, %v3558_v11  ;;  %v3645_v16 = vld [vmem:[%s7178_s18 + $0x798] sm:$0xff]  ;;  %v3615_v6 = vld [vmem:[%s7178_s18 + $0x6a8] sm:$0xff]  ;;  %v3399_v7 = vmax.f32 %v3313_v22, 0.0 }
 0xf03   : > { %5240 = vmatpush3.bf16.msra.mxu1 %v5239_v23  ;;  %v3542_v23 = vld [vmem:[%s7178_s18 + $0x460] sm:$0xff]  ;;  %v3629_v33 = vld [vmem:[%s7178_s18 + $0x718] sm:$0xff]  ;;  %v3647_v10 = vld [vmem:[%s7178_s18 + $0x7a8] sm:$0xff]  ;;  %v5305_v58 = vpack.c.bf16 %v3615_v6, %v3614_v5 }
 0xf04   : > { %5272 = vmatpush3.bf16.msra.mxu0 %v5271_v24  ;;  %5242 = vmatprep.subr.bf16.mxu1 %v5241_v60  ;;  %v3543_v24 = vld [vmem:[%s7178_s18 + $0x468] sm:$0xff]  ;;  %v3574_v60 = vld [vmem:[%s7178_s18 + $0x560] sm:$0xff]  ;;  %v3653_v54 = vld [vmem:[%s7178_s18 + $0x7d8] sm:$0xff] }
 0xf05   : > { %5274 = vmatprep.subr.bf16.mxu0 %v5273_v28  ;;  %v3561_v28 = vld [vmem:[%s7178_s18 + $0x4f8] sm:$0xff]  ;;  %v5259_v31 = vpack.c.bf16 %v3543_v24, %v3542_v23  ;;  %v5291_v32 = vpack.c.bf16 %v3575_v26, %v3574_v60  ;;  %v3631_v24 = vld [vmem:[%s7178_s18 + $0x728] sm:$0xff]  ;;  %v3616_v60 = vld [vmem:[%s7178_s18 + $0x6b0] sm:$0xff] }
 0xf06   : > { %v5261_v36 = vpack.c.bf16 %v3561_v28, %v3560_v27  ;;  %v3648_v26 = vld [vmem:[%s7178_s18 + $0x7b0] sm:$0xff]  ;;  %v3649_v27 = vld [vmem:[%s7178_s18 + $0x7b8] sm:$0xff]  ;;  %v3607_v5 = vld [vmem:[%s7178_s18 + $0x668] sm:$0xff] }
 0xf07   : > { %5244 = vmatpush3.bf16.msra.mxu1 %v5243_v37  ;;  %v3544_v37 = vld [vmem:[%s7178_s18 + $0x470] sm:$0xff]  ;;  %v3638_v6 = vld [vmem:[%s7178_s18 + $0x760] sm:$0xff] }
 0xf08   : > { %5276 = vmatpush3.bf16.msra.mxu0 %v5275_v38  ;;  %5246 = vmatprep.subr.bf16.mxu1 %v5245_v39  ;;  %v3545_v38 = vld [vmem:[%s7178_s18 + $0x478] sm:$0xff]  ;;  %v3576_v39 = vld [vmem:[%s7178_s18 + $0x570] sm:$0xff] }
 0xf09   : > { %5278 = vmatprep.subr.bf16.mxu0 %v5277_v8  ;;  %v3611_v8 = vld [vmem:[%s7178_s18 + $0x688] sm:$0xff]  ;;  %v5263_v62 = vpack.c.bf16 %v3545_v38, %v3544_v37  ;;  %v5341_v37 = vpack.c.bf16 %v3649_v27, %v3648_v26  ;;  %v3633_v38 = vld [vmem:[%s7178_s18 + $0x738] sm:$0xff]  ;;  %v3398_v27 = vmax.f32 %v6670_v14, 0.0 }
 0xf0b   : > { %5248 = vmatpush3.bf16.msra.mxu1 %v5247_v47  ;;  %v5295_v47 = vpack.c.bf16 %v3577_v61, %v3576_v39  ;;  %v3618_v39 = vld [vmem:[%s7178_s18 + $0x6c0] sm:$0xff] }
 0xf0c   : > { %5280 = vmatpush3.bf16.msra.mxu0 %v5279_v48  ;;  %5250 = vmatprep.subr.bf16.mxu1 %v5249_v63  ;;  %v5297_v48 = vpack.c.bf16 %v3611_v8, %v3610_v40  ;;  %v3595_v63 = vld [vmem:[%s7178_s18 + $0x608] sm:$0xff]  ;;  %v3650_v61 = vld [vmem:[%s7178_s18 + $0x7c0] sm:$0xff] }
 0xf0d   : > { %5282 = vmatprep.subr.bf16.mxu0 %v5281_v43  ;;  %v3384_v43 = vadd.f32 %v6677_v17, %v2798_v46  ;;  %v5299_v51 = vpack.c.bf16 %v3595_v63, %v3594_v21  ;;  %v3597_v17 = vld [vmem:[%s7178_s18 + $0x618] sm:$0xff]  ;;  %v3651_v40 = vld [vmem:[%s7178_s18 + $0x7c8] sm:$0xff]  ;;  %v3620_v21 = vld [vmem:[%s7178_s18 + $0x6d0] sm:$0xff] }
 0xf0e   : > { %v5303_v12 = vpack.c.bf16 %v3597_v17, %v3596_v2  ;;  %v3603_v46 = vld [vmem:[%s7178_s18 + $0x648] sm:$0xff]  ;;  %v3621_v63 = vld [vmem:[%s7178_s18 + $0x6d8] sm:$0xff]  ;;  %v3654_v2 = vld [vmem:[%s7178_s18 + $0x7e0] sm:$0xff] }
 0xf0f   : > { %5252 = vmatpush3.bf16.msra.mxu1 %v5251_v3  ;;  %v3628_v3 = vld [vmem:[%s7178_s18 + $0x710] sm:$0xff]  ;;  %v3401_v11 = vmax.f32 %v3384_v43, 0.0  ;;  %v5315_v56 = vpack.c.bf16 %v3603_v46, %v3602_v45  ;;  %v3605_v43 = vld [vmem:[%s7178_s18 + $0x658] sm:$0xff]  ;;  %v3655_v17 = vld [vmem:[%s7178_s18 + $0x7e8] sm:$0xff] }
 0xf10   : > { %5284 = vmatpush3.bf16.msra.mxu0 %v5283_v4  ;;  %5254 = vmatprep.subr.bf16.mxu1 %v5253_v35  ;;  %v3396_v4 = vmax.f32 %v6614_v59, 0.0  ;;  %v5301_v35 = vpack.c.bf16 %v3613_v42, %v3612_v50  ;;  %v3646_v59 = vld [vmem:[%s7178_s18 + $0x7a0] sm:$0xff]  ;;  %v5335_v13 = vpack.c.bf16 %v3629_v33, %v3628_v3  ;;  %v5317_v50 = vpack.c.bf16 %v3621_v63, %v3620_v21  ;;  %v3604_v42 = vld [vmem:[%s7178_s18 + $0x650] sm:$0xff] }
 0xf11   : > { %5286 = vmatprep.subr.bf16.mxu0 %v5285_v9  ;;  %v5333_v9 = vpack.c.bf16 %v3645_v16, %v3644_v52  ;;  %v5337_v23 = vpack.c.bf16 %v3647_v10, %v3646_v59  ;;  %v3637_v16 = vld [vmem:[%s7178_s18 + $0x758] sm:$0xff]  ;;  %v5319_v3 = vpack.c.bf16 %v3605_v43, %v3604_v42  ;;  %v3606_v33 = vld [vmem:[%s7178_s18 + $0x660] sm:$0xff]  ;;  %v3624_v59 = vld [vmem:[%s7178_s18 + $0x6f0] sm:$0xff] }
 0xf12   : > { %v3625_v10 = vld [vmem:[%s7178_s18 + $0x6f8] sm:$0xff] }
 0xf13   : > { %5256 = vmatpush3.bf16.msra.mxu1 %v5255_v18  ;;  %v3598_v18 = vld [vmem:[%s7178_s18 + $0x620] sm:$0xff] }
 0xf14   : > { %5288 = vmatpush3.bf16.msra.mxu0 %v5287_v19  ;;  %5258 = vmatprep.subr.bf16.mxu1 %v5257_v57  ;;  %v3599_v19 = vld [vmem:[%s7178_s18 + $0x628] sm:$0xff]  ;;  %v3630_v57 = vld [vmem:[%s7178_s18 + $0x720] sm:$0xff] }
 0xf15   : > { %5290 = vmatprep.subr.bf16.mxu0 %v5289_v25  ;;  %v3617_v25 = vld [vmem:[%s7178_s18 + $0x6b8] sm:$0xff]  ;;  %v5307_v28 = vpack.c.bf16 %v3599_v19, %v3598_v18  ;;  %v5339_v29 = vpack.c.bf16 %v3631_v24, %v3630_v57  ;;  %v5325_v18 = vpack.c.bf16 %v3625_v10, %v3624_v59  ;;  %v3608_v19 = vld [vmem:[%s7178_s18 + $0x670] sm:$0xff] }
 0xf16   : > { %v5309_v30 = vpack.c.bf16 %v3617_v25, %v3616_v60  ;;  %v3609_v57 = vld [vmem:[%s7178_s18 + $0x678] sm:$0xff]  ;;  %v3640_v24 = vld [vmem:[%s7178_s18 + $0x770] sm:$0xff] }
 0xf17   : > { %5260 = vmatpush3.bf16.msra.mxu1 %v5259_v31  ;;  %v3600_v31 = vld [vmem:[%s7178_s18 + $0x630] sm:$0xff]  ;;  %v3641_v60 = vld [vmem:[%s7178_s18 + $0x778] sm:$0xff]  ;;  %v5327_v25 = vpack.c.bf16 %v3609_v57, %v3608_v19  ;;  %v4284_v57 = vld [vmem:[%s7184_s24] sm:$0xff] }
 0xf18   : > { %5292 = vmatpush3.bf16.msra.mxu0 %v5291_v32  ;;  %5262 = vmatprep.subr.bf16.mxu1 %v5261_v36  ;;  %v3601_v32 = vld [vmem:[%s7178_s18 + $0x638] sm:$0xff]  ;;  %v3632_v36 = vld [vmem:[%s7178_s18 + $0x730] sm:$0xff]  ;;  %v5359_v26 = vpack.c.bf16 %v3641_v60, %v3640_v24 }
 0xf19   : > { %5294 = vmatprep.subr.bf16.mxu0 %v5293_v55  ;;  %v3619_v55 = vld [vmem:[%s7178_s18 + $0x6c8] sm:$0xff]  ;;  %v5311_v8 = vpack.c.bf16 %v3601_v32, %v3600_v31  ;;  %v5343_v41 = vpack.c.bf16 %v3633_v38, %v3632_v36  ;;  %v4514_v31 = vld [vmem:[%s7179_s19] ss:$0 sm:$0xff]  ;;  %v4286_v60 = vld [vmem:[%s7184_s24 + $0x10] sm:$0xff] }
 0xf1a   : > { %v5313_v44 = vpack.c.bf16 %v3619_v55, %v3618_v39 }
 0xf1b   : > { %5264 = vmatpush3.bf16.msra.mxu1 %v5263_v62  ;;  %v3634_v62 = vld [vmem:[%s7178_s18 + $0x740] sm:$0xff] }
 0xf1c   : > { %5296 = vmatpush3.bf16.msra.mxu0 %v5295_v47  ;;  %5298 = vmatprep.subr.bf16.mxu1 %v5297_v48  ;;  %v5345_v47 = vpack.c.bf16 %v3651_v40, %v3650_v61  ;;  %v3635_v48 = vld [vmem:[%s7178_s18 + $0x748] sm:$0xff] }
 0xf1d   : > { %5330 = vmatprep.subr.bf16.mxu0 %v5329_v49  ;;  %v3652_v49 = vld [vmem:[%s7178_s18 + $0x7d0] sm:$0xff]  ;;  %v5347_v22 = vpack.c.bf16 %v3635_v48, %v3634_v62 }
 0xf1e   : > { %4010 = vmatmul.mubr.f32.vlgmr.msra.gmra.mrb[34].mxu1 %v3394_v34  ;;  %v5349_v52 = vpack.c.bf16 %v3653_v54, %v3652_v49  ;;  %v3622_v34 = vld [vmem:[%s7178_s18 + $0x6e0] sm:$0xff] }
 0xf1f   : > { %4080 = vmatmul.mubr.f32.vlgmr.msra.gmra.mrb[32].mxu0 %v3396_v4  ;;  %5300 = vmatpush3.bf16.msra.mxu1 %v5299_v51  ;;  %v3636_v51 = vld [vmem:[%s7178_s18 + $0x750] sm:$0xff] }
 0xf20   : > { %4149 = vmatprep.mubr.f32.mxu1 %v3399_v7  ;;  %5332 = vmatpush3.bf16.msra.mxu0 %v5331_v53  ;;  %v3623_v53 = vld [vmem:[%s7178_s18 + $0x6e8] sm:$0xff]  ;;  %v5351_v4 = vpack.c.bf16 %v3637_v16, %v3636_v51  ;;  %v5353_v7 = vpack.c.bf16 %v3655_v17, %v3654_v2 }
 0xf21   : > { %4219 = vmatprep.mubr.f32.mxu0 %v3401_v11  ;;  %5302 = vmatprep.subr.bf16.mxu1 %v5301_v35  ;;  %v5321_v35 = vpack.c.bf16 %v3623_v53, %v3622_v34  ;;  %v3656_v11 = vld [vmem:[%s7178_s18 + $0x7f0] sm:$0xff] }
 0xf22   : > { %5334 = vmatprep.subr.bf16.mxu0 %v5333_v9  ;;  %v3639_v9 = vld [vmem:[%s7178_s18 + $0x768] sm:$0xff] }
 0xf23   : > { %5304 = vmatpush3.bf16.msra.mxu1 %v5303_v12  ;;  %v3657_v12 = vld [vmem:[%s7178_s18 + $0x7f8] sm:$0xff] }
 0xf24   : > { %5336 = vmatpush3.bf16.msra.mxu0 %v5335_v13  ;;  %5306 = vmatprep.subr.bf16.mxu1 %v5305_v58  ;;  %v5323_v13 = vpack.c.bf16 %v3607_v5, %v3606_v33  ;;  %v5355_v58 = vpack.c.bf16 %v3639_v9, %v3638_v6  ;;  %v4516_v9 = vld [vmem:[%s7181_s21] ss:$0 sm:$0xff] }
 0xf25   : > { %5338 = vmatprep.subr.bf16.mxu0 %v5337_v23  ;;  %v5357_v23 = vpack.c.bf16 %v3657_v12, %v3656_v11 }
 0xf27   : > { %5308 = vmatpush3.bf16.msra.mxu1 %v5307_v28  ;;  %v3400_v28 = vmax.f32 %v6673_v15, 0.0 }
 0xf28   : > { %5340 = vmatpush3.bf16.msra.mxu0 %v5339_v29  ;;  %5310 = vmatprep.subr.bf16.mxu1 %v5309_v30 }
 0xf29   : > { %5342 = vmatprep.subr.bf16.mxu0 %v5341_v37 }
 0xf2b   : > { %5312 = vmatpush3.bf16.msra.mxu1 %v5311_v8 }
 0xf2c   : > { %5344 = vmatpush3.bf16.msra.mxu0 %v5343_v41  ;;  %5314 = vmatprep.subr.bf16.mxu1 %v5313_v44 }
 0xf2d   : > { %5346 = vmatprep.subr.bf16.mxu0 %v5345_v47 }
 0xf2f   : > { %5316 = vmatpush3.bf16.msra.mxu1 %v5315_v56 }
 0xf30   : > { %5348 = vmatpush3.bf16.msra.mxu0 %v5347_v22  ;;  %5318 = vmatprep.subr.bf16.mxu1 %v5317_v50 }
 0xf31   : > { %5350 = vmatprep.subr.bf16.mxu0 %v5349_v52 }
 0xf33   : > { %5320 = vmatpush3.bf16.msra.mxu1 %v5319_v3 }
 0xf34   : > { %5352 = vmatpush3.bf16.msra.mxu0 %v5351_v4  ;;  %5322 = vmatprep.subr.bf16.mxu1 %v5321_v35 }
 0xf35   : > { %5354 = vmatprep.subr.bf16.mxu0 %v5353_v7  ;;  %v4515_v7 = vld [vmem:[%s7180_s20] ss:$0 sm:$0xff] }
 0xf37   : > { %5324 = vmatpush3.bf16.msra.mxu1 %v5323_v13 }
 0xf38   : > { %5356 = vmatpush3.bf16.msra.mxu0 %v5355_v58  ;;  %5326 = vmatprep.subr.bf16.mxu1 %v5325_v18 }
 0xf39   : > { %5358 = vmatprep.subr.bf16.mxu0 %v5357_v23  ;;  %v4285_v23 = vld [vmem:[%s7184_s24 + $0x8] sm:$0xff] }
 0xf3a   : > { %v5362_v24 = vpack.c.bf16 %v4285_v23, %v4284_v57 }
 0xf3b   : > { %5328 = vmatpush3.bf16.msra.mxu1 %v5327_v25  ;;  %v4287_v25 = vld [vmem:[%s7184_s24 + $0x18] sm:$0xff] }
 0xf3c   : > { %5360 = vmatpush3.bf16.msra.mxu0 %v5359_v26  ;;  %5361 = vmatprep.subr.bf16.mxu1 %v5527_v0  ;;  %v5365_v26 = vpack.c.bf16 %v4287_v25, %v4286_v60 }
 0xf3e   : > { %4150 = vmatmul.mubr.f32.vlgmr.msra.gmra.mrb[36].mxu1 %v3398_v27 }
 0xf3f   : > { %4220 = vmatmul.mubr.f32.vlgmr.msra.gmra.mrb[34].mxu0 %v3400_v28  ;;  %5008 = vmatprep.mubr.msk.f32.mxu1 %vm5528_vm0, %v5529_v1 }
 0xf40   : > { %5363 = vmatpush3.bf16.msra.mxu1 %v5362_v24 }
 0xf41   : > { %5364 = vmatprep.subr.bf16.mxu1 %v5527_v0 }
 0xf44   : > { %5366 = vmatpush3.bf16.msra.mxu1 %v5365_v26 }
 0xfb1   : > { %v4612_v29 = vpop.f32.mrb[30].mxu1  ;;  %v4647_v30 = vpop.f32.mrb[28].mxu0 }
 0xfb2   : > { %v4613_v32 = vpop.f32.mrb[31].mxu1  ;;  %v4648_v36 = vpop.f32.mrb[29].mxu0 }
 0xfb3   : > { %v4614_v37 = vadd.f32 %v4613_v32, %v4612_v29  ;;  %v4649_v14 = vadd.f32 %v4648_v36, %v4647_v30  ;;  %v4518_v36 = vld [vmem:[#allocation4] ss:$0 sm:$0xff] }
 0xfb5   : > { %v3732_v38 = vadd.f32 %v4614_v37, %v4514_v31  ;;  %v4517_v31 = vld [vmem:[#allocation2] ss:$0 sm:$0xff] }
 0xfb7   : > { %v3802_v39 = vadd.f32 %v4649_v14, %v3732_v38  ;;  %v4519_v14 = vld [vmem:[%s7185_s25] ss:$0 sm:$0xff] }
 0xfd1   : > { %v4682_v55 = vpop.f32.mrb[32].mxu1  ;;  %v4717_v61 = vpop.f32.mrb[30].mxu0 }
 0xfd2   : > { %v4683_v15 = vpop.f32.mrb[33].mxu1  ;;  %v4718_v40 = vpop.f32.mrb[31].mxu0 }
 0xfd3   : > { %v4684_v8 = vadd.f32 %v4683_v15, %v4682_v55  ;;  %v4719_v41 = vadd.f32 %v4718_v40, %v4717_v61 }
 0xfd5   : > { %v3872_v44 = vadd.f32 %v4684_v8, %v3802_v39 }
 0xfd7   : > { %v3942_v1 = vadd.f32 %v4719_v41, %v3872_v44 }
 0xff1   : > { %v4752_v45 = vpop.f32.mrb[34].mxu1 }
 0xff2   : > { %v4787_v46 = vpop.f32.mrb[32].mxu0  ;;  %v4753_v62 = vpop.f32.mrb[35].mxu1 }
 0xff3   : > { %v4754_v47 = vadd.f32 %v4753_v62, %v4752_v45  ;;  %v4788_v48 = vpop.f32.mrb[33].mxu0 }
 0xff4   : > { %v4789_v21 = vadd.f32 %v4788_v48, %v4787_v46 }
 0xff5   : > { %v4012_v63 = vadd.f32 %v4754_v47, %v3942_v1 }
 0xff7   : > { %v4082_v49 = vadd.f32 %v4789_v21, %v4012_v63 }
0x1011   : > { %v4822_v54 = vpop.f32.mrb[36].mxu1 }
0x1012   : > { %v4857_v56 = vpop.f32.mrb[34].mxu0  ;;  %v4823_v22 = vpop.f32.mrb[37].mxu1 }
0x1013   : > { %v4824_v50 = vadd.f32 %v4823_v22, %v4822_v54  ;;  %v4858_v42 = vpop.f32.mrb[35].mxu0 }
0x1014   : > { %v4859_v43 = vadd.f32 %v4858_v42, %v4857_v56 }
0x1015   : > { %v4152_v51 = vadd.f32 %v4824_v50, %v4082_v49 }
0x1017   : > { %v4222_v52 = vadd.f32 %v4859_v43, %v4152_v51 }
0x1019   : > { %v4225_v16 = vadd.f32 %v4222_v52, %v6128_v20 }
0x101b   : > { %v4228_v34 = vsel %vm843_vm1, %v4225_v16, 0.0 }
0x101c   : > { %4229 = vadd.xlane.f32.xlu0 %v4228_v34 }
0x10a9   : > { %v4230_v53 = vpop.xlane.xlu0 %4229 }
0x10aa   : > { %v4231_v2 = vmul.f32 0.03125, %v4230_v53 }
0x10ac   : > { %v4232_v17 = vsub.f32 %v4225_v16, %v4231_v2 }
0x10ae   : > { %v4233_v3 = vmul.f32 %v4232_v17, %v4232_v17 }
0x10b0   : > { %v4234_v4 = vsel %vm843_vm1, %v4233_v3, 0.0 }
0x10b1   : > { %4235 = vadd.xlane.f32.xlu1 %v4234_v4 }
0x113e   : > { %v4236_v35 = vpop.xlane.xlu1 %4235 }
0x113f   : > { %v4237_v33 = vmul.f32 0.03125, %v4236_v35 }
0x1141   : > { %v4238_v5 = vadd.f32 1e-05, %v4237_v33 }
0x1143   : > { %5449 = vrsqrt.f32 %v4238_v5 }
0x114d   : > { %v5450_v6 = vpop.eup %5449 }
0x114e   : > { %v4240_v20 = vmul.f32 %v5450_v6, %v4232_v17 }
0x1150   : > { %v4247_v59 = vmul.f32 %v4515_v7, %v4240_v20 }
0x1152   : > { %v4254_v10 = vadd.f32 %v4516_v9, %v4247_v59 }
0x1154   : > { %v4257_v11 = vsel %vm843_vm1, %v4254_v10, 0.0 }
0x1155   : > { %4258 = vadd.xlane.f32.xlu0 %v4257_v11 }
0x11e2   : > { %v4259_v12 = vpop.xlane.xlu0 %4258 }
0x11e3   : > { %v4260_v13 = vmul.f32 0.03125, %v4259_v12 }
0x11e5   : > { %v4261_v58 = vsub.f32 %v4254_v10, %v4260_v13 }
0x11e7   : > { %v4262_v18 = vmul.f32 %v4261_v58, %v4261_v58 }
0x11e9   : > { %v4263_v19 = vsel %vm843_vm1, %v4262_v18, 0.0 }
0x11ea   : > { %4264 = vadd.xlane.f32.xlu1 %v4263_v19 }
0x1277   : > { %v4265_v27 = vpop.xlane.xlu1 %4264 }
0x1278   : > { %v4266_v28 = vmul.f32 0.03125, %v4265_v27 }
0x127a   : > { %v4267_v29 = vadd.f32 1e-05, %v4266_v28 }
0x127c   : > { %5451 = vrsqrt.f32 %v4267_v29 }
0x1286   : > { %v5452_v30 = vpop.eup %5451 }
0x1287   : > { %v4269_v32 = vmul.f32 %v5452_v30, %v4261_v58 }
0x1289   : > { %v4276_v0 = vmul.f32 %v4517_v31, %v4269_v32 }
0x128b   : > { %v4283_v37 = vadd.f32 %v4518_v36, %v4276_v0 }
0x128d   : > { %5009 = vmatmul.mubr.msk.f32.vlgmr.msra.gmra.mrb[38].mxu1 %vm843_vm1, %v4283_v37 }
0x1360   : > { %v4364_v38 = vpop.f32.mrb[38].mxu1 }
0x1361   : > { %v4365_v39 = vadd.f32 %v4519_v14, %v4364_v38  ;;  %v5010_v55 = vpop.f32.mrb[39].mxu1 }
0x1363   : > { %4368 = vst [vmem:[%s829_s0] sm:$0xff] %v4365_v39 }
0x1364 PF: > { %s38_s27 = sadd.s32 1, %s5523_s27  }
0x1365   : > { %p35_p5 = scmp.ge.s32.totalorder %s38_s27, 4  }
0x1367   :  { %37 = sbr.rel (!%p35_p5) target bundleno = 14 (0xe), region = 166 }
0x136e   :  { %4388 = vsyncpa [#allocation3], 1 }
0x136f   :  { %4390 = vsyncpa [#allocation3 + $0x1], 1 }
0x1370   :  { %4391 = vsyncpa [#allocation5], 1 }

</bundles_post_ra>
